<compile_context>
chip_gen: v7x
topology: tpu7x:2x2x1
jax: 0.10.0
libtpu: 0.0.40
codegen_flags: <defaults>
</compile_context>

<pallas_src>
import functools

import jax
import jax.numpy as jnp
from jax.experimental import pallas as pl
from jax.experimental.pallas import tpu as pltpu


# ---------------------------------------------------------------------------
# One-time weight re-layout (outside the kernel)
# ---------------------------------------------------------------------------
def prepare_params(p):
    f32 = jnp.float32

    # layer 0: Conv2d(3,16,3,s2,p1) consumed as a 2x2-cell window over the
    # space-to-depth(2) input; patch columns are (dh, dw, qh, qw, ic).
    w0 = p["w0"].astype(f32)                       # [oc=16, ic=3, ky, kx]
    w0s = jnp.zeros((2, 2, 2, 2, 3, 16), f32)      # [dh, dw, qh, qw, ic, oc]
    for ky in range(3):
        for kx in range(3):
            dh, qh = divmod(ky, 2)
            dw, qw = divmod(kx, 2)
            w0s = w0s.at[dh, dw, qh, qw, :, :].set(w0[:, :, ky, kx].T)
    w0s = w0s.reshape(48, 16)

    # layer 1: Conv2d(16,32,3,s2,p1), patch columns (ky, kx, ic).
    w1m = p["w1"].astype(f32).transpose(2, 3, 1, 0).reshape(144, 32)

    # layer 2: Conv2d(32,64,7) on a 7x7 map == dense matmul, K = (i, j, ic).
    w2m = p["w2"].astype(f32).transpose(2, 3, 1, 0).reshape(49 * 32, 64)

    # layer 3: ConvTranspose2d(64,32,7) on a 1x1 map == dense matmul,
    # output columns (i, j, oc).
    w3m = p["w3"].astype(f32).transpose(0, 2, 3, 1).reshape(64, 49 * 32)

    # layers 4/5: stride-2 ConvTranspose2d(k=3,p=1,op=1) via sub-pixel
    # decomposition: rows (dy, dx, ic), cols (a, b, oc), out[2u+a, 2v+b].
    def subpixel(w):                               # w: [ic, oc, 3, 3]
        ic, oc = w.shape[0], w.shape[1]
        m = jnp.zeros((2, 2, ic, 2, 2, oc), f32)
        for a in range(2):
            for b in range(2):
                for dy in range(2):
                    for dx in range(2):
                        ky = a + 1 - 2 * dy
                        kx = b + 1 - 2 * dx
                        if 0 <= ky < 3 and 0 <= kx < 3:
                            m = m.at[dy, dx, :, a, b, :].set(w[:, :, ky, kx])
        return m.reshape(4 * ic, 4 * oc)

    w4s = subpixel(p["w4"].astype(f32))            # [128, 64]
    w5s = subpixel(p["w5"].astype(f32))            # [64, 12]

    return dict(
        w0=w0s, b0=p["b0"].reshape(1, 16),
        w1=w1m, b1=p["b1"].reshape(1, 32),
        w2=w2m, b2=p["b2"].reshape(1, 64),
        w3=w3m, b3=jnp.tile(p["b3"], 49).reshape(1, 49 * 32),
        w4=w4s, b4=jnp.tile(p["b4"], 4).reshape(1, 64),
        w5=w5s, b5=jnp.tile(p["b5"], 4).reshape(1, 12),
    )


# ---------------------------------------------------------------------------
# Single fused Pallas kernel: the whole autoencoder forward pass
# ---------------------------------------------------------------------------
def _fused_kernel(x_ref, w0_ref, b0_ref, w1_ref, b1_ref, w2_ref, b2_ref,
                  w3_ref, b3_ref, w4_ref, b4_ref, w5_ref, b5_ref,
                  o_ref, h0p_ref, h1f_ref, h3p_ref, s4p_ref, *, n):
    f32 = jnp.float32

    def mm(a, w_r, b_r):
        return jnp.dot(a, w_r[...], preferred_element_type=f32) + b_r[...]

    # ---- layer 0: Conv2d(3,16,3,s2,p1) + ReLU ------------------------------
    # x_ref is the space-to-depth(2) padded input: [n, 15, 17, 12]
    taps0 = [x_ref[:, dh:dh + 14, dw:dw + 16, :]
             for dh in range(2) for dw in range(2)]
    p0 = jnp.concatenate(taps0, axis=3)                    # [n, 14, 16, 48]
    h0 = jnp.maximum(mm(p0.reshape(n * 14 * 16, 48), w0_ref, b0_ref), 0.0)
    h0 = h0.reshape(n, 14, 16, 16)

    # zero-padded copy for layer 1 (conv pad = 1, plus alignment columns)
    h0p_ref[...] = jnp.zeros(h0p_ref.shape, f32)
    h0p_ref[:, 1:15, 1:15, :] = h0[:, :, 0:14, :]

    # ---- layer 1: Conv2d(16,32,3,s2,p1) + ReLU -----------------------------
    # evaluated at stride 1, then subsampled to even rows/cols
    taps1 = [h0p_ref[:, ky:ky + 14, kx:kx + 16, :]
             for ky in range(3) for kx in range(3)]
    p1 = jnp.concatenate(taps1, axis=3)                    # [n, 14, 16, 144]
    p1 = jnp.concatenate([p1[:, 2 * i:2 * i + 1] for i in range(7)], axis=1)
    p1 = jnp.concatenate([p1[:, :, 2 * j:2 * j + 1] for j in range(7)]
                         + [p1[:, :, 14:15]], axis=2)      # [n, 7, 8, 144]
    h1 = jnp.maximum(mm(p1.reshape(n * 56, 144), w1_ref, b1_ref), 0.0)
    h1 = h1.reshape(n, 7, 8, 32)

    # flatten (i, j, c) per sample for the dense bottleneck
    for i in range(7):
        for j in range(7):
            k = i * 7 + j
            h1f_ref[:, k * 32:(k + 1) * 32] = h1[:, i, j, :]

    # ---- layer 2: Conv2d(32,64,7) == dense matmul (no activation) ----------
    z = mm(h1f_ref[...], w2_ref, b2_ref)                   # [n, 64]

    # ---- layer 3: ConvTranspose2d(64,32,7) == dense matmul + ReLU ----------
    t3 = jnp.maximum(mm(z, w3_ref, b3_ref), 0.0)           # [n, 1568] (i,j,c)

    # un-flatten into a zero-padded NHWC scratch for layer 4
    h3p_ref[...] = jnp.zeros(h3p_ref.shape, f32)
    for i in range(7):
        for j in range(7):
            k = i * 7 + j
            h3p_ref[:, i, j, :] = t3[:, k * 32:(k + 1) * 32]

    # ---- layer 4: ConvTranspose2d(32,16,3,s2,p1,op1) + ReLU ----------------
    # sub-pixel form: rows (n, u, v), output columns (a, b, oc)
    taps4 = [h3p_ref[:, dy:dy + 7, dx:dx + 8, :]
             for dy in range(2) for dx in range(2)]
    p4 = jnp.concatenate(taps4, axis=3)                    # [n, 7, 8, 128]
    s4 = jnp.maximum(mm(p4.reshape(n * 56, 128), w4_ref, b4_ref), 0.0)
    s4 = s4.reshape(n, 7, 8, 64)

    s4p_ref[...] = jnp.zeros(s4p_ref.shape, f32)
    s4p_ref[:, 0:7, 0:7, :] = s4[:, :, 0:7, :]

    # ---- layer 5: ConvTranspose2d(16,3,3,s2,p1,op1) + Sigmoid --------------
    # parity-composed: 4 output classes (sig, tau), each a sub-pixel matmul
    for ci, (sig, tau) in enumerate(((0, 0), (0, 1), (1, 0), (1, 1))):
        taps5 = []
        for dy in range(2):
            for dx in range(2):
                su, aa = divmod(sig + dy, 2)
                sv, bb = divmod(tau + dx, 2)
                off = (aa * 2 + bb) * 16
                taps5.append(s4p_ref[:, su:su + 7, sv:sv + 8, off:off + 16])
        p5 = jnp.concatenate(taps5, axis=3)                # [n, 7, 8, 64]
        acc = mm(p5.reshape(n * 56, 64), w5_ref, b5_ref)
        out = pl.reciprocal(1.0 + jnp.exp(-acc), approx=False)  # exact sigmoid
        o_ref[ci * (n * 56):(ci + 1) * (n * 56), :] = out


# ---------------------------------------------------------------------------
# Wrapper: layout glue + the single pallas_call
# ---------------------------------------------------------------------------
def autoencoder_forward(prep, x):
    """x: NCHW [n, 3, 28, 28] float32 -> NCHW [n, 3, 28, 28]."""
    n = x.shape[0]
    f32 = jnp.float32
    x = x.astype(f32)

    # NCHW -> NHWC, conv pad=1, space-to-depth(2)  (tiny one-time XLA glue)
    xh = jnp.transpose(x, (0, 2, 3, 1))
    xh = jnp.pad(xh, ((0, 0), (1, 1), (1, 1), (0, 0)))               # [n,30,30,3]
    xc = xh.reshape(n, 15, 2, 15, 2, 3).transpose(0, 1, 3, 2, 4, 5)
    xc = xc.reshape(n, 15, 15, 12)
    xc = jnp.pad(xc, ((0, 0), (0, 0), (0, 2), (0, 0)))               # [n,15,17,12]

    args = (xc, prep["w0"], prep["b0"], prep["w1"], prep["b1"],
            prep["w2"], prep["b2"], prep["w3"], prep["b3"],
            prep["w4"], prep["b4"], prep["w5"], prep["b5"])

    vmem = pl.BlockSpec(memory_space=pltpu.MemorySpace.VMEM)
    out = pl.pallas_call(
        functools.partial(_fused_kernel, n=n),
        out_shape=jax.ShapeDtypeStruct((4 * n * 56, 12), f32),
        in_specs=[vmem] * len(args),
        out_specs=vmem,
        scratch_shapes=[
            pltpu.VMEM((n, 16, 18, 16), f32),   # padded layer-0 output
            pltpu.VMEM((n, 49 * 32), f32),      # flattened layer-1 output
            pltpu.VMEM((n, 8, 9, 32), f32),     # padded layer-3 output
            pltpu.VMEM((n, 8, 9, 64), f32),     # padded layer-4 sub-pixel out
        ],
        compiler_params=pltpu.CompilerParams(
            vmem_limit_bytes=32 * 1024 * 1024),
    )(*args)

    # un-scramble the doubly sub-pixel output:
    # rows = (sig, tau, n, s, t_pad8), cols = (alpha, beta, oc);
    # final pixel (4s + 2*sig + alpha, 4t + 2*tau + beta).
    o = out.reshape(2, 2, n, 7, 8, 2, 2, 3)[:, :, :, :, :7]
    o = o.transpose(2, 3, 0, 5, 4, 1, 6, 7).reshape(n, 28, 28, 3)
    return jnp.transpose(o, (0, 3, 1, 2))


# ---------------------------------------------------------------------------
# Parameters (PyTorch default-init style) and a plain-JAX reference
# ---------------------------------------------------------------------------
def init_params(key):
    def u(key, shape, fan_in):
        bound = 1.0 / jnp.sqrt(fan_in)
        return jax.random.uniform(key, shape, jnp.float32, -bound, bound)

    ks = jax.random.split(key, 12)
    p = {}
    # encoder (Conv2d weight [oc, ic, kh, kw], fan_in = ic*kh*kw)
    p["w0"] = u(ks[0], (16, 3, 3, 3), 3 * 9);    p["b0"] = u(ks[1], (16,), 3 * 9)
    p["w1"] = u(ks[2], (32, 16, 3, 3), 16 * 9);  p["b1"] = u(ks[3], (32,), 16 * 9)
    p["w2"] = u(ks[4], (64, 32, 7, 7), 32 * 49); p["b2"] = u(ks[5], (64,), 32 * 49)
    # decoder (ConvTranspose2d weight [ic, oc, kh, kw], fan_in = oc*kh*kw)
    p["w3"] = u(ks[6], (64, 32, 7, 7), 32 * 49); p["b3"] = u(ks[7], (32,), 32 * 49)
    p["w4"] = u(ks[8], (32, 16, 3, 3), 16 * 9);  p["b4"] = u(ks[9], (16,), 16 * 9)
    p["w5"] = u(ks[10], (16, 3, 3, 3), 3 * 9);   p["b5"] = u(ks[11], (3,), 3 * 9)
    return p


def reference_forward(p, x):
    dn = ("NCHW", "OIHW", "NCHW")
    hp = jax.lax.Precision.HIGHEST

    def conv(x, w, b, stride, pad):
        y = jax.lax.conv_general_dilated(
            x, w, window_strides=(stride, stride),
            padding=((pad, pad), (pad, pad)),
            dimension_numbers=dn, precision=hp)
        return y + b.reshape(1, -1, 1, 1)

    def convT(x, w, b, stride, pad, opad):
        wc = jnp.flip(w, (2, 3)).transpose(1, 0, 2, 3)
        k = w.shape[2]
        lo, hi = k - 1 - pad, k - 1 - pad + opad
        y = jax.lax.conv_general_dilated(
            x, wc, window_strides=(1, 1), padding=((lo, hi), (lo, hi)),
            lhs_dilation=(stride, stride), dimension_numbers=dn, precision=hp)
        return y + b.reshape(1, -1, 1, 1)

    h = jax.nn.relu(conv(x, p["w0"], p["b0"], 2, 1))
    h = jax.nn.relu(conv(h, p["w1"], p["b1"], 2, 1))
    h = conv(h, p["w2"], p["b2"], 1, 0)
    h = jax.nn.relu(convT(h, p["w3"], p["b3"], 1, 0, 0))
    h = jax.nn.relu(convT(h, p["w4"], p["b4"], 2, 1, 1))
    return jax.nn.sigmoid(convT(h, p["w5"], p["b5"], 2, 1, 1))


if __name__ == "__main__":
    key = jax.random.PRNGKey(0)
    pkey, xkey = jax.random.split(key)
    params = init_params(pkey)
    prep = prepare_params(params)     # one-time weight re-layout
    # 28x28 is the smallest spatial size this architecture supports
    # (28 -> 14 -> 7 -> 1 -> 7 -> 14 -> 28); channels fixed at 3.
    x = jax.random.uniform(xkey, (2, 3, 28, 28), jnp.float32)

    fwd = jax.jit(autoencoder_forward)
    y = fwd(prep, x)
    jax.block_until_ready(y)

    assert y.shape == x.shape, y.shape
    assert bool(jnp.all(jnp.isfinite(y)))
    assert bool(jnp.all((y >= 0.0) & (y <= 1.0)))   # exact sigmoid range

    # numerical check against a plain-JAX reference of the PyTorch module
    y_ref = jax.jit(reference_forward)(params, x)
    err = float(jnp.max(jnp.abs(y - y_ref)))
    assert err < 3e-2, err

    print("KERNEL_OK")
</pallas_src>

<mosaic_0001>
module attributes {stable_mosaic.version = 11 : i64} {
  func.func @_fused_kernel(%arg0: memref<2x15x17x12xf32, #tpu.memory_space<vmem>>, %arg1: memref<48x16xf32, #tpu.memory_space<vmem>>, %arg2: memref<1x16xf32, #tpu.memory_space<vmem>>, %arg3: memref<144x32xf32, #tpu.memory_space<vmem>>, %arg4: memref<1x32xf32, #tpu.memory_space<vmem>>, %arg5: memref<1568x64xf32, #tpu.memory_space<vmem>>, %arg6: memref<1x64xf32, #tpu.memory_space<vmem>>, %arg7: memref<64x1568xf32, #tpu.memory_space<vmem>>, %arg8: memref<1x1568xf32, #tpu.memory_space<vmem>>, %arg9: memref<128x64xf32, #tpu.memory_space<vmem>>, %arg10: memref<1x64xf32, #tpu.memory_space<vmem>>, %arg11: memref<64x12xf32, #tpu.memory_space<vmem>>, %arg12: memref<1x12xf32, #tpu.memory_space<vmem>>, %arg13: memref<448x12xf32, #tpu.memory_space<vmem>>, %arg14: memref<2x16x18x16xf32, #tpu.memory_space<vmem>>, %arg15: memref<2x1568xf32, #tpu.memory_space<vmem>>, %arg16: memref<2x8x9x32xf32, #tpu.memory_space<vmem>>, %arg17: memref<2x8x9x64xf32, #tpu.memory_space<vmem>>) attributes {dimension_semantics = [], scalar_prefetch = 0 : i64, scratch_operands = 4 : i64, tpu.core_type = #tpu.core_type<tc>} {
    %c0 = arith.constant 0 : index
    %c0_0 = arith.constant 0 : index
    %c0_1 = arith.constant 0 : index
    %c0_2 = arith.constant 0 : index
    %0 = vector.load %arg0[%c0, %c0_0, %c0_1, %c0_2] : memref<2x15x17x12xf32, #tpu.memory_space<vmem>>, vector<2x14x16x12xf32>
    %c0_3 = arith.constant 0 : index
    %c0_4 = arith.constant 0 : index
    %c1 = arith.constant 1 : index
    %c0_5 = arith.constant 0 : index
    %1 = vector.load %arg0[%c0_3, %c0_4, %c1, %c0_5] : memref<2x15x17x12xf32, #tpu.memory_space<vmem>>, vector<2x14x16x12xf32>
    %c0_6 = arith.constant 0 : index
    %c1_7 = arith.constant 1 : index
    %c0_8 = arith.constant 0 : index
    %c0_9 = arith.constant 0 : index
    %2 = vector.load %arg0[%c0_6, %c1_7, %c0_8, %c0_9] : memref<2x15x17x12xf32, #tpu.memory_space<vmem>>, vector<2x14x16x12xf32>
    %c0_10 = arith.constant 0 : index
    %c1_11 = arith.constant 1 : index
    %c1_12 = arith.constant 1 : index
    %c0_13 = arith.constant 0 : index
    %3 = vector.load %arg0[%c0_10, %c1_11, %c1_12, %c0_13] : memref<2x15x17x12xf32, #tpu.memory_space<vmem>>, vector<2x14x16x12xf32>
    %4 = tpu.concatenate %0, %1, %2, %3 in 3 : vector<2x14x16x12xf32>, vector<2x14x16x12xf32>, vector<2x14x16x12xf32>, vector<2x14x16x12xf32> -> vector<2x14x16x48xf32>
    %5 = vector.shape_cast %4 : vector<2x14x16x48xf32> to vector<448x48xf32>
    %c0_14 = arith.constant 0 : index
    %c0_15 = arith.constant 0 : index
    %6 = vector.load %arg1[%c0_14, %c0_15] : memref<48x16xf32, #tpu.memory_space<vmem>>, vector<48x16xf32>
    %cst = arith.constant dense<0.000000e+00> : vector<448x16xf32>
    %7 = tpu.matmul %5, %6, %cst {dimension_numbers = #tpu.dot_dimension_numbers<[1], [0], [0], [1], [0, 0, 1, 1], [], []>} : vector<448x48xf32>, vector<48x16xf32>, vector<448x16xf32> -> vector<448x16xf32>
    %c0_16 = arith.constant 0 : index
    %c0_17 = arith.constant 0 : index
    %8 = vector.load %arg2[%c0_16, %c0_17] : memref<1x16xf32, #tpu.memory_space<vmem>>, vector<1x16xf32>
    %9 = vector.broadcast %8 : vector<1x16xf32> to vector<448x16xf32>
    %10 = arith.addf %7, %9 : vector<448x16xf32>
    %cst_18 = arith.constant 0.000000e+00 : f32
    %11 = vector.broadcast %cst_18 : f32 to vector<448x16xf32>
    %12 = arith.maximumf %10, %11 : vector<448x16xf32>
    %13 = vector.shape_cast %12 : vector<448x16xf32> to vector<2x14x16x16xf32>
    %cst_19 = arith.constant 0.000000e+00 : f32
    %14 = vector.broadcast %cst_19 : f32 to vector<2x16x18x16xf32>
    %c0_20 = arith.constant 0 : index
    %c0_21 = arith.constant 0 : index
    %c0_22 = arith.constant 0 : index
    %c0_23 = arith.constant 0 : index
    %15 = vector.load %arg14[%c0_20, %c0_21, %c0_22, %c0_23] : memref<2x16x18x16xf32, #tpu.memory_space<vmem>>, vector<2x16x18x16xf32>
    tpu.vector_store %arg14[%c0_20, %c0_21, %c0_22, %c0_23], %14 {strides = array<i32>} : memref<2x16x18x16xf32, #tpu.memory_space<vmem>>, vector<2x16x18x16xf32>,
    %16 = vector.extract_strided_slice %13 {offsets = [0, 0, 0, 0], sizes = [2, 14, 14, 16], strides = [1, 1, 1, 1]} : vector<2x14x16x16xf32> to vector<2x14x14x16xf32>
    %c0_24 = arith.constant 0 : index
    %c1_25 = arith.constant 1 : index
    %c1_26 = arith.constant 1 : index
    %c0_27 = arith.constant 0 : index
    %17 = vector.load %arg14[%c0_24, %c1_25, %c1_26, %c0_27] : memref<2x16x18x16xf32, #tpu.memory_space<vmem>>, vector<2x14x14x16xf32>
    tpu.vector_store %arg14[%c0_24, %c1_25, %c1_26, %c0_27], %16 {strides = array<i32>} : memref<2x16x18x16xf32, #tpu.memory_space<vmem>>, vector<2x14x14x16xf32>,
    %c0_28 = arith.constant 0 : index
    %c0_29 = arith.constant 0 : index
    %c0_30 = arith.constant 0 : index
    %c0_31 = arith.constant 0 : index
    %18 = vector.load %arg14[%c0_28, %c0_29, %c0_30, %c0_31] : memref<2x16x18x16xf32, #tpu.memory_space<vmem>>, vector<2x14x16x16xf32>
    %c0_32 = arith.constant 0 : index
    %c0_33 = arith.constant 0 : index
    %c1_34 = arith.constant 1 : index
    %c0_35 = arith.constant 0 : index
    %19 = vector.load %arg14[%c0_32, %c0_33, %c1_34, %c0_35] : memref<2x16x18x16xf32, #tpu.memory_space<vmem>>, vector<2x14x16x16xf32>
    %c0_36 = arith.constant 0 : index
    %c0_37 = arith.constant 0 : index
    %c2 = arith.constant 2 : index
    %c0_38 = arith.constant 0 : index
    %20 = vector.load %arg14[%c0_36, %c0_37, %c2, %c0_38] : memref<2x16x18x16xf32, #tpu.memory_space<vmem>>, vector<2x14x16x16xf32>
    %c0_39 = arith.constant 0 : index
    %c1_40 = arith.constant 1 : index
    %c0_41 = arith.constant 0 : index
    %c0_42 = arith.constant 0 : index
    %21 = vector.load %arg14[%c0_39, %c1_40, %c0_41, %c0_42] : memref<2x16x18x16xf32, #tpu.memory_space<vmem>>, vector<2x14x16x16xf32>
    %c0_43 = arith.constant 0 : index
    %c1_44 = arith.constant 1 : index
    %c1_45 = arith.constant 1 : index
    %c0_46 = arith.constant 0 : index
    %22 = vector.load %arg14[%c0_43, %c1_44, %c1_45, %c0_46] : memref<2x16x18x16xf32, #tpu.memory_space<vmem>>, vector<2x14x16x16xf32>
    %c0_47 = arith.constant 0 : index
    %c1_48 = arith.constant 1 : index
    %c2_49 = arith.constant 2 : index
    %c0_50 = arith.constant 0 : index
    %23 = vector.load %arg14[%c0_47, %c1_48, %c2_49, %c0_50] : memref<2x16x18x16xf32, #tpu.memory_space<vmem>>, vector<2x14x16x16xf32>
    %c0_51 = arith.constant 0 : index
    %c2_52 = arith.constant 2 : index
    %c0_53 = arith.constant 0 : index
    %c0_54 = arith.constant 0 : index
    %24 = vector.load %arg14[%c0_51, %c2_52, %c0_53, %c0_54] : memref<2x16x18x16xf32, #tpu.memory_space<vmem>>, vector<2x14x16x16xf32>
    %c0_55 = arith.constant 0 : index
    %c2_56 = arith.constant 2 : index
    %c1_57 = arith.constant 1 : index
    %c0_58 = arith.constant 0 : index
    %25 = vector.load %arg14[%c0_55, %c2_56, %c1_57, %c0_58] : memref<2x16x18x16xf32, #tpu.memory_space<vmem>>, vector<2x14x16x16xf32>
    %c0_59 = arith.constant 0 : index
    %c2_60 = arith.constant 2 : index
    %c2_61 = arith.constant 2 : index
    %c0_62 = arith.constant 0 : index
    %26 = vector.load %arg14[%c0_59, %c2_60, %c2_61, %c0_62] : memref<2x16x18x16xf32, #tpu.memory_space<vmem>>, vector<2x14x16x16xf32>
    %27 = tpu.concatenate %18, %19, %20, %21, %22, %23, %24, %25, %26 in 3 : vector<2x14x16x16xf32>, vector<2x14x16x16xf32>, vector<2x14x16x16xf32>, vector<2x14x16x16xf32>, vector<2x14x16x16xf32>, vector<2x14x16x16xf32>, vector<2x14x16x16xf32>, vector<2x14x16x16xf32>, vector<2x14x16x16xf32> -> vector<2x14x16x144xf32>
    %28 = vector.extract_strided_slice %27 {offsets = [0, 0, 0, 0], sizes = [2, 1, 16, 144], strides = [1, 1, 1, 1]} : vector<2x14x16x144xf32> to vector<2x1x16x144xf32>
    %29 = vector.extract_strided_slice %27 {offsets = [0, 2, 0, 0], sizes = [2, 1, 16, 144], strides = [1, 1, 1, 1]} : vector<2x14x16x144xf32> to vector<2x1x16x144xf32>
    %30 = vector.extract_strided_slice %27 {offsets = [0, 4, 0, 0], sizes = [2, 1, 16, 144], strides = [1, 1, 1, 1]} : vector<2x14x16x144xf32> to vector<2x1x16x144xf32>
    %31 = vector.extract_strided_slice %27 {offsets = [0, 6, 0, 0], sizes = [2, 1, 16, 144], strides = [1, 1, 1, 1]} : vector<2x14x16x144xf32> to vector<2x1x16x144xf32>
    %32 = vector.extract_strided_slice %27 {offsets = [0, 8, 0, 0], sizes = [2, 1, 16, 144], strides = [1, 1, 1, 1]} : vector<2x14x16x144xf32> to vector<2x1x16x144xf32>
    %33 = vector.extract_strided_slice %27 {offsets = [0, 10, 0, 0], sizes = [2, 1, 16, 144], strides = [1, 1, 1, 1]} : vector<2x14x16x144xf32> to vector<2x1x16x144xf32>
    %34 = vector.extract_strided_slice %27 {offsets = [0, 12, 0, 0], sizes = [2, 1, 16, 144], strides = [1, 1, 1, 1]} : vector<2x14x16x144xf32> to vector<2x1x16x144xf32>
    %35 = tpu.concatenate %28, %29, %30, %31, %32, %33, %34 in 1 : vector<2x1x16x144xf32>, vector<2x1x16x144xf32>, vector<2x1x16x144xf32>, vector<2x1x16x144xf32>, vector<2x1x16x144xf32>, vector<2x1x16x144xf32>, vector<2x1x16x144xf32> -> vector<2x7x16x144xf32>
    %36 = vector.extract_strided_slice %35 {offsets = [0, 0, 0, 0], sizes = [2, 7, 1, 144], strides = [1, 1, 1, 1]} : vector<2x7x16x144xf32> to vector<2x7x1x144xf32>
    %37 = vector.extract_strided_slice %35 {offsets = [0, 0, 2, 0], sizes = [2, 7, 1, 144], strides = [1, 1, 1, 1]} : vector<2x7x16x144xf32> to vector<2x7x1x144xf32>
    %38 = vector.extract_strided_slice %35 {offsets = [0, 0, 4, 0], sizes = [2, 7, 1, 144], strides = [1, 1, 1, 1]} : vector<2x7x16x144xf32> to vector<2x7x1x144xf32>
    %39 = vector.extract_strided_slice %35 {offsets = [0, 0, 6, 0], sizes = [2, 7, 1, 144], strides = [1, 1, 1, 1]} : vector<2x7x16x144xf32> to vector<2x7x1x144xf32>
    %40 = vector.extract_strided_slice %35 {offsets = [0, 0, 8, 0], sizes = [2, 7, 1, 144], strides = [1, 1, 1, 1]} : vector<2x7x16x144xf32> to vector<2x7x1x144xf32>
    %41 = vector.extract_strided_slice %35 {offsets = [0, 0, 10, 0], sizes = [2, 7, 1, 144], strides = [1, 1, 1, 1]} : vector<2x7x16x144xf32> to vector<2x7x1x144xf32>
    %42 = vector.extract_strided_slice %35 {offsets = [0, 0, 12, 0], sizes = [2, 7, 1, 144], strides = [1, 1, 1, 1]} : vector<2x7x16x144xf32> to vector<2x7x1x144xf32>
    %43 = vector.extract_strided_slice %35 {offsets = [0, 0, 14, 0], sizes = [2, 7, 1, 144], strides = [1, 1, 1, 1]} : vector<2x7x16x144xf32> to vector<2x7x1x144xf32>
    %44 = tpu.concatenate %36, %37, %38, %39, %40, %41, %42, %43 in 2 : vector<2x7x1x144xf32>, vector<2x7x1x144xf32>, vector<2x7x1x144xf32>, vector<2x7x1x144xf32>, vector<2x7x1x144xf32>, vector<2x7x1x144xf32>, vector<2x7x1x144xf32>, vector<2x7x1x144xf32> -> vector<2x7x8x144xf32>
    %45 = vector.shape_cast %44 : vector<2x7x8x144xf32> to vector<112x144xf32>
    %c0_63 = arith.constant 0 : index
    %c0_64 = arith.constant 0 : index
    %46 = vector.load %arg3[%c0_63, %c0_64] : memref<144x32xf32, #tpu.memory_space<vmem>>, vector<144x32xf32>
    %cst_65 = arith.constant dense<0.000000e+00> : vector<112x32xf32>
    %47 = tpu.matmul %45, %46, %cst_65 {dimension_numbers = #tpu.dot_dimension_numbers<[1], [0], [0], [1], [0, 0, 1, 1], [], []>} : vector<112x144xf32>, vector<144x32xf32>, vector<112x32xf32> -> vector<112x32xf32>
    %c0_66 = arith.constant 0 : index
    %c0_67 = arith.constant 0 : index
    %48 = vector.load %arg4[%c0_66, %c0_67] : memref<1x32xf32, #tpu.memory_space<vmem>>, vector<1x32xf32>
    %49 = vector.broadcast %48 : vector<1x32xf32> to vector<112x32xf32>
    %50 = arith.addf %47, %49 : vector<112x32xf32>
    %cst_68 = arith.constant 0.000000e+00 : f32
    %51 = vector.broadcast %cst_68 : f32 to vector<112x32xf32>
    %52 = arith.maximumf %50, %51 : vector<112x32xf32>
    %53 = vector.shape_cast %52 : vector<112x32xf32> to vector<2x7x8x32xf32>
    %54 = vector.extract_strided_slice %53 {offsets = [0, 0, 0, 0], sizes = [2, 1, 1, 32], strides = [1, 1, 1, 1]} : vector<2x7x8x32xf32> to vector<2x1x1x32xf32>
    %55 = vector.shape_cast %54 : vector<2x1x1x32xf32> to vector<2x32xf32>
    %c0_69 = arith.constant 0 : index
    %c0_70 = arith.constant 0 : index
    %56 = vector.load %arg15[%c0_69, %c0_70] : memref<2x1568xf32, #tpu.memory_space<vmem>>, vector<2x32xf32>
    tpu.vector_store %arg15[%c0_69, %c0_70], %55 {strides = array<i32>} : memref<2x1568xf32, #tpu.memory_space<vmem>>, vector<2x32xf32>,
    %57 = vector.extract_strided_slice %53 {offsets = [0, 0, 1, 0], sizes = [2, 1, 1, 32], strides = [1, 1, 1, 1]} : vector<2x7x8x32xf32> to vector<2x1x1x32xf32>
    %58 = vector.shape_cast %57 : vector<2x1x1x32xf32> to vector<2x32xf32>
    %c0_71 = arith.constant 0 : index
    %c32 = arith.constant 32 : index
    %59 = vector.load %arg15[%c0_71, %c32] : memref<2x1568xf32, #tpu.memory_space<vmem>>, vector<2x32xf32>
    tpu.vector_store %arg15[%c0_71, %c32], %58 {strides = array<i32>} : memref<2x1568xf32, #tpu.memory_space<vmem>>, vector<2x32xf32>,
    %60 = vector.extract_strided_slice %53 {offsets = [0, 0, 2, 0], sizes = [2, 1, 1, 32], strides = [1, 1, 1, 1]} : vector<2x7x8x32xf32> to vector<2x1x1x32xf32>
    %61 = vector.shape_cast %60 : vector<2x1x1x32xf32> to vector<2x32xf32>
    %c0_72 = arith.constant 0 : index
    %c64 = arith.constant 64 : index
    %62 = vector.load %arg15[%c0_72, %c64] : memref<2x1568xf32, #tpu.memory_space<vmem>>, vector<2x32xf32>
    tpu.vector_store %arg15[%c0_72, %c64], %61 {strides = array<i32>} : memref<2x1568xf32, #tpu.memory_space<vmem>>, vector<2x32xf32>,
    %63 = vector.extract_strided_slice %53 {offsets = [0, 0, 3, 0], sizes = [2, 1, 1, 32], strides = [1, 1, 1, 1]} : vector<2x7x8x32xf32> to vector<2x1x1x32xf32>
    %64 = vector.shape_cast %63 : vector<2x1x1x32xf32> to vector<2x32xf32>
    %c0_73 = arith.constant 0 : index
    %c96 = arith.constant 96 : index
    %65 = vector.load %arg15[%c0_73, %c96] : memref<2x1568xf32, #tpu.memory_space<vmem>>, vector<2x32xf32>
    tpu.vector_store %arg15[%c0_73, %c96], %64 {strides = array<i32>} : memref<2x1568xf32, #tpu.memory_space<vmem>>, vector<2x32xf32>,
    %66 = vector.extract_strided_slice %53 {offsets = [0, 0, 4, 0], sizes = [2, 1, 1, 32], strides = [1, 1, 1, 1]} : vector<2x7x8x32xf32> to vector<2x1x1x32xf32>
    %67 = vector.shape_cast %66 : vector<2x1x1x32xf32> to vector<2x32xf32>
    %c0_74 = arith.constant 0 : index
    %c128 = arith.constant 128 : index
    %68 = vector.load %arg15[%c0_74, %c128] : memref<2x1568xf32, #tpu.memory_space<vmem>>, vector<2x32xf32>
    tpu.vector_store %arg15[%c0_74, %c128], %67 {strides = array<i32>} : memref<2x1568xf32, #tpu.memory_space<vmem>>, vector<2x32xf32>,
    %69 = vector.extract_strided_slice %53 {offsets = [0, 0, 5, 0], sizes = [2, 1, 1, 32], strides = [1, 1, 1, 1]} : vector<2x7x8x32xf32> to vector<2x1x1x32xf32>
    %70 = vector.shape_cast %69 : vector<2x1x1x32xf32> to vector<2x32xf32>
    %c0_75 = arith.constant 0 : index
    %c160 = arith.constant 160 : index
    %71 = vector.load %arg15[%c0_75, %c160] : memref<2x1568xf32, #tpu.memory_space<vmem>>, vector<2x32xf32>
    tpu.vector_store %arg15[%c0_75, %c160], %70 {strides = array<i32>} : memref<2x1568xf32, #tpu.memory_space<vmem>>, vector<2x32xf32>,
    %72 = vector.extract_strided_slice %53 {offsets = [0, 0, 6, 0], sizes = [2, 1, 1, 32], strides = [1, 1, 1, 1]} : vector<2x7x8x32xf32> to vector<2x1x1x32xf32>
    %73 = vector.shape_cast %72 : vector<2x1x1x32xf32> to vector<2x32xf32>
    %c0_76 = arith.constant 0 : index
    %c192 = arith.constant 192 : index
    %74 = vector.load %arg15[%c0_76, %c192] : memref<2x1568xf32, #tpu.memory_space<vmem>>, vector<2x32xf32>
    tpu.vector_store %arg15[%c0_76, %c192], %73 {strides = array<i32>} : memref<2x1568xf32, #tpu.memory_space<vmem>>, vector<2x32xf32>,
    %75 = vector.extract_strided_slice %53 {offsets = [0, 1, 0, 0], sizes = [2, 1, 1, 32], strides = [1, 1, 1, 1]} : vector<2x7x8x32xf32> to vector<2x1x1x32xf32>
    %76 = vector.shape_cast %75 : vector<2x1x1x32xf32> to vector<2x32xf32>
    %c0_77 = arith.constant 0 : index
    %c224 = arith.constant 224 : index
    %77 = vector.load %arg15[%c0_77, %c224] : memref<2x1568xf32, #tpu.memory_space<vmem>>, vector<2x32xf32>
    tpu.vector_store %arg15[%c0_77, %c224], %76 {strides = array<i32>} : memref<2x1568xf32, #tpu.memory_space<vmem>>, vector<2x32xf32>,
    %78 = vector.extract_strided_slice %53 {offsets = [0, 1, 1, 0], sizes = [2, 1, 1, 32], strides = [1, 1, 1, 1]} : vector<2x7x8x32xf32> to vector<2x1x1x32xf32>
    %79 = vector.shape_cast %78 : vector<2x1x1x32xf32> to vector<2x32xf32>
    %c0_78 = arith.constant 0 : index
    %c256 = arith.constant 256 : index
    %80 = vector.load %arg15[%c0_78, %c256] : memref<2x1568xf32, #tpu.memory_space<vmem>>, vector<2x32xf32>
    tpu.vector_store %arg15[%c0_78, %c256], %79 {strides = array<i32>} : memref<2x1568xf32, #tpu.memory_space<vmem>>, vector<2x32xf32>,
    %81 = vector.extract_strided_slice %53 {offsets = [0, 1, 2, 0], sizes = [2, 1, 1, 32], strides = [1, 1, 1, 1]} : vector<2x7x8x32xf32> to vector<2x1x1x32xf32>
    %82 = vector.shape_cast %81 : vector<2x1x1x32xf32> to vector<2x32xf32>
    %c0_79 = arith.constant 0 : index
    %c288 = arith.constant 288 : index
    %83 = vector.load %arg15[%c0_79, %c288] : memref<2x1568xf32, #tpu.memory_space<vmem>>, vector<2x32xf32>
    tpu.vector_store %arg15[%c0_79, %c288], %82 {strides = array<i32>} : memref<2x1568xf32, #tpu.memory_space<vmem>>, vector<2x32xf32>,
    %84 = vector.extract_strided_slice %53 {offsets = [0, 1, 3, 0], sizes = [2, 1, 1, 32], strides = [1, 1, 1, 1]} : vector<2x7x8x32xf32> to vector<2x1x1x32xf32>
    %85 = vector.shape_cast %84 : vector<2x1x1x32xf32> to vector<2x32xf32>
    %c0_80 = arith.constant 0 : index
    %c320 = arith.constant 320 : index
    %86 = vector.load %arg15[%c0_80, %c320] : memref<2x1568xf32, #tpu.memory_space<vmem>>, vector<2x32xf32>
    tpu.vector_store %arg15[%c0_80, %c320], %85 {strides = array<i32>} : memref<2x1568xf32, #tpu.memory_space<vmem>>, vector<2x32xf32>,
    %87 = vector.extract_strided_slice %53 {offsets = [0, 1, 4, 0], sizes = [2, 1, 1, 32], strides = [1, 1, 1, 1]} : vector<2x7x8x32xf32> to vector<2x1x1x32xf32>
    %88 = vector.shape_cast %87 : vector<2x1x1x32xf32> to vector<2x32xf32>
    %c0_81 = arith.constant 0 : index
    %c352 = arith.constant 352 : index
    %89 = vector.load %arg15[%c0_81, %c352] : memref<2x1568xf32, #tpu.memory_space<vmem>>, vector<2x32xf32>
    tpu.vector_store %arg15[%c0_81, %c352], %88 {strides = array<i32>} : memref<2x1568xf32, #tpu.memory_space<vmem>>, vector<2x32xf32>,
    %90 = vector.extract_strided_slice %53 {offsets = [0, 1, 5, 0], sizes = [2, 1, 1, 32], strides = [1, 1, 1, 1]} : vector<2x7x8x32xf32> to vector<2x1x1x32xf32>
    %91 = vector.shape_cast %90 : vector<2x1x1x32xf32> to vector<2x32xf32>
    %c0_82 = arith.constant 0 : index
    %c384 = arith.constant 384 : index
    %92 = vector.load %arg15[%c0_82, %c384] : memref<2x1568xf32, #tpu.memory_space<vmem>>, vector<2x32xf32>
    tpu.vector_store %arg15[%c0_82, %c384], %91 {strides = array<i32>} : memref<2x1568xf32, #tpu.memory_space<vmem>>, vector<2x32xf32>,
    %93 = vector.extract_strided_slice %53 {offsets = [0, 1, 6, 0], sizes = [2, 1, 1, 32], strides = [1, 1, 1, 1]} : vector<2x7x8x32xf32> to vector<2x1x1x32xf32>
    %94 = vector.shape_cast %93 : vector<2x1x1x32xf32> to vector<2x32xf32>
    %c0_83 = arith.constant 0 : index
    %c416 = arith.constant 416 : index
    %95 = vector.load %arg15[%c0_83, %c416] : memref<2x1568xf32, #tpu.memory_space<vmem>>, vector<2x32xf32>
    tpu.vector_store %arg15[%c0_83, %c416], %94 {strides = array<i32>} : memref<2x1568xf32, #tpu.memory_space<vmem>>, vector<2x32xf32>,
    %96 = vector.extract_strided_slice %53 {offsets = [0, 2, 0, 0], sizes = [2, 1, 1, 32], strides = [1, 1, 1, 1]} : vector<2x7x8x32xf32> to vector<2x1x1x32xf32>
    %97 = vector.shape_cast %96 : vector<2x1x1x32xf32> to vector<2x32xf32>
    %c0_84 = arith.constant 0 : index
    %c448 = arith.constant 448 : index
    %98 = vector.load %arg15[%c0_84, %c448] : memref<2x1568xf32, #tpu.memory_space<vmem>>, vector<2x32xf32>
    tpu.vector_store %arg15[%c0_84, %c448], %97 {strides = array<i32>} : memref<2x1568xf32, #tpu.memory_space<vmem>>, vector<2x32xf32>,
    %99 = vector.extract_strided_slice %53 {offsets = [0, 2, 1, 0], sizes = [2, 1, 1, 32], strides = [1, 1, 1, 1]} : vector<2x7x8x32xf32> to vector<2x1x1x32xf32>
    %100 = vector.shape_cast %99 : vector<2x1x1x32xf32> to vector<2x32xf32>
    %c0_85 = arith.constant 0 : index
    %c480 = arith.constant 480 : index
    %101 = vector.load %arg15[%c0_85, %c480] : memref<2x1568xf32, #tpu.memory_space<vmem>>, vector<2x32xf32>
    tpu.vector_store %arg15[%c0_85, %c480], %100 {strides = array<i32>} : memref<2x1568xf32, #tpu.memory_space<vmem>>, vector<2x32xf32>,
    %102 = vector.extract_strided_slice %53 {offsets = [0, 2, 2, 0], sizes = [2, 1, 1, 32], strides = [1, 1, 1, 1]} : vector<2x7x8x32xf32> to vector<2x1x1x32xf32>
    %103 = vector.shape_cast %102 : vector<2x1x1x32xf32> to vector<2x32xf32>
    %c0_86 = arith.constant 0 : index
    %c512 = arith.constant 512 : index
    %104 = vector.load %arg15[%c0_86, %c512] : memref<2x1568xf32, #tpu.memory_space<vmem>>, vector<2x32xf32>
    tpu.vector_store %arg15[%c0_86, %c512], %103 {strides = array<i32>} : memref<2x1568xf32, #tpu.memory_space<vmem>>, vector<2x32xf32>,
    %105 = vector.extract_strided_slice %53 {offsets = [0, 2, 3, 0], sizes = [2, 1, 1, 32], strides = [1, 1, 1, 1]} : vector<2x7x8x32xf32> to vector<2x1x1x32xf32>
    %106 = vector.shape_cast %105 : vector<2x1x1x32xf32> to vector<2x32xf32>
    %c0_87 = arith.constant 0 : index
    %c544 = arith.constant 544 : index
    %107 = vector.load %arg15[%c0_87, %c544] : memref<2x1568xf32, #tpu.memory_space<vmem>>, vector<2x32xf32>
    tpu.vector_store %arg15[%c0_87, %c544], %106 {strides = array<i32>} : memref<2x1568xf32, #tpu.memory_space<vmem>>, vector<2x32xf32>,
    %108 = vector.extract_strided_slice %53 {offsets = [0, 2, 4, 0], sizes = [2, 1, 1, 32], strides = [1, 1, 1, 1]} : vector<2x7x8x32xf32> to vector<2x1x1x32xf32>
    %109 = vector.shape_cast %108 : vector<2x1x1x32xf32> to vector<2x32xf32>
    %c0_88 = arith.constant 0 : index
    %c576 = arith.constant 576 : index
    %110 = vector.load %arg15[%c0_88, %c576] : memref<2x1568xf32, #tpu.memory_space<vmem>>, vector<2x32xf32>
    tpu.vector_store %arg15[%c0_88, %c576], %109 {strides = array<i32>} : memref<2x1568xf32, #tpu.memory_space<vmem>>, vector<2x32xf32>,
    %111 = vector.extract_strided_slice %53 {offsets = [0, 2, 5, 0], sizes = [2, 1, 1, 32], strides = [1, 1, 1, 1]} : vector<2x7x8x32xf32> to vector<2x1x1x32xf32>
    %112 = vector.shape_cast %111 : vector<2x1x1x32xf32> to vector<2x32xf32>
    %c0_89 = arith.constant 0 : index
    %c608 = arith.constant 608 : index
    %113 = vector.load %arg15[%c0_89, %c608] : memref<2x1568xf32, #tpu.memory_space<vmem>>, vector<2x32xf32>
    tpu.vector_store %arg15[%c0_89, %c608], %112 {strides = array<i32>} : memref<2x1568xf32, #tpu.memory_space<vmem>>, vector<2x32xf32>,
    %114 = vector.extract_strided_slice %53 {offsets = [0, 2, 6, 0], sizes = [2, 1, 1, 32], strides = [1, 1, 1, 1]} : vector<2x7x8x32xf32> to vector<2x1x1x32xf32>
    %115 = vector.shape_cast %114 : vector<2x1x1x32xf32> to vector<2x32xf32>
    %c0_90 = arith.constant 0 : index
    %c640 = arith.constant 640 : index
    %116 = vector.load %arg15[%c0_90, %c640] : memref<2x1568xf32, #tpu.memory_space<vmem>>, vector<2x32xf32>
    tpu.vector_store %arg15[%c0_90, %c640], %115 {strides = array<i32>} : memref<2x1568xf32, #tpu.memory_space<vmem>>, vector<2x32xf32>,
    %117 = vector.extract_strided_slice %53 {offsets = [0, 3, 0, 0], sizes = [2, 1, 1, 32], strides = [1, 1, 1, 1]} : vector<2x7x8x32xf32> to vector<2x1x1x32xf32>
    %118 = vector.shape_cast %117 : vector<2x1x1x32xf32> to vector<2x32xf32>
    %c0_91 = arith.constant 0 : index
    %c672 = arith.constant 672 : index
    %119 = vector.load %arg15[%c0_91, %c672] : memref<2x1568xf32, #tpu.memory_space<vmem>>, vector<2x32xf32>
    tpu.vector_store %arg15[%c0_91, %c672], %118 {strides = array<i32>} : memref<2x1568xf32, #tpu.memory_space<vmem>>, vector<2x32xf32>,
    %120 = vector.extract_strided_slice %53 {offsets = [0, 3, 1, 0], sizes = [2, 1, 1, 32], strides = [1, 1, 1, 1]} : vector<2x7x8x32xf32> to vector<2x1x1x32xf32>
    %121 = vector.shape_cast %120 : vector<2x1x1x32xf32> to vector<2x32xf32>
    %c0_92 = arith.constant 0 : index
    %c704 = arith.constant 704 : index
    %122 = vector.load %arg15[%c0_92, %c704] : memref<2x1568xf32, #tpu.memory_space<vmem>>, vector<2x32xf32>
    tpu.vector_store %arg15[%c0_92, %c704], %121 {strides = array<i32>} : memref<2x1568xf32, #tpu.memory_space<vmem>>, vector<2x32xf32>,
    %123 = vector.extract_strided_slice %53 {offsets = [0, 3, 2, 0], sizes = [2, 1, 1, 32], strides = [1, 1, 1, 1]} : vector<2x7x8x32xf32> to vector<2x1x1x32xf32>
    %124 = vector.shape_cast %123 : vector<2x1x1x32xf32> to vector<2x32xf32>
    %c0_93 = arith.constant 0 : index
    %c736 = arith.constant 736 : index
    %125 = vector.load %arg15[%c0_93, %c736] : memref<2x1568xf32, #tpu.memory_space<vmem>>, vector<2x32xf32>
    tpu.vector_store %arg15[%c0_93, %c736], %124 {strides = array<i32>} : memref<2x1568xf32, #tpu.memory_space<vmem>>, vector<2x32xf32>,
    %126 = vector.extract_strided_slice %53 {offsets = [0, 3, 3, 0], sizes = [2, 1, 1, 32], strides = [1, 1, 1, 1]} : vector<2x7x8x32xf32> to vector<2x1x1x32xf32>
    %127 = vector.shape_cast %126 : vector<2x1x1x32xf32> to vector<2x32xf32>
    %c0_94 = arith.constant 0 : index
    %c768 = arith.constant 768 : index
    %128 = vector.load %arg15[%c0_94, %c768] : memref<2x1568xf32, #tpu.memory_space<vmem>>, vector<2x32xf32>
    tpu.vector_store %arg15[%c0_94, %c768], %127 {strides = array<i32>} : memref<2x1568xf32, #tpu.memory_space<vmem>>, vector<2x32xf32>,
    %129 = vector.extract_strided_slice %53 {offsets = [0, 3, 4, 0], sizes = [2, 1, 1, 32], strides = [1, 1, 1, 1]} : vector<2x7x8x32xf32> to vector<2x1x1x32xf32>
    %130 = vector.shape_cast %129 : vector<2x1x1x32xf32> to vector<2x32xf32>
    %c0_95 = arith.constant 0 : index
    %c800 = arith.constant 800 : index
    %131 = vector.load %arg15[%c0_95, %c800] : memref<2x1568xf32, #tpu.memory_space<vmem>>, vector<2x32xf32>
    tpu.vector_store %arg15[%c0_95, %c800], %130 {strides = array<i32>} : memref<2x1568xf32, #tpu.memory_space<vmem>>, vector<2x32xf32>,
    %132 = vector.extract_strided_slice %53 {offsets = [0, 3, 5, 0], sizes = [2, 1, 1, 32], strides = [1, 1, 1, 1]} : vector<2x7x8x32xf32> to vector<2x1x1x32xf32>
    %133 = vector.shape_cast %132 : vector<2x1x1x32xf32> to vector<2x32xf32>
    %c0_96 = arith.constant 0 : index
    %c832 = arith.constant 832 : index
    %134 = vector.load %arg15[%c0_96, %c832] : memref<2x1568xf32, #tpu.memory_space<vmem>>, vector<2x32xf32>
    tpu.vector_store %arg15[%c0_96, %c832], %133 {strides = array<i32>} : memref<2x1568xf32, #tpu.memory_space<vmem>>, vector<2x32xf32>,
    %135 = vector.extract_strided_slice %53 {offsets = [0, 3, 6, 0], sizes = [2, 1, 1, 32], strides = [1, 1, 1, 1]} : vector<2x7x8x32xf32> to vector<2x1x1x32xf32>
    %136 = vector.shape_cast %135 : vector<2x1x1x32xf32> to vector<2x32xf32>
    %c0_97 = arith.constant 0 : index
    %c864 = arith.constant 864 : index
    %137 = vector.load %arg15[%c0_97, %c864] : memref<2x1568xf32, #tpu.memory_space<vmem>>, vector<2x32xf32>
    tpu.vector_store %arg15[%c0_97, %c864], %136 {strides = array<i32>} : memref<2x1568xf32, #tpu.memory_space<vmem>>, vector<2x32xf32>,
    %138 = vector.extract_strided_slice %53 {offsets = [0, 4, 0, 0], sizes = [2, 1, 1, 32], strides = [1, 1, 1, 1]} : vector<2x7x8x32xf32> to vector<2x1x1x32xf32>
    %139 = vector.shape_cast %138 : vector<2x1x1x32xf32> to vector<2x32xf32>
    %c0_98 = arith.constant 0 : index
    %c896 = arith.constant 896 : index
    %140 = vector.load %arg15[%c0_98, %c896] : memref<2x1568xf32, #tpu.memory_space<vmem>>, vector<2x32xf32>
    tpu.vector_store %arg15[%c0_98, %c896], %139 {strides = array<i32>} : memref<2x1568xf32, #tpu.memory_space<vmem>>, vector<2x32xf32>,
    %141 = vector.extract_strided_slice %53 {offsets = [0, 4, 1, 0], sizes = [2, 1, 1, 32], strides = [1, 1, 1, 1]} : vector<2x7x8x32xf32> to vector<2x1x1x32xf32>
    %142 = vector.shape_cast %141 : vector<2x1x1x32xf32> to vector<2x32xf32>
    %c0_99 = arith.constant 0 : index
    %c928 = arith.constant 928 : index
    %143 = vector.load %arg15[%c0_99, %c928] : memref<2x1568xf32, #tpu.memory_space<vmem>>, vector<2x32xf32>
    tpu.vector_store %arg15[%c0_99, %c928], %142 {strides = array<i32>} : memref<2x1568xf32, #tpu.memory_space<vmem>>, vector<2x32xf32>,
    %144 = vector.extract_strided_slice %53 {offsets = [0, 4, 2, 0], sizes = [2, 1, 1, 32], strides = [1, 1, 1, 1]} : vector<2x7x8x32xf32> to vector<2x1x1x32xf32>
    %145 = vector.shape_cast %144 : vector<2x1x1x32xf32> to vector<2x32xf32>
    %c0_100 = arith.constant 0 : index
    %c960 = arith.constant 960 : index
    %146 = vector.load %arg15[%c0_100, %c960] : memref<2x1568xf32, #tpu.memory_space<vmem>>, vector<2x32xf32>
    tpu.vector_store %arg15[%c0_100, %c960], %145 {strides = array<i32>} : memref<2x1568xf32, #tpu.memory_space<vmem>>, vector<2x32xf32>,
    %147 = vector.extract_strided_slice %53 {offsets = [0, 4, 3, 0], sizes = [2, 1, 1, 32], strides = [1, 1, 1, 1]} : vector<2x7x8x32xf32> to vector<2x1x1x32xf32>
    %148 = vector.shape_cast %147 : vector<2x1x1x32xf32> to vector<2x32xf32>
    %c0_101 = arith.constant 0 : index
    %c992 = arith.constant 992 : index
    %149 = vector.load %arg15[%c0_101, %c992] : memref<2x1568xf32, #tpu.memory_space<vmem>>, vector<2x32xf32>
    tpu.vector_store %arg15[%c0_101, %c992], %148 {strides = array<i32>} : memref<2x1568xf32, #tpu.memory_space<vmem>>, vector<2x32xf32>,
    %150 = vector.extract_strided_slice %53 {offsets = [0, 4, 4, 0], sizes = [2, 1, 1, 32], strides = [1, 1, 1, 1]} : vector<2x7x8x32xf32> to vector<2x1x1x32xf32>
    %151 = vector.shape_cast %150 : vector<2x1x1x32xf32> to vector<2x32xf32>
    %c0_102 = arith.constant 0 : index
    %c1024 = arith.constant 1024 : index
    %152 = vector.load %arg15[%c0_102, %c1024] : memref<2x1568xf32, #tpu.memory_space<vmem>>, vector<2x32xf32>
    tpu.vector_store %arg15[%c0_102, %c1024], %151 {strides = array<i32>} : memref<2x1568xf32, #tpu.memory_space<vmem>>, vector<2x32xf32>,
    %153 = vector.extract_strided_slice %53 {offsets = [0, 4, 5, 0], sizes = [2, 1, 1, 32], strides = [1, 1, 1, 1]} : vector<2x7x8x32xf32> to vector<2x1x1x32xf32>
    %154 = vector.shape_cast %153 : vector<2x1x1x32xf32> to vector<2x32xf32>
    %c0_103 = arith.constant 0 : index
    %c1056 = arith.constant 1056 : index
    %155 = vector.load %arg15[%c0_103, %c1056] : memref<2x1568xf32, #tpu.memory_space<vmem>>, vector<2x32xf32>
    tpu.vector_store %arg15[%c0_103, %c1056], %154 {strides = array<i32>} : memref<2x1568xf32, #tpu.memory_space<vmem>>, vector<2x32xf32>,
    %156 = vector.extract_strided_slice %53 {offsets = [0, 4, 6, 0], sizes = [2, 1, 1, 32], strides = [1, 1, 1, 1]} : vector<2x7x8x32xf32> to vector<2x1x1x32xf32>
    %157 = vector.shape_cast %156 : vector<2x1x1x32xf32> to vector<2x32xf32>
    %c0_104 = arith.constant 0 : index
    %c1088 = arith.constant 1088 : index
    %158 = vector.load %arg15[%c0_104, %c1088] : memref<2x1568xf32, #tpu.memory_space<vmem>>, vector<2x32xf32>
    tpu.vector_store %arg15[%c0_104, %c1088], %157 {strides = array<i32>} : memref<2x1568xf32, #tpu.memory_space<vmem>>, vector<2x32xf32>,
    %159 = vector.extract_strided_slice %53 {offsets = [0, 5, 0, 0], sizes = [2, 1, 1, 32], strides = [1, 1, 1, 1]} : vector<2x7x8x32xf32> to vector<2x1x1x32xf32>
    %160 = vector.shape_cast %159 : vector<2x1x1x32xf32> to vector<2x32xf32>
    %c0_105 = arith.constant 0 : index
    %c1120 = arith.constant 1120 : index
    %161 = vector.load %arg15[%c0_105, %c1120] : memref<2x1568xf32, #tpu.memory_space<vmem>>, vector<2x32xf32>
    tpu.vector_store %arg15[%c0_105, %c1120], %160 {strides = array<i32>} : memref<2x1568xf32, #tpu.memory_space<vmem>>, vector<2x32xf32>,
    %162 = vector.extract_strided_slice %53 {offsets = [0, 5, 1, 0], sizes = [2, 1, 1, 32], strides = [1, 1, 1, 1]} : vector<2x7x8x32xf32> to vector<2x1x1x32xf32>
    %163 = vector.shape_cast %162 : vector<2x1x1x32xf32> to vector<2x32xf32>
    %c0_106 = arith.constant 0 : index
    %c1152 = arith.constant 1152 : index
    %164 = vector.load %arg15[%c0_106, %c1152] : memref<2x1568xf32, #tpu.memory_space<vmem>>, vector<2x32xf32>
    tpu.vector_store %arg15[%c0_106, %c1152], %163 {strides = array<i32>} : memref<2x1568xf32, #tpu.memory_space<vmem>>, vector<2x32xf32>,
    %165 = vector.extract_strided_slice %53 {offsets = [0, 5, 2, 0], sizes = [2, 1, 1, 32], strides = [1, 1, 1, 1]} : vector<2x7x8x32xf32> to vector<2x1x1x32xf32>
    %166 = vector.shape_cast %165 : vector<2x1x1x32xf32> to vector<2x32xf32>
    %c0_107 = arith.constant 0 : index
    %c1184 = arith.constant 1184 : index
    %167 = vector.load %arg15[%c0_107, %c1184] : memref<2x1568xf32, #tpu.memory_space<vmem>>, vector<2x32xf32>
    tpu.vector_store %arg15[%c0_107, %c1184], %166 {strides = array<i32>} : memref<2x1568xf32, #tpu.memory_space<vmem>>, vector<2x32xf32>,
    %168 = vector.extract_strided_slice %53 {offsets = [0, 5, 3, 0], sizes = [2, 1, 1, 32], strides = [1, 1, 1, 1]} : vector<2x7x8x32xf32> to vector<2x1x1x32xf32>
    %169 = vector.shape_cast %168 : vector<2x1x1x32xf32> to vector<2x32xf32>
    %c0_108 = arith.constant 0 : index
    %c1216 = arith.constant 1216 : index
    %170 = vector.load %arg15[%c0_108, %c1216] : memref<2x1568xf32, #tpu.memory_space<vmem>>, vector<2x32xf32>
    tpu.vector_store %arg15[%c0_108, %c1216], %169 {strides = array<i32>} : memref<2x1568xf32, #tpu.memory_space<vmem>>, vector<2x32xf32>,
    %171 = vector.extract_strided_slice %53 {offsets = [0, 5, 4, 0], sizes = [2, 1, 1, 32], strides = [1, 1, 1, 1]} : vector<2x7x8x32xf32> to vector<2x1x1x32xf32>
    %172 = vector.shape_cast %171 : vector<2x1x1x32xf32> to vector<2x32xf32>
    %c0_109 = arith.constant 0 : index
    %c1248 = arith.constant 1248 : index
    %173 = vector.load %arg15[%c0_109, %c1248] : memref<2x1568xf32, #tpu.memory_space<vmem>>, vector<2x32xf32>
    tpu.vector_store %arg15[%c0_109, %c1248], %172 {strides = array<i32>} : memref<2x1568xf32, #tpu.memory_space<vmem>>, vector<2x32xf32>,
    %174 = vector.extract_strided_slice %53 {offsets = [0, 5, 5, 0], sizes = [2, 1, 1, 32], strides = [1, 1, 1, 1]} : vector<2x7x8x32xf32> to vector<2x1x1x32xf32>
    %175 = vector.shape_cast %174 : vector<2x1x1x32xf32> to vector<2x32xf32>
    %c0_110 = arith.constant 0 : index
    %c1280 = arith.constant 1280 : index
    %176 = vector.load %arg15[%c0_110, %c1280] : memref<2x1568xf32, #tpu.memory_space<vmem>>, vector<2x32xf32>
    tpu.vector_store %arg15[%c0_110, %c1280], %175 {strides = array<i32>} : memref<2x1568xf32, #tpu.memory_space<vmem>>, vector<2x32xf32>,
    %177 = vector.extract_strided_slice %53 {offsets = [0, 5, 6, 0], sizes = [2, 1, 1, 32], strides = [1, 1, 1, 1]} : vector<2x7x8x32xf32> to vector<2x1x1x32xf32>
    %178 = vector.shape_cast %177 : vector<2x1x1x32xf32> to vector<2x32xf32>
    %c0_111 = arith.constant 0 : index
    %c1312 = arith.constant 1312 : index
    %179 = vector.load %arg15[%c0_111, %c1312] : memref<2x1568xf32, #tpu.memory_space<vmem>>, vector<2x32xf32>
    tpu.vector_store %arg15[%c0_111, %c1312], %178 {strides = array<i32>} : memref<2x1568xf32, #tpu.memory_space<vmem>>, vector<2x32xf32>,
    %180 = vector.extract_strided_slice %53 {offsets = [0, 6, 0, 0], sizes = [2, 1, 1, 32], strides = [1, 1, 1, 1]} : vector<2x7x8x32xf32> to vector<2x1x1x32xf32>
    %181 = vector.shape_cast %180 : vector<2x1x1x32xf32> to vector<2x32xf32>
    %c0_112 = arith.constant 0 : index
    %c1344 = arith.constant 1344 : index
    %182 = vector.load %arg15[%c0_112, %c1344] : memref<2x1568xf32, #tpu.memory_space<vmem>>, vector<2x32xf32>
    tpu.vector_store %arg15[%c0_112, %c1344], %181 {strides = array<i32>} : memref<2x1568xf32, #tpu.memory_space<vmem>>, vector<2x32xf32>,
    %183 = vector.extract_strided_slice %53 {offsets = [0, 6, 1, 0], sizes = [2, 1, 1, 32], strides = [1, 1, 1, 1]} : vector<2x7x8x32xf32> to vector<2x1x1x32xf32>
    %184 = vector.shape_cast %183 : vector<2x1x1x32xf32> to vector<2x32xf32>
    %c0_113 = arith.constant 0 : index
    %c1376 = arith.constant 1376 : index
    %185 = vector.load %arg15[%c0_113, %c1376] : memref<2x1568xf32, #tpu.memory_space<vmem>>, vector<2x32xf32>
    tpu.vector_store %arg15[%c0_113, %c1376], %184 {strides = array<i32>} : memref<2x1568xf32, #tpu.memory_space<vmem>>, vector<2x32xf32>,
    %186 = vector.extract_strided_slice %53 {offsets = [0, 6, 2, 0], sizes = [2, 1, 1, 32], strides = [1, 1, 1, 1]} : vector<2x7x8x32xf32> to vector<2x1x1x32xf32>
    %187 = vector.shape_cast %186 : vector<2x1x1x32xf32> to vector<2x32xf32>
    %c0_114 = arith.constant 0 : index
    %c1408 = arith.constant 1408 : index
    %188 = vector.load %arg15[%c0_114, %c1408] : memref<2x1568xf32, #tpu.memory_space<vmem>>, vector<2x32xf32>
    tpu.vector_store %arg15[%c0_114, %c1408], %187 {strides = array<i32>} : memref<2x1568xf32, #tpu.memory_space<vmem>>, vector<2x32xf32>,
    %189 = vector.extract_strided_slice %53 {offsets = [0, 6, 3, 0], sizes = [2, 1, 1, 32], strides = [1, 1, 1, 1]} : vector<2x7x8x32xf32> to vector<2x1x1x32xf32>
    %190 = vector.shape_cast %189 : vector<2x1x1x32xf32> to vector<2x32xf32>
    %c0_115 = arith.constant 0 : index
    %c1440 = arith.constant 1440 : index
    %191 = vector.load %arg15[%c0_115, %c1440] : memref<2x1568xf32, #tpu.memory_space<vmem>>, vector<2x32xf32>
    tpu.vector_store %arg15[%c0_115, %c1440], %190 {strides = array<i32>} : memref<2x1568xf32, #tpu.memory_space<vmem>>, vector<2x32xf32>,
    %192 = vector.extract_strided_slice %53 {offsets = [0, 6, 4, 0], sizes = [2, 1, 1, 32], strides = [1, 1, 1, 1]} : vector<2x7x8x32xf32> to vector<2x1x1x32xf32>
    %193 = vector.shape_cast %192 : vector<2x1x1x32xf32> to vector<2x32xf32>
    %c0_116 = arith.constant 0 : index
    %c1472 = arith.constant 1472 : index
    %194 = vector.load %arg15[%c0_116, %c1472] : memref<2x1568xf32, #tpu.memory_space<vmem>>, vector<2x32xf32>
    tpu.vector_store %arg15[%c0_116, %c1472], %193 {strides = array<i32>} : memref<2x1568xf32, #tpu.memory_space<vmem>>, vector<2x32xf32>,
    %195 = vector.extract_strided_slice %53 {offsets = [0, 6, 5, 0], sizes = [2, 1, 1, 32], strides = [1, 1, 1, 1]} : vector<2x7x8x32xf32> to vector<2x1x1x32xf32>
    %196 = vector.shape_cast %195 : vector<2x1x1x32xf32> to vector<2x32xf32>
    %c0_117 = arith.constant 0 : index
    %c1504 = arith.constant 1504 : index
    %197 = vector.load %arg15[%c0_117, %c1504] : memref<2x1568xf32, #tpu.memory_space<vmem>>, vector<2x32xf32>
    tpu.vector_store %arg15[%c0_117, %c1504], %196 {strides = array<i32>} : memref<2x1568xf32, #tpu.memory_space<vmem>>, vector<2x32xf32>,
    %198 = vector.extract_strided_slice %53 {offsets = [0, 6, 6, 0], sizes = [2, 1, 1, 32], strides = [1, 1, 1, 1]} : vector<2x7x8x32xf32> to vector<2x1x1x32xf32>
    %199 = vector.shape_cast %198 : vector<2x1x1x32xf32> to vector<2x32xf32>
    %c0_118 = arith.constant 0 : index
    %c1536 = arith.constant 1536 : index
    %200 = vector.load %arg15[%c0_118, %c1536] : memref<2x1568xf32, #tpu.memory_space<vmem>>, vector<2x32xf32>
    tpu.vector_store %arg15[%c0_118, %c1536], %199 {strides = array<i32>} : memref<2x1568xf32, #tpu.memory_space<vmem>>, vector<2x32xf32>,
    %c0_119 = arith.constant 0 : index
    %c0_120 = arith.constant 0 : index
    %201 = vector.load %arg15[%c0_119, %c0_120] : memref<2x1568xf32, #tpu.memory_space<vmem>>, vector<2x1568xf32>
    %c0_121 = arith.constant 0 : index
    %c0_122 = arith.constant 0 : index
    %202 = vector.load %arg5[%c0_121, %c0_122] : memref<1568x64xf32, #tpu.memory_space<vmem>>, vector<1568x64xf32>
    %cst_123 = arith.constant dense<0.000000e+00> : vector<2x64xf32>
    %203 = tpu.matmul %201, %202, %cst_123 {dimension_numbers = #tpu.dot_dimension_numbers<[1], [0], [0], [1], [0, 0, 1, 1], [], []>} : vector<2x1568xf32>, vector<1568x64xf32>, vector<2x64xf32> -> vector<2x64xf32>
    %c0_124 = arith.constant 0 : index
    %c0_125 = arith.constant 0 : index
    %204 = vector.load %arg6[%c0_124, %c0_125] : memref<1x64xf32, #tpu.memory_space<vmem>>, vector<1x64xf32>
    %205 = vector.broadcast %204 : vector<1x64xf32> to vector<2x64xf32>
    %206 = arith.addf %203, %205 : vector<2x64xf32>
    %c0_126 = arith.constant 0 : index
    %c0_127 = arith.constant 0 : index
    %207 = vector.load %arg7[%c0_126, %c0_127] : memref<64x1568xf32, #tpu.memory_space<vmem>>, vector<64x1568xf32>
    %cst_128 = arith.constant dense<0.000000e+00> : vector<2x1568xf32>
    %208 = tpu.matmul %206, %207, %cst_128 {dimension_numbers = #tpu.dot_dimension_numbers<[1], [0], [0], [1], [0, 0, 1, 1], [], []>} : vector<2x64xf32>, vector<64x1568xf32>, vector<2x1568xf32> -> vector<2x1568xf32>
    %c0_129 = arith.constant 0 : index
    %c0_130 = arith.constant 0 : index
    %209 = vector.load %arg8[%c0_129, %c0_130] : memref<1x1568xf32, #tpu.memory_space<vmem>>, vector<1x1568xf32>
    %210 = vector.broadcast %209 : vector<1x1568xf32> to vector<2x1568xf32>
    %211 = arith.addf %208, %210 : vector<2x1568xf32>
    %cst_131 = arith.constant 0.000000e+00 : f32
    %212 = vector.broadcast %cst_131 : f32 to vector<2x1568xf32>
    %213 = arith.maximumf %211, %212 : vector<2x1568xf32>
    %cst_132 = arith.constant 0.000000e+00 : f32
    %214 = vector.broadcast %cst_132 : f32 to vector<2x8x9x32xf32>
    %c0_133 = arith.constant 0 : index
    %c0_134 = arith.constant 0 : index
    %c0_135 = arith.constant 0 : index
    %c0_136 = arith.constant 0 : index
    %215 = vector.load %arg16[%c0_133, %c0_134, %c0_135, %c0_136] : memref<2x8x9x32xf32, #tpu.memory_space<vmem>>, vector<2x8x9x32xf32>
    tpu.vector_store %arg16[%c0_133, %c0_134, %c0_135, %c0_136], %214 {strides = array<i32>} : memref<2x8x9x32xf32, #tpu.memory_space<vmem>>, vector<2x8x9x32xf32>,
    %216 = vector.extract_strided_slice %213 {offsets = [0, 0], sizes = [2, 32], strides = [1, 1]} : vector<2x1568xf32> to vector<2x32xf32>
    %c0_137 = arith.constant 0 : index
    %c0_138 = arith.constant 0 : index
    %c0_139 = arith.constant 0 : index
    %c0_140 = arith.constant 0 : index
    %217 = vector.load %arg16[%c0_137, %c0_138, %c0_139, %c0_140] : memref<2x8x9x32xf32, #tpu.memory_space<vmem>>, vector<2x1x1x32xf32>
    %218 = vector.shape_cast %217 : vector<2x1x1x32xf32> to vector<2x32xf32>
    %219 = vector.shape_cast %216 : vector<2x32xf32> to vector<2x1x1x32xf32>
    tpu.vector_store %arg16[%c0_137, %c0_138, %c0_139, %c0_140], %219 {strides = array<i32>} : memref<2x8x9x32xf32, #tpu.memory_space<vmem>>, vector<2x1x1x32xf32>,
    %220 = vector.extract_strided_slice %213 {offsets = [0, 32], sizes = [2, 32], strides = [1, 1]} : vector<2x1568xf32> to vector<2x32xf32>
    %c0_141 = arith.constant 0 : index
    %c0_142 = arith.constant 0 : index
    %c1_143 = arith.constant 1 : index
    %c0_144 = arith.constant 0 : index
    %221 = vector.load %arg16[%c0_141, %c0_142, %c1_143, %c0_144] : memref<2x8x9x32xf32, #tpu.memory_space<vmem>>, vector<2x1x1x32xf32>
    %222 = vector.shape_cast %221 : vector<2x1x1x32xf32> to vector<2x32xf32>
    %223 = vector.shape_cast %220 : vector<2x32xf32> to vector<2x1x1x32xf32>
    tpu.vector_store %arg16[%c0_141, %c0_142, %c1_143, %c0_144], %223 {strides = array<i32>} : memref<2x8x9x32xf32, #tpu.memory_space<vmem>>, vector<2x1x1x32xf32>,
    %224 = vector.extract_strided_slice %213 {offsets = [0, 64], sizes = [2, 32], strides = [1, 1]} : vector<2x1568xf32> to vector<2x32xf32>
    %c0_145 = arith.constant 0 : index
    %c0_146 = arith.constant 0 : index
    %c2_147 = arith.constant 2 : index
    %c0_148 = arith.constant 0 : index
    %225 = vector.load %arg16[%c0_145, %c0_146, %c2_147, %c0_148] : memref<2x8x9x32xf32, #tpu.memory_space<vmem>>, vector<2x1x1x32xf32>
    %226 = vector.shape_cast %225 : vector<2x1x1x32xf32> to vector<2x32xf32>
    %227 = vector.shape_cast %224 : vector<2x32xf32> to vector<2x1x1x32xf32>
    tpu.vector_store %arg16[%c0_145, %c0_146, %c2_147, %c0_148], %227 {strides = array<i32>} : memref<2x8x9x32xf32, #tpu.memory_space<vmem>>, vector<2x1x1x32xf32>,
    %228 = vector.extract_strided_slice %213 {offsets = [0, 96], sizes = [2, 32], strides = [1, 1]} : vector<2x1568xf32> to vector<2x32xf32>
    %c0_149 = arith.constant 0 : index
    %c0_150 = arith.constant 0 : index
    %c3 = arith.constant 3 : index
    %c0_151 = arith.constant 0 : index
    %229 = vector.load %arg16[%c0_149, %c0_150, %c3, %c0_151] : memref<2x8x9x32xf32, #tpu.memory_space<vmem>>, vector<2x1x1x32xf32>
    %230 = vector.shape_cast %229 : vector<2x1x1x32xf32> to vector<2x32xf32>
    %231 = vector.shape_cast %228 : vector<2x32xf32> to vector<2x1x1x32xf32>
    tpu.vector_store %arg16[%c0_149, %c0_150, %c3, %c0_151], %231 {strides = array<i32>} : memref<2x8x9x32xf32, #tpu.memory_space<vmem>>, vector<2x1x1x32xf32>,
    %232 = vector.extract_strided_slice %213 {offsets = [0, 128], sizes = [2, 32], strides = [1, 1]} : vector<2x1568xf32> to vector<2x32xf32>
    %c0_152 = arith.constant 0 : index
    %c0_153 = arith.constant 0 : index
    %c4 = arith.constant 4 : index
    %c0_154 = arith.constant 0 : index
    %233 = vector.load %arg16[%c0_152, %c0_153, %c4, %c0_154] : memref<2x8x9x32xf32, #tpu.memory_space<vmem>>, vector<2x1x1x32xf32>
    %234 = vector.shape_cast %233 : vector<2x1x1x32xf32> to vector<2x32xf32>
    %235 = vector.shape_cast %232 : vector<2x32xf32> to vector<2x1x1x32xf32>
    tpu.vector_store %arg16[%c0_152, %c0_153, %c4, %c0_154], %235 {strides = array<i32>} : memref<2x8x9x32xf32, #tpu.memory_space<vmem>>, vector<2x1x1x32xf32>,
    %236 = vector.extract_strided_slice %213 {offsets = [0, 160], sizes = [2, 32], strides = [1, 1]} : vector<2x1568xf32> to vector<2x32xf32>
    %c0_155 = arith.constant 0 : index
    %c0_156 = arith.constant 0 : index
    %c5 = arith.constant 5 : index
    %c0_157 = arith.constant 0 : index
    %237 = vector.load %arg16[%c0_155, %c0_156, %c5, %c0_157] : memref<2x8x9x32xf32, #tpu.memory_space<vmem>>, vector<2x1x1x32xf32>
    %238 = vector.shape_cast %237 : vector<2x1x1x32xf32> to vector<2x32xf32>
    %239 = vector.shape_cast %236 : vector<2x32xf32> to vector<2x1x1x32xf32>
    tpu.vector_store %arg16[%c0_155, %c0_156, %c5, %c0_157], %239 {strides = array<i32>} : memref<2x8x9x32xf32, #tpu.memory_space<vmem>>, vector<2x1x1x32xf32>,
    %240 = vector.extract_strided_slice %213 {offsets = [0, 192], sizes = [2, 32], strides = [1, 1]} : vector<2x1568xf32> to vector<2x32xf32>
    %c0_158 = arith.constant 0 : index
    %c0_159 = arith.constant 0 : index
    %c6 = arith.constant 6 : index
    %c0_160 = arith.constant 0 : index
    %241 = vector.load %arg16[%c0_158, %c0_159, %c6, %c0_160] : memref<2x8x9x32xf32, #tpu.memory_space<vmem>>, vector<2x1x1x32xf32>
    %242 = vector.shape_cast %241 : vector<2x1x1x32xf32> to vector<2x32xf32>
    %243 = vector.shape_cast %240 : vector<2x32xf32> to vector<2x1x1x32xf32>
    tpu.vector_store %arg16[%c0_158, %c0_159, %c6, %c0_160], %243 {strides = array<i32>} : memref<2x8x9x32xf32, #tpu.memory_space<vmem>>, vector<2x1x1x32xf32>,
    %244 = vector.extract_strided_slice %213 {offsets = [0, 224], sizes = [2, 32], strides = [1, 1]} : vector<2x1568xf32> to vector<2x32xf32>
    %c0_161 = arith.constant 0 : index
    %c1_162 = arith.constant 1 : index
    %c0_163 = arith.constant 0 : index
    %c0_164 = arith.constant 0 : index
    %245 = vector.load %arg16[%c0_161, %c1_162, %c0_163, %c0_164] : memref<2x8x9x32xf32, #tpu.memory_space<vmem>>, vector<2x1x1x32xf32>
    %246 = vector.shape_cast %245 : vector<2x1x1x32xf32> to vector<2x32xf32>
    %247 = vector.shape_cast %244 : vector<2x32xf32> to vector<2x1x1x32xf32>
    tpu.vector_store %arg16[%c0_161, %c1_162, %c0_163, %c0_164], %247 {strides = array<i32>} : memref<2x8x9x32xf32, #tpu.memory_space<vmem>>, vector<2x1x1x32xf32>,
    %248 = vector.extract_strided_slice %213 {offsets = [0, 256], sizes = [2, 32], strides = [1, 1]} : vector<2x1568xf32> to vector<2x32xf32>
    %c0_165 = arith.constant 0 : index
    %c1_166 = arith.constant 1 : index
    %c1_167 = arith.constant 1 : index
    %c0_168 = arith.constant 0 : index
    %249 = vector.load %arg16[%c0_165, %c1_166, %c1_167, %c0_168] : memref<2x8x9x32xf32, #tpu.memory_space<vmem>>, vector<2x1x1x32xf32>
    %250 = vector.shape_cast %249 : vector<2x1x1x32xf32> to vector<2x32xf32>
    %251 = vector.shape_cast %248 : vector<2x32xf32> to vector<2x1x1x32xf32>
    tpu.vector_store %arg16[%c0_165, %c1_166, %c1_167, %c0_168], %251 {strides = array<i32>} : memref<2x8x9x32xf32, #tpu.memory_space<vmem>>, vector<2x1x1x32xf32>,
    %252 = vector.extract_strided_slice %213 {offsets = [0, 288], sizes = [2, 32], strides = [1, 1]} : vector<2x1568xf32> to vector<2x32xf32>
    %c0_169 = arith.constant 0 : index
    %c1_170 = arith.constant 1 : index
    %c2_171 = arith.constant 2 : index
    %c0_172 = arith.constant 0 : index
    %253 = vector.load %arg16[%c0_169, %c1_170, %c2_171, %c0_172] : memref<2x8x9x32xf32, #tpu.memory_space<vmem>>, vector<2x1x1x32xf32>
    %254 = vector.shape_cast %253 : vector<2x1x1x32xf32> to vector<2x32xf32>
    %255 = vector.shape_cast %252 : vector<2x32xf32> to vector<2x1x1x32xf32>
    tpu.vector_store %arg16[%c0_169, %c1_170, %c2_171, %c0_172], %255 {strides = array<i32>} : memref<2x8x9x32xf32, #tpu.memory_space<vmem>>, vector<2x1x1x32xf32>,
    %256 = vector.extract_strided_slice %213 {offsets = [0, 320], sizes = [2, 32], strides = [1, 1]} : vector<2x1568xf32> to vector<2x32xf32>
    %c0_173 = arith.constant 0 : index
    %c1_174 = arith.constant 1 : index
    %c3_175 = arith.constant 3 : index
    %c0_176 = arith.constant 0 : index
    %257 = vector.load %arg16[%c0_173, %c1_174, %c3_175, %c0_176] : memref<2x8x9x32xf32, #tpu.memory_space<vmem>>, vector<2x1x1x32xf32>
    %258 = vector.shape_cast %257 : vector<2x1x1x32xf32> to vector<2x32xf32>
    %259 = vector.shape_cast %256 : vector<2x32xf32> to vector<2x1x1x32xf32>
    tpu.vector_store %arg16[%c0_173, %c1_174, %c3_175, %c0_176], %259 {strides = array<i32>} : memref<2x8x9x32xf32, #tpu.memory_space<vmem>>, vector<2x1x1x32xf32>,
    %260 = vector.extract_strided_slice %213 {offsets = [0, 352], sizes = [2, 32], strides = [1, 1]} : vector<2x1568xf32> to vector<2x32xf32>
    %c0_177 = arith.constant 0 : index
    %c1_178 = arith.constant 1 : index
    %c4_179 = arith.constant 4 : index
    %c0_180 = arith.constant 0 : index
    %261 = vector.load %arg16[%c0_177, %c1_178, %c4_179, %c0_180] : memref<2x8x9x32xf32, #tpu.memory_space<vmem>>, vector<2x1x1x32xf32>
    %262 = vector.shape_cast %261 : vector<2x1x1x32xf32> to vector<2x32xf32>
    %263 = vector.shape_cast %260 : vector<2x32xf32> to vector<2x1x1x32xf32>
    tpu.vector_store %arg16[%c0_177, %c1_178, %c4_179, %c0_180], %263 {strides = array<i32>} : memref<2x8x9x32xf32, #tpu.memory_space<vmem>>, vector<2x1x1x32xf32>,
    %264 = vector.extract_strided_slice %213 {offsets = [0, 384], sizes = [2, 32], strides = [1, 1]} : vector<2x1568xf32> to vector<2x32xf32>
    %c0_181 = arith.constant 0 : index
    %c1_182 = arith.constant 1 : index
    %c5_183 = arith.constant 5 : index
    %c0_184 = arith.constant 0 : index
    %265 = vector.load %arg16[%c0_181, %c1_182, %c5_183, %c0_184] : memref<2x8x9x32xf32, #tpu.memory_space<vmem>>, vector<2x1x1x32xf32>
    %266 = vector.shape_cast %265 : vector<2x1x1x32xf32> to vector<2x32xf32>
    %267 = vector.shape_cast %264 : vector<2x32xf32> to vector<2x1x1x32xf32>
    tpu.vector_store %arg16[%c0_181, %c1_182, %c5_183, %c0_184], %267 {strides = array<i32>} : memref<2x8x9x32xf32, #tpu.memory_space<vmem>>, vector<2x1x1x32xf32>,
    %268 = vector.extract_strided_slice %213 {offsets = [0, 416], sizes = [2, 32], strides = [1, 1]} : vector<2x1568xf32> to vector<2x32xf32>
    %c0_185 = arith.constant 0 : index
    %c1_186 = arith.constant 1 : index
    %c6_187 = arith.constant 6 : index
    %c0_188 = arith.constant 0 : index
    %269 = vector.load %arg16[%c0_185, %c1_186, %c6_187, %c0_188] : memref<2x8x9x32xf32, #tpu.memory_space<vmem>>, vector<2x1x1x32xf32>
    %270 = vector.shape_cast %269 : vector<2x1x1x32xf32> to vector<2x32xf32>
    %271 = vector.shape_cast %268 : vector<2x32xf32> to vector<2x1x1x32xf32>
    tpu.vector_store %arg16[%c0_185, %c1_186, %c6_187, %c0_188], %271 {strides = array<i32>} : memref<2x8x9x32xf32, #tpu.memory_space<vmem>>, vector<2x1x1x32xf32>,
    %272 = vector.extract_strided_slice %213 {offsets = [0, 448], sizes = [2, 32], strides = [1, 1]} : vector<2x1568xf32> to vector<2x32xf32>
    %c0_189 = arith.constant 0 : index
    %c2_190 = arith.constant 2 : index
    %c0_191 = arith.constant 0 : index
    %c0_192 = arith.constant 0 : index
    %273 = vector.load %arg16[%c0_189, %c2_190, %c0_191, %c0_192] : memref<2x8x9x32xf32, #tpu.memory_space<vmem>>, vector<2x1x1x32xf32>
    %274 = vector.shape_cast %273 : vector<2x1x1x32xf32> to vector<2x32xf32>
    %275 = vector.shape_cast %272 : vector<2x32xf32> to vector<2x1x1x32xf32>
    tpu.vector_store %arg16[%c0_189, %c2_190, %c0_191, %c0_192], %275 {strides = array<i32>} : memref<2x8x9x32xf32, #tpu.memory_space<vmem>>, vector<2x1x1x32xf32>,
    %276 = vector.extract_strided_slice %213 {offsets = [0, 480], sizes = [2, 32], strides = [1, 1]} : vector<2x1568xf32> to vector<2x32xf32>
    %c0_193 = arith.constant 0 : index
    %c2_194 = arith.constant 2 : index
    %c1_195 = arith.constant 1 : index
    %c0_196 = arith.constant 0 : index
    %277 = vector.load %arg16[%c0_193, %c2_194, %c1_195, %c0_196] : memref<2x8x9x32xf32, #tpu.memory_space<vmem>>, vector<2x1x1x32xf32>
    %278 = vector.shape_cast %277 : vector<2x1x1x32xf32> to vector<2x32xf32>
    %279 = vector.shape_cast %276 : vector<2x32xf32> to vector<2x1x1x32xf32>
    tpu.vector_store %arg16[%c0_193, %c2_194, %c1_195, %c0_196], %279 {strides = array<i32>} : memref<2x8x9x32xf32, #tpu.memory_space<vmem>>, vector<2x1x1x32xf32>,
    %280 = vector.extract_strided_slice %213 {offsets = [0, 512], sizes = [2, 32], strides = [1, 1]} : vector<2x1568xf32> to vector<2x32xf32>
    %c0_197 = arith.constant 0 : index
    %c2_198 = arith.constant 2 : index
    %c2_199 = arith.constant 2 : index
    %c0_200 = arith.constant 0 : index
    %281 = vector.load %arg16[%c0_197, %c2_198, %c2_199, %c0_200] : memref<2x8x9x32xf32, #tpu.memory_space<vmem>>, vector<2x1x1x32xf32>
    %282 = vector.shape_cast %281 : vector<2x1x1x32xf32> to vector<2x32xf32>
    %283 = vector.shape_cast %280 : vector<2x32xf32> to vector<2x1x1x32xf32>
    tpu.vector_store %arg16[%c0_197, %c2_198, %c2_199, %c0_200], %283 {strides = array<i32>} : memref<2x8x9x32xf32, #tpu.memory_space<vmem>>, vector<2x1x1x32xf32>,
    %284 = vector.extract_strided_slice %213 {offsets = [0, 544], sizes = [2, 32], strides = [1, 1]} : vector<2x1568xf32> to vector<2x32xf32>
    %c0_201 = arith.constant 0 : index
    %c2_202 = arith.constant 2 : index
    %c3_203 = arith.constant 3 : index
    %c0_204 = arith.constant 0 : index
    %285 = vector.load %arg16[%c0_201, %c2_202, %c3_203, %c0_204] : memref<2x8x9x32xf32, #tpu.memory_space<vmem>>, vector<2x1x1x32xf32>
    %286 = vector.shape_cast %285 : vector<2x1x1x32xf32> to vector<2x32xf32>
    %287 = vector.shape_cast %284 : vector<2x32xf32> to vector<2x1x1x32xf32>
    tpu.vector_store %arg16[%c0_201, %c2_202, %c3_203, %c0_204], %287 {strides = array<i32>} : memref<2x8x9x32xf32, #tpu.memory_space<vmem>>, vector<2x1x1x32xf32>,
    %288 = vector.extract_strided_slice %213 {offsets = [0, 576], sizes = [2, 32], strides = [1, 1]} : vector<2x1568xf32> to vector<2x32xf32>
    %c0_205 = arith.constant 0 : index
    %c2_206 = arith.constant 2 : index
    %c4_207 = arith.constant 4 : index
    %c0_208 = arith.constant 0 : index
    %289 = vector.load %arg16[%c0_205, %c2_206, %c4_207, %c0_208] : memref<2x8x9x32xf32, #tpu.memory_space<vmem>>, vector<2x1x1x32xf32>
    %290 = vector.shape_cast %289 : vector<2x1x1x32xf32> to vector<2x32xf32>
    %291 = vector.shape_cast %288 : vector<2x32xf32> to vector<2x1x1x32xf32>
    tpu.vector_store %arg16[%c0_205, %c2_206, %c4_207, %c0_208], %291 {strides = array<i32>} : memref<2x8x9x32xf32, #tpu.memory_space<vmem>>, vector<2x1x1x32xf32>,
    %292 = vector.extract_strided_slice %213 {offsets = [0, 608], sizes = [2, 32], strides = [1, 1]} : vector<2x1568xf32> to vector<2x32xf32>
    %c0_209 = arith.constant 0 : index
    %c2_210 = arith.constant 2 : index
    %c5_211 = arith.constant 5 : index
    %c0_212 = arith.constant 0 : index
    %293 = vector.load %arg16[%c0_209, %c2_210, %c5_211, %c0_212] : memref<2x8x9x32xf32, #tpu.memory_space<vmem>>, vector<2x1x1x32xf32>
    %294 = vector.shape_cast %293 : vector<2x1x1x32xf32> to vector<2x32xf32>
    %295 = vector.shape_cast %292 : vector<2x32xf32> to vector<2x1x1x32xf32>
    tpu.vector_store %arg16[%c0_209, %c2_210, %c5_211, %c0_212], %295 {strides = array<i32>} : memref<2x8x9x32xf32, #tpu.memory_space<vmem>>, vector<2x1x1x32xf32>,
    %296 = vector.extract_strided_slice %213 {offsets = [0, 640], sizes = [2, 32], strides = [1, 1]} : vector<2x1568xf32> to vector<2x32xf32>
    %c0_213 = arith.constant 0 : index
    %c2_214 = arith.constant 2 : index
    %c6_215 = arith.constant 6 : index
    %c0_216 = arith.constant 0 : index
    %297 = vector.load %arg16[%c0_213, %c2_214, %c6_215, %c0_216] : memref<2x8x9x32xf32, #tpu.memory_space<vmem>>, vector<2x1x1x32xf32>
    %298 = vector.shape_cast %297 : vector<2x1x1x32xf32> to vector<2x32xf32>
    %299 = vector.shape_cast %296 : vector<2x32xf32> to vector<2x1x1x32xf32>
    tpu.vector_store %arg16[%c0_213, %c2_214, %c6_215, %c0_216], %299 {strides = array<i32>} : memref<2x8x9x32xf32, #tpu.memory_space<vmem>>, vector<2x1x1x32xf32>,
    %300 = vector.extract_strided_slice %213 {offsets = [0, 672], sizes = [2, 32], strides = [1, 1]} : vector<2x1568xf32> to vector<2x32xf32>
    %c0_217 = arith.constant 0 : index
    %c3_218 = arith.constant 3 : index
    %c0_219 = arith.constant 0 : index
    %c0_220 = arith.constant 0 : index
    %301 = vector.load %arg16[%c0_217, %c3_218, %c0_219, %c0_220] : memref<2x8x9x32xf32, #tpu.memory_space<vmem>>, vector<2x1x1x32xf32>
    %302 = vector.shape_cast %301 : vector<2x1x1x32xf32> to vector<2x32xf32>
    %303 = vector.shape_cast %300 : vector<2x32xf32> to vector<2x1x1x32xf32>
    tpu.vector_store %arg16[%c0_217, %c3_218, %c0_219, %c0_220], %303 {strides = array<i32>} : memref<2x8x9x32xf32, #tpu.memory_space<vmem>>, vector<2x1x1x32xf32>,
    %304 = vector.extract_strided_slice %213 {offsets = [0, 704], sizes = [2, 32], strides = [1, 1]} : vector<2x1568xf32> to vector<2x32xf32>
    %c0_221 = arith.constant 0 : index
    %c3_222 = arith.constant 3 : index
    %c1_223 = arith.constant 1 : index
    %c0_224 = arith.constant 0 : index
    %305 = vector.load %arg16[%c0_221, %c3_222, %c1_223, %c0_224] : memref<2x8x9x32xf32, #tpu.memory_space<vmem>>, vector<2x1x1x32xf32>
    %306 = vector.shape_cast %305 : vector<2x1x1x32xf32> to vector<2x32xf32>
    %307 = vector.shape_cast %304 : vector<2x32xf32> to vector<2x1x1x32xf32>
    tpu.vector_store %arg16[%c0_221, %c3_222, %c1_223, %c0_224], %307 {strides = array<i32>} : memref<2x8x9x32xf32, #tpu.memory_space<vmem>>, vector<2x1x1x32xf32>,
    %308 = vector.extract_strided_slice %213 {offsets = [0, 736], sizes = [2, 32], strides = [1, 1]} : vector<2x1568xf32> to vector<2x32xf32>
    %c0_225 = arith.constant 0 : index
    %c3_226 = arith.constant 3 : index
    %c2_227 = arith.constant 2 : index
    %c0_228 = arith.constant 0 : index
    %309 = vector.load %arg16[%c0_225, %c3_226, %c2_227, %c0_228] : memref<2x8x9x32xf32, #tpu.memory_space<vmem>>, vector<2x1x1x32xf32>
    %310 = vector.shape_cast %309 : vector<2x1x1x32xf32> to vector<2x32xf32>
    %311 = vector.shape_cast %308 : vector<2x32xf32> to vector<2x1x1x32xf32>
    tpu.vector_store %arg16[%c0_225, %c3_226, %c2_227, %c0_228], %311 {strides = array<i32>} : memref<2x8x9x32xf32, #tpu.memory_space<vmem>>, vector<2x1x1x32xf32>,
    %312 = vector.extract_strided_slice %213 {offsets = [0, 768], sizes = [2, 32], strides = [1, 1]} : vector<2x1568xf32> to vector<2x32xf32>
    %c0_229 = arith.constant 0 : index
    %c3_230 = arith.constant 3 : index
    %c3_231 = arith.constant 3 : index
    %c0_232 = arith.constant 0 : index
    %313 = vector.load %arg16[%c0_229, %c3_230, %c3_231, %c0_232] : memref<2x8x9x32xf32, #tpu.memory_space<vmem>>, vector<2x1x1x32xf32>
    %314 = vector.shape_cast %313 : vector<2x1x1x32xf32> to vector<2x32xf32>
    %315 = vector.shape_cast %312 : vector<2x32xf32> to vector<2x1x1x32xf32>
    tpu.vector_store %arg16[%c0_229, %c3_230, %c3_231, %c0_232], %315 {strides = array<i32>} : memref<2x8x9x32xf32, #tpu.memory_space<vmem>>, vector<2x1x1x32xf32>,
    %316 = vector.extract_strided_slice %213 {offsets = [0, 800], sizes = [2, 32], strides = [1, 1]} : vector<2x1568xf32> to vector<2x32xf32>
    %c0_233 = arith.constant 0 : index
    %c3_234 = arith.constant 3 : index
    %c4_235 = arith.constant 4 : index
    %c0_236 = arith.constant 0 : index
    %317 = vector.load %arg16[%c0_233, %c3_234, %c4_235, %c0_236] : memref<2x8x9x32xf32, #tpu.memory_space<vmem>>, vector<2x1x1x32xf32>
    %318 = vector.shape_cast %317 : vector<2x1x1x32xf32> to vector<2x32xf32>
    %319 = vector.shape_cast %316 : vector<2x32xf32> to vector<2x1x1x32xf32>
    tpu.vector_store %arg16[%c0_233, %c3_234, %c4_235, %c0_236], %319 {strides = array<i32>} : memref<2x8x9x32xf32, #tpu.memory_space<vmem>>, vector<2x1x1x32xf32>,
    %320 = vector.extract_strided_slice %213 {offsets = [0, 832], sizes = [2, 32], strides = [1, 1]} : vector<2x1568xf32> to vector<2x32xf32>
    %c0_237 = arith.constant 0 : index
    %c3_238 = arith.constant 3 : index
    %c5_239 = arith.constant 5 : index
    %c0_240 = arith.constant 0 : index
    %321 = vector.load %arg16[%c0_237, %c3_238, %c5_239, %c0_240] : memref<2x8x9x32xf32, #tpu.memory_space<vmem>>, vector<2x1x1x32xf32>
    %322 = vector.shape_cast %321 : vector<2x1x1x32xf32> to vector<2x32xf32>
    %323 = vector.shape_cast %320 : vector<2x32xf32> to vector<2x1x1x32xf32>
    tpu.vector_store %arg16[%c0_237, %c3_238, %c5_239, %c0_240], %323 {strides = array<i32>} : memref<2x8x9x32xf32, #tpu.memory_space<vmem>>, vector<2x1x1x32xf32>,
    %324 = vector.extract_strided_slice %213 {offsets = [0, 864], sizes = [2, 32], strides = [1, 1]} : vector<2x1568xf32> to vector<2x32xf32>
    %c0_241 = arith.constant 0 : index
    %c3_242 = arith.constant 3 : index
    %c6_243 = arith.constant 6 : index
    %c0_244 = arith.constant 0 : index
    %325 = vector.load %arg16[%c0_241, %c3_242, %c6_243, %c0_244] : memref<2x8x9x32xf32, #tpu.memory_space<vmem>>, vector<2x1x1x32xf32>
    %326 = vector.shape_cast %325 : vector<2x1x1x32xf32> to vector<2x32xf32>
    %327 = vector.shape_cast %324 : vector<2x32xf32> to vector<2x1x1x32xf32>
    tpu.vector_store %arg16[%c0_241, %c3_242, %c6_243, %c0_244], %327 {strides = array<i32>} : memref<2x8x9x32xf32, #tpu.memory_space<vmem>>, vector<2x1x1x32xf32>,
    %328 = vector.extract_strided_slice %213 {offsets = [0, 896], sizes = [2, 32], strides = [1, 1]} : vector<2x1568xf32> to vector<2x32xf32>
    %c0_245 = arith.constant 0 : index
    %c4_246 = arith.constant 4 : index
    %c0_247 = arith.constant 0 : index
    %c0_248 = arith.constant 0 : index
    %329 = vector.load %arg16[%c0_245, %c4_246, %c0_247, %c0_248] : memref<2x8x9x32xf32, #tpu.memory_space<vmem>>, vector<2x1x1x32xf32>
    %330 = vector.shape_cast %329 : vector<2x1x1x32xf32> to vector<2x32xf32>
    %331 = vector.shape_cast %328 : vector<2x32xf32> to vector<2x1x1x32xf32>
    tpu.vector_store %arg16[%c0_245, %c4_246, %c0_247, %c0_248], %331 {strides = array<i32>} : memref<2x8x9x32xf32, #tpu.memory_space<vmem>>, vector<2x1x1x32xf32>,
    %332 = vector.extract_strided_slice %213 {offsets = [0, 928], sizes = [2, 32], strides = [1, 1]} : vector<2x1568xf32> to vector<2x32xf32>
    %c0_249 = arith.constant 0 : index
    %c4_250 = arith.constant 4 : index
    %c1_251 = arith.constant 1 : index
    %c0_252 = arith.constant 0 : index
    %333 = vector.load %arg16[%c0_249, %c4_250, %c1_251, %c0_252] : memref<2x8x9x32xf32, #tpu.memory_space<vmem>>, vector<2x1x1x32xf32>
    %334 = vector.shape_cast %333 : vector<2x1x1x32xf32> to vector<2x32xf32>
    %335 = vector.shape_cast %332 : vector<2x32xf32> to vector<2x1x1x32xf32>
    tpu.vector_store %arg16[%c0_249, %c4_250, %c1_251, %c0_252], %335 {strides = array<i32>} : memref<2x8x9x32xf32, #tpu.memory_space<vmem>>, vector<2x1x1x32xf32>,
    %336 = vector.extract_strided_slice %213 {offsets = [0, 960], sizes = [2, 32], strides = [1, 1]} : vector<2x1568xf32> to vector<2x32xf32>
    %c0_253 = arith.constant 0 : index
    %c4_254 = arith.constant 4 : index
    %c2_255 = arith.constant 2 : index
    %c0_256 = arith.constant 0 : index
    %337 = vector.load %arg16[%c0_253, %c4_254, %c2_255, %c0_256] : memref<2x8x9x32xf32, #tpu.memory_space<vmem>>, vector<2x1x1x32xf32>
    %338 = vector.shape_cast %337 : vector<2x1x1x32xf32> to vector<2x32xf32>
    %339 = vector.shape_cast %336 : vector<2x32xf32> to vector<2x1x1x32xf32>
    tpu.vector_store %arg16[%c0_253, %c4_254, %c2_255, %c0_256], %339 {strides = array<i32>} : memref<2x8x9x32xf32, #tpu.memory_space<vmem>>, vector<2x1x1x32xf32>,
    %340 = vector.extract_strided_slice %213 {offsets = [0, 992], sizes = [2, 32], strides = [1, 1]} : vector<2x1568xf32> to vector<2x32xf32>
    %c0_257 = arith.constant 0 : index
    %c4_258 = arith.constant 4 : index
    %c3_259 = arith.constant 3 : index
    %c0_260 = arith.constant 0 : index
    %341 = vector.load %arg16[%c0_257, %c4_258, %c3_259, %c0_260] : memref<2x8x9x32xf32, #tpu.memory_space<vmem>>, vector<2x1x1x32xf32>
    %342 = vector.shape_cast %341 : vector<2x1x1x32xf32> to vector<2x32xf32>
    %343 = vector.shape_cast %340 : vector<2x32xf32> to vector<2x1x1x32xf32>
    tpu.vector_store %arg16[%c0_257, %c4_258, %c3_259, %c0_260], %343 {strides = array<i32>} : memref<2x8x9x32xf32, #tpu.memory_space<vmem>>, vector<2x1x1x32xf32>,
    %344 = vector.extract_strided_slice %213 {offsets = [0, 1024], sizes = [2, 32], strides = [1, 1]} : vector<2x1568xf32> to vector<2x32xf32>
    %c0_261 = arith.constant 0 : index
    %c4_262 = arith.constant 4 : index
    %c4_263 = arith.constant 4 : index
    %c0_264 = arith.constant 0 : index
    %345 = vector.load %arg16[%c0_261, %c4_262, %c4_263, %c0_264] : memref<2x8x9x32xf32, #tpu.memory_space<vmem>>, vector<2x1x1x32xf32>
    %346 = vector.shape_cast %345 : vector<2x1x1x32xf32> to vector<2x32xf32>
    %347 = vector.shape_cast %344 : vector<2x32xf32> to vector<2x1x1x32xf32>
    tpu.vector_store %arg16[%c0_261, %c4_262, %c4_263, %c0_264], %347 {strides = array<i32>} : memref<2x8x9x32xf32, #tpu.memory_space<vmem>>, vector<2x1x1x32xf32>,
    %348 = vector.extract_strided_slice %213 {offsets = [0, 1056], sizes = [2, 32], strides = [1, 1]} : vector<2x1568xf32> to vector<2x32xf32>
    %c0_265 = arith.constant 0 : index
    %c4_266 = arith.constant 4 : index
    %c5_267 = arith.constant 5 : index
    %c0_268 = arith.constant 0 : index
    %349 = vector.load %arg16[%c0_265, %c4_266, %c5_267, %c0_268] : memref<2x8x9x32xf32, #tpu.memory_space<vmem>>, vector<2x1x1x32xf32>
    %350 = vector.shape_cast %349 : vector<2x1x1x32xf32> to vector<2x32xf32>
    %351 = vector.shape_cast %348 : vector<2x32xf32> to vector<2x1x1x32xf32>
    tpu.vector_store %arg16[%c0_265, %c4_266, %c5_267, %c0_268], %351 {strides = array<i32>} : memref<2x8x9x32xf32, #tpu.memory_space<vmem>>, vector<2x1x1x32xf32>,
    %352 = vector.extract_strided_slice %213 {offsets = [0, 1088], sizes = [2, 32], strides = [1, 1]} : vector<2x1568xf32> to vector<2x32xf32>
    %c0_269 = arith.constant 0 : index
    %c4_270 = arith.constant 4 : index
    %c6_271 = arith.constant 6 : index
    %c0_272 = arith.constant 0 : index
    %353 = vector.load %arg16[%c0_269, %c4_270, %c6_271, %c0_272] : memref<2x8x9x32xf32, #tpu.memory_space<vmem>>, vector<2x1x1x32xf32>
    %354 = vector.shape_cast %353 : vector<2x1x1x32xf32> to vector<2x32xf32>
    %355 = vector.shape_cast %352 : vector<2x32xf32> to vector<2x1x1x32xf32>
    tpu.vector_store %arg16[%c0_269, %c4_270, %c6_271, %c0_272], %355 {strides = array<i32>} : memref<2x8x9x32xf32, #tpu.memory_space<vmem>>, vector<2x1x1x32xf32>,
    %356 = vector.extract_strided_slice %213 {offsets = [0, 1120], sizes = [2, 32], strides = [1, 1]} : vector<2x1568xf32> to vector<2x32xf32>
    %c0_273 = arith.constant 0 : index
    %c5_274 = arith.constant 5 : index
    %c0_275 = arith.constant 0 : index
    %c0_276 = arith.constant 0 : index
    %357 = vector.load %arg16[%c0_273, %c5_274, %c0_275, %c0_276] : memref<2x8x9x32xf32, #tpu.memory_space<vmem>>, vector<2x1x1x32xf32>
    %358 = vector.shape_cast %357 : vector<2x1x1x32xf32> to vector<2x32xf32>
    %359 = vector.shape_cast %356 : vector<2x32xf32> to vector<2x1x1x32xf32>
    tpu.vector_store %arg16[%c0_273, %c5_274, %c0_275, %c0_276], %359 {strides = array<i32>} : memref<2x8x9x32xf32, #tpu.memory_space<vmem>>, vector<2x1x1x32xf32>,
    %360 = vector.extract_strided_slice %213 {offsets = [0, 1152], sizes = [2, 32], strides = [1, 1]} : vector<2x1568xf32> to vector<2x32xf32>
    %c0_277 = arith.constant 0 : index
    %c5_278 = arith.constant 5 : index
    %c1_279 = arith.constant 1 : index
    %c0_280 = arith.constant 0 : index
    %361 = vector.load %arg16[%c0_277, %c5_278, %c1_279, %c0_280] : memref<2x8x9x32xf32, #tpu.memory_space<vmem>>, vector<2x1x1x32xf32>
    %362 = vector.shape_cast %361 : vector<2x1x1x32xf32> to vector<2x32xf32>
    %363 = vector.shape_cast %360 : vector<2x32xf32> to vector<2x1x1x32xf32>
    tpu.vector_store %arg16[%c0_277, %c5_278, %c1_279, %c0_280], %363 {strides = array<i32>} : memref<2x8x9x32xf32, #tpu.memory_space<vmem>>, vector<2x1x1x32xf32>,
    %364 = vector.extract_strided_slice %213 {offsets = [0, 1184], sizes = [2, 32], strides = [1, 1]} : vector<2x1568xf32> to vector<2x32xf32>
    %c0_281 = arith.constant 0 : index
    %c5_282 = arith.constant 5 : index
    %c2_283 = arith.constant 2 : index
    %c0_284 = arith.constant 0 : index
    %365 = vector.load %arg16[%c0_281, %c5_282, %c2_283, %c0_284] : memref<2x8x9x32xf32, #tpu.memory_space<vmem>>, vector<2x1x1x32xf32>
    %366 = vector.shape_cast %365 : vector<2x1x1x32xf32> to vector<2x32xf32>
    %367 = vector.shape_cast %364 : vector<2x32xf32> to vector<2x1x1x32xf32>
    tpu.vector_store %arg16[%c0_281, %c5_282, %c2_283, %c0_284], %367 {strides = array<i32>} : memref<2x8x9x32xf32, #tpu.memory_space<vmem>>, vector<2x1x1x32xf32>,
    %368 = vector.extract_strided_slice %213 {offsets = [0, 1216], sizes = [2, 32], strides = [1, 1]} : vector<2x1568xf32> to vector<2x32xf32>
    %c0_285 = arith.constant 0 : index
    %c5_286 = arith.constant 5 : index
    %c3_287 = arith.constant 3 : index
    %c0_288 = arith.constant 0 : index
    %369 = vector.load %arg16[%c0_285, %c5_286, %c3_287, %c0_288] : memref<2x8x9x32xf32, #tpu.memory_space<vmem>>, vector<2x1x1x32xf32>
    %370 = vector.shape_cast %369 : vector<2x1x1x32xf32> to vector<2x32xf32>
    %371 = vector.shape_cast %368 : vector<2x32xf32> to vector<2x1x1x32xf32>
    tpu.vector_store %arg16[%c0_285, %c5_286, %c3_287, %c0_288], %371 {strides = array<i32>} : memref<2x8x9x32xf32, #tpu.memory_space<vmem>>, vector<2x1x1x32xf32>,
    %372 = vector.extract_strided_slice %213 {offsets = [0, 1248], sizes = [2, 32], strides = [1, 1]} : vector<2x1568xf32> to vector<2x32xf32>
    %c0_289 = arith.constant 0 : index
    %c5_290 = arith.constant 5 : index
    %c4_291 = arith.constant 4 : index
    %c0_292 = arith.constant 0 : index
    %373 = vector.load %arg16[%c0_289, %c5_290, %c4_291, %c0_292] : memref<2x8x9x32xf32, #tpu.memory_space<vmem>>, vector<2x1x1x32xf32>
    %374 = vector.shape_cast %373 : vector<2x1x1x32xf32> to vector<2x32xf32>
    %375 = vector.shape_cast %372 : vector<2x32xf32> to vector<2x1x1x32xf32>
    tpu.vector_store %arg16[%c0_289, %c5_290, %c4_291, %c0_292], %375 {strides = array<i32>} : memref<2x8x9x32xf32, #tpu.memory_space<vmem>>, vector<2x1x1x32xf32>,
    %376 = vector.extract_strided_slice %213 {offsets = [0, 1280], sizes = [2, 32], strides = [1, 1]} : vector<2x1568xf32> to vector<2x32xf32>
    %c0_293 = arith.constant 0 : index
    %c5_294 = arith.constant 5 : index
    %c5_295 = arith.constant 5 : index
    %c0_296 = arith.constant 0 : index
    %377 = vector.load %arg16[%c0_293, %c5_294, %c5_295, %c0_296] : memref<2x8x9x32xf32, #tpu.memory_space<vmem>>, vector<2x1x1x32xf32>
    %378 = vector.shape_cast %377 : vector<2x1x1x32xf32> to vector<2x32xf32>
    %379 = vector.shape_cast %376 : vector<2x32xf32> to vector<2x1x1x32xf32>
    tpu.vector_store %arg16[%c0_293, %c5_294, %c5_295, %c0_296], %379 {strides = array<i32>} : memref<2x8x9x32xf32, #tpu.memory_space<vmem>>, vector<2x1x1x32xf32>,
    %380 = vector.extract_strided_slice %213 {offsets = [0, 1312], sizes = [2, 32], strides = [1, 1]} : vector<2x1568xf32> to vector<2x32xf32>
    %c0_297 = arith.constant 0 : index
    %c5_298 = arith.constant 5 : index
    %c6_299 = arith.constant 6 : index
    %c0_300 = arith.constant 0 : index
    %381 = vector.load %arg16[%c0_297, %c5_298, %c6_299, %c0_300] : memref<2x8x9x32xf32, #tpu.memory_space<vmem>>, vector<2x1x1x32xf32>
    %382 = vector.shape_cast %381 : vector<2x1x1x32xf32> to vector<2x32xf32>
    %383 = vector.shape_cast %380 : vector<2x32xf32> to vector<2x1x1x32xf32>
    tpu.vector_store %arg16[%c0_297, %c5_298, %c6_299, %c0_300], %383 {strides = array<i32>} : memref<2x8x9x32xf32, #tpu.memory_space<vmem>>, vector<2x1x1x32xf32>,
    %384 = vector.extract_strided_slice %213 {offsets = [0, 1344], sizes = [2, 32], strides = [1, 1]} : vector<2x1568xf32> to vector<2x32xf32>
    %c0_301 = arith.constant 0 : index
    %c6_302 = arith.constant 6 : index
    %c0_303 = arith.constant 0 : index
    %c0_304 = arith.constant 0 : index
    %385 = vector.load %arg16[%c0_301, %c6_302, %c0_303, %c0_304] : memref<2x8x9x32xf32, #tpu.memory_space<vmem>>, vector<2x1x1x32xf32>
    %386 = vector.shape_cast %385 : vector<2x1x1x32xf32> to vector<2x32xf32>
    %387 = vector.shape_cast %384 : vector<2x32xf32> to vector<2x1x1x32xf32>
    tpu.vector_store %arg16[%c0_301, %c6_302, %c0_303, %c0_304], %387 {strides = array<i32>} : memref<2x8x9x32xf32, #tpu.memory_space<vmem>>, vector<2x1x1x32xf32>,
    %388 = vector.extract_strided_slice %213 {offsets = [0, 1376], sizes = [2, 32], strides = [1, 1]} : vector<2x1568xf32> to vector<2x32xf32>
    %c0_305 = arith.constant 0 : index
    %c6_306 = arith.constant 6 : index
    %c1_307 = arith.constant 1 : index
    %c0_308 = arith.constant 0 : index
    %389 = vector.load %arg16[%c0_305, %c6_306, %c1_307, %c0_308] : memref<2x8x9x32xf32, #tpu.memory_space<vmem>>, vector<2x1x1x32xf32>
    %390 = vector.shape_cast %389 : vector<2x1x1x32xf32> to vector<2x32xf32>
    %391 = vector.shape_cast %388 : vector<2x32xf32> to vector<2x1x1x32xf32>
    tpu.vector_store %arg16[%c0_305, %c6_306, %c1_307, %c0_308], %391 {strides = array<i32>} : memref<2x8x9x32xf32, #tpu.memory_space<vmem>>, vector<2x1x1x32xf32>,
    %392 = vector.extract_strided_slice %213 {offsets = [0, 1408], sizes = [2, 32], strides = [1, 1]} : vector<2x1568xf32> to vector<2x32xf32>
    %c0_309 = arith.constant 0 : index
    %c6_310 = arith.constant 6 : index
    %c2_311 = arith.constant 2 : index
    %c0_312 = arith.constant 0 : index
    %393 = vector.load %arg16[%c0_309, %c6_310, %c2_311, %c0_312] : memref<2x8x9x32xf32, #tpu.memory_space<vmem>>, vector<2x1x1x32xf32>
    %394 = vector.shape_cast %393 : vector<2x1x1x32xf32> to vector<2x32xf32>
    %395 = vector.shape_cast %392 : vector<2x32xf32> to vector<2x1x1x32xf32>
    tpu.vector_store %arg16[%c0_309, %c6_310, %c2_311, %c0_312], %395 {strides = array<i32>} : memref<2x8x9x32xf32, #tpu.memory_space<vmem>>, vector<2x1x1x32xf32>,
    %396 = vector.extract_strided_slice %213 {offsets = [0, 1440], sizes = [2, 32], strides = [1, 1]} : vector<2x1568xf32> to vector<2x32xf32>
    %c0_313 = arith.constant 0 : index
    %c6_314 = arith.constant 6 : index
    %c3_315 = arith.constant 3 : index
    %c0_316 = arith.constant 0 : index
    %397 = vector.load %arg16[%c0_313, %c6_314, %c3_315, %c0_316] : memref<2x8x9x32xf32, #tpu.memory_space<vmem>>, vector<2x1x1x32xf32>
    %398 = vector.shape_cast %397 : vector<2x1x1x32xf32> to vector<2x32xf32>
    %399 = vector.shape_cast %396 : vector<2x32xf32> to vector<2x1x1x32xf32>
    tpu.vector_store %arg16[%c0_313, %c6_314, %c3_315, %c0_316], %399 {strides = array<i32>} : memref<2x8x9x32xf32, #tpu.memory_space<vmem>>, vector<2x1x1x32xf32>,
    %400 = vector.extract_strided_slice %213 {offsets = [0, 1472], sizes = [2, 32], strides = [1, 1]} : vector<2x1568xf32> to vector<2x32xf32>
    %c0_317 = arith.constant 0 : index
    %c6_318 = arith.constant 6 : index
    %c4_319 = arith.constant 4 : index
    %c0_320 = arith.constant 0 : index
    %401 = vector.load %arg16[%c0_317, %c6_318, %c4_319, %c0_320] : memref<2x8x9x32xf32, #tpu.memory_space<vmem>>, vector<2x1x1x32xf32>
    %402 = vector.shape_cast %401 : vector<2x1x1x32xf32> to vector<2x32xf32>
    %403 = vector.shape_cast %400 : vector<2x32xf32> to vector<2x1x1x32xf32>
    tpu.vector_store %arg16[%c0_317, %c6_318, %c4_319, %c0_320], %403 {strides = array<i32>} : memref<2x8x9x32xf32, #tpu.memory_space<vmem>>, vector<2x1x1x32xf32>,
    %404 = vector.extract_strided_slice %213 {offsets = [0, 1504], sizes = [2, 32], strides = [1, 1]} : vector<2x1568xf32> to vector<2x32xf32>
    %c0_321 = arith.constant 0 : index
    %c6_322 = arith.constant 6 : index
    %c5_323 = arith.constant 5 : index
    %c0_324 = arith.constant 0 : index
    %405 = vector.load %arg16[%c0_321, %c6_322, %c5_323, %c0_324] : memref<2x8x9x32xf32, #tpu.memory_space<vmem>>, vector<2x1x1x32xf32>
    %406 = vector.shape_cast %405 : vector<2x1x1x32xf32> to vector<2x32xf32>
    %407 = vector.shape_cast %404 : vector<2x32xf32> to vector<2x1x1x32xf32>
    tpu.vector_store %arg16[%c0_321, %c6_322, %c5_323, %c0_324], %407 {strides = array<i32>} : memref<2x8x9x32xf32, #tpu.memory_space<vmem>>, vector<2x1x1x32xf32>,
    %408 = vector.extract_strided_slice %213 {offsets = [0, 1536], sizes = [2, 32], strides = [1, 1]} : vector<2x1568xf32> to vector<2x32xf32>
    %c0_325 = arith.constant 0 : index
    %c6_326 = arith.constant 6 : index
    %c6_327 = arith.constant 6 : index
    %c0_328 = arith.constant 0 : index
    %409 = vector.load %arg16[%c0_325, %c6_326, %c6_327, %c0_328] : memref<2x8x9x32xf32, #tpu.memory_space<vmem>>, vector<2x1x1x32xf32>
    %410 = vector.shape_cast %409 : vector<2x1x1x32xf32> to vector<2x32xf32>
    %411 = vector.shape_cast %408 : vector<2x32xf32> to vector<2x1x1x32xf32>
    tpu.vector_store %arg16[%c0_325, %c6_326, %c6_327, %c0_328], %411 {strides = array<i32>} : memref<2x8x9x32xf32, #tpu.memory_space<vmem>>, vector<2x1x1x32xf32>,
    %c0_329 = arith.constant 0 : index
    %c0_330 = arith.constant 0 : index
    %c0_331 = arith.constant 0 : index
    %c0_332 = arith.constant 0 : index
    %412 = vector.load %arg16[%c0_329, %c0_330, %c0_331, %c0_332] : memref<2x8x9x32xf32, #tpu.memory_space<vmem>>, vector<2x7x8x32xf32>
    %c0_333 = arith.constant 0 : index
    %c0_334 = arith.constant 0 : index
    %c1_335 = arith.constant 1 : index
    %c0_336 = arith.constant 0 : index
    %413 = vector.load %arg16[%c0_333, %c0_334, %c1_335, %c0_336] : memref<2x8x9x32xf32, #tpu.memory_space<vmem>>, vector<2x7x8x32xf32>
    %c0_337 = arith.constant 0 : index
    %c1_338 = arith.constant 1 : index
    %c0_339 = arith.constant 0 : index
    %c0_340 = arith.constant 0 : index
    %414 = vector.load %arg16[%c0_337, %c1_338, %c0_339, %c0_340] : memref<2x8x9x32xf32, #tpu.memory_space<vmem>>, vector<2x7x8x32xf32>
    %c0_341 = arith.constant 0 : index
    %c1_342 = arith.constant 1 : index
    %c1_343 = arith.constant 1 : index
    %c0_344 = arith.constant 0 : index
    %415 = vector.load %arg16[%c0_341, %c1_342, %c1_343, %c0_344] : memref<2x8x9x32xf32, #tpu.memory_space<vmem>>, vector<2x7x8x32xf32>
    %416 = tpu.concatenate %412, %413, %414, %415 in 3 : vector<2x7x8x32xf32>, vector<2x7x8x32xf32>, vector<2x7x8x32xf32>, vector<2x7x8x32xf32> -> vector<2x7x8x128xf32>
    %417 = vector.shape_cast %416 : vector<2x7x8x128xf32> to vector<112x128xf32>
    %c0_345 = arith.constant 0 : index
    %c0_346 = arith.constant 0 : index
    %418 = vector.load %arg9[%c0_345, %c0_346] : memref<128x64xf32, #tpu.memory_space<vmem>>, vector<128x64xf32>
    %cst_347 = arith.constant dense<0.000000e+00> : vector<112x64xf32>
    %419 = tpu.matmul %417, %418, %cst_347 {dimension_numbers = #tpu.dot_dimension_numbers<[1], [0], [0], [1], [0, 0, 1, 1], [], []>} : vector<112x128xf32>, vector<128x64xf32>, vector<112x64xf32> -> vector<112x64xf32>
    %c0_348 = arith.constant 0 : index
    %c0_349 = arith.constant 0 : index
    %420 = vector.load %arg10[%c0_348, %c0_349] : memref<1x64xf32, #tpu.memory_space<vmem>>, vector<1x64xf32>
    %421 = vector.broadcast %420 : vector<1x64xf32> to vector<112x64xf32>
    %422 = arith.addf %419, %421 : vector<112x64xf32>
    %cst_350 = arith.constant 0.000000e+00 : f32
    %423 = vector.broadcast %cst_350 : f32 to vector<112x64xf32>
    %424 = arith.maximumf %422, %423 : vector<112x64xf32>
    %425 = vector.shape_cast %424 : vector<112x64xf32> to vector<2x7x8x64xf32>
    %cst_351 = arith.constant 0.000000e+00 : f32
    %426 = vector.broadcast %cst_351 : f32 to vector<2x8x9x64xf32>
    %c0_352 = arith.constant 0 : index
    %c0_353 = arith.constant 0 : index
    %c0_354 = arith.constant 0 : index
    %c0_355 = arith.constant 0 : index
    %427 = vector.load %arg17[%c0_352, %c0_353, %c0_354, %c0_355] : memref<2x8x9x64xf32, #tpu.memory_space<vmem>>, vector<2x8x9x64xf32>
    tpu.vector_store %arg17[%c0_352, %c0_353, %c0_354, %c0_355], %426 {strides = array<i32>} : memref<2x8x9x64xf32, #tpu.memory_space<vmem>>, vector<2x8x9x64xf32>,
    %428 = vector.extract_strided_slice %425 {offsets = [0, 0, 0, 0], sizes = [2, 7, 7, 64], strides = [1, 1, 1, 1]} : vector<2x7x8x64xf32> to vector<2x7x7x64xf32>
    %c0_356 = arith.constant 0 : index
    %c0_357 = arith.constant 0 : index
    %c0_358 = arith.constant 0 : index
    %c0_359 = arith.constant 0 : index
    %429 = vector.load %arg17[%c0_356, %c0_357, %c0_358, %c0_359] : memref<2x8x9x64xf32, #tpu.memory_space<vmem>>, vector<2x7x7x64xf32>
    tpu.vector_store %arg17[%c0_356, %c0_357, %c0_358, %c0_359], %428 {strides = array<i32>} : memref<2x8x9x64xf32, #tpu.memory_space<vmem>>, vector<2x7x7x64xf32>,
    %c0_360 = arith.constant 0 : index
    %c0_361 = arith.constant 0 : index
    %c0_362 = arith.constant 0 : index
    %c0_363 = arith.constant 0 : index
    %430 = vector.load %arg17[%c0_360, %c0_361, %c0_362, %c0_363] : memref<2x8x9x64xf32, #tpu.memory_space<vmem>>, vector<2x7x8x16xf32>
    %c0_364 = arith.constant 0 : index
    %c0_365 = arith.constant 0 : index
    %c0_366 = arith.constant 0 : index
    %c16 = arith.constant 16 : index
    %431 = vector.load %arg17[%c0_364, %c0_365, %c0_366, %c16] : memref<2x8x9x64xf32, #tpu.memory_space<vmem>>, vector<2x7x8x16xf32>
    %c0_367 = arith.constant 0 : index
    %c0_368 = arith.constant 0 : index
    %c0_369 = arith.constant 0 : index
    %c32_370 = arith.constant 32 : index
    %432 = vector.load %arg17[%c0_367, %c0_368, %c0_369, %c32_370] : memref<2x8x9x64xf32, #tpu.memory_space<vmem>>, vector<2x7x8x16xf32>
    %c0_371 = arith.constant 0 : index
    %c0_372 = arith.constant 0 : index
    %c0_373 = arith.constant 0 : index
    %c48 = arith.constant 48 : index
    %433 = vector.load %arg17[%c0_371, %c0_372, %c0_373, %c48] : memref<2x8x9x64xf32, #tpu.memory_space<vmem>>, vector<2x7x8x16xf32>
    %434 = tpu.concatenate %430, %431, %432, %433 in 3 : vector<2x7x8x16xf32>, vector<2x7x8x16xf32>, vector<2x7x8x16xf32>, vector<2x7x8x16xf32> -> vector<2x7x8x64xf32>
    %435 = vector.shape_cast %434 : vector<2x7x8x64xf32> to vector<112x64xf32>
    %c0_374 = arith.constant 0 : index
    %c0_375 = arith.constant 0 : index
    %436 = vector.load %arg11[%c0_374, %c0_375] : memref<64x12xf32, #tpu.memory_space<vmem>>, vector<64x12xf32>
    %cst_376 = arith.constant dense<0.000000e+00> : vector<112x12xf32>
    %437 = tpu.matmul %435, %436, %cst_376 {dimension_numbers = #tpu.dot_dimension_numbers<[1], [0], [0], [1], [0, 0, 1, 1], [], []>} : vector<112x64xf32>, vector<64x12xf32>, vector<112x12xf32> -> vector<112x12xf32>
    %c0_377 = arith.constant 0 : index
    %c0_378 = arith.constant 0 : index
    %438 = vector.load %arg12[%c0_377, %c0_378] : memref<1x12xf32, #tpu.memory_space<vmem>>, vector<1x12xf32>
    %439 = vector.broadcast %438 : vector<1x12xf32> to vector<112x12xf32>
    %440 = arith.addf %437, %439 : vector<112x12xf32>
    %cst_379 = arith.constant 0.000000e+00 : f32
    %441 = vector.broadcast %cst_379 : f32 to vector<112x12xf32>
    %442 = arith.subf %441, %440 : vector<112x12xf32>
    %443 = math.exp %442 : vector<112x12xf32>
    %cst_380 = arith.constant 1.000000e+00 : f32
    %444 = vector.broadcast %cst_380 : f32 to vector<112x12xf32>
    %445 = arith.addf %444, %443 : vector<112x12xf32>
    %446 = tpu.reciprocal %445 : vector<112x12xf32> -> vector<112x12xf32>
    %c0_381 = arith.constant 0 : index
    %c0_382 = arith.constant 0 : index
    %447 = vector.load %arg13[%c0_381, %c0_382] : memref<448x12xf32, #tpu.memory_space<vmem>>, vector<112x12xf32>
    tpu.vector_store %arg13[%c0_381, %c0_382], %446 {strides = array<i32>} : memref<448x12xf32, #tpu.memory_space<vmem>>, vector<112x12xf32>,
    %c0_383 = arith.constant 0 : index
    %c0_384 = arith.constant 0 : index
    %c0_385 = arith.constant 0 : index
    %c16_386 = arith.constant 16 : index
    %448 = vector.load %arg17[%c0_383, %c0_384, %c0_385, %c16_386] : memref<2x8x9x64xf32, #tpu.memory_space<vmem>>, vector<2x7x8x16xf32>
    %c0_387 = arith.constant 0 : index
    %c0_388 = arith.constant 0 : index
    %c1_389 = arith.constant 1 : index
    %c0_390 = arith.constant 0 : index
    %449 = vector.load %arg17[%c0_387, %c0_388, %c1_389, %c0_390] : memref<2x8x9x64xf32, #tpu.memory_space<vmem>>, vector<2x7x8x16xf32>
    %c0_391 = arith.constant 0 : index
    %c0_392 = arith.constant 0 : index
    %c0_393 = arith.constant 0 : index
    %c48_394 = arith.constant 48 : index
    %450 = vector.load %arg17[%c0_391, %c0_392, %c0_393, %c48_394] : memref<2x8x9x64xf32, #tpu.memory_space<vmem>>, vector<2x7x8x16xf32>
    %c0_395 = arith.constant 0 : index
    %c0_396 = arith.constant 0 : index
    %c1_397 = arith.constant 1 : index
    %c32_398 = arith.constant 32 : index
    %451 = vector.load %arg17[%c0_395, %c0_396, %c1_397, %c32_398] : memref<2x8x9x64xf32, #tpu.memory_space<vmem>>, vector<2x7x8x16xf32>
    %452 = tpu.concatenate %448, %449, %450, %451 in 3 : vector<2x7x8x16xf32>, vector<2x7x8x16xf32>, vector<2x7x8x16xf32>, vector<2x7x8x16xf32> -> vector<2x7x8x64xf32>
    %453 = vector.shape_cast %452 : vector<2x7x8x64xf32> to vector<112x64xf32>
    %c0_399 = arith.constant 0 : index
    %c0_400 = arith.constant 0 : index
    %454 = vector.load %arg11[%c0_399, %c0_400] : memref<64x12xf32, #tpu.memory_space<vmem>>, vector<64x12xf32>
    %cst_401 = arith.constant dense<0.000000e+00> : vector<112x12xf32>
    %455 = tpu.matmul %453, %454, %cst_401 {dimension_numbers = #tpu.dot_dimension_numbers<[1], [0], [0], [1], [0, 0, 1, 1], [], []>} : vector<112x64xf32>, vector<64x12xf32>, vector<112x12xf32> -> vector<112x12xf32>
    %c0_402 = arith.constant 0 : index
    %c0_403 = arith.constant 0 : index
    %456 = vector.load %arg12[%c0_402, %c0_403] : memref<1x12xf32, #tpu.memory_space<vmem>>, vector<1x12xf32>
    %457 = vector.broadcast %456 : vector<1x12xf32> to vector<112x12xf32>
    %458 = arith.addf %455, %457 : vector<112x12xf32>
    %cst_404 = arith.constant 0.000000e+00 : f32
    %459 = vector.broadcast %cst_404 : f32 to vector<112x12xf32>
    %460 = arith.subf %459, %458 : vector<112x12xf32>
    %461 = math.exp %460 : vector<112x12xf32>
    %cst_405 = arith.constant 1.000000e+00 : f32
    %462 = vector.broadcast %cst_405 : f32 to vector<112x12xf32>
    %463 = arith.addf %462, %461 : vector<112x12xf32>
    %464 = tpu.reciprocal %463 : vector<112x12xf32> -> vector<112x12xf32>
    %c112 = arith.constant 112 : index
    %c0_406 = arith.constant 0 : index
    %465 = vector.load %arg13[%c112, %c0_406] : memref<448x12xf32, #tpu.memory_space<vmem>>, vector<112x12xf32>
    tpu.vector_store %arg13[%c112, %c0_406], %464 {strides = array<i32>} : memref<448x12xf32, #tpu.memory_space<vmem>>, vector<112x12xf32>,
    %c0_407 = arith.constant 0 : index
    %c0_408 = arith.constant 0 : index
    %c0_409 = arith.constant 0 : index
    %c32_410 = arith.constant 32 : index
    %466 = vector.load %arg17[%c0_407, %c0_408, %c0_409, %c32_410] : memref<2x8x9x64xf32, #tpu.memory_space<vmem>>, vector<2x7x8x16xf32>
    %c0_411 = arith.constant 0 : index
    %c0_412 = arith.constant 0 : index
    %c0_413 = arith.constant 0 : index
    %c48_414 = arith.constant 48 : index
    %467 = vector.load %arg17[%c0_411, %c0_412, %c0_413, %c48_414] : memref<2x8x9x64xf32, #tpu.memory_space<vmem>>, vector<2x7x8x16xf32>
    %c0_415 = arith.constant 0 : index
    %c1_416 = arith.constant 1 : index
    %c0_417 = arith.constant 0 : index
    %c0_418 = arith.constant 0 : index
    %468 = vector.load %arg17[%c0_415, %c1_416, %c0_417, %c0_418] : memref<2x8x9x64xf32, #tpu.memory_space<vmem>>, vector<2x7x8x16xf32>
    %c0_419 = arith.constant 0 : index
    %c1_420 = arith.constant 1 : index
    %c0_421 = arith.constant 0 : index
    %c16_422 = arith.constant 16 : index
    %469 = vector.load %arg17[%c0_419, %c1_420, %c0_421, %c16_422] : memref<2x8x9x64xf32, #tpu.memory_space<vmem>>, vector<2x7x8x16xf32>
    %470 = tpu.concatenate %466, %467, %468, %469 in 3 : vector<2x7x8x16xf32>, vector<2x7x8x16xf32>, vector<2x7x8x16xf32>, vector<2x7x8x16xf32> -> vector<2x7x8x64xf32>
    %471 = vector.shape_cast %470 : vector<2x7x8x64xf32> to vector<112x64xf32>
    %c0_423 = arith.constant 0 : index
    %c0_424 = arith.constant 0 : index
    %472 = vector.load %arg11[%c0_423, %c0_424] : memref<64x12xf32, #tpu.memory_space<vmem>>, vector<64x12xf32>
    %cst_425 = arith.constant dense<0.000000e+00> : vector<112x12xf32>
    %473 = tpu.matmul %471, %472, %cst_425 {dimension_numbers = #tpu.dot_dimension_numbers<[1], [0], [0], [1], [0, 0, 1, 1], [], []>} : vector<112x64xf32>, vector<64x12xf32>, vector<112x12xf32> -> vector<112x12xf32>
    %c0_426 = arith.constant 0 : index
    %c0_427 = arith.constant 0 : index
    %474 = vector.load %arg12[%c0_426, %c0_427] : memref<1x12xf32, #tpu.memory_space<vmem>>, vector<1x12xf32>
    %475 = vector.broadcast %474 : vector<1x12xf32> to vector<112x12xf32>
    %476 = arith.addf %473, %475 : vector<112x12xf32>
    %cst_428 = arith.constant 0.000000e+00 : f32
    %477 = vector.broadcast %cst_428 : f32 to vector<112x12xf32>
    %478 = arith.subf %477, %476 : vector<112x12xf32>
    %479 = math.exp %478 : vector<112x12xf32>
    %cst_429 = arith.constant 1.000000e+00 : f32
    %480 = vector.broadcast %cst_429 : f32 to vector<112x12xf32>
    %481 = arith.addf %480, %479 : vector<112x12xf32>
    %482 = tpu.reciprocal %481 : vector<112x12xf32> -> vector<112x12xf32>
    %c224_430 = arith.constant 224 : index
    %c0_431 = arith.constant 0 : index
    %483 = vector.load %arg13[%c224_430, %c0_431] : memref<448x12xf32, #tpu.memory_space<vmem>>, vector<112x12xf32>
    tpu.vector_store %arg13[%c224_430, %c0_431], %482 {strides = array<i32>} : memref<448x12xf32, #tpu.memory_space<vmem>>, vector<112x12xf32>,
    %c0_432 = arith.constant 0 : index
    %c0_433 = arith.constant 0 : index
    %c0_434 = arith.constant 0 : index
    %c48_435 = arith.constant 48 : index
    %484 = vector.load %arg17[%c0_432, %c0_433, %c0_434, %c48_435] : memref<2x8x9x64xf32, #tpu.memory_space<vmem>>, vector<2x7x8x16xf32>
    %c0_436 = arith.constant 0 : index
    %c0_437 = arith.constant 0 : index
    %c1_438 = arith.constant 1 : index
    %c32_439 = arith.constant 32 : index
    %485 = vector.load %arg17[%c0_436, %c0_437, %c1_438, %c32_439] : memref<2x8x9x64xf32, #tpu.memory_space<vmem>>, vector<2x7x8x16xf32>
    %c0_440 = arith.constant 0 : index
    %c1_441 = arith.constant 1 : index
    %c0_442 = arith.constant 0 : index
    %c16_443 = arith.constant 16 : index
    %486 = vector.load %arg17[%c0_440, %c1_441, %c0_442, %c16_443] : memref<2x8x9x64xf32, #tpu.memory_space<vmem>>, vector<2x7x8x16xf32>
    %c0_444 = arith.constant 0 : index
    %c1_445 = arith.constant 1 : index
    %c1_446 = arith.constant 1 : index
    %c0_447 = arith.constant 0 : index
    %487 = vector.load %arg17[%c0_444, %c1_445, %c1_446, %c0_447] : memref<2x8x9x64xf32, #tpu.memory_space<vmem>>, vector<2x7x8x16xf32>
    %488 = tpu.concatenate %484, %485, %486, %487 in 3 : vector<2x7x8x16xf32>, vector<2x7x8x16xf32>, vector<2x7x8x16xf32>, vector<2x7x8x16xf32> -> vector<2x7x8x64xf32>
    %489 = vector.shape_cast %488 : vector<2x7x8x64xf32> to vector<112x64xf32>
    %c0_448 = arith.constant 0 : index
    %c0_449 = arith.constant 0 : index
    %490 = vector.load %arg11[%c0_448, %c0_449] : memref<64x12xf32, #tpu.memory_space<vmem>>, vector<64x12xf32>
    %cst_450 = arith.constant dense<0.000000e+00> : vector<112x12xf32>
    %491 = tpu.matmul %489, %490, %cst_450 {dimension_numbers = #tpu.dot_dimension_numbers<[1], [0], [0], [1], [0, 0, 1, 1], [], []>} : vector<112x64xf32>, vector<64x12xf32>, vector<112x12xf32> -> vector<112x12xf32>
    %c0_451 = arith.constant 0 : index
    %c0_452 = arith.constant 0 : index
    %492 = vector.load %arg12[%c0_451, %c0_452] : memref<1x12xf32, #tpu.memory_space<vmem>>, vector<1x12xf32>
    %493 = vector.broadcast %492 : vector<1x12xf32> to vector<112x12xf32>
    %494 = arith.addf %491, %493 : vector<112x12xf32>
    %cst_453 = arith.constant 0.000000e+00 : f32
    %495 = vector.broadcast %cst_453 : f32 to vector<112x12xf32>
    %496 = arith.subf %495, %494 : vector<112x12xf32>
    %497 = math.exp %496 : vector<112x12xf32>
    %cst_454 = arith.constant 1.000000e+00 : f32
    %498 = vector.broadcast %cst_454 : f32 to vector<112x12xf32>
    %499 = arith.addf %498, %497 : vector<112x12xf32>
    %500 = tpu.reciprocal %499 : vector<112x12xf32> -> vector<112x12xf32>
    %c336 = arith.constant 336 : index
    %c0_455 = arith.constant 0 : index
    %501 = vector.load %arg13[%c336, %c0_455] : memref<448x12xf32, #tpu.memory_space<vmem>>, vector<112x12xf32>
    tpu.vector_store %arg13[%c336, %c0_455], %500 {strides = array<i32>} : memref<448x12xf32, #tpu.memory_space<vmem>>, vector<112x12xf32>,
    return
  }
}

</mosaic_0001>

<bundles_post_ra>
// kernel: autoencoder_forward.1
= control target key start
LH: loop header
LB: loop body
LE: loop exit
PB: predicated region body
PF: predicated region fallthrough
CT: control target
= control target key end

     0   :  { %s11541_s29 = smov 24   ;;  %s11542_s30 = smov 12   ;;  %vm941_vm0 = vcmask 97280   ;;  %vm998_vm1 = vcmask 195584   ;;  %vm1055_vm2 = vcmask 293888   ;;  %vm1125_vm3 = vcmask 392192   ;;  %s16568_s0 = inlined_call_operand.vmem [shape: f32[2,15,17,12], index: 0, kind: input, shape index: {}]   ;;  %s16569_s1 = inlined_call_operand.vmem [shape: f32[48,16], index: 1, kind: input, shape index: {}]   ;;  %s16570_s2 = inlined_call_operand.vmem [shape: f32[1,16], index: 2, kind: input, shape index: {}]   ;;  %s16571_s3 = inlined_call_operand.vmem [shape: f32[144,32], index: 3, kind: input, shape index: {}]   ;;  %s16572_s5 = inlined_call_operand.vmem [shape: f32[1568,64], index: 5, kind: input, shape index: {}]   ;;  %s16573_s4 = inlined_call_operand.vmem [shape: f32[1,32], index: 4, kind: input, shape index: {}]   ;;  %s16574_s7 = inlined_call_operand.vmem [shape: f32[64,1568], index: 7, kind: input, shape index: {}]   ;;  %s16575_s6 = inlined_call_operand.vmem [shape: f32[1,64], index: 6, kind: input, shape index: {}]   ;;  %s16576_s8 = inlined_call_operand.vmem [shape: f32[1,1568], index: 8, kind: input, shape index: {}]   ;;  %s16577_s9 = inlined_call_operand.vmem [shape: f32[128,64], index: 9, kind: input, shape index: {}]   ;;  %s16578_s11 = inlined_call_operand.vmem [shape: f32[64,12], index: 11, kind: input, shape index: {}]   ;;  %s16579_s10 = inlined_call_operand.vmem [shape: f32[1,64], index: 10, kind: input, shape index: {}]   ;;  %s16580_s12 = inlined_call_operand.vmem [shape: f32[1,12], index: 12, kind: input, shape index: {}]   ;;  %s16581_s13 = inlined_call_operand.vmem [shape: f32[448,12], index: 13, kind: output, shape index: {}]  }
   0x1   :  { %v11629_v0 = vld [vmem:[%s16568_s0 + $0x18] sm:$0xff]  ;;  %v100_v1 = vld [vmem:[%s16568_s0 + $0x1] sm:$0xff]  ;;  %v101_v3 = vld [vmem:[%s16568_s0 + $0x9] sm:$0xff]  ;;  %s11543_s22 = smov 36   ;;  %vm1695_vm4 = vcmask 130048   ;;  %vm1698_vm5 = vcmask 123904  }
   0x2   :  { %549 = vrot.lane.b32.xlu1 %v11629_v0, %s11541_s29  ;;  %325 = vrot.lane.b32.xlu0 %v100_v1, %s11542_s30  ;;  %v11640_v2 = vld [vmem:[%s16568_s0 + $0x20] sm:$0xff]  ;;  %v11661_v6 = vld [vmem:[%s16568_s0 + $0x38] sm:$0xff]  ;;  %s11545_s28 = smov 32   ;;  %s11546_s14 = smov 16   ;;  %vm1795_vm6 = vcmask 128000   ;;  %vm2916_vm7 = vcmask 261120  }
   0x3   :  { %v9329_v4 = vld [vmem:[%s16568_s0 + $0x21] sm:$0xff]  ;;  %v9328_v5 = vld [vmem:[%s16568_s0 + $0x19] sm:$0xff]  ;;  %v11666_v7 = vld [vmem:[%s16568_s0 + $0x30] sm:$0xff]  ;;  %vm2973_vm8 = vcmask 523264   ;;  %s11548_s26 = smov 64   ;;  %s11549_s27 = smov 48  }
   0x4   :  { %v1112_v8 = vld [vmem:[%s16569_s1] sm:$0xff]  ;;  %v1113_v9 = vld [vmem:[%s16569_s1 + $0x8] sm:$0xff]  ;;  %v1114_v11 = vld [vmem:[%s16569_s1 + $0x10] sm:$0xff]  ;;  %s11550_s17 = smov 80   ;;  %vm3537_vm9 = vcmask 1040384   ;;  %vm3566_vm10 = vcmask 1041408  }
   0x5   :  { %v10258_v10 = vpack.c.bf16 %v1113_v9, %v1112_v8  ;;  %v1115_v12 = vld [vmem:[%s16569_s1 + $0x18] sm:$0xff]  ;;  %v1116_v14 = vld [vmem:[%s16569_s1 + $0x20] sm:$0xff]  ;;  %v1117_v17 = vld [vmem:[%s16569_s1 + $0x28] sm:$0xff]  ;;  %s11551_s24 = smov 96   ;;  %vm3595_vm11 = vcmask 1042432   ;;  %vm3624_vm12 = vcmask 1043456  }
   0x6   :  { %551 = vrot.lane.b32.xlu1 %v11640_v2, %s11541_s29  ;;  %327 = vrot.lane.b32.xlu0 %v101_v3, %s11542_s30  ;;  %v10262_v13 = vpack.c.bf16 %v1115_v12, %v1114_v11  ;;  %v9331_v15 = vld [vmem:[%s16568_s0 + $0x39] sm:$0xff]  ;;  %v9330_v16 = vld [vmem:[%s16568_s0 + $0x31] sm:$0xff]  ;;  %v10266_v18 = vpack.c.bf16 %v1117_v17, %v1116_v14  ;;  %vm3653_vm13 = vcmask 1044480   ;;  %vm3682_vm14 = vcmask 1045504   ;;  %s11552_s1 = smov 112  }
   0x7   :  { %10259 = vmatprep.subr.bf16.mxu0 %v10258_v10  ;;  %v11703_v19 = vld [vmem:[%s16568_s0 + $0x50] sm:$0xff]  ;;  %v11708_v20 = vld [vmem:[%s16568_s0 + $0x48] sm:$0xff]  ;;  %v11732_v24 = vld [vmem:[%s16568_s0 + $0x60] sm:$0xff]  ;;  %vm3711_vm15 = vcmask 1046528  }
   0x8   :  { %10261 = vmatpush3.bf16.msra.mxu0 %v10258_v10  ;;  %v9333_v21 = vld [vmem:[%s16568_s0 + $0x51] sm:$0xff]  ;;  %v9332_v22 = vld [vmem:[%s16568_s0 + $0x49] sm:$0xff]  ;;  %v9334_v26 = vld [vmem:[%s16568_s0 + $0x61] sm:$0xff] }
   0x9   :  { %10263 = vmatprep.subr.bf16.mxu0 %v10262_v13  ;;  %v11727_v23 = vld [vmem:[%s16568_s0 + $0x68] sm:$0xff]  ;;  %v11751_v27 = vld [vmem:[%s16568_s0 + $0x80] sm:$0xff]  ;;  %v11756_v28 = vld [vmem:[%s16568_s0 + $0x78] sm:$0xff] }
   0xa   :  { %775 = vrot.lane.b32.xlu1 %v9329_v4, %s11543_s22  ;;  %773 = vrot.lane.b32.xlu0 %v9328_v5, %s11543_s22  ;;  %v9335_v25 = vld [vmem:[%s16568_s0 + $0x69] sm:$0xff]  ;;  %v9337_v29 = vld [vmem:[%s16568_s0 + $0x81] sm:$0xff] }
   0xb   :  { %v9336_v30 = vld [vmem:[%s16568_s0 + $0x79] sm:$0xff]  ;;  %v11780_v32 = vld [vmem:[%s16568_s0 + $0x90] sm:$0xff]  ;;  %v11804_v36 = vld [vmem:[%s16568_s0 + $0xa8] sm:$0xff] }
   0xc   :  { %10265 = vmatpush3.bf16.msra.mxu0 %v10262_v13  ;;  %v11775_v31 = vld [vmem:[%s16568_s0 + $0x98] sm:$0xff]  ;;  %v11799_v35 = vld [vmem:[%s16568_s0 + $0xb0] sm:$0xff]  ;;  %v11823_v39 = vld [vmem:[%s16568_s0 + $0xc8] sm:$0xff] }
   0xd   :  { %10267 = vmatprep.subr.bf16.mxu0 %v10266_v18  ;;  %v9339_v33 = vld [vmem:[%s16568_s0 + $0x99] sm:$0xff]  ;;  %v9338_v34 = vld [vmem:[%s16568_s0 + $0x91] sm:$0xff]  ;;  %v9340_v38 = vld [vmem:[%s16568_s0 + $0xa9] sm:$0xff] }
   0xe   :  { %331 = vrot.lane.b32.xlu1 %v9329_v4, %s11542_s30  ;;  %329 = vrot.lane.b32.xlu0 %v9328_v5, %s11542_s30  ;;  %v9341_v37 = vld [vmem:[%s16568_s0 + $0xb1] sm:$0xff]  ;;  %v11828_v40 = vld [vmem:[%s16568_s0 + $0xc0] sm:$0xff] }
   0xf   :  { %v9343_v41 = vld [vmem:[%s16568_s0 + $0xc9] sm:$0xff]  ;;  %v9342_v42 = vld [vmem:[%s16568_s0 + $0xc1] sm:$0xff]  ;;  %v11852_v44 = vld [vmem:[%s16568_s0 + $0xd8] sm:$0xff] }
  0x10   :  { %10269 = vmatpush3.bf16.msra.mxu0 %v10266_v18  ;;  %v11847_v43 = vld [vmem:[%s16568_s0 + $0xe0] sm:$0xff]  ;;  %v11871_v47 = vld [vmem:[%s16568_s0 + $0xf8] sm:$0xff]  ;;  %v11876_v48 = vld [vmem:[%s16568_s0 + $0xf0] sm:$0xff] }
  0x11   :  { %v9345_v45 = vld [vmem:[%s16568_s0 + $0xe1] sm:$0xff]  ;;  %v9344_v46 = vld [vmem:[%s16568_s0 + $0xd9] sm:$0xff]  ;;  %v9346_v50 = vld [vmem:[%s16568_s0 + $0xf1] sm:$0xff] }
  0x12   :  { %555 = vrot.lane.b32.xlu1 %v11661_v6, %s11541_s29  ;;  %553 = vrot.lane.b32.xlu0 %v11666_v7, %s11541_s29  ;;  %v9347_v49 = vld [vmem:[%s16568_s0 + $0xf9] sm:$0xff]  ;;  %v45_v54 = vld [vmem:[%s16568_s0 + $0x8] sm:$0xff] }
  0x13   :  { %v44_v53 = vld [vmem:[%s16568_s0] sm:$0xff]  ;;  %v11903_v59 = vld [vmem:[%s16568_s0 + $0x110] sm:$0xff]  ;;  %v11908_v60 = vld [vmem:[%s16568_s0 + $0x108] sm:$0xff] }
  0x14   :  { %v9349_v5 = vld [vmem:[%s16568_s0 + $0x111] sm:$0xff]  ;;  %v9348_v8 = vld [vmem:[%s16568_s0 + $0x109] sm:$0xff] }
  0x16   :  { %779 = vrot.lane.b32.xlu1 %v9331_v15, %s11543_s22  ;;  %777 = vrot.lane.b32.xlu0 %v9330_v16, %s11543_s22 }
  0x1a   :  { %335 = vrot.lane.b32.xlu1 %v9331_v15, %s11542_s30  ;;  %333 = vrot.lane.b32.xlu0 %v9330_v16, %s11542_s30  ;;  %v11937_v15 = vld [vmem:[%s16568_s0 + $0x128] sm:$0xff]  ;;  %v11942_v16 = vld [vmem:[%s16568_s0 + $0x120] sm:$0xff] }
  0x1e   :  { %559 = vrot.lane.b32.xlu1 %v11703_v19, %s11541_s29  ;;  %557 = vrot.lane.b32.xlu0 %v11708_v20, %s11541_s29 }
  0x22   :  { %783 = vrot.lane.b32.xlu1 %v9333_v21, %s11543_s22  ;;  %781 = vrot.lane.b32.xlu0 %v9332_v22, %s11543_s22 }
  0x26   :  { %339 = vrot.lane.b32.xlu1 %v9333_v21, %s11542_s30  ;;  %337 = vrot.lane.b32.xlu0 %v9332_v22, %s11542_s30 }
  0x2a   :  { %563 = vrot.lane.b32.xlu1 %v11727_v23, %s11541_s29  ;;  %561 = vrot.lane.b32.xlu0 %v11732_v24, %s11541_s29 }
  0x2e   :  { %787 = vrot.lane.b32.xlu1 %v9335_v25, %s11543_s22  ;;  %785 = vrot.lane.b32.xlu0 %v9334_v26, %s11543_s22 }
  0x32   :  { %343 = vrot.lane.b32.xlu1 %v9335_v25, %s11542_s30  ;;  %341 = vrot.lane.b32.xlu0 %v9334_v26, %s11542_s30  ;;  %v9351_v25 = vld [vmem:[%s16568_s0 + $0x129] sm:$0xff]  ;;  %v9350_v26 = vld [vmem:[%s16568_s0 + $0x121] sm:$0xff] }
  0x36   :  { %567 = vrot.lane.b32.xlu1 %v11751_v27, %s11541_s29  ;;  %565 = vrot.lane.b32.xlu0 %v11756_v28, %s11541_s29 }
  0x3a   :  { %791 = vrot.lane.b32.xlu1 %v9337_v29, %s11543_s22  ;;  %789 = vrot.lane.b32.xlu0 %v9336_v30, %s11543_s22 }
  0x3e   :  { %347 = vrot.lane.b32.xlu1 %v9337_v29, %s11542_s30  ;;  %345 = vrot.lane.b32.xlu0 %v9336_v30, %s11542_s30 }
  0x42   :  { %571 = vrot.lane.b32.xlu1 %v11775_v31, %s11541_s29  ;;  %569 = vrot.lane.b32.xlu0 %v11780_v32, %s11541_s29 }
  0x46   :  { %795 = vrot.lane.b32.xlu1 %v9339_v33, %s11543_s22  ;;  %793 = vrot.lane.b32.xlu0 %v9338_v34, %s11543_s22 }
  0x4a   :  { %351 = vrot.lane.b32.xlu1 %v9339_v33, %s11542_s30  ;;  %349 = vrot.lane.b32.xlu0 %v9338_v34, %s11542_s30 }
  0x4e   :  { %575 = vrot.lane.b32.xlu1 %v11799_v35, %s11541_s29  ;;  %573 = vrot.lane.b32.xlu0 %v11804_v36, %s11541_s29 }
  0x52   :  { %799 = vrot.lane.b32.xlu1 %v9341_v37, %s11543_s22  ;;  %797 = vrot.lane.b32.xlu0 %v9340_v38, %s11543_s22 }
  0x56   :  { %355 = vrot.lane.b32.xlu1 %v9341_v37, %s11542_s30  ;;  %353 = vrot.lane.b32.xlu0 %v9340_v38, %s11542_s30 }
  0x5a   :  { %579 = vrot.lane.b32.xlu1 %v11823_v39, %s11541_s29  ;;  %577 = vrot.lane.b32.xlu0 %v11828_v40, %s11541_s29 }
  0x5e   :  { %803 = vrot.lane.b32.xlu1 %v9343_v41, %s11543_s22  ;;  %801 = vrot.lane.b32.xlu0 %v9342_v42, %s11543_s22 }
  0x62   :  { %359 = vrot.lane.b32.xlu1 %v9343_v41, %s11542_s30  ;;  %357 = vrot.lane.b32.xlu0 %v9342_v42, %s11542_s30  ;;  %v11971_v41 = vld [vmem:[%s16568_s0 + $0x140] sm:$0xff]  ;;  %v11976_v42 = vld [vmem:[%s16568_s0 + $0x138] sm:$0xff] }
  0x66   :  { %583 = vrot.lane.b32.xlu1 %v11847_v43, %s11541_s29  ;;  %581 = vrot.lane.b32.xlu0 %v11852_v44, %s11541_s29 }
  0x6a   :  { %807 = vrot.lane.b32.xlu1 %v9345_v45, %s11543_s22  ;;  %805 = vrot.lane.b32.xlu0 %v9344_v46, %s11543_s22 }
  0x6e   :  { %363 = vrot.lane.b32.xlu1 %v9345_v45, %s11542_s30  ;;  %361 = vrot.lane.b32.xlu0 %v9344_v46, %s11542_s30 }
  0x72   :  { %587 = vrot.lane.b32.xlu1 %v11871_v47, %s11541_s29  ;;  %585 = vrot.lane.b32.xlu0 %v11876_v48, %s11541_s29 }
  0x74   :  { %v550_v51 = vpop.permute.xlu1 %549  ;;  %v326_v52 = vpop.permute.xlu0 %325 }
  0x75   :  { %v942_v57 = vsel %vm941_vm0, %v44_v53, %v326_v52  ;;  %v9352_v52 = vld [vmem:[%s16568_s0 + $0x139] sm:$0xff] }
  0x76   :  { %811 = vrot.lane.b32.xlu1 %v9347_v49, %s11543_s22  ;;  %809 = vrot.lane.b32.xlu0 %v9346_v50, %s11543_s22  ;;  %v999_v1 = vsel %vm998_vm1, %v942_v57, %v550_v51  ;;  %v9353_v51 = vld [vmem:[%s16568_s0 + $0x141] sm:$0xff] }
  0x78   :  { %v552_v55 = vpop.permute.xlu1 %551  ;;  %v328_v56 = vpop.permute.xlu0 %327 }
  0x79   :  { %v943_v58 = vsel %vm941_vm0, %v45_v54, %v328_v56 }
  0x7a   :  { %367 = vrot.lane.b32.xlu1 %v9347_v49, %s11542_s30  ;;  %365 = vrot.lane.b32.xlu0 %v9346_v50, %s11542_s30  ;;  %v1000_v62 = vsel %vm998_vm1, %v943_v58, %v552_v55 }
  0x7c   :  { %v776_v61 = vpop.permute.xlu1 %775  ;;  %v774_v63 = vpop.permute.xlu0 %773 }
  0x7d   :  { %v1057_v3 = vsel %vm1055_vm2, %v1000_v62, %v776_v61  ;;  %v1056_v4 = vsel %vm1055_vm2, %v999_v1, %v774_v63  ;;  %v9299_v61 = vld [vmem:[%s16568_s0 + $0x158] sm:$0xff]  ;;  %v9298_v62 = vld [vmem:[%s16568_s0 + $0x150] sm:$0xff] }
  0x7e   :  { %591 = vrot.lane.b32.xlu1 %v11903_v59, %s11541_s29  ;;  %589 = vrot.lane.b32.xlu0 %v11908_v60, %s11541_s29 }
  0x7f   :  { %9943 = vmatprep.mubr.msk.f32.mxu0 %vm1125_vm3, %v1056_v4 }
  0x80   :  { %9944 = vmatmul.mubr.msk.f32.vlgmr.msra.gmra.mrb[0].mxu0 %vm1125_vm3, %v1057_v3  ;;  %v332_v9 = vpop.permute.xlu1 %331  ;;  %v330_v10 = vpop.permute.xlu0 %329 }
  0x81   :  { %v945_v13 = vsel %vm941_vm0, %v11640_v2, %v332_v9  ;;  %v944_v14 = vsel %vm941_vm0, %v11629_v0, %v330_v10 }
  0x82   :  { %815 = vrot.lane.b32.xlu1 %v9349_v5, %s11543_s22  ;;  %813 = vrot.lane.b32.xlu0 %v9348_v8, %s11543_s22 }
  0x84   :  { %v556_v11 = vpop.permute.xlu1 %555  ;;  %v554_v12 = vpop.permute.xlu0 %553 }
  0x85   :  { %v1002_v17 = vsel %vm998_vm1, %v945_v13, %v556_v11  ;;  %v1001_v18 = vsel %vm998_vm1, %v944_v14, %v554_v12  ;;  %v129_v11 = vld [vmem:[%s16568_s0 + $0x171] sm:$0xff]  ;;  %v128_v12 = vld [vmem:[%s16568_s0 + $0x169] sm:$0xff] }
  0x86   :  { %371 = vrot.lane.b32.xlu1 %v9349_v5, %s11542_s30  ;;  %369 = vrot.lane.b32.xlu0 %v9348_v8, %s11542_s30  ;;  %v9354_v8 = vld [vmem:[%s16568_s0 + $0x151] sm:$0xff] }
  0x88   :  { %v780_v21 = vpop.permute.xlu1 %779  ;;  %v778_v22 = vpop.permute.xlu0 %777 }
  0x89   :  { %v1059_v2 = vsel %vm1055_vm2, %v1002_v17, %v780_v21  ;;  %v1058_v0 = vsel %vm1055_vm2, %v1001_v18, %v778_v22  ;;  %v12039_v21 = vld [vmem:[%s16568_s0 + $0x188] sm:$0xff]  ;;  %v12044_v22 = vld [vmem:[%s16568_s0 + $0x180] sm:$0xff] }
  0x8a   :  { %595 = vrot.lane.b32.xlu1 %v11937_v15, %s11541_s29  ;;  %593 = vrot.lane.b32.xlu0 %v11942_v16, %s11541_s29 }
  0x8b   :  { %9946 = vmatprep.mubr.msk.f32.mxu0 %vm1125_vm3, %v1058_v0 }
  0x8c   :  { %9947 = vmatmul.mubr.msk.f32.gmra.mrb[2].mxu0 %vm1125_vm3, %v1059_v2  ;;  %v336_v29 = vpop.permute.xlu1 %335  ;;  %v334_v30 = vpop.permute.xlu0 %333 }
  0x8d   :  { %v947_v37 = vsel %vm941_vm0, %v11661_v6, %v336_v29  ;;  %v946_v38 = vsel %vm941_vm0, %v11666_v7, %v334_v30  ;;  %v9357_v29 = vld [vmem:[%s16568_s0 + $0x189] sm:$0xff]  ;;  %v9356_v30 = vld [vmem:[%s16568_s0 + $0x181] sm:$0xff] }
  0x8e   :  { %819 = vrot.lane.b32.xlu1 %v9351_v25, %s11543_s22  ;;  %817 = vrot.lane.b32.xlu0 %v9350_v26, %s11543_s22 }
  0x90   :  { %v560_v33 = vpop.permute.xlu1 %559  ;;  %v558_v34 = vpop.permute.xlu0 %557 }
  0x91   :  { %v1004_v45 = vsel %vm998_vm1, %v947_v37, %v560_v33  ;;  %v1003_v46 = vsel %vm998_vm1, %v946_v38, %v558_v34 }
  0x92   :  { %375 = vrot.lane.b32.xlu1 %v9351_v25, %s11542_s30  ;;  %373 = vrot.lane.b32.xlu0 %v9350_v26, %s11542_s30 }
  0x94   :  { %v784_v49 = vpop.permute.xlu1 %783  ;;  %v782_v50 = vpop.permute.xlu0 %781 }
  0x95   :  { %v1061_v6 = vsel %vm1055_vm2, %v1004_v45, %v784_v49  ;;  %v1060_v7 = vsel %vm1055_vm2, %v1003_v46, %v782_v50  ;;  %v12073_v49 = vld [vmem:[%s16568_s0 + $0x1a0] sm:$0xff]  ;;  %v12078_v50 = vld [vmem:[%s16568_s0 + $0x198] sm:$0xff] }
  0x96   :  { %599 = vrot.lane.b32.xlu1 %v11971_v41, %s11541_s29  ;;  %597 = vrot.lane.b32.xlu0 %v11976_v42, %s11541_s29 }
  0x97   :  { %9949 = vmatprep.mubr.msk.f32.mxu0 %vm1125_vm3, %v1060_v7 }
  0x98   :  { %9950 = vmatmul.mubr.msk.f32.gmra.mrb[4].mxu0 %vm1125_vm3, %v1061_v6  ;;  %v340_v53 = vpop.permute.xlu1 %339  ;;  %v338_v54 = vpop.permute.xlu0 %337 }
  0x99   :  { %v949_v57 = vsel %vm941_vm0, %v11703_v19, %v340_v53  ;;  %v948_v58 = vsel %vm941_vm0, %v11708_v20, %v338_v54  ;;  %v9355_v20 = vld [vmem:[%s16568_s0 + $0x159] sm:$0xff]  ;;  %v9359_v53 = vld [vmem:[%s16568_s0 + $0x1a1] sm:$0xff] }
  0x9a   :  { %823 = vrot.lane.b32.xlu1 %v9353_v51, %s11543_s22  ;;  %821 = vrot.lane.b32.xlu0 %v9352_v52, %s11543_s22  ;;  %v9358_v54 = vld [vmem:[%s16568_s0 + $0x199] sm:$0xff] }
  0x9c   :  { %v564_v55 = vpop.permute.xlu1 %563  ;;  %v562_v56 = vpop.permute.xlu0 %561 }
  0x9d   :  { %v1006_v63 = vsel %vm998_vm1, %v949_v57, %v564_v55  ;;  %v1005_v1 = vsel %vm998_vm1, %v948_v58, %v562_v56 }
  0x9e   :  { %379 = vrot.lane.b32.xlu1 %v9353_v51, %s11542_s30  ;;  %377 = vrot.lane.b32.xlu0 %v9352_v52, %s11542_s30 }
  0xa0   :  { %v788_v3 = vpop.permute.xlu1 %787  ;;  %v786_v4 = vpop.permute.xlu0 %785 }
  0xa1   :  { %v1063_v5 = vsel %vm1055_vm2, %v1006_v63, %v788_v3  ;;  %v1062_v19 = vsel %vm1055_vm2, %v1005_v1, %v786_v4  ;;  %v12107_v63 = vld [vmem:[%s16568_s0 + $0x1b8] sm:$0xff]  ;;  %v12112_v1 = vld [vmem:[%s16568_s0 + $0x1b0] sm:$0xff] }
  0xa2   :  { %603 = vrot.lane.b32.xlu1 %v9299_v61, %s11541_s29  ;;  %601 = vrot.lane.b32.xlu0 %v9298_v62, %s11541_s29 }
  0xa3   :  { %9952 = vmatprep.mubr.msk.f32.mxu0 %vm1125_vm3, %v1062_v19 }
  0xa4   :  { %9953 = vmatmul.mubr.msk.f32.gmra.mrb[6].mxu0 %vm1125_vm3, %v1063_v5  ;;  %v344_v9 = vpop.permute.xlu1 %343  ;;  %v342_v10 = vpop.permute.xlu0 %341 }
  0xa5   :  { %v951_v17 = vsel %vm941_vm0, %v11727_v23, %v344_v9  ;;  %v950_v18 = vsel %vm941_vm0, %v11732_v24, %v342_v10 }
  0xa6   :  { %827 = vrot.lane.b32.xlu1 %v9355_v20, %s11543_s22  ;;  %825 = vrot.lane.b32.xlu0 %v9354_v8, %s11543_s22  ;;  %v9361_v20 = vld [vmem:[%s16568_s0 + $0x1b9] sm:$0xff]  ;;  %v9360_v8 = vld [vmem:[%s16568_s0 + $0x1b1] sm:$0xff] }
  0xa8   :  { %v568_v13 = vpop.permute.xlu1 %567  ;;  %v566_v14 = vpop.permute.xlu0 %565 }
  0xa9   :  { %v1008_v2 = vsel %vm998_vm1, %v951_v17, %v568_v13  ;;  %v1007_v0 = vsel %vm998_vm1, %v950_v18, %v566_v14  ;;  %v12141_v17 = vld [vmem:[%s16568_s0 + $0x1d0] sm:$0xff]  ;;  %v12146_v18 = vld [vmem:[%s16568_s0 + $0x1c8] sm:$0xff] }
  0xaa   :  { %383 = vrot.lane.b32.xlu1 %v129_v11, %s11542_s30  ;;  %381 = vrot.lane.b32.xlu0 %v128_v12, %s11542_s30 }
  0xac   :  { %v792_v25 = vpop.permute.xlu1 %791  ;;  %v790_v26 = vpop.permute.xlu0 %789 }
  0xad   :  { %v1065_v23 = vsel %vm1055_vm2, %v1008_v2, %v792_v25  ;;  %v1064_v24 = vsel %vm1055_vm2, %v1007_v0, %v790_v26 }
  0xae   :  { %607 = vrot.lane.b32.xlu1 %v12039_v21, %s11541_s29  ;;  %605 = vrot.lane.b32.xlu0 %v12044_v22, %s11541_s29 }
  0xaf   :  { %9955 = vmatprep.mubr.msk.f32.mxu0 %vm1125_vm3, %v1064_v24  ;;  %v12165_v24 = vld [vmem:[%s16568_s0 + $0x1c9] sm:$0xff] }
  0xb0   :  { %9956 = vmatmul.mubr.msk.f32.gmra.mrb[8].mxu0 %vm1125_vm3, %v1065_v23  ;;  %v348_v33 = vpop.permute.xlu1 %347  ;;  %v346_v34 = vpop.permute.xlu0 %345  ;;  %v12160_v23 = vld [vmem:[%s16568_s0 + $0x1d1] sm:$0xff] }
  0xb1   :  { %v953_v45 = vsel %vm941_vm0, %v11751_v27, %v348_v33  ;;  %v952_v46 = vsel %vm941_vm0, %v11756_v28, %v346_v34  ;;  %v11544_v33 = vmov 0.0  }
  0xb2   :  { %831 = vrot.lane.b32.xlu1 %v9357_v29, %s11543_s22  ;;  %829 = vrot.lane.b32.xlu0 %v9356_v30, %s11543_s22  ;;  %1701 = vst.msk [vmem:[#allocation2 + $0x20] sm:$0xff] %vm1695_vm4, %v11544_v33  ;;  %1696 = vst.msk [vmem:[#allocation2] sm:$0xff] %vm1695_vm4, %v11544_v33 }
  0xb3   :  { %1697 = vst.msk [vmem:[#allocation2 + $0x8] sm:$0xff] %vm1695_vm4, %v11544_v33  ;;  %1700 = vst.msk [vmem:[#allocation2 + $0x18] sm:$0xff] %vm1695_vm4, %v11544_v33 }
  0xb4   :  { %v572_v37 = vpop.permute.xlu1 %571  ;;  %v570_v38 = vpop.permute.xlu0 %569  ;;  %1703 = vst.msk [vmem:[#allocation2 + $0x30] sm:$0xff] %vm1695_vm4, %v11544_v33  ;;  %1704 = vst.msk [vmem:[#allocation2 + $0x38] sm:$0xff] %vm1695_vm4, %v11544_v33 }
  0xb5   :  { %v1010_v6 = vsel %vm998_vm1, %v953_v45, %v572_v37  ;;  %v1009_v7 = vsel %vm998_vm1, %v952_v46, %v570_v38  ;;  %1706 = vst.msk [vmem:[#allocation2 + $0x48] sm:$0xff] %vm1695_vm4, %v11544_v33  ;;  %1707 = vst.msk [vmem:[#allocation2 + $0x50] sm:$0xff] %vm1695_vm4, %v11544_v33  ;;  %v12369_v46 = vld [vmem:[%s16568_s0 + $0x1e8] sm:$0xff] }
  0xb6   :  { %387 = vrot.lane.b32.xlu1 %v9357_v29, %s11542_s30  ;;  %385 = vrot.lane.b32.xlu0 %v9356_v30, %s11542_s30  ;;  %1709 = vst.msk [vmem:[#allocation2 + $0x60] sm:$0xff] %vm1695_vm4, %v11544_v33  ;;  %1710 = vst.msk [vmem:[#allocation2 + $0x68] sm:$0xff] %vm1695_vm4, %v11544_v33 }
  0xb7   :  { %1712 = vst.msk [vmem:[#allocation2 + $0x78] sm:$0xff] %vm1695_vm4, %v11544_v33  ;;  %1713 = vst.msk [vmem:[#allocation2 + $0x80] sm:$0xff] %vm1695_vm4, %v11544_v33 }
  0xb8   :  { %v796_v51 = vpop.permute.xlu1 %795  ;;  %v794_v52 = vpop.permute.xlu0 %793  ;;  %1715 = vst.msk [vmem:[#allocation2 + $0x90] sm:$0xff] %vm1695_vm4, %v11544_v33  ;;  %1716 = vst.msk [vmem:[#allocation2 + $0x98] sm:$0xff] %vm1695_vm4, %v11544_v33 }
  0xb9   :  { %v1067_v27 = vsel %vm1055_vm2, %v1010_v6, %v796_v51  ;;  %v1066_v28 = vsel %vm1055_vm2, %v1009_v7, %v794_v52  ;;  %1718 = vst.msk [vmem:[#allocation2 + $0xa8] sm:$0xff] %vm1695_vm4, %v11544_v33  ;;  %1719 = vst.msk [vmem:[#allocation2 + $0xb0] sm:$0xff] %vm1695_vm4, %v11544_v33  ;;  %v12374_v6 = vld [vmem:[%s16568_s0 + $0x1e0] sm:$0xff] }
  0xba   :  { %611 = vrot.lane.b32.xlu1 %v12073_v49, %s11541_s29  ;;  %609 = vrot.lane.b32.xlu0 %v12078_v50, %s11541_s29  ;;  %1721 = vst.msk [vmem:[#allocation2 + $0xc0] sm:$0xff] %vm1695_vm4, %v11544_v33  ;;  %1722 = vst.msk [vmem:[#allocation2 + $0xc8] sm:$0xff] %vm1695_vm4, %v11544_v33 }
  0xbb   :  { %9958 = vmatprep.mubr.msk.f32.mxu0 %vm1125_vm3, %v1066_v28  ;;  %1724 = vst.msk [vmem:[#allocation2 + $0xd8] sm:$0xff] %vm1695_vm4, %v11544_v33  ;;  %1725 = vst.msk [vmem:[#allocation2 + $0xe0] sm:$0xff] %vm1695_vm4, %v11544_v33  ;;  %v9365_v28 = vld [vmem:[%s16568_s0 + $0x1e9] sm:$0xff] }
  0xbc   :  { %9959 = vmatmul.mubr.msk.f32.gmra.mrb[10].mxu0 %vm1125_vm3, %v1067_v27  ;;  %v352_v55 = vpop.permute.xlu1 %351  ;;  %v350_v56 = vpop.permute.xlu0 %349  ;;  %1727 = vst.msk [vmem:[#allocation2 + $0xf0] sm:$0xff] %vm1695_vm4, %v11544_v33  ;;  %1728 = vst.msk [vmem:[#allocation2 + $0xf8] sm:$0xff] %vm1695_vm4, %v11544_v33 }
  0xbd   :  { %v955_v61 = vsel %vm941_vm0, %v11775_v31, %v352_v55  ;;  %v954_v62 = vsel %vm941_vm0, %v11780_v32, %v350_v56  ;;  %1730 = vst.msk [vmem:[#allocation2 + $0x108] sm:$0xff] %vm1695_vm4, %v11544_v33  ;;  %1731 = vst.msk [vmem:[#allocation2 + $0x110] sm:$0xff] %vm1695_vm4, %v11544_v33 }
  0xbe   :  { %835 = vrot.lane.b32.xlu1 %v9359_v53, %s11543_s22  ;;  %833 = vrot.lane.b32.xlu0 %v9358_v54, %s11543_s22  ;;  %1733 = vst.msk [vmem:[#allocation2 + $0x120] sm:$0xff] %vm1695_vm4, %v11544_v33  ;;  %1734 = vst.msk [vmem:[#allocation2 + $0x128] sm:$0xff] %vm1695_vm4, %v11544_v33 }
  0xbf   :  { %1736 = vst.msk [vmem:[#allocation2 + $0x138] sm:$0xff] %vm1695_vm4, %v11544_v33  ;;  %1737 = vst.msk [vmem:[#allocation2 + $0x140] sm:$0xff] %vm1695_vm4, %v11544_v33 }
  0xc0   :  { %v576_v57 = vpop.permute.xlu1 %575  ;;  %v574_v58 = vpop.permute.xlu0 %573  ;;  %1739 = vst.msk [vmem:[#allocation2 + $0x150] sm:$0xff] %vm1695_vm4, %v11544_v33  ;;  %1740 = vst.msk [vmem:[#allocation2 + $0x158] sm:$0xff] %vm1695_vm4, %v11544_v33 }
  0xc1   :  { %v1012_v3 = vsel %vm998_vm1, %v955_v61, %v576_v57  ;;  %v1011_v4 = vsel %vm998_vm1, %v954_v62, %v574_v58  ;;  %1745 = vst.msk [vmem:[#allocation2 + $0x180] sm:$0xff] %vm1695_vm4, %v11544_v33  ;;  %1746 = vst.msk [vmem:[#allocation2 + $0x188] sm:$0xff] %vm1695_vm4, %v11544_v33  ;;  %v12403_v62 = vld [vmem:[%s16568_s0 + $0x200] sm:$0xff] }
  0xc2   :  { %391 = vrot.lane.b32.xlu1 %v9359_v53, %s11542_s30  ;;  %389 = vrot.lane.b32.xlu0 %v9358_v54, %s11542_s30  ;;  %1748 = vst.msk [vmem:[#allocation2 + $0x198] sm:$0xff] %vm1695_vm4, %v11544_v33  ;;  %1749 = vst.msk [vmem:[#allocation2 + $0x1a0] sm:$0xff] %vm1695_vm4, %v11544_v33  ;;  %v9364_v53 = vld [vmem:[%s16568_s0 + $0x1e1] sm:$0xff] }
  0xc3   :  { %1751 = vst.msk [vmem:[#allocation2 + $0x1b0] sm:$0xff] %vm1695_vm4, %v11544_v33  ;;  %1752 = vst.msk [vmem:[#allocation2 + $0x1b8] sm:$0xff] %vm1695_vm4, %v11544_v33 }
  0xc4   :  { %v800_v5 = vpop.permute.xlu1 %799  ;;  %v798_v19 = vpop.permute.xlu0 %797  ;;  %1754 = vst.msk [vmem:[#allocation2 + $0x1c8] sm:$0xff] %vm1695_vm4, %v11544_v33  ;;  %1755 = vst.msk [vmem:[#allocation2 + $0x1d0] sm:$0xff] %vm1695_vm4, %v11544_v33 }
  0xc5   :  { %v1069_v31 = vsel %vm1055_vm2, %v1012_v3, %v800_v5  ;;  %v1068_v32 = vsel %vm1055_vm2, %v1011_v4, %v798_v19  ;;  %1757 = vst.msk [vmem:[#allocation2 + $0x1e0] sm:$0xff] %vm1695_vm4, %v11544_v33  ;;  %1758 = vst.msk [vmem:[#allocation2 + $0x1e8] sm:$0xff] %vm1695_vm4, %v11544_v33  ;;  %v12408_v3 = vld [vmem:[%s16568_s0 + $0x1f8] sm:$0xff] }
  0xc6   :  { %615 = vrot.lane.b32.xlu1 %v12107_v63, %s11541_s29  ;;  %613 = vrot.lane.b32.xlu0 %v12112_v1, %s11541_s29  ;;  %1760 = vst.msk [vmem:[#allocation2 + $0x1f8] sm:$0xff] %vm1695_vm4, %v11544_v33  ;;  %1761 = vst.msk [vmem:[#allocation2 + $0x200] sm:$0xff] %vm1695_vm4, %v11544_v33 }
  0xc7   :  { %9961 = vmatprep.mubr.msk.f32.mxu0 %vm1125_vm3, %v1068_v32  ;;  %1763 = vst.msk [vmem:[#allocation2 + $0x210] sm:$0xff] %vm1695_vm4, %v11544_v33  ;;  %1764 = vst.msk [vmem:[#allocation2 + $0x218] sm:$0xff] %vm1695_vm4, %v11544_v33  ;;  %v9367_v32 = vld [vmem:[%s16568_s0 + $0x201] sm:$0xff] }
  0xc8   :  { %9962 = vmatmul.mubr.msk.f32.gmra.mrb[12].mxu0 %vm1125_vm3, %v1069_v31  ;;  %v356_v9 = vpop.permute.xlu1 %355  ;;  %v354_v10 = vpop.permute.xlu0 %353  ;;  %1766 = vst.msk [vmem:[#allocation2 + $0x228] sm:$0xff] %vm1695_vm4, %v11544_v33  ;;  %1767 = vst.msk [vmem:[#allocation2 + $0x230] sm:$0xff] %vm1695_vm4, %v11544_v33 }
  0xc9   :  { %v957_v13 = vsel %vm941_vm0, %v11799_v35, %v356_v9  ;;  %v956_v14 = vsel %vm941_vm0, %v11804_v36, %v354_v10  ;;  %1769 = vst.msk [vmem:[#allocation2 + $0x240] sm:$0xff] %vm1695_vm4, %v11544_v33  ;;  %1770 = vst.msk [vmem:[#allocation2 + $0x248] sm:$0xff] %vm1695_vm4, %v11544_v33 }
  0xca   :  { %839 = vrot.lane.b32.xlu1 %v9361_v20, %s11543_s22  ;;  %837 = vrot.lane.b32.xlu0 %v9360_v8, %s11543_s22  ;;  %1772 = vst.msk [vmem:[#allocation2 + $0x258] sm:$0xff] %vm1695_vm4, %v11544_v33  ;;  %1773 = vst.msk [vmem:[#allocation2 + $0x260] sm:$0xff] %vm1695_vm4, %v11544_v33 }
  0xcb   :  { %1775 = vst.msk [vmem:[#allocation2 + $0x270] sm:$0xff] %vm1695_vm4, %v11544_v33  ;;  %1776 = vst.msk [vmem:[#allocation2 + $0x278] sm:$0xff] %vm1695_vm4, %v11544_v33 }
  0xcc   :  { %v580_v11 = vpop.permute.xlu1 %579  ;;  %v578_v12 = vpop.permute.xlu0 %577  ;;  %1778 = vst.msk [vmem:[#allocation2 + $0x288] sm:$0xff] %vm1695_vm4, %v11544_v33  ;;  %1779 = vst.msk [vmem:[#allocation2 + $0x290] sm:$0xff] %vm1695_vm4, %v11544_v33 }
  0xcd   :  { %v1014_v2 = vsel %vm998_vm1, %v957_v13, %v580_v11  ;;  %v1013_v0 = vsel %vm998_vm1, %v956_v14, %v578_v12  ;;  %1781 = vst.msk [vmem:[#allocation2 + $0x2a0] sm:$0xff] %vm1695_vm4, %v11544_v33  ;;  %1782 = vst.msk [vmem:[#allocation2 + $0x2a8] sm:$0xff] %vm1695_vm4, %v11544_v33  ;;  %v12437_v14 = vld [vmem:[%s16568_s0 + $0x218] sm:$0xff] }
  0xce   :  { %395 = vrot.lane.b32.xlu1 %v9361_v20, %s11542_s30  ;;  %393 = vrot.lane.b32.xlu0 %v9360_v8, %s11542_s30  ;;  %1784 = vst.msk [vmem:[#allocation2 + $0x2b8] sm:$0xff] %vm1695_vm4, %v11544_v33  ;;  %1785 = vst.msk [vmem:[#allocation2 + $0x2c0] sm:$0xff] %vm1695_vm4, %v11544_v33  ;;  %v9366_v20 = vld [vmem:[%s16568_s0 + $0x1f9] sm:$0xff] }
  0xcf   :  { %1787 = vst.msk [vmem:[#allocation2 + $0x2d0] sm:$0xff] %vm1695_vm4, %v11544_v33  ;;  %1788 = vst.msk [vmem:[#allocation2 + $0x2d8] sm:$0xff] %vm1695_vm4, %v11544_v33 }
  0xd0   :  { %v804_v25 = vpop.permute.xlu1 %803  ;;  %v802_v26 = vpop.permute.xlu0 %801  ;;  %1699 = vst.msk [vmem:[#allocation2 + $0x10] sm:$0x3] %vm1698_vm5, %v11544_v33  ;;  %1702 = vst.msk [vmem:[#allocation2 + $0x28] sm:$0x3] %vm1698_vm5, %v11544_v33 }
  0xd1   :  { %v1071_v35 = vsel %vm1055_vm2, %v1014_v2, %v804_v25  ;;  %v1070_v36 = vsel %vm1055_vm2, %v1013_v0, %v802_v26  ;;  %1705 = vst.msk [vmem:[#allocation2 + $0x40] sm:$0x3] %vm1698_vm5, %v11544_v33  ;;  %1708 = vst.msk [vmem:[#allocation2 + $0x58] sm:$0x3] %vm1698_vm5, %v11544_v33  ;;  %v12442_v2 = vld [vmem:[%s16568_s0 + $0x210] sm:$0xff] }
  0xd2   :  { %619 = vrot.lane.b32.xlu1 %v12141_v17, %s11541_s29  ;;  %617 = vrot.lane.b32.xlu0 %v12146_v18, %s11541_s29  ;;  %1711 = vst.msk [vmem:[#allocation2 + $0x70] sm:$0x3] %vm1698_vm5, %v11544_v33  ;;  %1714 = vst.msk [vmem:[#allocation2 + $0x88] sm:$0x3] %vm1698_vm5, %v11544_v33 }
  0xd3   :  { %9964 = vmatprep.mubr.msk.f32.mxu0 %vm1125_vm3, %v1070_v36  ;;  %1717 = vst.msk [vmem:[#allocation2 + $0xa0] sm:$0x3] %vm1698_vm5, %v11544_v33  ;;  %1720 = vst.msk [vmem:[#allocation2 + $0xb8] sm:$0x3] %vm1698_vm5, %v11544_v33  ;;  %v9369_v36 = vld [vmem:[%s16568_s0 + $0x219] sm:$0xff] }
  0xd4   :  { %9965 = vmatmul.mubr.msk.f32.gmra.mrb[14].mxu0 %vm1125_vm3, %v1071_v35  ;;  %v12168_v29 = vpop.permute.xlu1 %359  ;;  %v12170_v30 = vpop.permute.xlu0 %357  ;;  %1723 = vst.msk [vmem:[#allocation2 + $0xd0] sm:$0x3] %vm1698_vm5, %v11544_v33  ;;  %1726 = vst.msk [vmem:[#allocation2 + $0xe8] sm:$0x3] %vm1698_vm5, %v11544_v33 }
  0xd5   :  { %1729 = vst.msk [vmem:[#allocation2 + $0x100] sm:$0x3] %vm1698_vm5, %v11544_v33  ;;  %1732 = vst.msk [vmem:[#allocation2 + $0x118] sm:$0x3] %vm1698_vm5, %v11544_v33  ;;  %v959_v38 = vsel %vm941_vm0, %v11823_v39, %v12168_v29  ;;  %v958_v45 = vsel %vm941_vm0, %v11828_v40, %v12170_v30 }
  0xd6   :  { %1735 = vst.msk [vmem:[#allocation2 + $0x130] sm:$0x3] %vm1698_vm5, %v11544_v33  ;;  %1738 = vst.msk [vmem:[#allocation2 + $0x148] sm:$0x3] %vm1698_vm5, %v11544_v33  ;;  %843 = vrot.lane.b32.xlu1 %v12160_v23, %s11543_s22  ;;  %841 = vrot.lane.b32.xlu0 %v12165_v24, %s11543_s22 }
  0xd7   :  { %1741 = vst.msk [vmem:[#allocation2 + $0x160] sm:$0x3] %vm1698_vm5, %v11544_v33  ;;  %1747 = vst.msk [vmem:[#allocation2 + $0x190] sm:$0x3] %vm1698_vm5, %v11544_v33 }
  0xd8   :  { %1750 = vst.msk [vmem:[#allocation2 + $0x1a8] sm:$0x3] %vm1698_vm5, %v11544_v33  ;;  %1753 = vst.msk [vmem:[#allocation2 + $0x1c0] sm:$0x3] %vm1698_vm5, %v11544_v33  ;;  %v584_v34 = vpop.permute.xlu1 %583  ;;  %v582_v37 = vpop.permute.xlu0 %581 }
  0xd9   :  { %1756 = vst.msk [vmem:[#allocation2 + $0x1d8] sm:$0x3] %vm1698_vm5, %v11544_v33  ;;  %1759 = vst.msk [vmem:[#allocation2 + $0x1f0] sm:$0x3] %vm1698_vm5, %v11544_v33  ;;  %v1016_v7 = vsel %vm998_vm1, %v959_v38, %v584_v34  ;;  %v1015_v51 = vsel %vm998_vm1, %v958_v45, %v582_v37  ;;  %v12471_v45 = vld [vmem:[%s16568_s0 + $0x230] sm:$0xff] }
  0xda   :  { %1762 = vst.msk [vmem:[#allocation2 + $0x208] sm:$0x3] %vm1698_vm5, %v11544_v33  ;;  %1765 = vst.msk [vmem:[#allocation2 + $0x220] sm:$0x3] %vm1698_vm5, %v11544_v33  ;;  %399 = vrot.lane.b32.xlu1 %v12160_v23, %s11542_s30  ;;  %397 = vrot.lane.b32.xlu0 %v12165_v24, %s11542_s30  ;;  %v9368_v23 = vld [vmem:[%s16568_s0 + $0x211] sm:$0xff] }
  0xdb   :  { %1768 = vst.msk [vmem:[#allocation2 + $0x238] sm:$0x3] %vm1698_vm5, %v11544_v33  ;;  %1771 = vst.msk [vmem:[#allocation2 + $0x250] sm:$0x3] %vm1698_vm5, %v11544_v33 }
  0xdc   :  { %1774 = vst.msk [vmem:[#allocation2 + $0x268] sm:$0x3] %vm1698_vm5, %v11544_v33  ;;  %1777 = vst.msk [vmem:[#allocation2 + $0x280] sm:$0x3] %vm1698_vm5, %v11544_v33  ;;  %v808_v52 = vpop.permute.xlu1 %807  ;;  %v806_v39 = vpop.permute.xlu0 %805 }
  0xdd   :  { %1780 = vst.msk [vmem:[#allocation2 + $0x298] sm:$0x3] %vm1698_vm5, %v11544_v33  ;;  %1783 = vst.msk [vmem:[#allocation2 + $0x2b0] sm:$0x3] %vm1698_vm5, %v11544_v33  ;;  %v1073_v27 = vsel %vm1055_vm2, %v1016_v7, %v808_v52  ;;  %v1072_v40 = vsel %vm1055_vm2, %v1015_v51, %v806_v39  ;;  %v12476_v7 = vld [vmem:[%s16568_s0 + $0x228] sm:$0xff] }
  0xde   :  { %1786 = vst.msk [vmem:[#allocation2 + $0x2c8] sm:$0x3] %vm1698_vm5, %v11544_v33  ;;  %1789 = vst.msk [vmem:[#allocation2 + $0x2e0] sm:$0x3] %vm1698_vm5, %v11544_v33  ;;  %623 = vrot.lane.b32.xlu1 %v12369_v46, %s11541_s29  ;;  %621 = vrot.lane.b32.xlu0 %v12374_v6, %s11541_s29  ;;  %vm3060_vm5 = vcmask 916480  }
  0xdf   :  { %9967 = vmatprep.mubr.msk.f32.mxu0 %vm1125_vm3, %v1072_v40  ;;  %v9371_v40 = vld [vmem:[%s16568_s0 + $0x231] sm:$0xff]  ;;  %6189 = vst.msk [vmem:[#allocation4] sm:$0xff] %vm2916_vm7, %v11544_v33  ;;  %6192 = vst.msk [vmem:[#allocation4 + $0x10] sm:$0xff] %vm2916_vm7, %v11544_v33 }
  0xe0   :  { %9968 = vmatmul.mubr.msk.f32.gmra.mrb[16].mxu0 %vm1125_vm3, %v1073_v27  ;;  %v364_v54 = vpop.permute.xlu1 %363  ;;  %v362_v55 = vpop.permute.xlu0 %361  ;;  %6194 = vst.msk [vmem:[#allocation4 + $0x20] sm:$0xff] %vm2916_vm7, %v11544_v33  ;;  %6196 = vst.msk [vmem:[#allocation4 + $0x30] sm:$0xff] %vm2916_vm7, %v11544_v33 }
  0xe1   :  { %v961_v58 = vsel %vm941_vm0, %v11847_v43, %v364_v54  ;;  %v960_v61 = vsel %vm941_vm0, %v11852_v44, %v362_v55  ;;  %6198 = vst.msk [vmem:[#allocation4 + $0x40] sm:$0xff] %vm2916_vm7, %v11544_v33  ;;  %6200 = vst.msk [vmem:[#allocation4 + $0x50] sm:$0xff] %vm2916_vm7, %v11544_v33 }
  0xe2   :  { %847 = vrot.lane.b32.xlu1 %v9365_v28, %s11543_s22  ;;  %845 = vrot.lane.b32.xlu0 %v9364_v53, %s11543_s22  ;;  %6202 = vst.msk [vmem:[#allocation4 + $0x60] sm:$0xff] %vm2916_vm7, %v11544_v33  ;;  %6204 = vst.msk [vmem:[#allocation4 + $0x70] sm:$0xff] %vm2916_vm7, %v11544_v33 }
  0xe3   :  { %6206 = vst.msk [vmem:[#allocation4 + $0x80] sm:$0xff] %vm2916_vm7, %v11544_v33  ;;  %6208 = vst.msk [vmem:[#allocation4 + $0x90] sm:$0xff] %vm2916_vm7, %v11544_v33 }
  0xe4   :  { %v588_v56 = vpop.permute.xlu1 %587  ;;  %v586_v57 = vpop.permute.xlu0 %585  ;;  %6210 = vst.msk [vmem:[#allocation4 + $0xa0] sm:$0xff] %vm2916_vm7, %v11544_v33  ;;  %6212 = vst.msk [vmem:[#allocation4 + $0xb0] sm:$0xff] %vm2916_vm7, %v11544_v33 }
  0xe5   :  { %v1018_v4 = vsel %vm998_vm1, %v961_v58, %v588_v56  ;;  %v1017_v5 = vsel %vm998_vm1, %v960_v61, %v586_v57  ;;  %v12505_v61 = vld [vmem:[%s16568_s0 + $0x248] sm:$0xff]  ;;  %6214 = vst.msk [vmem:[#allocation4 + $0xc0] sm:$0xff] %vm2916_vm7, %v11544_v33  ;;  %6216 = vst.msk [vmem:[#allocation4 + $0xd0] sm:$0xff] %vm2916_vm7, %v11544_v33 }
  0xe6   :  { %403 = vrot.lane.b32.xlu1 %v9365_v28, %s11542_s30  ;;  %401 = vrot.lane.b32.xlu0 %v9364_v53, %s11542_s30  ;;  %v9370_v28 = vld [vmem:[%s16568_s0 + $0x229] sm:$0xff]  ;;  %6218 = vst.msk [vmem:[#allocation4 + $0xe0] sm:$0xff] %vm2916_vm7, %v11544_v33  ;;  %6220 = vst.msk [vmem:[#allocation4 + $0xf0] sm:$0xff] %vm2916_vm7, %v11544_v33 }
  0xe7   :  { %7401 = vst.msk [vmem:[#allocation5] sm:$0xff] %vm2973_vm8, %v11544_v33  ;;  %7404 = vst.msk [vmem:[#allocation5 + $0x10] sm:$0xff] %vm2973_vm8, %v11544_v33 }
  0xe8   :  { %v812_v19 = vpop.permute.xlu1 %811  ;;  %v810_v31 = vpop.permute.xlu0 %809  ;;  %7406 = vst.msk [vmem:[#allocation5 + $0x20] sm:$0xff] %vm2973_vm8, %v11544_v33  ;;  %7408 = vst.msk [vmem:[#allocation5 + $0x30] sm:$0xff] %vm2973_vm8, %v11544_v33 }
  0xe9   :  { %v1075_v43 = vsel %vm1055_vm2, %v1018_v4, %v812_v19  ;;  %v1074_v44 = vsel %vm1055_vm2, %v1017_v5, %v810_v31  ;;  %v12510_v4 = vld [vmem:[%s16568_s0 + $0x240] sm:$0xff]  ;;  %7410 = vst.msk [vmem:[#allocation5 + $0x40] sm:$0xff] %vm2973_vm8, %v11544_v33  ;;  %7412 = vst.msk [vmem:[#allocation5 + $0x50] sm:$0xff] %vm2973_vm8, %v11544_v33 }
  0xea   :  { %627 = vrot.lane.b32.xlu1 %v12403_v62, %s11541_s29  ;;  %625 = vrot.lane.b32.xlu0 %v12408_v3, %s11541_s29  ;;  %7414 = vst.msk [vmem:[#allocation5 + $0x60] sm:$0xff] %vm2973_vm8, %v11544_v33  ;;  %7416 = vst.msk [vmem:[#allocation5 + $0x70] sm:$0xff] %vm2973_vm8, %v11544_v33 }
  0xeb   :  { %9970 = vmatprep.mubr.msk.f32.mxu0 %vm1125_vm3, %v1074_v44  ;;  %v9373_v44 = vld [vmem:[%s16568_s0 + $0x249] sm:$0xff]  ;;  %7418 = vst.msk [vmem:[#allocation5 + $0x80] sm:$0xff] %vm2973_vm8, %v11544_v33  ;;  %7420 = vst.msk [vmem:[#allocation5 + $0x90] sm:$0xff] %vm2973_vm8, %v11544_v33 }
  0xec   :  { %9971 = vmatmul.mubr.msk.f32.gmra.mrb[18].mxu0 %vm1125_vm3, %v1075_v43  ;;  %v368_v8 = vpop.permute.xlu1 %367  ;;  %v366_v9 = vpop.permute.xlu0 %365  ;;  %7422 = vst.msk [vmem:[#allocation5 + $0xa0] sm:$0xff] %vm2973_vm8, %v11544_v33  ;;  %7424 = vst.msk [vmem:[#allocation5 + $0xb0] sm:$0xff] %vm2973_vm8, %v11544_v33 }
  0xed   :  { %v963_v12 = vsel %vm941_vm0, %v11871_v47, %v368_v8  ;;  %v962_v13 = vsel %vm941_vm0, %v11876_v48, %v366_v9  ;;  %7426 = vst.msk [vmem:[#allocation5 + $0xc0] sm:$0xff] %vm2973_vm8, %v11544_v33  ;;  %7428 = vst.msk [vmem:[#allocation5 + $0xd0] sm:$0xff] %vm2973_vm8, %v11544_v33 }
  0xee   :  { %851 = vrot.lane.b32.xlu1 %v9367_v32, %s11543_s22  ;;  %849 = vrot.lane.b32.xlu0 %v9366_v20, %s11543_s22  ;;  %7430 = vst.msk [vmem:[#allocation5 + $0xe0] sm:$0xff] %vm2973_vm8, %v11544_v33  ;;  %7432 = vst.msk [vmem:[#allocation5 + $0xf0] sm:$0xff] %vm2973_vm8, %v11544_v33 }
  0xf0   :  { %v592_v10 = vpop.permute.xlu1 %591  ;;  %v590_v11 = vpop.permute.xlu0 %589 }
  0xf1   :  { %v1020_v0 = vsel %vm998_vm1, %v963_v12, %v592_v10  ;;  %v1019_v25 = vsel %vm998_vm1, %v962_v13, %v590_v11  ;;  %v12539_v13 = vld [vmem:[%s16568_s0 + $0x260] sm:$0xff] }
  0xf2   :  { %407 = vrot.lane.b32.xlu1 %v9367_v32, %s11542_s30  ;;  %405 = vrot.lane.b32.xlu0 %v9366_v20, %s11542_s30  ;;  %v9372_v32 = vld [vmem:[%s16568_s0 + $0x241] sm:$0xff] }
  0xf4   :  { %v816_v26 = vpop.permute.xlu1 %815  ;;  %v814_v35 = vpop.permute.xlu0 %813 }
  0xf5   :  { %v1077_v47 = vsel %vm1055_vm2, %v1020_v0, %v816_v26  ;;  %v1076_v48 = vsel %vm1055_vm2, %v1019_v25, %v814_v35  ;;  %v12544_v0 = vld [vmem:[%s16568_s0 + $0x258] sm:$0xff] }
  0xf6   :  { %631 = vrot.lane.b32.xlu1 %v12437_v14, %s11541_s29  ;;  %629 = vrot.lane.b32.xlu0 %v12442_v2, %s11541_s29 }
  0xf7   :  { %9973 = vmatprep.mubr.msk.f32.mxu0 %vm1125_vm3, %v1076_v48  ;;  %v9375_v48 = vld [vmem:[%s16568_s0 + $0x261] sm:$0xff] }
  0xf8   :  { %9974 = vmatmul.mubr.msk.f32.gmra.mrb[20].mxu0 %vm1125_vm3, %v1077_v47  ;;  %v372_v24 = vpop.permute.xlu1 %371  ;;  %v370_v29 = vpop.permute.xlu0 %369 }
  0xf9   :  { %v965_v37 = vsel %vm941_vm0, %v11903_v59, %v372_v24  ;;  %v964_v38 = vsel %vm941_vm0, %v11908_v60, %v370_v29  ;;  %v73_v29 = vld [vmem:[%s16568_s0 + $0x170] sm:$0xff] }
  0xfa   :  { %855 = vrot.lane.b32.xlu1 %v9369_v36, %s11543_s22  ;;  %853 = vrot.lane.b32.xlu0 %v9368_v23, %s11543_s22 }
  0xfc   :  { %v596_v30 = vpop.permute.xlu1 %595  ;;  %v594_v34 = vpop.permute.xlu0 %593 }
  0xfd   :  { %v1022_v51 = vsel %vm998_vm1, %v965_v37, %v596_v30  ;;  %v1021_v52 = vsel %vm998_vm1, %v964_v38, %v594_v34  ;;  %v72_v30 = vld [vmem:[%s16568_s0 + $0x168] sm:$0xff] }
  0xfe   :  { %411 = vrot.lane.b32.xlu1 %v9369_v36, %s11542_s30  ;;  %409 = vrot.lane.b32.xlu0 %v9368_v23, %s11542_s30  ;;  %v9374_v36 = vld [vmem:[%s16568_s0 + $0x259] sm:$0xff] }
 0x100   :  { %v820_v39 = vpop.permute.xlu1 %819  ;;  %v818_v27 = vpop.permute.xlu0 %817 }
 0x101   :  { %v1079_v59 = vsel %vm1055_vm2, %v1022_v51, %v820_v39  ;;  %v1078_v60 = vsel %vm1055_vm2, %v1021_v52, %v818_v27  ;;  %v12577_v52 = vld [vmem:[%s16568_s0 + $0x278] sm:$0xff]  ;;  %v12582_v39 = vld [vmem:[%s16568_s0 + $0x270] sm:$0xff] }
 0x102   :  { %635 = vrot.lane.b32.xlu1 %v12471_v45, %s11541_s29  ;;  %633 = vrot.lane.b32.xlu0 %v12476_v7, %s11541_s29 }
 0x103   :  { %9976 = vmatprep.mubr.msk.f32.mxu0 %vm1125_vm3, %v1078_v60 }
 0x104   :  { %9977 = vmatmul.mubr.msk.f32.gmra.mrb[22].mxu0 %vm1125_vm3, %v1079_v59  ;;  %v376_v53 = vpop.permute.xlu1 %375  ;;  %v374_v54 = vpop.permute.xlu0 %373 }
 0x105   :  { %v967_v57 = vsel %vm941_vm0, %v11937_v15, %v376_v53  ;;  %v966_v58 = vsel %vm941_vm0, %v11942_v16, %v374_v54  ;;  %v9377_v54 = vld [vmem:[%s16568_s0 + $0x279] sm:$0xff] }
 0x106   :  { %859 = vrot.lane.b32.xlu1 %v9371_v40, %s11543_s22  ;;  %857 = vrot.lane.b32.xlu0 %v9370_v28, %s11543_s22 }
 0x108   :  { %v600_v55 = vpop.permute.xlu1 %599  ;;  %v598_v56 = vpop.permute.xlu0 %597 }
 0x109   :  { %v1024_v5 = vsel %vm998_vm1, %v967_v57, %v600_v55  ;;  %v1023_v19 = vsel %vm998_vm1, %v966_v58, %v598_v56  ;;  %v9376_v55 = vld [vmem:[%s16568_s0 + $0x271] sm:$0xff] }
 0x10a   :  { %415 = vrot.lane.b32.xlu1 %v9371_v40, %s11542_s30  ;;  %413 = vrot.lane.b32.xlu0 %v9370_v28, %s11542_s30 }
 0x10c   :  { %v824_v31 = vpop.permute.xlu1 %823  ;;  %v822_v43 = vpop.permute.xlu0 %821 }
 0x10d   :  { %v1081_v15 = vsel %vm1055_vm2, %v1024_v5, %v824_v31  ;;  %v1080_v16 = vsel %vm1055_vm2, %v1023_v19, %v822_v43  ;;  %v12611_v43 = vld [vmem:[%s16568_s0 + $0x290] sm:$0xff] }
 0x10e   :  { %639 = vrot.lane.b32.xlu1 %v12505_v61, %s11541_s29  ;;  %637 = vrot.lane.b32.xlu0 %v12510_v4, %s11541_s29 }
 0x10f   :  { %9979 = vmatprep.mubr.msk.f32.mxu0 %vm1125_vm3, %v1080_v16 }
 0x110   :  { %9980 = vmatmul.mubr.msk.f32.gmra.mrb[24].mxu0 %vm1125_vm3, %v1081_v15  ;;  %v380_v20 = vpop.permute.xlu1 %379  ;;  %v378_v8 = vpop.permute.xlu0 %377  ;;  %v12616_v15 = vld [vmem:[%s16568_s0 + $0x288] sm:$0xff] }
 0x111   :  { %v969_v11 = vsel %vm941_vm0, %v11971_v41, %v380_v20  ;;  %v968_v12 = vsel %vm941_vm0, %v11976_v42, %v378_v8  ;;  %v9379_v8 = vld [vmem:[%s16568_s0 + $0x291] sm:$0xff] }
 0x112   :  { %863 = vrot.lane.b32.xlu1 %v9373_v44, %s11543_s22  ;;  %861 = vrot.lane.b32.xlu0 %v9372_v32, %s11543_s22 }
 0x114   :  { %v604_v9 = vpop.permute.xlu1 %603  ;;  %v602_v10 = vpop.permute.xlu0 %601 }
 0x115   :  { %v1026_v25 = vsel %vm998_vm1, %v969_v11, %v604_v9  ;;  %v1025_v26 = vsel %vm998_vm1, %v968_v12, %v602_v10  ;;  %v9378_v9 = vld [vmem:[%s16568_s0 + $0x289] sm:$0xff] }
 0x116   :  { %419 = vrot.lane.b32.xlu1 %v9373_v44, %s11542_s30  ;;  %417 = vrot.lane.b32.xlu0 %v9372_v32, %s11542_s30 }
 0x118   :  { %v828_v35 = vpop.permute.xlu1 %827  ;;  %v826_v47 = vpop.permute.xlu0 %825 }
 0x119   :  { %v1083_v41 = vsel %vm1055_vm2, %v1026_v25, %v828_v35  ;;  %v1082_v42 = vsel %vm1055_vm2, %v1025_v26, %v826_v47  ;;  %v12645_v47 = vld [vmem:[%s16568_s0 + $0x2a8] sm:$0xff] }
 0x11a   :  { %643 = vrot.lane.b32.xlu1 %v12539_v13, %s11541_s29  ;;  %641 = vrot.lane.b32.xlu0 %v12544_v0, %s11541_s29 }
 0x11b   :  { %9982 = vmatprep.mubr.msk.f32.mxu0 %vm1125_vm3, %v1082_v42 }
 0x11c   :  { %9983 = vmatmul.mubr.msk.f32.gmra.mrb[26].mxu0 %vm1125_vm3, %v1083_v41  ;;  %v384_v23 = vpop.permute.xlu1 %383  ;;  %v382_v24 = vpop.permute.xlu0 %381  ;;  %v12650_v41 = vld [vmem:[%s16568_s0 + $0x2a0] sm:$0xff] }
 0x11d   :  { %v971_v38 = vsel %vm941_vm0, %v73_v29, %v384_v23  ;;  %v970_v51 = vsel %vm941_vm0, %v72_v30, %v382_v24  ;;  %v9381_v24 = vld [vmem:[%s16568_s0 + $0x2a9] sm:$0xff]  ;;  %v9380_v29 = vld [vmem:[%s16568_s0 + $0x2a1] sm:$0xff] }
 0x11e   :  { %867 = vrot.lane.b32.xlu1 %v9375_v48, %s11543_s22  ;;  %865 = vrot.lane.b32.xlu0 %v9374_v36, %s11543_s22 }
 0x120   :  { %v608_v34 = vpop.permute.xlu1 %607  ;;  %v606_v37 = vpop.permute.xlu0 %605 }
 0x121   :  { %v1028_v27 = vsel %vm998_vm1, %v971_v38, %v608_v34  ;;  %v1027_v59 = vsel %vm998_vm1, %v970_v51, %v606_v37 }
 0x122   :  { %423 = vrot.lane.b32.xlu1 %v9375_v48, %s11542_s30  ;;  %421 = vrot.lane.b32.xlu0 %v9374_v36, %s11542_s30 }
 0x124   :  { %v832_v60 = vpop.permute.xlu1 %831  ;;  %v830_v40 = vpop.permute.xlu0 %829 }
 0x125   :  { %v1085_v28 = vsel %vm1055_vm2, %v1028_v27, %v832_v60  ;;  %v1084_v53 = vsel %vm1055_vm2, %v1027_v59, %v830_v40  ;;  %v9327_v59 = vld [vmem:[%s16568_s0 + $0x2c0] sm:$0xff]  ;;  %v9326_v60 = vld [vmem:[%s16568_s0 + $0x2b8] sm:$0xff] }
 0x126   :  { %647 = vrot.lane.b32.xlu1 %v12577_v52, %s11541_s29  ;;  %645 = vrot.lane.b32.xlu0 %v12582_v39, %s11541_s29 }
 0x127   :  { %9985 = vmatprep.mubr.msk.f32.mxu0 %vm1125_vm3, %v1084_v53 }
 0x128   :  { %9986 = vmatmul.mubr.msk.f32.gmra.mrb[28].mxu0 %vm1125_vm3, %v1085_v28  ;;  %v388_v56 = vpop.permute.xlu1 %387  ;;  %v386_v57 = vpop.permute.xlu0 %385 }
 0x129   :  { %v973_v19 = vsel %vm941_vm0, %v12039_v21, %v388_v56  ;;  %v972_v31 = vsel %vm941_vm0, %v12044_v22, %v386_v57  ;;  %v9382_v56 = vld [vmem:[%s16568_s0 + $0x2b9] sm:$0xff]  ;;  %v1907_v57 = vld [vmem:[#allocation2 + $0x2] sm:$0xff] }
 0x12a   :  { %871 = vrot.lane.b32.xlu1 %v9377_v54, %s11543_s22  ;;  %869 = vrot.lane.b32.xlu0 %v9376_v55, %s11543_s22 }
 0x12c   :  { %v612_v58 = vpop.permute.xlu1 %611  ;;  %v610_v5 = vpop.permute.xlu0 %609 }
 0x12d   :  { %v1030_v16 = vsel %vm998_vm1, %v973_v19, %v612_v58  ;;  %v1029_v44 = vsel %vm998_vm1, %v972_v31, %v610_v5  ;;  %v1908_v58 = vld [vmem:[#allocation2 + $0xa] sm:$0xff]  ;;  %v1879_v5 = vld [vmem:[#allocation2 + $0x1] sm:$0xff] }
 0x12e   :  { %427 = vrot.lane.b32.xlu1 %v9377_v54, %s11542_s30  ;;  %425 = vrot.lane.b32.xlu0 %v9376_v55, %s11542_s30  ;;  %v1880_v19 = vld [vmem:[#allocation2 + $0x9] sm:$0xff] }
 0x130   :  { %v836_v32 = vpop.permute.xlu1 %835  ;;  %v834_v20 = vpop.permute.xlu0 %833 }
 0x131   :  { %v1087_v21 = vsel %vm1055_vm2, %v1030_v16, %v836_v32  ;;  %v1086_v22 = vsel %vm1055_vm2, %v1029_v44, %v834_v20  ;;  %v10727_v44 = vpack.i.bf16 %v1908_v58, %v1907_v57  ;;  %v10722_v32 = vpack.i.bf16 %v1880_v19, %v1879_v5 }
 0x132   :  { %651 = vrot.lane.b32.xlu1 %v12611_v43, %s11541_s29  ;;  %649 = vrot.lane.b32.xlu0 %v12616_v15, %s11541_s29 }
 0x133   :  { %9988 = vmatprep.mubr.msk.f32.mxu0 %vm1125_vm3, %v1086_v22  ;;  %v3740_v22 = vld [vmem:[%s16571_s3] sm:$0xff] }
 0x134   :  { %9989 = vmatmul.mubr.msk.f32.gmra.mrb[30].mxu0 %vm1125_vm3, %v1087_v21  ;;  %v392_v10 = vpop.permute.xlu1 %391  ;;  %v390_v11 = vpop.permute.xlu0 %389 }
 0x135   :  { %v975_v26 = vsel %vm941_vm0, %v12073_v49, %v392_v10  ;;  %v974_v35 = vsel %vm941_vm0, %v12078_v50, %v390_v11  ;;  %v3742_v11 = vld [vmem:[%s16571_s3 + $0x10] sm:$0xff] }
 0x136   :  { %875 = vrot.lane.b32.xlu1 %v9379_v8, %s11543_s22  ;;  %873 = vrot.lane.b32.xlu0 %v9378_v9, %s11543_s22 }
 0x138   :  { %v616_v12 = vpop.permute.xlu1 %615  ;;  %v614_v25 = vpop.permute.xlu0 %613 }
 0x139   :  { %v1032_v42 = vsel %vm998_vm1, %v975_v26, %v616_v12  ;;  %v1031_v48 = vsel %vm998_vm1, %v974_v35, %v614_v25  ;;  %v3743_v12 = vld [vmem:[%s16571_s3 + $0x18] sm:$0xff]  ;;  %v11547_v35 = vmov 0.0|0.0  }
 0x13a   :  { %431 = vrot.lane.b32.xlu1 %v9379_v8, %s11542_s30  ;;  %429 = vrot.lane.b32.xlu0 %v9378_v9, %s11542_s30  ;;  %v3741_v8 = vld [vmem:[%s16571_s3 + $0x8] sm:$0xff]  ;;  %v12707_v9 = vld [vmem:[%s16570_s2] ss:$0 sm:$0xff] }
 0x13b   :  { %v10271_v10 = vpack.c.bf16 %v3741_v8, %v3740_v22  ;;  %10270 = vmatprep.subr.bf16.mxu1 %v11547_v35 }
 0x13c   :  { %v840_v36 = vpop.permute.xlu1 %839  ;;  %v838_v23 = vpop.permute.xlu0 %837 }
 0x13d   :  { %v1089_v49 = vsel %vm1055_vm2, %v1032_v42, %v840_v36  ;;  %v1088_v50 = vsel %vm1055_vm2, %v1031_v48, %v838_v23  ;;  %10272 = vmatpush1.bf16.msra.mxu1 %v10271_v10 }
 0x13e   :  { %655 = vrot.lane.b32.xlu1 %v12645_v47, %s11541_s29  ;;  %653 = vrot.lane.b32.xlu0 %v12650_v41, %s11541_s29 }
 0x13f   :  { %9991 = vmatprep.mubr.msk.f32.mxu0 %vm1125_vm3, %v1088_v50  ;;  %v10274_v50 = vpack.c.bf16 %v3743_v12, %v3742_v11  ;;  %10273 = vmatprep.subr.bf16.mxu1 %v11547_v35 }
 0x140   :  { %9992 = vmatmul.mubr.msk.f32.gmra.mrb[32].mxu0 %vm1125_vm3, %v1089_v49  ;;  %v396_v30 = vpop.permute.xlu1 %395  ;;  %v394_v34 = vpop.permute.xlu0 %393 }
 0x141   :  { %v977_v51 = vsel %vm941_vm0, %v12107_v63, %v396_v30  ;;  %v976_v27 = vsel %vm941_vm0, %v12112_v1, %v394_v34  ;;  %v9383_v1 = vld [vmem:[%s16568_s0 + $0x2c1] sm:$0xff]  ;;  %10275 = vmatpush1.bf16.msra.mxu1 %v10274_v50  ;;  %v3751_v50 = vld [vmem:[%s16571_s3 + $0x58] sm:$0xff] }
 0x142   :  { %879 = vrot.lane.b32.xlu1 %v9381_v24, %s11543_s22  ;;  %877 = vrot.lane.b32.xlu0 %v9380_v29, %s11543_s22 }
 0x143   :  { %10276 = vmatprep.subr.bf16.mxu1 %v11547_v35 }
 0x144   :  { %v620_v37 = vpop.permute.xlu1 %619  ;;  %v618_v38 = vpop.permute.xlu0 %617 }
 0x145   :  { %v1034_v40 = vsel %vm998_vm1, %v977_v51, %v620_v37  ;;  %v1033_v28 = vsel %vm998_vm1, %v976_v27, %v618_v38  ;;  %v3744_v51 = vld [vmem:[%s16571_s3 + $0x20] sm:$0xff]  ;;  %v3745_v27 = vld [vmem:[%s16571_s3 + $0x28] sm:$0xff] }
 0x146   :  { %435 = vrot.lane.b32.xlu1 %v9381_v24, %s11542_s30  ;;  %433 = vrot.lane.b32.xlu0 %v9380_v29, %s11542_s30 }
 0x148   :  { %v844_v53 = vpop.permute.xlu1 %843  ;;  %v842_v54 = vpop.permute.xlu0 %841 }
 0x149   :  { %v1091_v55 = vsel %vm1055_vm2, %v1034_v40, %v844_v53  ;;  %v1090_v63 = vsel %vm1055_vm2, %v1033_v28, %v842_v54  ;;  %v3746_v28 = vld [vmem:[%s16571_s3 + $0x30] sm:$0xff]  ;;  %v3747_v53 = vld [vmem:[%s16571_s3 + $0x38] sm:$0xff] }
 0x14a   :  { %659 = vrot.lane.b32.xlu1 %v9327_v59, %s11541_s29  ;;  %657 = vrot.lane.b32.xlu0 %v9326_v60, %s11541_s29  ;;  %v10277_v60 = vpack.c.bf16 %v3745_v27, %v3744_v51 }
 0x14b   :  { %9994 = vmatprep.mubr.msk.f32.mxu0 %vm1125_vm3, %v1090_v63  ;;  %v3748_v63 = vld [vmem:[%s16571_s3 + $0x40] sm:$0xff] }
 0x14c   :  { %9995 = vmatmul.mubr.msk.f32.gmra.mrb[34].mxu0 %vm1125_vm3, %v1091_v55  ;;  %v400_v31 = vpop.permute.xlu1 %399  ;;  %v398_v16 = vpop.permute.xlu0 %397  ;;  %10278 = vmatpush1.bf16.msra.mxu1 %v10277_v60  ;;  %v10280_v55 = vpack.c.bf16 %v3747_v53, %v3746_v28 }
 0x14d   :  { %v979_v25 = vsel %vm941_vm0, %v12141_v17, %v400_v31  ;;  %v978_v42 = vsel %vm941_vm0, %v12146_v18, %v398_v16  ;;  %10279 = vmatprep.subr.bf16.mxu1 %v11547_v35 }
 0x14e   :  { %883 = vrot.lane.b32.xlu1 %v9383_v1, %s11543_s22  ;;  %881 = vrot.lane.b32.xlu0 %v9382_v56, %s11543_s22  ;;  %v3749_v1 = vld [vmem:[%s16571_s3 + $0x48] sm:$0xff] }
 0x14f   :  { %v10283_v8 = vpack.c.bf16 %v3749_v1, %v3748_v63 }
 0x150   :  { %v624_v20 = vpop.permute.xlu1 %623  ;;  %v622_v21 = vpop.permute.xlu0 %621  ;;  %10281 = vmatpush1.bf16.msra.mxu1 %v10280_v55 }
 0x151   :  { %v1036_v48 = vsel %vm998_vm1, %v979_v25, %v624_v20  ;;  %v1035_v24 = vsel %vm998_vm1, %v978_v42, %v622_v21  ;;  %10282 = vmatprep.subr.bf16.mxu1 %v11547_v35 }
 0x152   :  { %10728 = vrot.lane.b32.xlu1 %v10727_v44, %s11545_s28  ;;  %10723 = vrot.lane.b32.xlu0 %v10722_v32, %s11546_s14 }
 0x153   :  { %v9945_v26 = vpop.f32.mrb[0].mxu0 }
 0x154   :  { %v1366_v36 = vadd.f32 %v9945_v26, %v12707_v9  ;;  %v1360_v23 = vpop.f32.mrb[1].mxu0  ;;  %v848_v49 = vpop.permute.xlu1 %847  ;;  %10284 = vmatpush1.bf16.msra.mxu1 %v10283_v8 }
 0x155   :  { %v1361_v17 = vadd.f32 %v12707_v9, %v1360_v23  ;;  %v1093_v29 = vsel %vm1055_vm2, %v1036_v48, %v848_v49  ;;  %v846_v30 = vpop.permute.xlu0 %845  ;;  %v3750_v49 = vld [vmem:[%s16571_s3 + $0x50] sm:$0xff]  ;;  %10285 = vmatprep.subr.bf16.mxu1 %v11547_v35 }
 0x156   :  { %v1640_v34 = vmax.f32 %v1366_v36, 0.0  ;;  %v1092_v18 = vsel %vm1055_vm2, %v1035_v24, %v846_v30 }
 0x157   :  { %v1639_v37 = vmax.f32 %v1361_v17, 0.0  ;;  %9997 = vmatprep.mubr.msk.f32.mxu0 %vm1125_vm3, %v1092_v18  ;;  %v3753_v18 = vld [vmem:[%s16571_s3 + $0x68] sm:$0xff] }
 0x158   :  { %1796 = vst.msk [vmem:[#allocation2 + $0x21] sm:$0x3f] %vm1795_vm6, %v1640_v34  ;;  %9998 = vmatmul.mubr.msk.f32.gmra.mrb[36].mxu0 %vm1125_vm3, %v1093_v29  ;;  %v404_v38 = vpop.permute.xlu1 %403  ;;  %v10286_v29 = vpack.c.bf16 %v3751_v50, %v3750_v49  ;;  %v3752_v34 = vld [vmem:[%s16571_s3 + $0x60] sm:$0xff] }
 0x159   :  { %1794 = vst.msk [vmem:[#allocation2 + $0x19] sm:$0xff] %vm1695_vm4, %v1639_v37  ;;  %v402_v59 = vpop.permute.xlu0 %401  ;;  %v981_v56 = vsel %vm941_vm0, %v12369_v46, %v404_v38  ;;  %v10289_v38 = vpack.c.bf16 %v3753_v18, %v3752_v34 }
 0x15a   :  { %v980_v57 = vsel %vm941_vm0, %v12374_v6, %v402_v59  ;;  %10287 = vmatpush1.bf16.msra.mxu1 %v10286_v29 }
 0x15b   :  { %10288 = vmatprep.subr.bf16.mxu1 %v11547_v35 }
 0x15c   :  { %v628_v40 = vpop.permute.xlu1 %627 }
 0x15d   :  { %v626_v54 = vpop.permute.xlu0 %625  ;;  %v1038_v19 = vsel %vm998_vm1, %v981_v56, %v628_v40 }
 0x15e   :  { %v1037_v31 = vsel %vm998_vm1, %v980_v57, %v626_v54  ;;  %10290 = vmatpush1.bf16.msra.mxu1 %v10289_v38 }
 0x15f   :  { %v9948_v58 = vpop.f32.mrb[2].mxu0  ;;  %v1964_v5 = vld [vmem:[#allocation2 + $0x21] sm:$0xff]  ;;  %10291 = vmatprep.subr.bf16.mxu1 %v11547_v35 }
 0x160   :  { %v1376_v16 = vadd.f32 %v9948_v58, %v12707_v9  ;;  %v1370_v44 = vpop.f32.mrb[3].mxu0  ;;  %v852_v32 = vpop.permute.xlu1 %851  ;;  %v1963_v20 = vld [vmem:[#allocation2 + $0x19] sm:$0xff]  ;;  %v1992_v48 = vld [vmem:[#allocation2 + $0x22] sm:$0xff] }
 0x161   :  { %v1935_v21 = vld [vmem:[#allocation2 + $0x18] sm:$0xff]  ;;  %v1936_v22 = vld [vmem:[#allocation2 + $0x20] sm:$0xff]  ;;  %v1371_v46 = vadd.f32 %v12707_v9, %v1370_v44  ;;  %v1095_v10 = vsel %vm1055_vm2, %v1038_v19, %v852_v32  ;;  %v850_v6 = vpop.permute.xlu0 %849  ;;  %v10737_v11 = vpack.i.bf16 %v1964_v5, %v1963_v20 }
 0x162   :  { %v10732_v12 = vpack.i.bf16 %v1936_v22, %v1935_v21  ;;  %v1642_v25 = vmax.f32 %v1376_v16, 0.0  ;;  %v1094_v26 = vsel %vm1055_vm2, %v1037_v31, %v850_v6  ;;  %v1991_v42 = vld [vmem:[#allocation2 + $0x1a] sm:$0xff]  ;;  %v3754_v31 = vld [vmem:[%s16571_s3 + $0x70] sm:$0xff] }
 0x163   :  { %v1641_v36 = vmax.f32 %v1371_v46, 0.0  ;;  %10000 = vmatprep.mubr.msk.f32.mxu0 %vm1125_vm3, %v1094_v26  ;;  %10738 = vrot.lane.b32.xlu1 %v10737_v11, %s11548_s26  ;;  %v10742_v17 = vpack.i.bf16 %v1992_v48, %v1991_v42  ;;  %v3755_v16 = vld [vmem:[%s16571_s3 + $0x78] sm:$0xff] }
 0x164   :  { %1798 = vst.msk [vmem:[#allocation2 + $0x39] sm:$0x3f] %vm1795_vm6, %v1642_v25  ;;  %10733 = vrot.lane.b32.xlu0 %v10732_v12, %s11549_s27  ;;  %10001 = vmatmul.mubr.msk.f32.gmra.mrb[38].mxu0 %vm1125_vm3, %v1095_v10  ;;  %v408_v23 = vpop.permute.xlu1 %407  ;;  %v10292_v11 = vpack.c.bf16 %v3755_v16, %v3754_v31  ;;  %v3756_v12 = vld [vmem:[%s16571_s3 + $0x80] sm:$0xff]  ;;  %v3757_v25 = vld [vmem:[%s16571_s3 + $0x88] sm:$0xff] }
 0x165   :  { %1797 = vst.msk [vmem:[#allocation2 + $0x31] sm:$0xff] %vm1695_vm4, %v1641_v36  ;;  %v406_v24 = vpop.permute.xlu0 %405  ;;  %v983_v51 = vsel %vm941_vm0, %v12403_v62, %v408_v23  ;;  %v10295_v50 = vpack.c.bf16 %v3757_v25, %v3756_v12 }
 0x166   :  { %v982_v27 = vsel %vm941_vm0, %v12408_v3, %v406_v24  ;;  %10293 = vmatpush1.bf16.msra.mxu1 %v10292_v11 }
 0x167   :  { %10743 = vrot.lane.b32.xlu1 %v10742_v17, %s11550_s17  ;;  %10294 = vmatprep.subr.bf16.mxu1 %v11547_v35 }
 0x168   :  { %v632_v30 = vpop.permute.xlu1 %631 }
 0x169   :  { %v630_v37 = vpop.permute.xlu0 %629  ;;  %v1040_v40 = vsel %vm998_vm1, %v983_v51, %v632_v30 }
 0x16a   :  { %v1039_v28 = vsel %vm998_vm1, %v982_v27, %v630_v37  ;;  %10296 = vmatpush1.bf16.msra.mxu1 %v10295_v50 }
 0x16b   :  { %v9951_v59 = vpop.f32.mrb[4].mxu0  ;;  %v1882_v60 = vld [vmem:[#allocation2 + $0x39] sm:$0xff] }
 0x16c   :  { %v1386_v53 = vadd.f32 %v9951_v59, %v12707_v9  ;;  %v1380_v54 = vpop.f32.mrb[5].mxu0  ;;  %v856_v55 = vpop.permute.xlu1 %855  ;;  %v12856_v63 = vld [vmem:[#allocation2 + $0x30] sm:$0xff]  ;;  %v12858_v1 = vld [vmem:[#allocation2 + $0x38] sm:$0xff] }
 0x16d   :  { %v1881_v56 = vld [vmem:[#allocation2 + $0x31] sm:$0xff]  ;;  %v1381_v62 = vadd.f32 %v12707_v9, %v1380_v54  ;;  %v1097_v3 = vsel %vm1055_vm2, %v1040_v40, %v856_v55  ;;  %v854_v57 = vpop.permute.xlu0 %853  ;;  %v10757_v58 = vpack.i.bf16 %v12858_v1, %v12856_v63  ;;  %v1910_v20 = vld [vmem:[#allocation2 + $0x3a] sm:$0xff] }
 0x16e   :  { %v10747_v5 = vpack.i.bf16 %v1882_v60, %v1881_v56  ;;  %v1909_v19 = vld [vmem:[#allocation2 + $0x32] sm:$0xff]  ;;  %v1644_v44 = vmax.f32 %v1386_v53, 0.0  ;;  %v1096_v32 = vsel %vm1055_vm2, %v1039_v28, %v854_v57  ;;  %v3314_v42 = vrot.slane %v1910_v20, 4 }
 0x16f   :  { %v3118_v21 = vrot.slane %v1909_v19, 1  ;;  %v1643_v22 = vmax.f32 %v1381_v62, 0.0  ;;  %10003 = vmatprep.mubr.msk.f32.mxu0 %vm1125_vm3, %v1096_v32  ;;  %10758 = vrot.lane.b32.xlu1 %v10757_v58, %s11551_s24  ;;  %v3174_v8 = vrot.slane %v1909_v19, 2  ;;  %v3230_v10 = vrot.slane %v1909_v19, 3 }
 0x170   :  { %1800 = vst.msk [vmem:[#allocation2 + $0x51] sm:$0x3f] %vm1795_vm6, %v1644_v44  ;;  %10748 = vrot.lane.b32.xlu0 %v10747_v5, %s11546_s14  ;;  %10004 = vmatmul.mubr.msk.f32.gmra.mrb[40].mxu0 %vm1125_vm3, %v1097_v3  ;;  %v412_v46 = vpop.permute.xlu1 %411  ;;  %v10752_v36 = vpack.i.bf16 %v1910_v20, %v1909_v19  ;;  %v3370_v23 = vrot.slane %v1910_v20, 5  ;;  %v3426_v24 = vrot.slane %v1910_v20, 6  ;;  %v3482_v30 = vrot.slane %v1910_v20, 7 }
 0x171   :  { %v3539_v6 = vsel %vm3537_vm9, %v1909_v19, %v3118_v21  ;;  %1799 = vst.msk [vmem:[#allocation2 + $0x49] sm:$0xff] %vm1695_vm4, %v1643_v22  ;;  %v410_v26 = vpop.permute.xlu0 %409  ;;  %v985_v51 = vsel %vm941_vm0, %v12437_v14, %v412_v46 }
 0x172   :  { %v3568_v48 = vsel %vm3566_vm10, %v3539_v6, %v3174_v8  ;;  %v984_v59 = vsel %vm941_vm0, %v12442_v2, %v410_v26 }
 0x173   :  { %v3597_v49 = vsel %vm3595_vm11, %v3568_v48, %v3230_v10  ;;  %10763 = vrot.lane.b32.xlu1 %v10747_v5, %s11552_s1 }
 0x174   :  { %v3626_v17 = vsel %vm3624_vm12, %v3597_v49, %v3314_v42  ;;  %10753 = vrot.lane.b32.xlu0 %v10752_v36, %s11545_s28  ;;  %v636_v29 = vpop.permute.xlu1 %635 }
 0x175   :  { %v3655_v34 = vsel %vm3653_vm13, %v3626_v17, %v3370_v23  ;;  %v634_v18 = vpop.permute.xlu0 %633  ;;  %v1042_v60 = vsel %vm998_vm1, %v985_v51, %v636_v29 }
 0x176   :  { %v3684_v37 = vsel %vm3682_vm14, %v3655_v34, %v3426_v24  ;;  %v1041_v56 = vsel %vm998_vm1, %v984_v59, %v634_v18 }
 0x177   :  { %v3713_v38 = vsel %vm3711_vm15, %v3684_v37, %v3482_v30  ;;  %v9954_v27 = vpop.f32.mrb[6].mxu0  ;;  %v1966_v19 = vld [vmem:[#allocation2 + $0x51] sm:$0xff] }
 0x178   :  { %9442 = vmatprep.mubr.msk.f32.mxu1 %vm1695_vm4, %v3713_v38  ;;  %v1396_v40 = vadd.f32 %v9954_v27, %v12707_v9  ;;  %v1390_v28 = vpop.f32.mrb[7].mxu0  ;;  %v860_v53 = vpop.permute.xlu1 %859  ;;  %v1937_v54 = vld [vmem:[#allocation2 + $0x48] sm:$0xff]  ;;  %v1938_v55 = vld [vmem:[#allocation2 + $0x50] sm:$0xff] }
 0x179   :  { %v1391_v62 = vadd.f32 %v12707_v9, %v1390_v28  ;;  %v1099_v14 = vsel %vm1055_vm2, %v1042_v60, %v860_v53  ;;  %v858_v3 = vpop.permute.xlu0 %857  ;;  %v10767_v57 = vpack.i.bf16 %v1938_v55, %v1937_v54  ;;  %v1965_v2 = vld [vmem:[#allocation2 + $0x49] sm:$0xff]  ;;  %v1994_v21 = vld [vmem:[#allocation2 + $0x52] sm:$0xff] }
 0x17a   :  { %v1646_v58 = vmax.f32 %v1396_v40, 0.0  ;;  %v1098_v5 = vsel %vm1055_vm2, %v1041_v56, %v858_v3  ;;  %v10772_v32 = vpack.i.bf16 %v1966_v19, %v1965_v2  ;;  %v1993_v20 = vld [vmem:[#allocation2 + $0x4a] sm:$0xff] }
 0x17b   :  { %v1645_v31 = vmax.f32 %v1391_v62, 0.0  ;;  %10006 = vmatprep.mubr.msk.f32.mxu0 %vm1125_vm3, %v1098_v5  ;;  %10768 = vrot.lane.b32.xlu0 %v10767_v57, %s11549_s27  ;;  %v10777_v46 = vpack.i.bf16 %v1994_v21, %v1993_v20 }
 0x17c   :  { %1802 = vst.msk [vmem:[#allocation2 + $0x69] sm:$0x3f] %vm1795_vm6, %v1646_v58  ;;  %10007 = vmatmul.mubr.msk.f32.gmra.mrb[42].mxu0 %vm1125_vm3, %v1099_v14  ;;  %v416_v16 = vpop.permute.xlu1 %415 }
 0x17d   :  { %1801 = vst.msk [vmem:[#allocation2 + $0x61] sm:$0xff] %vm1695_vm4, %v1645_v31  ;;  %v414_v44 = vpop.permute.xlu0 %413  ;;  %v987_v10 = vsel %vm941_vm0, %v12471_v45, %v416_v16 }
 0x17e   :  { %v986_v6 = vsel %vm941_vm0, %v12476_v7, %v414_v44 }
 0x17f   :  { %10773 = vrot.lane.b32.xlu0 %v10772_v32, %s11548_s26 }
 0x180   :  { %v640_v22 = vpop.permute.xlu1 %639 }
 0x181   :  { %v638_v8 = vpop.permute.xlu0 %637  ;;  %v1044_v25 = vsel %vm998_vm1, %v987_v10, %v640_v22 }
 0x182   :  { %v1043_v26 = vsel %vm998_vm1, %v986_v6, %v638_v8 }
 0x183   :  { %v9957_v11 = vpop.f32.mrb[8].mxu0  ;;  %10778 = vrot.lane.b32.xlu0 %v10777_v46, %s11550_s17  ;;  %v1884_v12 = vld [vmem:[#allocation2 + $0x69] sm:$0xff] }
 0x184   :  { %v1406_v42 = vadd.f32 %v9957_v11, %v12707_v9  ;;  %v1400_v48 = vpop.f32.mrb[9].mxu0  ;;  %v864_v36 = vpop.permute.xlu1 %863  ;;  %v1883_v23 = vld [vmem:[#allocation2 + $0x61] sm:$0xff]  ;;  %v1912_v37 = vld [vmem:[#allocation2 + $0x6a] sm:$0xff] }
 0x185   :  { %v12919_v49 = vld [vmem:[#allocation2 + $0x60] sm:$0xff]  ;;  %v12921_v50 = vld [vmem:[#allocation2 + $0x68] sm:$0xff]  ;;  %v1401_v45 = vadd.f32 %v12707_v9, %v1400_v48  ;;  %v1101_v7 = vsel %vm1055_vm2, %v1044_v25, %v864_v36  ;;  %v862_v24 = vpop.permute.xlu0 %861  ;;  %v10782_v17 = vpack.i.bf16 %v1884_v12, %v1883_v23  ;;  %v3316_v54 = vrot.slane %v1912_v37, 4 }
 0x186   :  { %v10792_v29 = vpack.i.bf16 %v12921_v50, %v12919_v49  ;;  %v1911_v30 = vld [vmem:[#allocation2 + $0x62] sm:$0xff]  ;;  %v1648_v34 = vmax.f32 %v1406_v42, 0.0  ;;  %v1100_v18 = vsel %vm1055_vm2, %v1043_v26, %v862_v24  ;;  %v3372_v56 = vrot.slane %v1912_v37, 5 }
 0x187   :  { %v3120_v38 = vrot.slane %v1911_v30, 1  ;;  %v1647_v51 = vmax.f32 %v1401_v45, 0.0  ;;  %10009 = vmatprep.mubr.msk.f32.mxu0 %vm1125_vm3, %v1100_v18  ;;  %10783 = vrot.lane.b32.xlu1 %v10782_v17, %s11546_s14  ;;  %v3176_v27 = vrot.slane %v1911_v30, 2  ;;  %v3232_v60 = vrot.slane %v1911_v30, 3 }
 0x188   :  { %1804 = vst.msk [vmem:[#allocation2 + $0x81] sm:$0x3f] %vm1795_vm6, %v1648_v34  ;;  %10793 = vrot.lane.b32.xlu0 %v10792_v29, %s11551_s24  ;;  %10010 = vmatmul.mubr.msk.f32.gmra.mrb[44].mxu0 %vm1125_vm3, %v1101_v7  ;;  %v420_v59 = vpop.permute.xlu1 %419  ;;  %v10787_v53 = vpack.i.bf16 %v1912_v37, %v1911_v30  ;;  %v3428_v14 = vrot.slane %v1912_v37, 6  ;;  %v3484_v58 = vrot.slane %v1912_v37, 7 }
 0x189   :  { %v3541_v40 = vsel %vm3537_vm9, %v1911_v30, %v3120_v38  ;;  %1803 = vst.msk [vmem:[#allocation2 + $0x79] sm:$0xff] %vm1695_vm4, %v1647_v51  ;;  %v418_v28 = vpop.permute.xlu0 %417  ;;  %v989_v16 = vsel %vm941_vm0, %v12505_v61, %v420_v59 }
 0x18a   :  { %v3570_v55 = vsel %vm3566_vm10, %v3541_v40, %v3176_v27  ;;  %v988_v32 = vsel %vm941_vm0, %v12510_v4, %v418_v28 }
 0x18b   :  { %v3599_v62 = vsel %vm3595_vm11, %v3570_v55, %v3232_v60  ;;  %10788 = vrot.lane.b32.xlu1 %v10787_v53, %s11545_s28 }
 0x18c   :  { %v3628_v3 = vsel %vm3624_vm12, %v3599_v62, %v3316_v54  ;;  %10803 = vrot.lane.b32.xlu0 %v10782_v17, %s11552_s1  ;;  %v644_v57 = vpop.permute.xlu1 %643 }
 0x18d   :  { %v3657_v5 = vsel %vm3653_vm13, %v3628_v3, %v3372_v56  ;;  %v642_v2 = vpop.permute.xlu0 %641  ;;  %v1046_v20 = vsel %vm998_vm1, %v989_v16, %v644_v57 }
 0x18e   :  { %v3686_v19 = vsel %vm3682_vm14, %v3657_v5, %v3428_v14  ;;  %v1045_v6 = vsel %vm998_vm1, %v988_v32, %v642_v2 }
 0x18f   :  { %v12943_v31 = vsel %vm3711_vm15, %v3686_v19, %v3484_v58  ;;  %v9960_v44 = vpop.f32.mrb[10].mxu0  ;;  %v1968_v48 = vld [vmem:[#allocation2 + $0x81] sm:$0xff] }
 0x190   :  { %v1416_v21 = vadd.f32 %v9960_v44, %v12707_v9  ;;  %v1410_v22 = vpop.f32.mrb[11].mxu0  ;;  %v868_v8 = vpop.permute.xlu1 %867  ;;  %v1939_v46 = vld [vmem:[#allocation2 + $0x78] sm:$0xff]  ;;  %v1940_v10 = vld [vmem:[#allocation2 + $0x80] sm:$0xff] }
 0x191   :  { %v1411_v11 = vadd.f32 %v12707_v9, %v1410_v22  ;;  %v1103_v12 = vsel %vm1055_vm2, %v1046_v20, %v868_v8  ;;  %v866_v25 = vpop.permute.xlu0 %865  ;;  %v10797_v61 = vpack.i.bf16 %v1940_v10, %v1939_v46  ;;  %v1967_v4 = vld [vmem:[#allocation2 + $0x79] sm:$0xff]  ;;  %v1996_v17 = vld [vmem:[#allocation2 + $0x82] sm:$0xff] }
 0x192   :  { %v1650_v26 = vmax.f32 %v1416_v21, 0.0  ;;  %v1102_v42 = vsel %vm1055_vm2, %v1045_v6, %v866_v25  ;;  %v10807_v7 = vpack.i.bf16 %v1968_v48, %v1967_v4  ;;  %v1995_v24 = vld [vmem:[#allocation2 + $0x7a] sm:$0xff] }
 0x193   :  { %v1649_v36 = vmax.f32 %v1411_v11, 0.0  ;;  %10012 = vmatprep.mubr.msk.f32.mxu0 %vm1125_vm3, %v1102_v42  ;;  %10798 = vrot.lane.b32.xlu1 %v10797_v61, %s11549_s27  ;;  %v10817_v34 = vpack.i.bf16 %v1996_v17, %v1995_v24 }
 0x194   :  { %1806 = vst.msk [vmem:[#allocation2 + $0x99] sm:$0x3f] %vm1795_vm6, %v1650_v26  ;;  %10013 = vmatmul.mubr.msk.f32.gmra.mrb[46].mxu0 %vm1125_vm3, %v1103_v12  ;;  %v424_v23 = vpop.permute.xlu1 %423 }
 0x195   :  { %1805 = vst.msk [vmem:[#allocation2 + $0x91] sm:$0xff] %vm1695_vm4, %v1649_v36  ;;  %v422_v45 = vpop.permute.xlu0 %421  ;;  %v991_v18 = vsel %vm941_vm0, %v12539_v13, %v424_v23 }
 0x196   :  { %v990_v37 = vsel %vm941_vm0, %v12544_v0, %v422_v45 }
 0x197   :  { %10808 = vrot.lane.b32.xlu1 %v10807_v7, %s11548_s26 }
 0x198   :  { %v648_v29 = vpop.permute.xlu1 %647 }
 0x199   :  { %v646_v30 = vpop.permute.xlu0 %645  ;;  %v1048_v27 = vsel %vm998_vm1, %v991_v18, %v648_v29 }
 0x19a   :  { %v1047_v59 = vsel %vm998_vm1, %v990_v37, %v646_v30 }
 0x19b   :  { %v9963_v38 = vpop.f32.mrb[12].mxu0  ;;  %10818 = vrot.lane.b32.xlu1 %v10817_v34, %s11550_s17  ;;  %v1886_v51 = vld [vmem:[#allocation2 + $0x99] sm:$0xff] }
 0x19c   :  { %v1426_v60 = vadd.f32 %v9963_v38, %v12707_v9  ;;  %v1420_v40 = vpop.f32.mrb[13].mxu0  ;;  %v872_v28 = vpop.permute.xlu1 %871  ;;  %v2024_v53 = vld [vmem:[#allocation2 + $0x90] sm:$0xff]  ;;  %v2025_v54 = vld [vmem:[#allocation2 + $0x98] sm:$0xff] }
 0x19d   :  { %v1885_v55 = vld [vmem:[#allocation2 + $0x91] sm:$0xff]  ;;  %v1421_v13 = vadd.f32 %v12707_v9, %v1420_v40  ;;  %v1105_v56 = vsel %vm1055_vm2, %v1048_v27, %v872_v28  ;;  %v870_v0 = vpop.permute.xlu0 %869  ;;  %v10827_v62 = vpack.i.bf16 %v2025_v54, %v2024_v53  ;;  %v1914_v5 = vld [vmem:[#allocation2 + $0x9a] sm:$0xff] }
 0x19e   :  { %v10812_v14 = vpack.i.bf16 %v1886_v51, %v1885_v55  ;;  %v1913_v3 = vld [vmem:[#allocation2 + $0x92] sm:$0xff]  ;;  %v1652_v57 = vmax.f32 %v1426_v60, 0.0  ;;  %v1104_v58 = vsel %vm1055_vm2, %v1047_v59, %v870_v0  ;;  %v3318_v22 = vrot.slane %v1914_v5, 4 }
 0x19f   :  { %v3122_v2 = vrot.slane %v1913_v3, 1  ;;  %v1651_v19 = vmax.f32 %v1421_v13, 0.0  ;;  %10015 = vmatprep.mubr.msk.f32.mxu0 %vm1125_vm3, %v1104_v58  ;;  %10828 = vrot.lane.b32.xlu1 %v10827_v62, %s11551_s24  ;;  %v3178_v16 = vrot.slane %v1913_v3, 2  ;;  %v3234_v32 = vrot.slane %v1913_v3, 3 }
 0x1a0   :  { %1808 = vst.msk [vmem:[#allocation2 + $0xb1] sm:$0x3f] %vm1795_vm6, %v1652_v57  ;;  %10813 = vrot.lane.b32.xlu0 %v10812_v14, %s11546_s14  ;;  %10016 = vmatmul.mubr.msk.f32.gmra.mrb[48].mxu0 %vm1125_vm3, %v1105_v56  ;;  %v428_v44 = vpop.permute.xlu1 %427  ;;  %v10822_v46 = vpack.i.bf16 %v1914_v5, %v1913_v3  ;;  %v3374_v10 = vrot.slane %v1914_v5, 5  ;;  %v3430_v11 = vrot.slane %v1914_v5, 6  ;;  %v3486_v61 = vrot.slane %v1914_v5, 7 }
 0x1a1   :  { %v3543_v20 = vsel %vm3537_vm9, %v1913_v3, %v3122_v2  ;;  %1807 = vst.msk [vmem:[#allocation2 + $0xa9] sm:$0xff] %vm1695_vm4, %v1651_v19  ;;  %v426_v21 = vpop.permute.xlu0 %425  ;;  %v993_v36 = vsel %vm941_vm0, %v12577_v52, %v428_v44 }
 0x1a2   :  { %v3572_v8 = vsel %vm3566_vm10, %v3543_v20, %v3178_v16  ;;  %v992_v45 = vsel %vm941_vm0, %v12582_v39, %v426_v21 }
 0x1a3   :  { %v3601_v6 = vsel %vm3595_vm11, %v3572_v8, %v3234_v32  ;;  %10838 = vrot.lane.b32.xlu1 %v10812_v14, %s11552_s1 }
 0x1a4   :  { %v3630_v12 = vsel %vm3624_vm12, %v3601_v6, %v3318_v22  ;;  %10823 = vrot.lane.b32.xlu0 %v10822_v46, %s11545_s28  ;;  %v652_v25 = vpop.permute.xlu1 %651 }
 0x1a5   :  { %v3659_v26 = vsel %vm3653_vm13, %v3630_v12, %v3374_v10  ;;  %v650_v42 = vpop.permute.xlu0 %649  ;;  %v1050_v7 = vsel %vm998_vm1, %v993_v36, %v652_v25 }
 0x1a6   :  { %v3688_v4 = vsel %vm3682_vm14, %v3659_v26, %v3430_v11  ;;  %v1049_v18 = vsel %vm998_vm1, %v992_v45, %v650_v42 }
 0x1a7   :  { %v12987_v48 = vsel %vm3711_vm15, %v3688_v4, %v3486_v61  ;;  %v9966_v23 = vpop.f32.mrb[14].mxu0  ;;  %v1970_v60 = vld [vmem:[#allocation2 + $0xb1] sm:$0xff] }
 0x1a8   :  { %v1436_v24 = vadd.f32 %v9966_v23, %v12707_v9  ;;  %v1430_v17 = vpop.f32.mrb[15].mxu0  ;;  %v876_v29 = vpop.permute.xlu1 %875  ;;  %v1941_v30 = vld [vmem:[#allocation2 + $0xa8] sm:$0xff]  ;;  %v1942_v34 = vld [vmem:[#allocation2 + $0xb0] sm:$0xff] }
 0x1a9   :  { %v1431_v37 = vadd.f32 %v12707_v9, %v1430_v17  ;;  %v1107_v38 = vsel %vm1055_vm2, %v1050_v7, %v876_v29  ;;  %v874_v51 = vpop.permute.xlu0 %873  ;;  %v10832_v52 = vpack.i.bf16 %v1942_v34, %v1941_v30  ;;  %v1969_v39 = vld [vmem:[#allocation2 + $0xa9] sm:$0xff]  ;;  %v1998_v13 = vld [vmem:[#allocation2 + $0xb2] sm:$0xff] }
 0x1aa   :  { %v1654_v27 = vmax.f32 %v1436_v24, 0.0  ;;  %v1106_v59 = vsel %vm1055_vm2, %v1049_v18, %v874_v51  ;;  %v10842_v54 = vpack.i.bf16 %v1970_v60, %v1969_v39  ;;  %v1997_v55 = vld [vmem:[#allocation2 + $0xaa] sm:$0xff] }
 0x1ab   :  { %v1653_v40 = vmax.f32 %v1431_v37, 0.0  ;;  %10018 = vmatprep.mubr.msk.f32.mxu0 %vm1125_vm3, %v1106_v59  ;;  %10833 = vrot.lane.b32.xlu0 %v10832_v52, %s11549_s27  ;;  %v10852_v62 = vpack.i.bf16 %v1998_v13, %v1997_v55 }
 0x1ac   :  { %1810 = vst.msk [vmem:[#allocation2 + $0xc9] sm:$0x3f] %vm1795_vm6, %v1654_v27  ;;  %10019 = vmatmul.mubr.msk.f32.gmra.mrb[50].mxu0 %vm1125_vm3, %v1107_v38  ;;  %v432_v28 = vpop.permute.xlu1 %431 }
 0x1ad   :  { %1809 = vst.msk [vmem:[#allocation2 + $0xc1] sm:$0xff] %vm1695_vm4, %v1653_v40  ;;  %v430_v53 = vpop.permute.xlu0 %429  ;;  %v995_v14 = vsel %vm941_vm0, %v12611_v43, %v432_v28 }
 0x1ae   :  { %v994_v3 = vsel %vm941_vm0, %v12616_v15, %v430_v53 }
 0x1af   :  { %10843 = vrot.lane.b32.xlu0 %v10842_v54, %s11548_s26 }
 0x1b0   :  { %v656_v56 = vpop.permute.xlu1 %655 }
 0x1b1   :  { %v654_v0 = vpop.permute.xlu0 %653  ;;  %v1052_v5 = vsel %vm998_vm1, %v995_v14, %v656_v56 }
 0x1b2   :  { %v1051_v2 = vsel %vm998_vm1, %v994_v3, %v654_v0 }
 0x1b3   :  { %v9969_v57 = vpop.f32.mrb[16].mxu0  ;;  %10853 = vrot.lane.b32.xlu0 %v10852_v62, %s11550_s17  ;;  %v1888_v58 = vld [vmem:[#allocation2 + $0xc9] sm:$0xff] }
 0x1b4   :  { %v1446_v19 = vadd.f32 %v9969_v57, %v12707_v9  ;;  %v1440_v16 = vpop.f32.mrb[17].mxu0  ;;  %v880_v44 = vpop.permute.xlu1 %879  ;;  %v1887_v32 = vld [vmem:[#allocation2 + $0xc1] sm:$0xff]  ;;  %v1916_v12 = vld [vmem:[#allocation2 + $0xca] sm:$0xff] }
 0x1b5   :  { %v2026_v20 = vld [vmem:[#allocation2 + $0xc0] sm:$0xff]  ;;  %v2027_v21 = vld [vmem:[#allocation2 + $0xc8] sm:$0xff]  ;;  %v1441_v43 = vadd.f32 %v12707_v9, %v1440_v16  ;;  %v1109_v22 = vsel %vm1055_vm2, %v1052_v5, %v880_v44  ;;  %v878_v15 = vpop.permute.xlu0 %877  ;;  %v10847_v8 = vpack.i.bf16 %v1888_v58, %v1887_v32  ;;  %v3320_v7 = vrot.slane %v1916_v12, 4 }
 0x1b6   :  { %v10862_v46 = vpack.i.bf16 %v2027_v21, %v2026_v20  ;;  %v1915_v10 = vld [vmem:[#allocation2 + $0xc2] sm:$0xff]  ;;  %v1656_v6 = vmax.f32 %v1446_v19, 0.0  ;;  %v1108_v11 = vsel %vm1055_vm2, %v1051_v2, %v878_v15  ;;  %v3376_v17 = vrot.slane %v1916_v12, 5 }
 0x1b7   :  { %v3124_v25 = vrot.slane %v1915_v10, 1  ;;  %v1655_v61 = vmax.f32 %v1441_v43, 0.0  ;;  %10021 = vmatprep.mubr.msk.f32.mxu0 %vm1125_vm3, %v1108_v11  ;;  %10848 = vrot.lane.b32.xlu1 %v10847_v8, %s11546_s14  ;;  %v3180_v26 = vrot.slane %v1915_v10, 2  ;;  %v3236_v4 = vrot.slane %v1915_v10, 3 }
 0x1b8   :  { %1812 = vst.msk [vmem:[#allocation2 + $0xe1] sm:$0x3f] %vm1795_vm6, %v1656_v6  ;;  %10863 = vrot.lane.b32.xlu0 %v10862_v46, %s11551_s24  ;;  %10022 = vmatmul.mubr.msk.f32.gmra.mrb[52].mxu0 %vm1125_vm3, %v1109_v22  ;;  %v436_v42 = vpop.permute.xlu1 %435  ;;  %v10857_v45 = vpack.i.bf16 %v1916_v12, %v1915_v10  ;;  %v3432_v30 = vrot.slane %v1916_v12, 6  ;;  %v3488_v37 = vrot.slane %v1916_v12, 7 }
 0x1b9   :  { %v3545_v36 = vsel %vm3537_vm9, %v1915_v10, %v3124_v25  ;;  %1811 = vst.msk [vmem:[#allocation2 + $0xd9] sm:$0xff] %vm1695_vm4, %v1655_v61  ;;  %v434_v23 = vpop.permute.xlu0 %433  ;;  %v997_v59 = vsel %vm941_vm0, %v12645_v47, %v436_v42 }
 0x1ba   :  { %v3574_v24 = vsel %vm3566_vm10, %v3545_v36, %v3180_v26  ;;  %v996_v60 = vsel %vm941_vm0, %v12650_v41, %v434_v23 }
 0x1bb   :  { %v3603_v29 = vsel %vm3595_vm11, %v3574_v24, %v3236_v4  ;;  %10858 = vrot.lane.b32.xlu1 %v10857_v45, %s11545_s28 }
 0x1bc   :  { %v3632_v34 = vsel %vm3624_vm12, %v3603_v29, %v3320_v7  ;;  %10873 = vrot.lane.b32.xlu0 %v10847_v8, %s11552_s1  ;;  %v660_v18 = vpop.permute.xlu1 %659  ;;  %v1851_v7 = vld [vmem:[#allocation2] sm:$0xff] }
 0x1bd   :  { %v3661_v38 = vsel %vm3653_vm13, %v3632_v34, %v3376_v17  ;;  %v658_v51 = vpop.permute.xlu0 %657  ;;  %v1054_v40 = vsel %vm998_vm1, %v997_v59, %v660_v18  ;;  %v1852_v18 = vld [vmem:[#allocation2 + $0x8] sm:$0xff] }
 0x1be   :  { %v3690_v52 = vsel %vm3682_vm14, %v3661_v38, %v3432_v30  ;;  %v1053_v56 = vsel %vm998_vm1, %v996_v60, %v658_v51  ;;  %vm3002_vm1 = vcmask 654336  }
 0x1bf   :  { %v13031_v27 = vsel %vm3711_vm15, %v3690_v52, %v3488_v37  ;;  %v9972_v39 = vpop.f32.mrb[18].mxu0  ;;  %v1972_v58 = vld [vmem:[#allocation2 + $0xe1] sm:$0xff]  ;;  %v13062_v37 = vld [vmem:[%s16570_s2] ss:$0 sm:$0xff] }
 0x1c0   :  { %v1456_v28 = vadd.f32 %v9972_v39, %v12707_v9  ;;  %v1450_v53 = vpop.f32.mrb[19].mxu0  ;;  %v884_v54 = vpop.permute.xlu1 %883  ;;  %v1943_v55 = vld [vmem:[#allocation2 + $0xd8] sm:$0xff]  ;;  %v1944_v13 = vld [vmem:[#allocation2 + $0xe0] sm:$0xff] }
 0x1c1   :  { %v1451_v0 = vadd.f32 %v12707_v9, %v1450_v53  ;;  %v1111_v62 = vsel %vm1055_vm2, %v1054_v40, %v884_v54  ;;  %v882_v14 = vpop.permute.xlu0 %881  ;;  %v10867_v47 = vpack.i.bf16 %v1944_v13, %v1943_v55  ;;  %v1971_v41 = vld [vmem:[#allocation2 + $0xd9] sm:$0xff]  ;;  %v2000_v16 = vld [vmem:[#allocation2 + $0xe2] sm:$0xff] }
 0x1c2   :  { %v1658_v3 = vmax.f32 %v1456_v28, 0.0  ;;  %v1110_v57 = vsel %vm1055_vm2, %v1053_v56, %v882_v14  ;;  %v10877_v2 = vpack.i.bf16 %v1972_v58, %v1971_v41  ;;  %v1999_v19 = vld [vmem:[#allocation2 + $0xda] sm:$0xff]  ;;  %vm3031_vm2 = vcmask 785408  }
 0x1c3   :  { %v1657_v5 = vmax.f32 %v1451_v0, 0.0  ;;  %10024 = vmatprep.mubr.msk.f32.mxu0 %vm1125_vm3, %v1110_v57  ;;  %10868 = vrot.lane.b32.xlu1 %v10867_v47, %s11549_s27  ;;  %v10887_v44 = vpack.i.bf16 %v2000_v16, %v1999_v19 }
 0x1c4   :  { %1814 = vst.msk [vmem:[#allocation2 + $0xf9] sm:$0x3f] %vm1795_vm6, %v1658_v3  ;;  %10025 = vmatmul.mubr.msk.f32.gmra.mrb[54].mxu0 %vm1125_vm3, %v1111_v62  ;;  %v10729_v26 = vpop.permute.xlu1 %10728 }
 0x1c5   :  { %1813 = vst.msk [vmem:[#allocation2 + $0xf1] sm:$0xff] %vm1695_vm4, %v1657_v5  ;;  %v10724_v4 = vpop.permute.xlu0 %10723  ;;  %v10730_v52 = vunpack.i.l.bf16 %v10729_v26  ;;  %v10731_v28 = vunpack.i.h.bf16 %v10729_v26 }
 0x1c6   :  { %v10725_v36 = vunpack.i.l.bf16 %v10724_v4  ;;  %v10726_v24 = vunpack.i.h.bf16 %v10724_v4 }
 0x1c7   :  { %10878 = vrot.lane.b32.xlu1 %v10877_v2, %s11548_s26 }
 0x1c8   :  { %v2889_v54 = vsel %vm1695_vm4, %v1852_v18, %v10726_v24 }
 0x1c9   :  { %v2918_v3 = vsel %vm2916_vm7, %v2889_v54, %v10731_v28 }
 0x1cb   :  { %v9975_v32 = vpop.f32.mrb[20].mxu0  ;;  %10888 = vrot.lane.b32.xlu1 %v10887_v44, %s11550_s17  ;;  %v1890_v20 = vld [vmem:[#allocation2 + $0xf9] sm:$0xff] }
 0x1cc   :  { %v1466_v21 = vadd.f32 %v9975_v32, %v12707_v9  ;;  %v1460_v43 = vpop.f32.mrb[21].mxu0  ;;  %v2028_v22 = vld [vmem:[#allocation2 + $0xf0] sm:$0xff]  ;;  %v2029_v15 = vld [vmem:[#allocation2 + $0xf8] sm:$0xff] }
 0x1cd   :  { %v1889_v8 = vld [vmem:[#allocation2 + $0xf1] sm:$0xff]  ;;  %v1461_v46 = vadd.f32 %v12707_v9, %v1460_v43  ;;  %v10897_v10 = vpack.i.bf16 %v2029_v15, %v2028_v22  ;;  %v1918_v25 = vld [vmem:[#allocation2 + $0xfa] sm:$0xff] }
 0x1ce   :  { %v10882_v6 = vpack.i.bf16 %v1890_v20, %v1889_v8  ;;  %v1660_v11 = vmax.f32 %v1466_v21, 0.0  ;;  %v1917_v12 = vld [vmem:[#allocation2 + $0xf2] sm:$0xff] }
 0x1cf   :  { %v1659_v61 = vmax.f32 %v1461_v46, 0.0  ;;  %10898 = vrot.lane.b32.xlu1 %v10897_v10, %s11551_s24  ;;  %v10892_v42 = vpack.i.bf16 %v1918_v25, %v1917_v12 }
 0x1d0   :  { %10883 = vrot.lane.b32.xlu0 %v10882_v6, %s11546_s14  ;;  %1816 = vst.msk [vmem:[#allocation2 + $0x111] sm:$0x3f] %vm1795_vm6, %v1660_v11 }
 0x1d1   :  { %1815 = vst.msk [vmem:[#allocation2 + $0x109] sm:$0xff] %vm1695_vm4, %v1659_v61 }
 0x1d3   :  { %10908 = vrot.lane.b32.xlu1 %v10882_v6, %s11552_s1 }
 0x1d4   :  { %10893 = vrot.lane.b32.xlu0 %v10892_v42, %s11545_s28 }
 0x1d5   :  { %v10739_v23 = vpop.permute.xlu1 %10738 }
 0x1d6   :  { %v10734_v59 = vpop.permute.xlu0 %10733  ;;  %v10740_v57 = vunpack.i.l.bf16 %v10739_v23  ;;  %v10741_v41 = vunpack.i.h.bf16 %v10739_v23 }
 0x1d7   :  { %v9978_v45 = vpop.f32.mrb[22].mxu0  ;;  %v1974_v40 = vld [vmem:[#allocation2 + $0x111] sm:$0xff]  ;;  %v10735_v55 = vunpack.i.l.bf16 %v10734_v59  ;;  %v10736_v62 = vunpack.i.h.bf16 %v10734_v59 }
 0x1d8   :  { %v1476_v17 = vadd.f32 %v9978_v45, %v12707_v9  ;;  %v1470_v29 = vpop.f32.mrb[23].mxu0  ;;  %v1945_v30 = vld [vmem:[#allocation2 + $0x108] sm:$0xff]  ;;  %v1946_v34 = vld [vmem:[#allocation2 + $0x110] sm:$0xff]  ;;  %v2888_v9 = vsel %vm1695_vm4, %v1851_v7, %v10725_v36 }
 0x1d9   :  { %v1471_v38 = vadd.f32 %v13062_v37, %v1470_v29  ;;  %v10902_v51 = vpack.i.bf16 %v1946_v34, %v1945_v30  ;;  %v1973_v60 = vld [vmem:[#allocation2 + $0x109] sm:$0xff]  ;;  %v10744_v13 = vpop.permute.xlu1 %10743  ;;  %v2917_v0 = vsel %vm2916_vm7, %v2888_v9, %v10730_v52  ;;  %v2002_v47 = vld [vmem:[#allocation2 + $0x112] sm:$0xff]  ;;  %v2946_v16 = vsel %vm1125_vm3, %v2918_v3, %v10736_v62 }
 0x1da   :  { %v1662_v39 = vmax.f32 %v1476_v17, 0.0  ;;  %v10912_v56 = vpack.i.bf16 %v1974_v40, %v1973_v60  ;;  %v2001_v14 = vld [vmem:[#allocation2 + $0x10a] sm:$0xff]  ;;  %v2945_v58 = vsel %vm1125_vm3, %v2917_v0, %v10735_v55  ;;  %v10745_v5 = vunpack.i.l.bf16 %v10744_v13 }
 0x1db   :  { %v1661_v53 = vmax.f32 %v1471_v38, 0.0  ;;  %10903 = vrot.lane.b32.xlu0 %v10902_v51, %s11549_s27  ;;  %v10922_v19 = vpack.i.bf16 %v2002_v47, %v2001_v14  ;;  %v10746_v44 = vunpack.i.h.bf16 %v10744_v13  ;;  %v2974_v22 = vsel %vm2973_vm8, %v2945_v58, %v10740_v57  ;;  %v1893_v51 = vld [vmem:[#allocation2 + $0x181] sm:$0xff]  ;;  %v1894_v52 = vld [vmem:[#allocation2 + $0x189] sm:$0xff] }
 0x1dc   :  { %1818 = vst.msk [vmem:[#allocation2 + $0x129] sm:$0x3f] %vm1795_vm6, %v1662_v39  ;;  %v2975_v12 = vsel %vm2973_vm8, %v2946_v16, %v10741_v41  ;;  %v3003_v25 = vsel %vm3002_vm1, %v2974_v22, %v10745_v5  ;;  %v10952_v55 = vpack.i.bf16 %v1894_v52, %v1893_v51  ;;  %v1921_v57 = vld [vmem:[#allocation2 + $0x182] sm:$0xff]  ;;  %v1922_v41 = vld [vmem:[#allocation2 + $0x18a] sm:$0xff] }
 0x1dd   :  { %1817 = vst.msk [vmem:[#allocation2 + $0x121] sm:$0xff] %vm1695_vm4, %v1661_v53  ;;  %v3004_v17 = vsel %vm3002_vm1, %v2975_v12, %v10746_v44 }
 0x1df   :  { %10913 = vrot.lane.b32.xlu0 %v10912_v56, %s11548_s26 }
 0x1e1   :  { %v10759_v2 = vpop.permute.xlu1 %10758 }
 0x1e2   :  { %v10760_v32 = vunpack.i.l.bf16 %v10759_v2  ;;  %v13075_v20 = vpop.permute.xlu0 %10748  ;;  %v10761_v15 = vunpack.i.h.bf16 %v10759_v2 }
 0x1e3   :  { %v9981_v21 = vpop.f32.mrb[24].mxu0  ;;  %10923 = vrot.lane.b32.xlu0 %v10922_v19, %s11550_s17  ;;  %v1892_v43 = vld [vmem:[#allocation2 + $0x129] sm:$0xff] }
 0x1e4   :  { %v1486_v8 = vadd.f32 %v13062_v37, %v9981_v21  ;;  %v1480_v46 = vpop.f32.mrb[25].mxu0  ;;  %v1891_v10 = vld [vmem:[#allocation2 + $0x121] sm:$0xff]  ;;  %v13083_v36 = vld [vmem:[#allocation2 + $0x12a] sm:$0xff]  ;;  %v3032_v29 = vsel %vm3031_vm2, %v3003_v25, %v10760_v32  ;;  %v3033_v34 = vsel %vm3031_vm2, %v3004_v17, %v10761_v15 }
 0x1e5   :  { %v2030_v6 = vld [vmem:[#allocation2 + $0x120] sm:$0xff]  ;;  %v2031_v11 = vld [vmem:[#allocation2 + $0x128] sm:$0xff]  ;;  %v1481_v61 = vadd.f32 %v13062_v37, %v1480_v46  ;;  %v10764_v26 = vpop.permute.xlu1 %10763  ;;  %v10917_v42 = vpack.i.bf16 %v1892_v43, %v1891_v10  ;;  %v3324_v58 = vrot.slane %v13083_v36, 4 }
 0x1e6   :  { %v1919_v4 = vld [vmem:[#allocation2 + $0x122] sm:$0xff]  ;;  %v1664_v23 = vmax.f32 %v1486_v8, 0.0  ;;  %v10766_v45 = vunpack.i.h.bf16 %v10764_v26  ;;  %v10765_v7 = vunpack.i.l.bf16 %v10764_v26  ;;  %v10932_v24 = vpack.i.bf16 %v2031_v11, %v2030_v6  ;;  %v13095_v28 = vpop.permute.xlu0 %10753 }
 0x1e7   :  { %v1663_v30 = vmax.f32 %v1481_v61, 0.0  ;;  %10918 = vrot.lane.b32.xlu1 %v10917_v42, %s11546_s14  ;;  %v10927_v38 = vpack.i.bf16 %v13083_v36, %v1919_v4  ;;  %v3128_v59 = vrot.slane %v1919_v4, 1  ;;  %v3184_v9 = vrot.slane %v1919_v4, 2 }
 0x1e8   :  { %1820 = vst.msk [vmem:[#allocation2 + $0x141] sm:$0x3f] %vm1795_vm6, %v1664_v23  ;;  %v3061_v18 = vsel %vm3060_vm5, %v3032_v29, %v10765_v7  ;;  %10933 = vrot.lane.b32.xlu0 %v10932_v24, %s11551_s24  ;;  %v3062_v39 = vsel %vm3060_vm5, %v3033_v34, %v10766_v45  ;;  %v3240_v0 = vrot.slane %v1919_v4, 3  ;;  %v10962_v6 = vpack.i.bf16 %v1922_v41, %v1921_v57 }
 0x1e9   :  { %1819 = vst.msk [vmem:[#allocation2 + $0x139] sm:$0xff] %vm1695_vm4, %v1663_v30  ;;  %v3117_v60 = vrot.slane %v3061_v18, 1  ;;  %v3173_v40 = vrot.slane %v3061_v18, 2  ;;  %v3229_v53 = vrot.slane %v3061_v18, 3  ;;  %v3313_v13 = vrot.slane %v3062_v39, 4 }
 0x1ea   :  { %v3549_v62 = vsel %vm3537_vm9, %v1919_v4, %v3128_v59  ;;  %v3369_v47 = vrot.slane %v3062_v39, 5  ;;  %v3425_v2 = vrot.slane %v3062_v39, 6  ;;  %v3481_v32 = vrot.slane %v3062_v39, 7 }
 0x1eb   :  { %v3538_v54 = vsel %vm3537_vm9, %v3061_v18, %v3117_v60  ;;  %10928 = vrot.lane.b32.xlu1 %v10927_v38, %s11545_s28  ;;  %v3578_v5 = vsel %vm3566_vm10, %v3549_v62, %v3184_v9  ;;  %v3380_v26 = vrot.slane %v13083_v36, 5  ;;  %v3436_v45 = vrot.slane %v13083_v36, 6 }
 0x1ec   :  { %10943 = vrot.lane.b32.xlu0 %v10917_v42, %s11552_s1  ;;  %v3567_v56 = vsel %vm3566_vm10, %v3538_v54, %v3173_v40  ;;  %v3607_v16 = vsel %vm3595_vm11, %v3578_v5, %v3240_v0  ;;  %v3492_v24 = vrot.slane %v13083_v36, 7  ;;  %v10751_v38 = vunpack.i.h.bf16 %v13075_v20 }
 0x1ed   :  { %v13102_v14 = vpop.permute.xlu0 %10768  ;;  %v3596_v3 = vsel %vm3595_vm11, %v3567_v56, %v3229_v53  ;;  %v3636_v43 = vsel %vm3624_vm12, %v3607_v16, %v3324_v58  ;;  %v10756_v52 = vunpack.i.h.bf16 %v13095_v28  ;;  %v10755_v59 = vunpack.i.l.bf16 %v13095_v28 }
 0x1ee   :  { %v3625_v19 = vsel %vm3624_vm12, %v3596_v3, %v3313_v13  ;;  %v3665_v17 = vsel %vm3653_vm13, %v3636_v43, %v3380_v26  ;;  %v10770_v39 = vunpack.i.l.bf16 %v13102_v14  ;;  %v10771_v60 = vunpack.i.h.bf16 %v13102_v14 }
 0x1ef   :  { %v9984_v44 = vpop.f32.mrb[26].mxu0  ;;  %v3654_v21 = vsel %vm3653_vm13, %v3625_v19, %v3369_v47  ;;  %v1976_v23 = vld [vmem:[#allocation2 + $0x141] sm:$0xff]  ;;  %v3694_v29 = vsel %vm3682_vm14, %v3665_v17, %v3436_v45  ;;  %v2891_v9 = vsel %vm1695_vm4, %v12858_v1, %v10751_v38 }
 0x1f0   :  { %v1496_v22 = vadd.f32 %v13062_v37, %v9984_v44  ;;  %v1490_v15 = vpop.f32.mrb[27].mxu0  ;;  %v3683_v8 = vsel %vm3682_vm14, %v3654_v21, %v3425_v2  ;;  %v1947_v46 = vld [vmem:[#allocation2 + $0x138] sm:$0xff]  ;;  %v1948_v10 = vld [vmem:[#allocation2 + $0x140] sm:$0xff]  ;;  %10953 = vrot.lane.b32.xlu0 %v10952_v55, %s11546_s14  ;;  %v13128_v18 = vsel %vm3711_vm15, %v3694_v29, %v3492_v24  ;;  %v2920_v28 = vsel %vm2916_vm7, %v2891_v9, %v10756_v52 }
 0x1f1   :  { %v1491_v11 = vadd.f32 %v13062_v37, %v1490_v15  ;;  %v10774_v12 = vpop.permute.xlu0 %10773  ;;  %v3712_v25 = vsel %vm3711_vm15, %v3683_v8, %v3481_v32  ;;  %v10937_v61 = vpack.i.bf16 %v1948_v10, %v1947_v46  ;;  %v1975_v4 = vld [vmem:[#allocation2 + $0x139] sm:$0xff]  ;;  %v2004_v51 = vld [vmem:[#allocation2 + $0x142] sm:$0xff]  ;;  %v2948_v58 = vsel %vm1125_vm3, %v2920_v28, %v10771_v60 }
 0x1f2   :  { %v1666_v42 = vmax.f32 %v1496_v22, 0.0  ;;  %3872 = vmatmul.mubr.f32.vlgmr.msra.gmra.mrb[0].mxu1 %v3712_v25  ;;  %v10947_v34 = vpack.i.bf16 %v1976_v23, %v1975_v4  ;;  %v2003_v36 = vld [vmem:[#allocation2 + $0x13a] sm:$0xff]  ;;  %v10775_v54 = vunpack.i.l.bf16 %v10774_v12 }
 0x1f3   :  { %v1665_v7 = vmax.f32 %v1491_v11, 0.0  ;;  %10938 = vrot.lane.b32.xlu1 %v10937_v61, %s11549_s27  ;;  %9443 = vmatprep.mubr.msk.f32.mxu1 %vm1695_vm4, %v12943_v31  ;;  %v10750_v31 = vunpack.i.l.bf16 %v13075_v20  ;;  %v10957_v40 = vpack.i.bf16 %v2004_v51, %v2003_v36  ;;  %v10776_v20 = vunpack.i.h.bf16 %v10774_v12 }
 0x1f4   :  { %1822 = vst.msk [vmem:[#allocation2 + $0x159] sm:$0x3f] %vm1795_vm6, %v1666_v42  ;;  %10963 = vrot.lane.b32.xlu0 %v10962_v6, %s11545_s28 }
 0x1f5   :  { %1821 = vst.msk [vmem:[#allocation2 + $0x151] sm:$0xff] %vm1695_vm4, %v1665_v7  ;;  %v10779_v30 = vpop.permute.xlu0 %10778  ;;  %v2890_v53 = vsel %vm1695_vm4, %v12856_v63, %v10750_v31  ;;  %v2977_v44 = vsel %vm2973_vm8, %v2948_v58, %v10776_v20 }
 0x1f6   :  { %v2919_v13 = vsel %vm2916_vm7, %v2890_v53, %v10755_v59  ;;  %v10780_v56 = vunpack.i.l.bf16 %v10779_v30  ;;  %v10781_v47 = vunpack.i.h.bf16 %v10779_v30 }
 0x1f7   :  { %10948 = vrot.lane.b32.xlu1 %v10947_v34, %s11548_s26  ;;  %v2947_v14 = vsel %vm1125_vm3, %v2919_v13, %v10770_v39 }
 0x1f8   :  { %v2976_v16 = vsel %vm2973_vm8, %v2947_v14, %v10775_v54  ;;  %v3006_v6 = vsel %vm3002_vm1, %v2977_v44, %v10781_v47 }
 0x1f9   :  { %v13143_v0 = vpop.permute.xlu1 %10783  ;;  %v3005_v15 = vsel %vm3002_vm1, %v2976_v16, %v10780_v56 }
 0x1fa   :  { %v10794_v55 = vpop.permute.xlu0 %10793  ;;  %v10785_v14 = vunpack.i.l.bf16 %v13143_v0 }
 0x1fb   :  { %v9987_v62 = vpop.f32.mrb[28].mxu0  ;;  %10958 = vrot.lane.b32.xlu1 %v10957_v40, %s11550_s17  ;;  %v10795_v1 = vunpack.i.l.bf16 %v10794_v55  ;;  %v10796_v5 = vunpack.i.h.bf16 %v10794_v55  ;;  %v2061_v22 = vld [vmem:[#allocation2 + $0x159] sm:$0xff] }
 0x1fc   :  { %v1506_v3 = vadd.f32 %v13062_v37, %v9987_v62  ;;  %v1500_v63 = vpop.f32.mrb[29].mxu0  ;;  %v2032_v57 = vld [vmem:[#allocation2 + $0x150] sm:$0xff]  ;;  %v2033_v41 = vld [vmem:[#allocation2 + $0x158] sm:$0xff] }
 0x1fd   :  { %v1501_v2 = vadd.f32 %v13062_v37, %v1500_v63  ;;  %v10967_v19 = vpack.i.bf16 %v2033_v41, %v2032_v57  ;;  %v2060_v43 = vld [vmem:[#allocation2 + $0x151] sm:$0xff]  ;;  %v3034_v11 = vsel %vm3031_vm2, %v3005_v15, %v10795_v1  ;;  %v3035_v12 = vsel %vm3031_vm2, %v3006_v6, %v10796_v5  ;;  %v10789_v25 = vpop.permute.xlu1 %10788 }
 0x1fe   :  { %v1668_v32 = vmax.f32 %v1506_v3, 0.0  ;;  %v10804_v21 = vpop.permute.xlu0 %10803  ;;  %v10977_v26 = vpack.i.bf16 %v2061_v22, %v2060_v43  ;;  %v10786_v3 = vunpack.i.h.bf16 %v13143_v0  ;;  %v10790_v63 = vunpack.i.l.bf16 %v10789_v25 }
 0x1ff   :  { %v1667_v8 = vmax.f32 %v1501_v2, 0.0  ;;  %v10806_v46 = vunpack.i.h.bf16 %v10804_v21  ;;  %v10805_v10 = vunpack.i.l.bf16 %v10804_v21  ;;  %10968 = vrot.lane.b32.xlu1 %v10967_v19, %s11551_s24  ;;  %v10791_v58 = vunpack.i.h.bf16 %v10789_v25 }
 0x200   :  { %1824 = vst.msk [vmem:[#allocation2 + $0x1a1] sm:$0x3f] %vm1795_vm6, %v1668_v32  ;;  %v2893_v43 = vsel %vm1695_vm4, %v12921_v50, %v10786_v3 }
 0x201   :  { %1823 = vst.msk [vmem:[#allocation2 + $0x199] sm:$0xff] %vm1695_vm4, %v1667_v8  ;;  %v3063_v61 = vsel %vm3060_vm5, %v3034_v11, %v10805_v10  ;;  %v3064_v42 = vsel %vm3060_vm5, %v3035_v12, %v10806_v46  ;;  %v2922_v22 = vsel %vm2916_vm7, %v2893_v43, %v10791_v58 }
 0x202   :  { %v3119_v4 = vrot.slane %v3063_v61, 1  ;;  %v3175_v23 = vrot.slane %v3063_v61, 2  ;;  %v3231_v45 = vrot.slane %v3063_v61, 3  ;;  %v3315_v24 = vrot.slane %v3064_v42, 4 }
 0x203   :  { %10978 = vrot.lane.b32.xlu1 %v10977_v26, %s11552_s1  ;;  %v3371_v30 = vrot.slane %v3064_v42, 5  ;;  %v3427_v31 = vrot.slane %v3064_v42, 6  ;;  %v3483_v59 = vrot.slane %v3064_v42, 7 }
 0x204   :  { %v3540_v7 = vsel %vm3537_vm9, %v3063_v61, %v3119_v4 }
 0x205   :  { %v10799_v17 = vpop.permute.xlu1 %10798  ;;  %v3569_v29 = vsel %vm3566_vm10, %v3540_v7, %v3175_v23 }
 0x206   :  { %v3598_v34 = vsel %vm3595_vm11, %v3569_v29, %v3231_v45  ;;  %v10800_v5 = vunpack.i.l.bf16 %v10799_v17  ;;  %v10801_v2 = vunpack.i.h.bf16 %v10799_v17 }
 0x207   :  { %v9990_v38 = vpop.f32.mrb[30].mxu0  ;;  %v3627_v36 = vsel %vm3624_vm12, %v3598_v34, %v3315_v24  ;;  %v1978_v56 = vld [vmem:[#allocation2 + $0x1a1] sm:$0xff] }
 0x208   :  { %v1516_v51 = vadd.f32 %v13062_v37, %v9990_v38  ;;  %v1510_v52 = vpop.f32.mrb[31].mxu0  ;;  %v3656_v39 = vsel %vm3653_vm13, %v3627_v36, %v3371_v30  ;;  %v1949_v60 = vld [vmem:[#allocation2 + $0x198] sm:$0xff]  ;;  %v1950_v40 = vld [vmem:[#allocation2 + $0x1a0] sm:$0xff]  ;;  %v2950_v11 = vsel %vm1125_vm3, %v2922_v22, %v10801_v2 }
 0x209   :  { %v1511_v9 = vadd.f32 %v13062_v37, %v1510_v52  ;;  %v10809_v53 = vpop.permute.xlu1 %10808  ;;  %v3685_v20 = vsel %vm3682_vm14, %v3656_v39, %v3427_v31  ;;  %v10972_v54 = vpack.i.bf16 %v1950_v40, %v1949_v60  ;;  %v1977_v28 = vld [vmem:[#allocation2 + $0x199] sm:$0xff]  ;;  %v2006_v41 = vld [vmem:[#allocation2 + $0x1a2] sm:$0xff] }
 0x20a   :  { %v1670_v55 = vmax.f32 %v1516_v51, 0.0  ;;  %v3714_v13 = vsel %vm3711_vm15, %v3685_v20, %v3483_v59  ;;  %v10982_v1 = vpack.i.bf16 %v1978_v56, %v1977_v28  ;;  %v2005_v57 = vld [vmem:[#allocation2 + $0x19a] sm:$0xff]  ;;  %v10810_v19 = vunpack.i.l.bf16 %v10809_v53 }
 0x20b   :  { %v1669_v62 = vmax.f32 %v1511_v9, 0.0  ;;  %3877 = vmatmul.mubr.f32.gmra.mrb[2].mxu1 %v3714_v13  ;;  %10973 = vrot.lane.b32.xlu0 %v10972_v54, %s11549_s27  ;;  %v10811_v16 = vunpack.i.h.bf16 %v10809_v53  ;;  %v10992_v21 = vpack.i.bf16 %v2006_v41, %v2005_v57  ;;  %v13217_v41 = vld [vmem:[#allocation2 + $0xf2] sm:$0xff] }
 0x20c   :  { %1826 = vst.msk [vmem:[#allocation2 + $0x1b9] sm:$0x3f] %vm1795_vm6, %v1670_v55  ;;  %9444 = vmatprep.mubr.msk.f32.mxu1 %vm1695_vm4, %v12987_v48  ;;  %v2892_v48 = vsel %vm1695_vm4, %v12919_v49, %v10785_v14 }
 0x20d   :  { %1825 = vst.msk [vmem:[#allocation2 + $0x1b1] sm:$0xff] %vm1695_vm4, %v1669_v62  ;;  %v10819_v47 = vpop.permute.xlu1 %10818  ;;  %v2921_v0 = vsel %vm2916_vm7, %v2892_v48, %v10790_v63  ;;  %v2979_v23 = vsel %vm2973_vm8, %v2950_v11, %v10811_v16 }
 0x20e   :  { %v10820_v44 = vunpack.i.l.bf16 %v10819_v47  ;;  %v2949_v15 = vsel %vm1125_vm3, %v2921_v0, %v10800_v5  ;;  %v10821_v8 = vunpack.i.h.bf16 %v10819_v47 }
 0x20f   :  { %10983 = vrot.lane.b32.xlu0 %v10982_v1, %s11548_s26  ;;  %v2978_v12 = vsel %vm2973_vm8, %v2949_v15, %v10810_v19 }
 0x210   :  { %v3007_v45 = vsel %vm3002_vm1, %v2978_v12, %v10820_v44  ;;  %v3008_v51 = vsel %vm3002_vm1, %v2979_v23, %v10821_v8 }
 0x211   :  { %v10829_v32 = vpop.permute.xlu1 %10828 }
 0x212   :  { %v10830_v46 = vunpack.i.l.bf16 %v10829_v32  ;;  %v13186_v10 = vpop.permute.xlu0 %10813  ;;  %v10831_v25 = vunpack.i.h.bf16 %v10829_v32 }
 0x213   :  { %v9993_v6 = vpop.f32.mrb[32].mxu0  ;;  %10993 = vrot.lane.b32.xlu0 %v10992_v21, %s11550_s17  ;;  %v1896_v49 = vld [vmem:[#allocation2 + $0x1b9] sm:$0xff] }
 0x214   :  { %v1526_v50 = vadd.f32 %v13062_v37, %v9993_v6  ;;  %v1520_v61 = vpop.f32.mrb[33].mxu0  ;;  %v1895_v26 = vld [vmem:[#allocation2 + $0x1b1] sm:$0xff]  ;;  %v13195_v30 = vld [vmem:[#allocation2 + $0x1ba] sm:$0xff]  ;;  %v3036_v52 = vsel %vm3031_vm2, %v3007_v45, %v10830_v46  ;;  %v3037_v39 = vsel %vm3031_vm2, %v3008_v51, %v10831_v25  ;;  %v10816_v51 = vunpack.i.h.bf16 %v13186_v10 }
 0x215   :  { %v2034_v42 = vld [vmem:[#allocation2 + $0x1b0] sm:$0xff]  ;;  %v2035_v4 = vld [vmem:[#allocation2 + $0x1b8] sm:$0xff]  ;;  %v1521_v7 = vadd.f32 %v13062_v37, %v1520_v61  ;;  %v10839_v24 = vpop.permute.xlu1 %10838  ;;  %v10987_v17 = vpack.i.bf16 %v1896_v49, %v1895_v26  ;;  %v3328_v58 = vrot.slane %v13195_v30, 4  ;;  %v3126_v49 = vrot.slane %v13217_v41, 1 }
 0x216   :  { %v1923_v29 = vld [vmem:[#allocation2 + $0x1b2] sm:$0xff]  ;;  %v1672_v34 = vmax.f32 %v1526_v50, 0.0  ;;  %v10841_v38 = vunpack.i.h.bf16 %v10839_v24  ;;  %v10840_v31 = vunpack.i.l.bf16 %v10839_v24  ;;  %v11002_v36 = vpack.i.bf16 %v2035_v4, %v2034_v42  ;;  %v13207_v55 = vpop.permute.xlu0 %10823 }
 0x217   :  { %v1671_v59 = vmax.f32 %v1521_v7, 0.0  ;;  %10988 = vrot.lane.b32.xlu1 %v10987_v17, %s11546_s14  ;;  %v10997_v40 = vpack.i.bf16 %v13195_v30, %v1923_v29  ;;  %v3132_v9 = vrot.slane %v1923_v29, 1  ;;  %v3188_v13 = vrot.slane %v1923_v29, 2 }
 0x218   :  { %1828 = vst.msk [vmem:[#allocation2 + $0x1d1] sm:$0x3f] %vm1795_vm6, %v1672_v34  ;;  %v3065_v60 = vsel %vm3060_vm5, %v3036_v52, %v10840_v31  ;;  %11003 = vrot.lane.b32.xlu0 %v11002_v36, %s11551_s24  ;;  %v3066_v53 = vsel %vm3060_vm5, %v3037_v39, %v10841_v38  ;;  %v3244_v47 = vrot.slane %v1923_v29, 3  ;;  %v3384_v11 = vrot.slane %v13195_v30, 5 }
 0x219   :  { %1827 = vst.msk [vmem:[#allocation2 + $0x1c9] sm:$0xff] %vm1695_vm4, %v1671_v59  ;;  %v3121_v20 = vrot.slane %v3065_v60, 1  ;;  %v3177_v54 = vrot.slane %v3065_v60, 2  ;;  %v3233_v28 = vrot.slane %v3065_v60, 3  ;;  %v3317_v62 = vrot.slane %v3066_v53, 4  ;;  %v13251_v59 = vld [vmem:[#allocation2 + $0xfa] sm:$0xff] }
 0x21a   :  { %v3553_v1 = vsel %vm3537_vm9, %v1923_v29, %v3132_v9  ;;  %v3373_v63 = vrot.slane %v3066_v53, 5  ;;  %v3429_v2 = vrot.slane %v3066_v53, 6  ;;  %v3485_v44 = vrot.slane %v3066_v53, 7 }
 0x21b   :  { %v3542_v56 = vsel %vm3537_vm9, %v3065_v60, %v3121_v20  ;;  %10998 = vrot.lane.b32.xlu1 %v10997_v40, %s11545_s28  ;;  %v3582_v5 = vsel %vm3566_vm10, %v3553_v1, %v3188_v13  ;;  %v3440_v45 = vrot.slane %v13195_v30, 6  ;;  %v3496_v24 = vrot.slane %v13195_v30, 7 }
 0x21c   :  { %11013 = vrot.lane.b32.xlu0 %v10987_v17, %s11552_s1  ;;  %v3571_v14 = vsel %vm3566_vm10, %v3542_v56, %v3177_v54  ;;  %v3611_v48 = vsel %vm3595_vm11, %v3582_v5, %v3244_v47  ;;  %v3182_v29 = vrot.slane %v13217_v41, 2  ;;  %v3547_v36 = vsel %vm3537_vm9, %v13217_v41, %v3126_v49  ;;  %v11535_v54 = vld [vmem:[#allocation2 + $0x98] sm:$0xff] }
 0x21d   :  { %v13214_v3 = vpop.permute.xlu0 %10833  ;;  %v3600_v57 = vsel %vm3595_vm11, %v3571_v14, %v3233_v28  ;;  %v3640_v43 = vsel %vm3624_vm12, %v3611_v48, %v3328_v58  ;;  %v10815_v52 = vunpack.i.l.bf16 %v13186_v10  ;;  %v10825_v39 = vunpack.i.l.bf16 %v13207_v55  ;;  %v11536_v28 = vld [vmem:[#allocation2 + $0x90] sm:$0xff] }
 0x21e   :  { %v3629_v19 = vsel %vm3624_vm12, %v3600_v57, %v3317_v62  ;;  %v3669_v17 = vsel %vm3653_vm13, %v3640_v43, %v3384_v11  ;;  %v10835_v60 = vunpack.i.l.bf16 %v13214_v3  ;;  %v3576_v40 = vsel %vm3566_vm10, %v3547_v36, %v3182_v29 }
 0x21f   :  { %v9996_v16 = vpop.f32.mrb[34].mxu0  ;;  %v3658_v32 = vsel %vm3653_vm13, %v3629_v19, %v3373_v63  ;;  %v2008_v21 = vld [vmem:[#allocation2 + $0x1d2] sm:$0xff]  ;;  %v3698_v34 = vsel %vm3682_vm14, %v3669_v17, %v3440_v45  ;;  %v10836_v9 = vunpack.i.h.bf16 %v13214_v3  ;;  %v3238_v53 = vrot.slane %v13217_v41, 3 }
 0x220   :  { %v1536_v0 = vadd.f32 %v13062_v37, %v9996_v16  ;;  %v1530_v22 = vpop.f32.mrb[35].mxu0  ;;  %v3687_v15 = vsel %vm3682_vm14, %v3658_v32, %v3429_v2  ;;  %v1951_v8 = vld [vmem:[#allocation2 + $0x1c8] sm:$0xff]  ;;  %v1952_v46 = vld [vmem:[#allocation2 + $0x1d0] sm:$0xff]  ;;  %v13247_v30 = vsel %vm3711_vm15, %v3698_v34, %v3496_v24  ;;  %v3322_v20 = vrot.slane %v13251_v59, 4 }
 0x221   :  { %v2007_v6 = vld [vmem:[#allocation2 + $0x1ca] sm:$0xff]  ;;  %v1531_v12 = vadd.f32 %v13062_v37, %v1530_v22  ;;  %v13230_v25 = vpop.permute.xlu0 %10843  ;;  %v3716_v50 = vsel %vm3711_vm15, %v3687_v15, %v3485_v44  ;;  %v11007_v61 = vpack.i.bf16 %v1952_v46, %v1951_v8  ;;  %v3378_v10 = vrot.slane %v13251_v59, 5 }
 0x222   :  { %v11022_v26 = vpack.i.bf16 %v2008_v21, %v2007_v6  ;;  %v1674_v42 = vmax.f32 %v1536_v0, 0.0  ;;  %3882 = vmatmul.mubr.f32.gmra.mrb[4].mxu1 %v3716_v50  ;;  %v1979_v4 = vld [vmem:[#allocation2 + $0x1c9] sm:$0xff]  ;;  %v1980_v23 = vld [vmem:[#allocation2 + $0x1d1] sm:$0xff]  ;;  %v2895_v13 = vsel %vm1695_vm4, %v11535_v54, %v10816_v51  ;;  %v10846_v56 = vunpack.i.h.bf16 %v13230_v25 }
 0x223   :  { %v1673_v7 = vmax.f32 %v1531_v12, 0.0  ;;  %11008 = vrot.lane.b32.xlu1 %v11007_v61, %s11549_s27  ;;  %9445 = vmatprep.mubr.msk.f32.mxu1 %vm1695_vm4, %v13031_v27  ;;  %v11017_v31 = vpack.i.bf16 %v1980_v23, %v1979_v4  ;;  %v10826_v27 = vunpack.i.h.bf16 %v13207_v55  ;;  %v2894_v55 = vsel %vm1695_vm4, %v11536_v28, %v10815_v52 }
 0x224   :  { %11023 = vrot.lane.b32.xlu0 %v11022_v26, %s11550_s17  ;;  %1830 = vst.msk [vmem:[#allocation2 + $0x1e9] sm:$0x3f] %vm1795_vm6, %v1674_v42  ;;  %v10845_v62 = vunpack.i.l.bf16 %v13230_v25  ;;  %v2923_v47 = vsel %vm2916_vm7, %v2894_v55, %v10825_v39  ;;  %v3605_v58 = vsel %vm3595_vm11, %v3576_v40, %v3238_v53  ;;  %v3434_v52 = vrot.slane %v13251_v59, 6 }
 0x225   :  { %1829 = vst.msk [vmem:[#allocation2 + $0x1e1] sm:$0xff] %vm1695_vm4, %v1673_v7  ;;  %v10854_v38 = vpop.permute.xlu0 %10853  ;;  %v2924_v1 = vsel %vm2916_vm7, %v2895_v13, %v10826_v27  ;;  %v2951_v5 = vsel %vm1125_vm3, %v2923_v47, %v10835_v60  ;;  %v3634_v45 = vsel %vm3624_vm12, %v3605_v58, %v3322_v20 }
 0x226   :  { %v10855_v3 = vunpack.i.l.bf16 %v10854_v38  ;;  %v10856_v2 = vunpack.i.h.bf16 %v10854_v38  ;;  %v2952_v43 = vsel %vm1125_vm3, %v2924_v1, %v10836_v9  ;;  %v2980_v46 = vsel %vm2973_vm8, %v2951_v5, %v10845_v62 }
 0x227   :  { %11018 = vrot.lane.b32.xlu1 %v11017_v31, %s11548_s26  ;;  %v2981_v6 = vsel %vm2973_vm8, %v2952_v43, %v10846_v56  ;;  %v3663_v27 = vsel %vm3653_vm13, %v3634_v45, %v3378_v10  ;;  %v3490_v56 = vrot.slane %v13251_v59, 7 }
 0x228   :  { %v3009_v50 = vsel %vm3002_vm1, %v2980_v46, %v10855_v3  ;;  %v3010_v4 = vsel %vm3002_vm1, %v2981_v6, %v10856_v2 }
 0x229   :  { %v13268_v63 = vpop.permute.xlu1 %10848 }
 0x22a   :  { %v10864_v14 = vpop.permute.xlu0 %10863 }
 0x22b   :  { %v9999_v57 = vpop.f32.mrb[36].mxu0  ;;  %v1898_v41 = vld [vmem:[#allocation2 + $0x1e9] sm:$0xff]  ;;  %v10865_v19 = vunpack.i.l.bf16 %v10864_v14  ;;  %v10866_v0 = vunpack.i.h.bf16 %v10864_v14 }
 0x22c   :  { %v1546_v48 = vadd.f32 %v13062_v37, %v9999_v57  ;;  %v1540_v16 = vpop.f32.mrb[37].mxu0  ;;  %v1897_v44 = vld [vmem:[#allocation2 + $0x1e1] sm:$0xff]  ;;  %v13277_v25 = vld [vmem:[#allocation2 + $0x1ea] sm:$0xff]  ;;  %v3692_v57 = vsel %vm3682_vm14, %v3663_v27, %v3434_v52 }
 0x22d   :  { %v2036_v32 = vld [vmem:[#allocation2 + $0x1e0] sm:$0xff]  ;;  %v2037_v21 = vld [vmem:[#allocation2 + $0x1e8] sm:$0xff]  ;;  %v1541_v22 = vadd.f32 %v13062_v37, %v1540_v16  ;;  %v11027_v15 = vpack.i.bf16 %v1898_v41, %v1897_v44  ;;  %v3038_v23 = vsel %vm3031_vm2, %v3009_v50, %v10865_v19  ;;  %v3039_v24 = vsel %vm3031_vm2, %v3010_v4, %v10866_v0  ;;  %v13288_v17 = vpop.permute.xlu1 %10858 }
 0x22e   :  { %v1925_v8 = vld [vmem:[#allocation2 + $0x1e2] sm:$0xff]  ;;  %v1676_v49 = vmax.f32 %v1546_v48, 0.0  ;;  %v10874_v11 = vpop.permute.xlu0 %10873  ;;  %v11032_v12 = vpack.i.bf16 %v2037_v21, %v2036_v32  ;;  %v3330_v13 = vrot.slane %v13277_v25, 4  ;;  %v3386_v44 = vrot.slane %v13277_v25, 5 }
 0x22f   :  { %v1675_v61 = vmax.f32 %v1541_v22, 0.0  ;;  %v10876_v26 = vunpack.i.h.bf16 %v10874_v11  ;;  %v10875_v42 = vunpack.i.l.bf16 %v10874_v11  ;;  %11028 = vrot.lane.b32.xlu1 %v11027_v15, %s11546_s14  ;;  %v3134_v7 = vrot.slane %v1925_v8, 1 }
 0x230   :  { %1832 = vst.msk [vmem:[#allocation2 + $0x201] sm:$0x3f] %vm1795_vm6, %v1676_v49  ;;  %11033 = vrot.lane.b32.xlu0 %v11032_v12, %s11551_s24  ;;  %v11037_v34 = vpack.i.bf16 %v13277_v25, %v1925_v8  ;;  %v3190_v38 = vrot.slane %v1925_v8, 2  ;;  %v3246_v40 = vrot.slane %v1925_v8, 3  ;;  %v3442_v49 = vrot.slane %v13277_v25, 6 }
 0x231   :  { %1831 = vst.msk [vmem:[#allocation2 + $0x1f9] sm:$0xff] %vm1695_vm4, %v1675_v61  ;;  %v3067_v29 = vsel %vm3060_vm5, %v3038_v23, %v10875_v42  ;;  %v3068_v31 = vsel %vm3060_vm5, %v3039_v24, %v10876_v26  ;;  %v3555_v9 = vsel %vm3537_vm9, %v1925_v8, %v3134_v7  ;;  %v3721_v12 = vsel %vm3711_vm15, %v3692_v57, %v3490_v56 }
 0x232   :  { %v3123_v36 = vrot.slane %v3067_v29, 1  ;;  %v3179_v51 = vrot.slane %v3067_v29, 2  ;;  %v3235_v39 = vrot.slane %v3067_v29, 3  ;;  %v3319_v53 = vrot.slane %v3068_v31, 4 }
 0x233   :  { %11038 = vrot.lane.b32.xlu1 %v11037_v34, %s11545_s28  ;;  %v3584_v28 = vsel %vm3566_vm10, %v3555_v9, %v3190_v38  ;;  %v3375_v55 = vrot.slane %v3068_v31, 5  ;;  %v3431_v47 = vrot.slane %v3068_v31, 6  ;;  %v3487_v2 = vrot.slane %v3068_v31, 7  ;;  %v1859_v34 = vld [vmem:[#allocation2 + $0xc0] sm:$0xff] }
 0x234   :  { %v3544_v60 = vsel %vm3537_vm9, %v3067_v29, %v3123_v36  ;;  %11043 = vrot.lane.b32.xlu0 %v11027_v15, %s11552_s1  ;;  %v3613_v62 = vsel %vm3595_vm11, %v3584_v28, %v3246_v40  ;;  %v3498_v50 = vrot.slane %v13277_v25, 7  ;;  %v10850_v42 = vunpack.i.l.bf16 %v13268_v63  ;;  %v1860_v36 = vld [vmem:[#allocation2 + $0xc8] sm:$0xff] }
 0x235   :  { %v13299_v20 = vpop.permute.xlu1 %10868  ;;  %v3573_v54 = vsel %vm3566_vm10, %v3544_v60, %v3179_v51  ;;  %v3642_v41 = vsel %vm3624_vm12, %v3613_v62, %v3330_v13  ;;  %v10851_v25 = vunpack.i.h.bf16 %v13268_v63  ;;  %v10860_v7 = vunpack.i.l.bf16 %v13288_v17 }
 0x236   :  { %v3602_v10 = vsel %vm3595_vm11, %v3573_v54, %v3235_v39  ;;  %v3671_v61 = vsel %vm3653_vm13, %v3642_v41, %v3386_v44  ;;  %v10861_v24 = vunpack.i.h.bf16 %v13288_v17  ;;  %v10870_v29 = vunpack.i.l.bf16 %v13299_v20 }
 0x237   :  { %v10002_v14 = vpop.f32.mrb[38].mxu0  ;;  %v3631_v1 = vsel %vm3624_vm12, %v3602_v10, %v3319_v53  ;;  %v1982_v3 = vld [vmem:[#allocation2 + $0x201] sm:$0xff]  ;;  %v3700_v26 = vsel %vm3682_vm14, %v3671_v61, %v3442_v49  ;;  %v10871_v38 = vunpack.i.h.bf16 %v13299_v20  ;;  %v2896_v51 = vsel %vm1695_vm4, %v1859_v34, %v10850_v42 }
 0x238   :  { %v1556_v58 = vadd.f32 %v13062_v37, %v10002_v14  ;;  %v1550_v5 = vpop.f32.mrb[39].mxu0  ;;  %v3660_v19 = vsel %vm3653_vm13, %v3631_v1, %v3375_v55  ;;  %v1953_v48 = vld [vmem:[#allocation2 + $0x1f8] sm:$0xff]  ;;  %v1954_v16 = vld [vmem:[#allocation2 + $0x200] sm:$0xff]  ;;  %v13328_v45 = vsel %vm3711_vm15, %v3700_v26, %v3498_v50  ;;  %v2897_v27 = vsel %vm1695_vm4, %v1860_v36, %v10851_v25 }
 0x239   :  { %v1981_v59 = vld [vmem:[#allocation2 + $0x1f9] sm:$0xff]  ;;  %v1551_v32 = vadd.f32 %v13062_v37, %v1550_v5  ;;  %v10879_v21 = vpop.permute.xlu1 %10878  ;;  %v3689_v43 = vsel %vm3682_vm14, %v3660_v19, %v3431_v47  ;;  %v11047_v0 = vpack.i.bf16 %v1954_v16, %v1953_v48  ;;  %v2010_v6 = vld [vmem:[#allocation2 + $0x202] sm:$0xff]  ;;  %v2925_v63 = vsel %vm2916_vm7, %v2896_v51, %v10860_v7 }
 0x23a   :  { %v11052_v22 = vpack.i.bf16 %v1982_v3, %v1981_v59  ;;  %v1678_v15 = vmax.f32 %v1556_v58, 0.0  ;;  %v3718_v8 = vsel %vm3711_vm15, %v3689_v43, %v3487_v2  ;;  %v2009_v46 = vld [vmem:[#allocation2 + $0x1fa] sm:$0xff]  ;;  %v10880_v31 = vunpack.i.l.bf16 %v10879_v21 }
 0x23b   :  { %v1677_v11 = vmax.f32 %v1551_v32, 0.0  ;;  %3887 = vmatmul.mubr.f32.gmra.mrb[6].mxu1 %v3718_v8  ;;  %11048 = vrot.lane.b32.xlu1 %v11047_v0, %s11549_s27  ;;  %v11057_v23 = vpack.i.bf16 %v2010_v6, %v2009_v46  ;;  %v10881_v39 = vunpack.i.h.bf16 %v10879_v21  ;;  %v2926_v17 = vsel %vm2916_vm7, %v2897_v27, %v10861_v24  ;;  %v13371_v24 = vld [vmem:[#allocation2 + $0x152] sm:$0xff] }
 0x23c   :  { %1834 = vst.msk [vmem:[#allocation2 + $0x219] sm:$0x3f] %vm1795_vm6, %v1678_v15  ;;  %11053 = vrot.lane.b32.xlu0 %v11052_v22, %s11548_s26  ;;  %9446 = vmatprep.mubr.msk.f32.mxu1 %vm1695_vm4, %v3721_v12  ;;  %v2953_v40 = vsel %vm1125_vm3, %v2925_v63, %v10870_v29  ;;  %v2954_v28 = vsel %vm1125_vm3, %v2926_v17, %v10871_v38 }
 0x23d   :  { %1833 = vst.msk [vmem:[#allocation2 + $0x211] sm:$0xff] %vm1695_vm4, %v1677_v11  ;;  %v10889_v4 = vpop.permute.xlu1 %10888  ;;  %v2982_v55 = vsel %vm2973_vm8, %v2953_v40, %v10880_v31  ;;  %v2983_v2 = vsel %vm2973_vm8, %v2954_v28, %v10881_v39  ;;  %v3130_v28 = vrot.slane %v13371_v24, 1 }
 0x23e   :  { %v10890_v60 = vunpack.i.l.bf16 %v10889_v4  ;;  %v10891_v9 = vunpack.i.h.bf16 %v10889_v4 }
 0x23f   :  { %11058 = vrot.lane.b32.xlu1 %v11057_v23, %s11550_s17 }
 0x240   :  { %v3011_v19 = vsel %vm3002_vm1, %v2982_v55, %v10890_v60  ;;  %v3012_v44 = vsel %vm3002_vm1, %v2983_v2, %v10891_v9  ;;  %v13383_v60 = vld [vmem:[%s16570_s2] ss:$0 sm:$0xff] }
 0x241   :  { %v10899_v52 = vpop.permute.xlu1 %10898 }
 0x242   :  { %v10900_v53 = vunpack.i.l.bf16 %v10899_v52  ;;  %v13341_v54 = vpop.permute.xlu0 %10883  ;;  %v10901_v10 = vunpack.i.h.bf16 %v10899_v52 }
 0x243   :  { %v10005_v20 = vpop.f32.mrb[40].mxu0  ;;  %v2067_v13 = vld [vmem:[#allocation2 + $0x219] sm:$0xff] }
 0x244   :  { %v1560_v56 = vpop.f32.mrb[41].mxu0  ;;  %v2066_v62 = vld [vmem:[#allocation2 + $0x211] sm:$0xff]  ;;  %v1566_v1 = vadd.f32 %v13062_v37, %v10005_v20  ;;  %v13349_v59 = vld [vmem:[#allocation2 + $0x21a] sm:$0xff]  ;;  %v3040_v32 = vsel %vm3031_vm2, %v3011_v19, %v10900_v53 }
 0x245   :  { %v2038_v14 = vld [vmem:[#allocation2 + $0x210] sm:$0xff]  ;;  %v2039_v47 = vld [vmem:[#allocation2 + $0x218] sm:$0xff]  ;;  %v1561_v3 = vadd.f32 %v13062_v37, %v1560_v56  ;;  %v10909_v57 = vpop.permute.xlu1 %10908  ;;  %v11067_v41 = vpack.i.bf16 %v2067_v13, %v2066_v62  ;;  %v3041_v37 = vsel %vm3031_vm2, %v3012_v44, %v10901_v10  ;;  %v3332_v29 = vrot.slane %v13349_v59, 4 }
 0x246   :  { %v11062_v58 = vpack.i.bf16 %v2039_v47, %v2038_v14  ;;  %v1927_v5 = vld [vmem:[#allocation2 + $0x212] sm:$0xff]  ;;  %v10911_v48 = vunpack.i.h.bf16 %v10909_v57  ;;  %v10910_v16 = vunpack.i.l.bf16 %v10909_v57  ;;  %v1680_v21 = vmax.f32 %v1566_v1, 0.0  ;;  %v13360_v6 = vpop.permute.xlu0 %10893 }
 0x247   :  { %v1679_v43 = vmax.f32 %v1561_v3, 0.0  ;;  %11068 = vrot.lane.b32.xlu1 %v11067_v41, %s11552_s1  ;;  %v3136_v22 = vrot.slane %v1927_v5, 1  ;;  %v11077_v49 = vpack.i.bf16 %v13349_v59, %v1927_v5  ;;  %v3192_v11 = vrot.slane %v1927_v5, 2 }
 0x248   :  { %11063 = vrot.lane.b32.xlu0 %v11062_v58, %s11551_s24  ;;  %v3069_v0 = vsel %vm3060_vm5, %v3040_v32, %v10910_v16  ;;  %1836 = vst.msk [vmem:[#allocation2 + $0x231] sm:$0x3f] %vm1795_vm6, %v1680_v21  ;;  %v3070_v15 = vsel %vm3060_vm5, %v3041_v37, %v10911_v48  ;;  %v3248_v42 = vrot.slane %v1927_v5, 3  ;;  %v3388_v63 = vrot.slane %v13349_v59, 5 }
 0x249   :  { %1835 = vst.msk [vmem:[#allocation2 + $0x229] sm:$0xff] %vm1695_vm4, %v1679_v43  ;;  %v3125_v8 = vrot.slane %v3069_v0, 1  ;;  %v3181_v46 = vrot.slane %v3069_v0, 2  ;;  %v3237_v12 = vrot.slane %v3069_v0, 3  ;;  %v3321_v61 = vrot.slane %v3070_v15, 4  ;;  %v13410_v43 = vld [vmem:[#allocation2 + $0x15a] sm:$0xff] }
 0x24a   :  { %v3557_v4 = vsel %vm3537_vm9, %v1927_v5, %v3136_v22  ;;  %v3377_v25 = vrot.slane %v3070_v15, 5  ;;  %v3433_v38 = vrot.slane %v3070_v15, 6  ;;  %v3489_v52 = vrot.slane %v3070_v15, 7 }
 0x24b   :  { %v3546_v50 = vsel %vm3537_vm9, %v3069_v0, %v3125_v8  ;;  %11078 = vrot.lane.b32.xlu1 %v11077_v49, %s11545_s28  ;;  %v3586_v34 = vsel %vm3566_vm10, %v3557_v4, %v3192_v11  ;;  %v3444_v55 = vrot.slane %v13349_v59, 6  ;;  %v3500_v5 = vrot.slane %v13349_v59, 7  ;;  %v1861_v8 = vld [vmem:[#allocation2 + $0xf0] sm:$0xff] }
 0x24c   :  { %11073 = vrot.lane.b32.xlu0 %v11067_v41, %s11546_s14  ;;  %v3575_v26 = vsel %vm3566_vm10, %v3546_v50, %v3181_v46  ;;  %v3615_v36 = vsel %vm3595_vm11, %v3586_v34, %v3248_v42  ;;  %v3186_v48 = vrot.slane %v13371_v24, 2  ;;  %v3551_v32 = vsel %vm3537_vm9, %v13371_v24, %v3130_v28  ;;  %v1862_v46 = vld [vmem:[#allocation2 + $0xf8] sm:$0xff] }
 0x24d   :  { %v13368_v23 = vpop.permute.xlu0 %10903  ;;  %v3604_v7 = vsel %vm3595_vm11, %v3575_v26, %v3237_v12  ;;  %v3644_v39 = vsel %vm3624_vm12, %v3615_v36, %v3332_v29  ;;  %v10885_v21 = vunpack.i.l.bf16 %v13341_v54  ;;  %v10896_v37 = vunpack.i.h.bf16 %v13360_v6 }
 0x24e   :  { %v3633_v31 = vsel %vm3624_vm12, %v3604_v7, %v3321_v61  ;;  %v3673_v1 = vsel %vm3653_vm13, %v3644_v39, %v3388_v63  ;;  %v10895_v0 = vunpack.i.l.bf16 %v13360_v6  ;;  %v10905_v22 = vunpack.i.l.bf16 %v13368_v23 }
 0x24f   :  { %v10008_v51 = vpop.f32.mrb[42].mxu0  ;;  %v3662_v27 = vsel %vm3653_vm13, %v3633_v31, %v3377_v25  ;;  %v1984_v20 = vld [vmem:[#allocation2 + $0x231] sm:$0xff]  ;;  %v3702_v19 = vsel %vm3682_vm14, %v3673_v1, %v3444_v55  ;;  %v3580_v15 = vsel %vm3566_vm10, %v3551_v32, %v3186_v48  ;;  %v10906_v49 = vunpack.i.h.bf16 %v13368_v23 }
 0x250   :  { %v1576_v17 = vadd.f32 %v13383_v60, %v10008_v51  ;;  %v1570_v40 = vpop.f32.mrb[43].mxu0  ;;  %v3691_v9 = vsel %vm3682_vm14, %v3662_v27, %v3433_v38  ;;  %v1983_v53 = vld [vmem:[#allocation2 + $0x229] sm:$0xff]  ;;  %v2012_v58 = vld [vmem:[#allocation2 + $0x232] sm:$0xff]  ;;  %v13403_v16 = vsel %vm3711_vm15, %v3702_v19, %v3500_v5  ;;  %v3242_v11 = vrot.slane %v13371_v24, 3 }
 0x251   :  { %v1955_v13 = vld [vmem:[#allocation2 + $0x228] sm:$0xff]  ;;  %v1571_v10 = vadd.f32 %v13383_v60, %v1570_v40  ;;  %v13390_v56 = vpop.permute.xlu0 %10913  ;;  %v3720_v62 = vsel %vm3711_vm15, %v3691_v9, %v3489_v52  ;;  %v11087_v14 = vpack.i.bf16 %v1984_v20, %v1983_v53  ;;  %v1956_v47 = vld [vmem:[#allocation2 + $0x230] sm:$0xff]  ;;  %v2898_v50 = vsel %vm1695_vm4, %v1861_v8, %v10885_v21 }
 0x252   :  { %v1682_v3 = vmax.f32 %v1576_v17, 0.0  ;;  %3892 = vmatmul.mubr.f32.gmra.mrb[8].mxu1 %v3720_v62  ;;  %v11082_v57 = vpack.i.bf16 %v1956_v47, %v1955_v13  ;;  %v2011_v41 = vld [vmem:[#allocation2 + $0x22a] sm:$0xff]  ;;  %v10916_v6 = vunpack.i.h.bf16 %v13390_v56  ;;  %v10915_v61 = vunpack.i.l.bf16 %v13390_v56 }
 0x253   :  { %v1681_v2 = vmax.f32 %v1571_v10, 0.0  ;;  %11088 = vrot.lane.b32.xlu1 %v11087_v14, %s11548_s26  ;;  %9447 = vmatprep.mubr.msk.f32.mxu1 %vm1695_vm4, %v13128_v18  ;;  %v11097_v44 = vpack.i.bf16 %v2012_v58, %v2011_v41  ;;  %v10886_v18 = vunpack.i.h.bf16 %v13341_v54  ;;  %v3326_v54 = vrot.slane %v13410_v43, 4 }
 0x254   :  { %1838 = vst.msk [vmem:[#allocation2 + $0x249] sm:$0x3f] %vm1795_vm6, %v1682_v3  ;;  %11083 = vrot.lane.b32.xlu0 %v11082_v57, %s11549_s27  ;;  %v2927_v42 = vsel %vm2916_vm7, %v2898_v50, %v10895_v0  ;;  %v3609_v29 = vsel %vm3595_vm11, %v3580_v15, %v3242_v11  ;;  %v3382_v41 = vrot.slane %v13410_v43, 5 }
 0x255   :  { %1837 = vst.msk [vmem:[#allocation2 + $0x241] sm:$0xff] %vm1695_vm4, %v1681_v2  ;;  %v10924_v59 = vpop.permute.xlu0 %10923  ;;  %v2899_v12 = vsel %vm1695_vm4, %v1862_v46, %v10886_v18  ;;  %v2955_v34 = vsel %vm1125_vm3, %v2927_v42, %v10905_v22  ;;  %v3638_v19 = vsel %vm3624_vm12, %v3609_v29, %v3326_v54  ;;  %v3494_v42 = vrot.slane %v13410_v43, 7 }
 0x256   :  { %v2928_v4 = vsel %vm2916_vm7, %v2899_v12, %v10896_v37  ;;  %v10925_v25 = vunpack.i.l.bf16 %v10924_v59  ;;  %v10926_v38 = vunpack.i.h.bf16 %v10924_v59  ;;  %v2984_v53 = vsel %vm2973_vm8, %v2955_v34, %v10915_v61 }
 0x257   :  { %11098 = vrot.lane.b32.xlu1 %v11097_v44, %s11550_s17  ;;  %v2956_v39 = vsel %vm1125_vm3, %v2928_v4, %v10906_v49  ;;  %v3667_v0 = vsel %vm3653_vm13, %v3638_v19, %v3382_v41  ;;  %v3438_v49 = vrot.slane %v13410_v43, 6 }
 0x258   :  { %v2985_v20 = vsel %vm2973_vm8, %v2956_v39, %v10916_v6  ;;  %v3013_v56 = vsel %vm3002_vm1, %v2984_v53, %v10925_v25 }
 0x259   :  { %v13426_v7 = vpop.permute.xlu1 %10918  ;;  %v3014_v3 = vsel %vm3002_vm1, %v2985_v20, %v10926_v38  ;;  %v3696_v4 = vsel %vm3682_vm14, %v3667_v0, %v3438_v49 }
 0x25a   :  { %v10934_v26 = vpop.permute.xlu0 %10933 }
 0x25b   :  { %v10011_v23 = vpop.f32.mrb[44].mxu0  ;;  %v1902_v24 = vld [vmem:[#allocation2 + $0x249] sm:$0xff]  ;;  %v10935_v31 = vunpack.i.l.bf16 %v10934_v26  ;;  %v10936_v17 = vunpack.i.h.bf16 %v10934_v26 }
 0x25c   :  { %v1586_v36 = vadd.f32 %v13383_v60, %v10011_v23  ;;  %v1580_v51 = vpop.f32.mrb[45].mxu0  ;;  %v13431_v52 = vld [vmem:[#allocation2 + $0x240] sm:$0xff]  ;;  %v13433_v27 = vld [vmem:[#allocation2 + $0x248] sm:$0xff] }
 0x25d   :  { %v1901_v63 = vld [vmem:[#allocation2 + $0x241] sm:$0xff]  ;;  %v1581_v40 = vadd.f32 %v13383_v60, %v1580_v51  ;;  %v11107_v9 = vpack.i.bf16 %v13433_v27, %v13431_v52  ;;  %v13445_v1 = vld [vmem:[#allocation2 + $0x24a] sm:$0xff]  ;;  %v3042_v57 = vsel %vm3031_vm2, %v3013_v56, %v10935_v31  ;;  %v3043_v58 = vsel %vm3031_vm2, %v3014_v3, %v10936_v17  ;;  %v13454_v5 = vpop.permute.xlu1 %10928 }
 0x25e   :  { %v1684_v13 = vmax.f32 %v1586_v36, 0.0  ;;  %v10944_v28 = vpop.permute.xlu0 %10943  ;;  %v11092_v55 = vpack.i.bf16 %v1902_v24, %v1901_v63  ;;  %v13441_v10 = vld [vmem:[#allocation2 + $0x242] sm:$0xff]  ;;  %v3334_v56 = vrot.slane %v13445_v1, 4  ;;  %v10931_v3 = vunpack.i.h.bf16 %v13454_v5 }
 0x25f   :  { %v1683_v62 = vmax.f32 %v1581_v40, 0.0  ;;  %v10946_v14 = vunpack.i.h.bf16 %v10944_v28  ;;  %v10945_v47 = vunpack.i.l.bf16 %v10944_v28  ;;  %11108 = vrot.lane.b32.xlu1 %v11107_v9, %s11551_s24  ;;  %v3138_v48 = vrot.slane %v13441_v10, 1 }
 0x260   :  { %1840 = vst.msk [vmem:[#allocation2 + $0x261] sm:$0x3f] %vm1795_vm6, %v1684_v13  ;;  %11093 = vrot.lane.b32.xlu0 %v11092_v55, %s11546_s14  ;;  %v11102_v18 = vpack.i.bf16 %v13445_v1, %v13441_v10  ;;  %v3194_v22 = vrot.slane %v13441_v10, 2  ;;  %v3250_v53 = vrot.slane %v13441_v10, 3  ;;  %v3725_v13 = vsel %vm3711_vm15, %v3696_v4, %v3494_v42 }
 0x261   :  { %1839 = vst.msk [vmem:[#allocation2 + $0x259] sm:$0xff] %vm1695_vm4, %v1683_v62  ;;  %v3071_v2 = vsel %vm3060_vm5, %v3042_v57, %v10945_v47  ;;  %v3072_v59 = vsel %vm3060_vm5, %v3043_v58, %v10946_v14  ;;  %v3559_v11 = vsel %vm3537_vm9, %v13441_v10, %v3138_v48  ;;  %v10921_v62 = vunpack.i.h.bf16 %v13426_v7 }
 0x262   :  { %v3127_v44 = vrot.slane %v3071_v2, 1  ;;  %v3183_v32 = vrot.slane %v3071_v2, 2  ;;  %v3239_v21 = vrot.slane %v3071_v2, 3  ;;  %v3323_v15 = vrot.slane %v3072_v59, 4  ;;  %v13510_v49 = vpop.permute.xlu0 %10953 }
 0x263   :  { %11118 = vrot.lane.b32.xlu1 %v11092_v55, %s11552_s1  ;;  %v3379_v54 = vrot.slane %v3072_v59, 5  ;;  %v3435_v6 = vrot.slane %v3072_v59, 6  ;;  %v3491_v24 = vrot.slane %v3072_v59, 7  ;;  %v3588_v36 = vsel %vm3566_vm10, %v3559_v11, %v3194_v22 }
 0x264   :  { %v3548_v37 = vsel %vm3537_vm9, %v3071_v2, %v3127_v44  ;;  %11103 = vrot.lane.b32.xlu0 %v11102_v18, %s11545_s28  ;;  %v3390_v10 = vrot.slane %v13445_v1, 5  ;;  %v3617_v14 = vsel %vm3595_vm11, %v3588_v36, %v3250_v53  ;;  %v10920_v47 = vunpack.i.l.bf16 %v13426_v7  ;;  %v1863_v18 = vld [vmem:[#allocation2 + $0x120] sm:$0xff] }
 0x265   :  { %v13467_v8 = vpop.permute.xlu1 %10938  ;;  %v3577_v46 = vsel %vm3566_vm10, %v3548_v37, %v3183_v32  ;;  %v3446_v41 = vrot.slane %v13445_v1, 6  ;;  %v3646_v58 = vsel %vm3624_vm12, %v3617_v14, %v3334_v56  ;;  %v10930_v2 = vunpack.i.l.bf16 %v13454_v5 }
 0x266   :  { %v3606_v12 = vsel %vm3595_vm11, %v3577_v46, %v3239_v21  ;;  %v3502_v48 = vrot.slane %v13445_v1, 7  ;;  %v3675_v59 = vsel %vm3653_vm13, %v3646_v58, %v3390_v10  ;;  %v10941_v44 = vunpack.i.h.bf16 %v13467_v8  ;;  %v1864_v21 = vld [vmem:[#allocation2 + $0x128] sm:$0xff] }
 0x267   :  { %v10014_v50 = vpop.f32.mrb[46].mxu0  ;;  %v3635_v61 = vsel %vm3624_vm12, %v3606_v12, %v3323_v15  ;;  %v2014_v26 = vld [vmem:[#allocation2 + $0x262] sm:$0xff]  ;;  %v10940_v7 = vunpack.i.l.bf16 %v13467_v8  ;;  %v3704_v32 = vsel %vm3682_vm14, %v3675_v59, %v3446_v41  ;;  %v2901_v5 = vsel %vm1695_vm4, %v1864_v21, %v10921_v62 }
 0x268   :  { %v1596_v25 = vadd.f32 %v13383_v60, %v10014_v50  ;;  %v1590_v23 = vpop.f32.mrb[47].mxu0  ;;  %v3664_v29 = vsel %vm3653_vm13, %v3635_v61, %v3379_v54  ;;  %v2013_v34 = vld [vmem:[#allocation2 + $0x25a] sm:$0xff]  ;;  %v13506_v22 = vsel %vm3711_vm15, %v3704_v32, %v3502_v48  ;;  %v2900_v1 = vsel %vm1695_vm4, %v1863_v18, %v10920_v47 }
 0x269   :  { %v1957_v38 = vld [vmem:[#allocation2 + $0x258] sm:$0xff]  ;;  %v1958_v31 = vld [vmem:[#allocation2 + $0x260] sm:$0xff]  ;;  %v1591_v51 = vadd.f32 %v13383_v60, %v1590_v23  ;;  %v10949_v63 = vpop.permute.xlu1 %10948  ;;  %v3693_v39 = vsel %vm3682_vm14, %v3664_v29, %v3435_v6  ;;  %v11127_v17 = vpack.i.bf16 %v2014_v26, %v2013_v34  ;;  %v2929_v8 = vsel %vm2916_vm7, %v2900_v1, %v10930_v2 }
 0x26a   :  { %v11112_v43 = vpack.i.bf16 %v1958_v31, %v1957_v38  ;;  %v1686_v40 = vmax.f32 %v1596_v25, 0.0  ;;  %v3722_v9 = vsel %vm3711_vm15, %v3693_v39, %v3491_v24  ;;  %v1985_v28 = vld [vmem:[#allocation2 + $0x259] sm:$0xff]  ;;  %v1986_v55 = vld [vmem:[#allocation2 + $0x261] sm:$0xff]  ;;  %v10951_v37 = vunpack.i.h.bf16 %v10949_v63 }
 0x26b   :  { %v1685_v20 = vmax.f32 %v1591_v51, 0.0  ;;  %3897 = vmatmul.mubr.f32.gmra.mrb[10].mxu1 %v3722_v9  ;;  %11128 = vrot.lane.b32.xlu1 %v11127_v17, %s11550_s17  ;;  %v11122_v19 = vpack.i.bf16 %v1986_v55, %v1985_v28  ;;  %v10950_v0 = vunpack.i.l.bf16 %v10949_v63  ;;  %v2930_v11 = vsel %vm2916_vm7, %v2901_v5, %v10931_v3  ;;  %v13533_v55 = vpop.permute.xlu0 %10963 }
 0x26c   :  { %1842 = vst.msk [vmem:[#allocation2 + $0x279] sm:$0x3f] %vm1795_vm6, %v1686_v40  ;;  %11113 = vrot.lane.b32.xlu0 %v11112_v43, %s11549_s27  ;;  %9448 = vmatprep.mubr.msk.f32.mxu1 %vm1695_vm4, %v3725_v13  ;;  %v2957_v12 = vsel %vm1125_vm3, %v2929_v8, %v10940_v7  ;;  %v2958_v50 = vsel %vm1125_vm3, %v2930_v11, %v10941_v44 }
 0x26d   :  { %1841 = vst.msk [vmem:[#allocation2 + $0x271] sm:$0xff] %vm1695_vm4, %v1685_v20  ;;  %v10959_v57 = vpop.permute.xlu1 %10958  ;;  %v2986_v42 = vsel %vm2973_vm8, %v2957_v12, %v10950_v0  ;;  %v2987_v4 = vsel %vm2973_vm8, %v2958_v50, %v10951_v37 }
 0x26e   :  { %v10960_v15 = vunpack.i.l.bf16 %v10959_v57  ;;  %v10961_v54 = vunpack.i.h.bf16 %v10959_v57 }
 0x270   :  { %11123 = vrot.lane.b32.xlu0 %v11122_v19, %s11548_s26  ;;  %v3015_v31 = vsel %vm3002_vm1, %v2986_v42, %v10960_v15  ;;  %v3016_v43 = vsel %vm3002_vm1, %v2987_v4, %v10961_v54 }
 0x271   :  { %v10969_v46 = vpop.permute.xlu1 %10968 }
 0x272   :  { %v10970_v6 = vunpack.i.l.bf16 %v10969_v46  ;;  %v10971_v25 = vunpack.i.h.bf16 %v10969_v46 }
 0x273   :  { %v10017_v61 = vpop.f32.mrb[48].mxu0  ;;  %v2071_v26 = vld [vmem:[#allocation2 + $0x279] sm:$0xff] }
 0x274   :  { %v1606_v23 = vadd.f32 %v13383_v60, %v10017_v61  ;;  %v1600_v24 = vpop.f32.mrb[49].mxu0  ;;  %v2070_v29 = vld [vmem:[#allocation2 + $0x271] sm:$0xff]  ;;  %v13528_v20 = vld [vmem:[#allocation2 + $0x27a] sm:$0xff]  ;;  %v3044_v13 = vsel %vm3031_vm2, %v3015_v31, %v10970_v6  ;;  %v3045_v10 = vsel %vm3031_vm2, %v3016_v43, %v10971_v25 }
 0x275   :  { %v13519_v34 = vld [vmem:[#allocation2 + $0x270] sm:$0xff]  ;;  %v13521_v38 = vld [vmem:[#allocation2 + $0x278] sm:$0xff]  ;;  %v1601_v36 = vadd.f32 %v13383_v60, %v1600_v24  ;;  %v10979_v51 = vpop.permute.xlu1 %10978  ;;  %v11137_v63 = vpack.i.bf16 %v2071_v26, %v2070_v29  ;;  %v3336_v59 = vrot.slane %v13528_v20, 4  ;;  %v3392_v18 = vrot.slane %v13528_v20, 5 }
 0x276   :  { %v11132_v39 = vpack.i.bf16 %v13521_v38, %v13519_v34  ;;  %v1931_v17 = vld [vmem:[#allocation2 + $0x272] sm:$0xff]  ;;  %v1688_v40 = vmax.f32 %v1606_v23, 0.0  ;;  %v10981_v9 = vunpack.i.h.bf16 %v10979_v51  ;;  %v10980_v53 = vunpack.i.l.bf16 %v10979_v51 }
 0x277   :  { %v1687_v28 = vmax.f32 %v1601_v36, 0.0  ;;  %11138 = vrot.lane.b32.xlu1 %v11137_v63, %s11552_s1  ;;  %v3140_v56 = vrot.slane %v1931_v17, 1  ;;  %v3196_v62 = vrot.slane %v1931_v17, 2  ;;  %v11147_v41 = vpack.i.bf16 %v13528_v20, %v1931_v17 }
 0x278   :  { %11133 = vrot.lane.b32.xlu0 %v11132_v39, %s11551_s24  ;;  %1844 = vst.msk [vmem:[#allocation2 + $0x291] sm:$0x3f] %vm1795_vm6, %v1688_v40  ;;  %v3073_v14 = vsel %vm3060_vm5, %v3044_v13, %v10980_v53  ;;  %v3074_v47 = vsel %vm3060_vm5, %v3045_v10, %v10981_v9  ;;  %v3252_v58 = vrot.slane %v1931_v17, 3  ;;  %v3448_v1 = vrot.slane %v13528_v20, 6  ;;  %v1865_v53 = vld [vmem:[#allocation2 + $0x180] sm:$0xff] }
 0x279   :  { %1843 = vst.msk [vmem:[#allocation2 + $0x289] sm:$0xff] %vm1695_vm4, %v1687_v28  ;;  %v3129_v3 = vrot.slane %v3073_v14, 1  ;;  %v3185_v57 = vrot.slane %v3073_v14, 2  ;;  %v3561_v2 = vsel %vm3537_vm9, %v1931_v17, %v3140_v56  ;;  %v3241_v19 = vrot.slane %v3073_v14, 3  ;;  %v1866_v56 = vld [vmem:[#allocation2 + $0x188] sm:$0xff] }
 0x27a   :  { %v3590_v44 = vsel %vm3566_vm10, %v3561_v2, %v3196_v62  ;;  %v3325_v7 = vrot.slane %v3074_v47, 4  ;;  %v3381_v0 = vrot.slane %v3074_v47, 5  ;;  %v3437_v46 = vrot.slane %v3074_v47, 6 }
 0x27b   :  { %v3550_v48 = vsel %vm3537_vm9, %v3073_v14, %v3129_v3  ;;  %11148 = vrot.lane.b32.xlu1 %v11147_v41, %s11545_s28  ;;  %v3619_v21 = vsel %vm3595_vm11, %v3590_v44, %v3252_v58  ;;  %v3493_v12 = vrot.slane %v3074_v47, 7  ;;  %v3504_v29 = vrot.slane %v13528_v20, 7 }
 0x27c   :  { %11143 = vrot.lane.b32.xlu0 %v11137_v63, %s11546_s14  ;;  %v3579_v32 = vsel %vm3566_vm10, %v3550_v48, %v3185_v57  ;;  %v3648_v15 = vsel %vm3624_vm12, %v3619_v21, %v3336_v59  ;;  %v10955_v17 = vunpack.i.l.bf16 %v13510_v49  ;;  %v10956_v13 = vunpack.i.h.bf16 %v13510_v49 }
 0x27d   :  { %v13550_v37 = vpop.permute.xlu0 %10973  ;;  %v3608_v5 = vsel %vm3595_vm11, %v3579_v32, %v3241_v19  ;;  %v3677_v11 = vsel %vm3653_vm13, %v3648_v15, %v3392_v18  ;;  %v10965_v62 = vunpack.i.l.bf16 %v13533_v55  ;;  %v10966_v47 = vunpack.i.h.bf16 %v13533_v55 }
 0x27e   :  { %v3637_v8 = vsel %vm3624_vm12, %v3608_v5, %v3325_v7  ;;  %v3706_v61 = vsel %vm3682_vm14, %v3677_v11, %v3448_v1  ;;  %v2902_v14 = vsel %vm1695_vm4, %v1865_v53, %v10955_v17  ;;  %v2903_v3 = vsel %vm1695_vm4, %v1866_v56, %v10956_v13 }
 0x27f   :  { %v10020_v54 = vpop.f32.mrb[50].mxu0  ;;  %v3666_v50 = vsel %vm3653_vm13, %v3637_v8, %v3381_v0  ;;  %v1988_v6 = vld [vmem:[#allocation2 + $0x291] sm:$0xff]  ;;  %v13569_v20 = vsel %vm3711_vm15, %v3706_v61, %v3504_v29  ;;  %v10975_v57 = vunpack.i.l.bf16 %v13550_v37  ;;  %v2931_v41 = vsel %vm2916_vm7, %v2902_v14, %v10965_v62 }
 0x280   :  { %v1616_v26 = vadd.f32 %v13383_v60, %v10020_v54  ;;  %v1610_v42 = vpop.f32.mrb[51].mxu0  ;;  %v3695_v4 = vsel %vm3682_vm14, %v3666_v50, %v3437_v46  ;;  %v1987_v25 = vld [vmem:[#allocation2 + $0x289] sm:$0xff]  ;;  %v2016_v9 = vld [vmem:[#allocation2 + $0x292] sm:$0xff]  ;;  %v2932_v58 = vsel %vm2916_vm7, %v2903_v3, %v10966_v47 }
 0x281   :  { %v1959_v23 = vld [vmem:[#allocation2 + $0x288] sm:$0xff]  ;;  %v1960_v24 = vld [vmem:[#allocation2 + $0x290] sm:$0xff]  ;;  %v1611_v31 = vadd.f32 %v13383_v60, %v1610_v42  ;;  %v10984_v36 = vpop.permute.xlu0 %10983  ;;  %v3724_v51 = vsel %vm3711_vm15, %v3695_v4, %v3493_v12  ;;  %v11157_v63 = vpack.i.bf16 %v1988_v6, %v1987_v25  ;;  %v2959_v7 = vsel %vm1125_vm3, %v2931_v41, %v10975_v57 }
 0x282   :  { %v11152_v39 = vpack.i.bf16 %v1960_v24, %v1959_v23  ;;  %v1690_v43 = vmax.f32 %v1616_v26, 0.0  ;;  %3902 = vmatmul.mubr.f32.gmra.mrb[12].mxu1 %v3724_v51  ;;  %v2015_v40 = vld [vmem:[#allocation2 + $0x28a] sm:$0xff]  ;;  %v10985_v2 = vunpack.i.l.bf16 %v10984_v36  ;;  %v10986_v55 = vunpack.i.h.bf16 %v10984_v36 }
 0x283   :  { %v1689_v28 = vmax.f32 %v1611_v31, 0.0  ;;  %11158 = vrot.lane.b32.xlu1 %v11157_v63, %s11548_s26  ;;  %9449 = vmatprep.mubr.msk.f32.mxu1 %vm1695_vm4, %v13247_v30  ;;  %v11167_v49 = vpack.i.bf16 %v2016_v9, %v2015_v40  ;;  %v10976_v30 = vunpack.i.h.bf16 %v13550_v37 }
 0x284   :  { %11153 = vrot.lane.b32.xlu0 %v11152_v39, %s11549_s27  ;;  %1846 = vst.msk [vmem:[#allocation2 + $0x2a9] sm:$0x3f] %vm1795_vm6, %v1690_v43  ;;  %v2988_v12 = vsel %vm2973_vm8, %v2959_v7, %v10985_v2 }
 0x285   :  { %1845 = vst.msk [vmem:[#allocation2 + $0x2a1] sm:$0xff] %vm1695_vm4, %v1689_v28  ;;  %v10994_v10 = vpop.permute.xlu0 %10993  ;;  %v2960_v37 = vsel %vm1125_vm3, %v2932_v58, %v10976_v30 }
 0x286   :  { %v10995_v48 = vunpack.i.l.bf16 %v10994_v10  ;;  %v10996_v15 = vunpack.i.h.bf16 %v10994_v10  ;;  %v2989_v29 = vsel %vm2973_vm8, %v2960_v37, %v10986_v55 }
 0x287   :  { %11168 = vrot.lane.b32.xlu1 %v11167_v49, %s11550_s17 }
 0x288   :  { %v3017_v42 = vsel %vm3002_vm1, %v2988_v12, %v10995_v48  ;;  %v3018_v51 = vsel %vm3002_vm1, %v2989_v29, %v10996_v15 }
 0x289   :  { %v13591_v46 = vpop.permute.xlu1 %10988 }
 0x28a   :  { %v11004_v19 = vpop.permute.xlu0 %11003 }
 0x28b   :  { %v10023_v59 = vpop.f32.mrb[52].mxu0  ;;  %v1906_v44 = vld [vmem:[#allocation2 + $0x2a9] sm:$0xff]  ;;  %v11005_v32 = vunpack.i.l.bf16 %v11004_v19  ;;  %v11006_v50 = vunpack.i.h.bf16 %v11004_v19 }
 0x28c   :  { %v1626_v18 = vadd.f32 %v13383_v60, %v10023_v59  ;;  %v1620_v21 = vpop.f32.mrb[53].mxu0  ;;  %v13586_v0 = vld [vmem:[#allocation2 + $0x2a0] sm:$0xff]  ;;  %v13588_v5 = vld [vmem:[#allocation2 + $0x2a8] sm:$0xff] }
 0x28d   :  { %v1905_v1 = vld [vmem:[#allocation2 + $0x2a1] sm:$0xff]  ;;  %v1621_v8 = vadd.f32 %v13383_v60, %v1620_v21  ;;  %v11177_v11 = vpack.i.bf16 %v13588_v5, %v13586_v0  ;;  %v13599_v24 = vld [vmem:[#allocation2 + $0x2aa] sm:$0xff]  ;;  %v3046_v31 = vsel %vm3031_vm2, %v3017_v42, %v11005_v32  ;;  %v3047_v17 = vsel %vm3031_vm2, %v3018_v51, %v11006_v50  ;;  %v13610_v53 = vpop.permute.xlu1 %10998 }
 0x28e   :  { %v1933_v54 = vld [vmem:[#allocation2 + $0x2a2] sm:$0xff]  ;;  %v1692_v6 = vmax.f32 %v1626_v18, 0.0  ;;  %v11014_v61 = vpop.permute.xlu0 %11013  ;;  %v11162_v26 = vpack.i.bf16 %v1906_v44, %v1905_v1  ;;  %v3338_v19 = vrot.slane %v13599_v24, 4  ;;  %v10991_v51 = vunpack.i.h.bf16 %v13591_v46 }
 0x28f   :  { %v1691_v4 = vmax.f32 %v1621_v8, 0.0  ;;  %v11016_v25 = vunpack.i.h.bf16 %v11014_v61  ;;  %v11015_v23 = vunpack.i.l.bf16 %v11014_v61  ;;  %11178 = vrot.lane.b32.xlu1 %v11177_v11, %s11551_s24  ;;  %v3142_v36 = vrot.slane %v1933_v54, 1 }
 0x290   :  { %1848 = vst.msk [vmem:[#allocation2 + $0x2c1] sm:$0x3f] %vm1795_vm6, %v1692_v6  ;;  %11163 = vrot.lane.b32.xlu0 %v11162_v26, %s11546_s14  ;;  %v3198_v39 = vrot.slane %v1933_v54, 2  ;;  %v11172_v9 = vpack.i.bf16 %v13599_v24, %v1933_v54  ;;  %v3254_v47 = vrot.slane %v1933_v54, 3  ;;  %v3394_v6 = vrot.slane %v13599_v24, 5 }
 0x291   :  { %1847 = vst.msk [vmem:[#allocation2 + $0x2b9] sm:$0xff] %vm1695_vm4, %v1691_v4  ;;  %v3075_v63 = vsel %vm3060_vm5, %v3046_v31, %v11015_v23  ;;  %v3076_v13 = vsel %vm3060_vm5, %v3047_v17, %v11016_v25  ;;  %v3563_v56 = vsel %vm3537_vm9, %v1933_v54, %v3142_v36  ;;  %v3506_v4 = vrot.slane %v13599_v24, 7 }
 0x292   :  { %v3131_v43 = vrot.slane %v3075_v63, 1  ;;  %v3187_v40 = vrot.slane %v3075_v63, 2  ;;  %v3243_v62 = vrot.slane %v3075_v63, 3  ;;  %v3592_v49 = vsel %vm3566_vm10, %v3563_v56, %v3198_v39 }
 0x293   :  { %11188 = vrot.lane.b32.xlu1 %v11162_v26, %s11552_s1  ;;  %v3327_v14 = vrot.slane %v3076_v13, 4  ;;  %v3383_v41 = vrot.slane %v3076_v13, 5  ;;  %v3439_v30 = vrot.slane %v3076_v13, 6  ;;  %v3495_v44 = vrot.slane %v3076_v13, 7 }
 0x294   :  { %v3552_v28 = vsel %vm3537_vm9, %v3075_v63, %v3131_v43  ;;  %11173 = vrot.lane.b32.xlu0 %v11172_v9, %s11545_s28  ;;  %v3621_v21 = vsel %vm3595_vm11, %v3592_v49, %v3254_v47  ;;  %v10990_v23 = vunpack.i.l.bf16 %v13591_v46  ;;  %v11000_v63 = vunpack.i.l.bf16 %v13610_v53 }
 0x295   :  { %v3581_v10 = vsel %vm3566_vm10, %v3552_v28, %v3187_v40  ;;  %v11009_v3 = vpop.permute.xlu1 %11008  ;;  %v3650_v42 = vsel %vm3624_vm12, %v3621_v21, %v3338_v19  ;;  %v11001_v17 = vunpack.i.h.bf16 %v13610_v53  ;;  %v1867_v40 = vld [vmem:[#allocation2 + $0x1b0] sm:$0xff] }
 0x296   :  { %v3610_v58 = vsel %vm3595_vm11, %v3581_v10, %v3243_v62  ;;  %v3679_v25 = vsel %vm3653_vm13, %v3650_v42, %v3394_v6  ;;  %v11024_v39 = vpop.permute.xlu0 %11023  ;;  %v11010_v43 = vunpack.i.l.bf16 %v11009_v3  ;;  %v11011_v9 = vunpack.i.h.bf16 %v11009_v3 }
 0x297   :  { %v10026_v57 = vpop.f32.mrb[54].mxu0  ;;  %v2018_v2 = vld [vmem:[#allocation2 + $0x2c2] sm:$0xff]  ;;  %v3639_v7 = vsel %vm3624_vm12, %v3610_v58, %v3327_v14  ;;  %v2904_v28 = vsel %vm1695_vm4, %v1867_v40, %v10990_v23  ;;  %v11025_v58 = vunpack.i.l.bf16 %v11024_v39 }
 0x298   :  { %v1636_v48 = vadd.f32 %v13383_v60, %v10026_v57  ;;  %v1630_v59 = vpop.f32.mrb[55].mxu0  ;;  %v2017_v55 = vld [vmem:[#allocation2 + $0x2ba] sm:$0xff]  ;;  %v3668_v37 = vsel %vm3653_vm13, %v3639_v7, %v3383_v41  ;;  %v2933_v62 = vsel %vm2916_vm7, %v2904_v28, %v11000_v63  ;;  %v1870_v28 = vld [vmem:[#allocation2 + $0x1e8] sm:$0xff] }
 0x299   :  { %v1961_v32 = vld [vmem:[#allocation2 + $0x2b8] sm:$0xff]  ;;  %v1962_v18 = vld [vmem:[#allocation2 + $0x2c0] sm:$0xff]  ;;  %v1631_v1 = vadd.f32 %v13383_v60, %v1630_v59  ;;  %v11197_v15 = vpack.i.bf16 %v2018_v2, %v2017_v55  ;;  %v3697_v54 = vsel %vm3682_vm14, %v3668_v37, %v3439_v30  ;;  %v3450_v60 = vrot.slane %v13599_v24, 6  ;;  %v11019_v29 = vpop.permute.xlu1 %11018 }
 0x29a   :  { %v11182_v8 = vpack.i.bf16 %v1962_v18, %v1961_v32  ;;  %v1694_v11 = vmax.f32 %v1636_v48, 0.0  ;;  %v1989_v12 = vld [vmem:[#allocation2 + $0x2b9] sm:$0xff]  ;;  %v1990_v50 = vld [vmem:[#allocation2 + $0x2c1] sm:$0xff]  ;;  %v3726_v26 = vsel %vm3711_vm15, %v3697_v54, %v3495_v44  ;;  %v11020_v13 = vunpack.i.l.bf16 %v11019_v29 }
 0x29b   :  { %v1693_v61 = vmax.f32 %v1631_v1, 0.0  ;;  %11198 = vrot.lane.b32.xlu1 %v11197_v15, %s11550_s17  ;;  %3907 = vmatmul.mubr.f32.gmra.mrb[14].mxu1 %v3726_v26  ;;  %v11192_v31 = vpack.i.bf16 %v1990_v50, %v1989_v12  ;;  %v3708_v36 = vsel %vm3682_vm14, %v3679_v25, %v3450_v60  ;;  %v11021_v56 = vunpack.i.h.bf16 %v11019_v29 }
 0x29c   :  { %11183 = vrot.lane.b32.xlu0 %v11182_v8, %s11549_s27  ;;  %1850 = vst.msk [vmem:[#allocation2 + $0x2d9] sm:$0x3f] %vm1795_vm6, %v1694_v11  ;;  %9450 = vmatprep.mubr.msk.f32.mxu1 %vm1695_vm4, %v13328_v45  ;;  %v13644_v24 = vsel %vm3711_vm15, %v3708_v36, %v3506_v4  ;;  %v1868_v45 = vld [vmem:[#allocation2 + $0x1b8] sm:$0xff]  ;;  %v2961_v14 = vsel %vm1125_vm3, %v2933_v62, %v11010_v43  ;;  %v11026_v48 = vunpack.i.h.bf16 %v11024_v39  ;;  %vm3977_vm6 = vcmask 1041409  }
 0x29d   :  { %1849 = vst.msk [vmem:[#allocation2 + $0x2d1] sm:$0xff] %vm1695_vm4, %v1693_v61  ;;  %v2905_v46 = vsel %vm1695_vm4, %v1868_v45, %v10991_v51  ;;  %v2990_v47 = vsel %vm2973_vm8, %v2961_v14, %v11020_v13  ;;  %v1869_v45 = vld [vmem:[#allocation2 + $0x1e0] sm:$0xff] }
 0x29e   :  { %v2934_v49 = vsel %vm2916_vm7, %v2905_v46, %v11001_v17  ;;  %v3019_v44 = vsel %vm3002_vm1, %v2990_v47, %v11025_v58 }
 0x29f   :  { %v2962_v53 = vsel %vm1125_vm3, %v2934_v49, %v11011_v9 }
 0x2a0   :  { %11193 = vrot.lane.b32.xlu0 %v11192_v31, %s11548_s26  ;;  %v2991_v2 = vsel %vm2973_vm8, %v2962_v53, %v11021_v56 }
 0x2a1   :  { %v11029_v57 = vpop.permute.xlu1 %11028  ;;  %v3020_v32 = vsel %vm3002_vm1, %v2991_v2, %v11026_v48 }
 0x2a2   :  { %v11034_v10 = vpop.permute.xlu0 %11033  ;;  %v11031_v29 = vunpack.i.h.bf16 %v11029_v57  ;;  %v11030_v31 = vunpack.i.l.bf16 %v11029_v57 }
 0x2a3   :  { %v11035_v3 = vunpack.i.l.bf16 %v11034_v10  ;;  %v11036_v19 = vunpack.i.h.bf16 %v11034_v10  ;;  %v2075_v21 = vld [vmem:[#allocation2 + $0x2d9] sm:$0xff] }
 0x2a4   :  { %v2074_v41 = vld [vmem:[#allocation2 + $0x2d1] sm:$0xff]  ;;  %v2907_v56 = vsel %vm1695_vm4, %v1870_v28, %v11031_v29  ;;  %v2906_v46 = vsel %vm1695_vm4, %v1869_v45, %v11030_v31 }
 0x2a5   :  { %v2046_v30 = vld [vmem:[#allocation2 + $0x2d0] sm:$0xff]  ;;  %2856 = vrot.lane.b32.xlu1 %v2074_v41, %s11552_s1  ;;  %v3048_v18 = vsel %vm3031_vm2, %v3019_v44, %v11035_v3  ;;  %v2047_v1 = vld [vmem:[#allocation2 + $0x2d8] sm:$0xff]  ;;  %v3049_v37 = vsel %vm3031_vm2, %v3020_v32, %v11036_v19  ;;  %v11039_v8 = vpop.permute.xlu1 %11038 }
 0x2a6   :  { %2744 = vrot.lane.b32.xlu0 %v2046_v30, %s11551_s24  ;;  %v11044_v59 = vpop.permute.xlu0 %11043  ;;  %v11041_v63 = vunpack.i.h.bf16 %v11039_v8  ;;  %v11040_v39 = vunpack.i.l.bf16 %v11039_v8 }
 0x2a7   :  { %v11046_v7 = vunpack.i.h.bf16 %v11044_v59  ;;  %v11045_v55 = vunpack.i.l.bf16 %v11044_v59 }
 0x2a8   :  { %v2935_v10 = vsel %vm2916_vm7, %v2906_v46, %v11040_v39  ;;  %v2936_v49 = vsel %vm2916_vm7, %v2907_v56, %v11041_v63  ;;  %v11539_v56 = vld [vmem:[#allocation2 + $0x218] sm:$0xff] }
 0x2a9   :  { %v3077_v15 = vsel %vm3060_vm5, %v3048_v18, %v11045_v55  ;;  %2858 = vrot.lane.b32.xlu1 %v2075_v21, %s11552_s1  ;;  %v3078_v11 = vsel %vm3060_vm5, %v3049_v37, %v11046_v7 }
 0x2aa   :  { %2746 = vrot.lane.b32.xlu0 %v2047_v1, %s11551_s24  ;;  %v3133_v54 = vrot.slane %v3077_v15, 1  ;;  %v3189_v12 = vrot.slane %v3077_v15, 2  ;;  %v3245_v50 = vrot.slane %v3077_v15, 3  ;;  %v3329_v61 = vrot.slane %v3078_v11, 4 }
 0x2ab   :  { %v3385_v42 = vrot.slane %v3078_v11, 5  ;;  %v3441_v25 = vrot.slane %v3078_v11, 6  ;;  %v3497_v36 = vrot.slane %v3078_v11, 7 }
 0x2ac   :  { %v3554_v6 = vsel %vm3537_vm9, %v3077_v15, %v3133_v54 }
 0x2ad   :  { %v3583_v26 = vsel %vm3566_vm10, %v3554_v6, %v3189_v12  ;;  %v11049_v60 = vpop.permute.xlu1 %11048 }
 0x2ae   :  { %v3612_v4 = vsel %vm3595_vm11, %v3583_v26, %v3245_v50  ;;  %v11051_v43 = vunpack.i.h.bf16 %v11049_v60  ;;  %v11050_v40 = vunpack.i.l.bf16 %v11049_v60  ;;  %v11054_v9 = vpop.permute.xlu0 %11053 }
 0x2af   :  { %v3641_v23 = vsel %vm3624_vm12, %v3612_v4, %v3329_v61  ;;  %v11056_v14 = vunpack.i.h.bf16 %v11054_v9  ;;  %v11055_v53 = vunpack.i.l.bf16 %v11054_v9 }
 0x2b0   :  { %v3670_v51 = vsel %vm3653_vm13, %v3641_v23, %v3385_v42  ;;  %v2963_v47 = vsel %vm1125_vm3, %v2935_v10, %v11050_v40  ;;  %v2964_v57 = vsel %vm1125_vm3, %v2936_v49, %v11051_v43 }
 0x2b1   :  { %v3699_v17 = vsel %vm3682_vm14, %v3670_v51, %v3441_v25  ;;  %v11059_v62 = vpop.permute.xlu1 %11058  ;;  %v2993_v30 = vsel %vm2973_vm8, %v2964_v57, %v11056_v14  ;;  %v2992_v58 = vsel %vm2973_vm8, %v2963_v47, %v11055_v53 }
 0x2b2   :  { %v3728_v13 = vsel %vm3711_vm15, %v3699_v17, %v3497_v36  ;;  %v11061_v3 = vunpack.i.h.bf16 %v11059_v62  ;;  %v11060_v41 = vunpack.i.l.bf16 %v11059_v62 }
 0x2b3   :  { %3912 = vmatmul.mubr.f32.gmra.mrb[16].mxu1 %v3728_v13  ;;  %v11538_v13 = vld [vmem:[#allocation2 + $0x210] sm:$0xff] }
 0x2b4   :  { %9451 = vmatprep.mubr.msk.f32.mxu1 %vm1695_vm4, %v13403_v16  ;;  %v3021_v7 = vsel %vm3002_vm1, %v2992_v58, %v11060_v41  ;;  %v3022_v55 = vsel %vm3002_vm1, %v2993_v30, %v11061_v3 }
 0x2b9   :  { %v11069_v2 = vpop.permute.xlu1 %11068 }
 0x2ba   :  { %v11064_v19 = vpop.permute.xlu0 %11063  ;;  %v11071_v48 = vunpack.i.h.bf16 %v11069_v2  ;;  %v11070_v16 = vunpack.i.l.bf16 %v11069_v2 }
 0x2bb   :  { %v11066_v59 = vunpack.i.h.bf16 %v11064_v19  ;;  %v11065_v44 = vunpack.i.l.bf16 %v11064_v19 }
 0x2bd   :  { %v3050_v32 = vsel %vm3031_vm2, %v3021_v7, %v11065_v44  ;;  %v3051_v18 = vsel %vm3031_vm2, %v3022_v55, %v11066_v59  ;;  %v11079_v61 = vpop.permute.xlu1 %11078 }
 0x2be   :  { %v3079_v21 = vsel %vm3060_vm5, %v3050_v32, %v11070_v16  ;;  %v3080_v15 = vsel %vm3060_vm5, %v3051_v18, %v11071_v48  ;;  %v11074_v36 = vpop.permute.xlu0 %11073  ;;  %v11080_v43 = vunpack.i.l.bf16 %v11079_v61  ;;  %v11081_v9 = vunpack.i.h.bf16 %v11079_v61 }
 0x2bf   :  { %v3135_v1 = vrot.slane %v3079_v21, 1  ;;  %v3191_v37 = vrot.slane %v3079_v21, 2  ;;  %v3247_v8 = vrot.slane %v3079_v21, 3  ;;  %v3331_v54 = vrot.slane %v3080_v15, 4 }
 0x2c0   :  { %v3387_v50 = vrot.slane %v3080_v15, 5  ;;  %v3443_v26 = vrot.slane %v3080_v15, 6  ;;  %v3499_v42 = vrot.slane %v3080_v15, 7  ;;  %v11075_v63 = vunpack.i.l.bf16 %v11074_v36 }
 0x2c1   :  { %v3556_v11 = vsel %vm3537_vm9, %v3079_v21, %v3135_v1  ;;  %v11076_v39 = vunpack.i.h.bf16 %v11074_v36 }
 0x2c2   :  { %v3585_v12 = vsel %vm3566_vm10, %v3556_v11, %v3191_v37  ;;  %v2908_v45 = vsel %vm1695_vm4, %v11538_v13, %v11075_v63 }
 0x2c3   :  { %v3614_v6 = vsel %vm3595_vm11, %v3585_v12, %v3247_v8  ;;  %v2909_v46 = vsel %vm1695_vm4, %v11539_v56, %v11076_v39  ;;  %v2937_v49 = vsel %vm2916_vm7, %v2908_v45, %v11080_v43 }
 0x2c4   :  { %v3643_v60 = vsel %vm3624_vm12, %v3614_v6, %v3331_v54 }
 0x2c5   :  { %v3672_v4 = vsel %vm3653_vm13, %v3643_v60, %v3387_v50  ;;  %v13694_v25 = vpop.f32.mrb[0].mxu1  ;;  %v11089_v51 = vpop.permute.xlu1 %11088 }
 0x2c6   :  { %v3701_v23 = vsel %vm3682_vm14, %v3672_v4, %v3443_v26  ;;  %v3875_v29 = vpop.f32.mrb[1].mxu1  ;;  %v11084_v17 = vpop.permute.xlu0 %11083  ;;  %v11090_v10 = vunpack.i.l.bf16 %v11089_v51  ;;  %v11091_v53 = vunpack.i.h.bf16 %v11089_v51 }
 0x2c7   :  { %v3730_v31 = vsel %vm3711_vm15, %v3701_v23, %v3499_v42  ;;  %v11085_v28 = vunpack.i.l.bf16 %v11084_v17  ;;  %v11086_v62 = vunpack.i.h.bf16 %v11084_v17 }
 0x2c8   :  { %3917 = vmatmul.mubr.f32.gmra.mrb[18].mxu1 %v3730_v31 }
 0x2c9   :  { %9452 = vmatprep.mubr.msk.f32.mxu1 %vm1695_vm4, %v13506_v22  ;;  %v11099_v40 = vpop.permute.xlu1 %11098  ;;  %v2938_v22 = vsel %vm2916_vm7, %v2909_v46, %v11081_v9  ;;  %v2965_v47 = vsel %vm1125_vm3, %v2937_v49, %v11085_v28 }
 0x2ca   :  { %v11100_v57 = vunpack.i.l.bf16 %v11099_v40  ;;  %v2966_v3 = vsel %vm1125_vm3, %v2938_v22, %v11086_v62  ;;  %v11101_v41 = vunpack.i.h.bf16 %v11099_v40  ;;  %v2994_v19 = vsel %vm2973_vm8, %v2965_v47, %v11090_v10 }
 0x2cb   :  { %v2995_v16 = vsel %vm2973_vm8, %v2966_v3, %v11091_v53 }
 0x2cc   :  { %v3023_v59 = vsel %vm3002_vm1, %v2994_v19, %v11100_v57  ;;  %v3024_v55 = vsel %vm3002_vm1, %v2995_v16, %v11101_v41 }
 0x2d1   :  { %v11109_v14 = vpop.permute.xlu1 %11108 }
 0x2d2   :  { %v11110_v30 = vunpack.i.l.bf16 %v11109_v14  ;;  %v11111_v58 = vunpack.i.h.bf16 %v11109_v14  ;;  %v11094_v2 = vpop.permute.xlu0 %11093 }
 0x2d3   :  { %v11096_v51 = vunpack.i.h.bf16 %v11094_v2  ;;  %v11095_v63 = vunpack.i.l.bf16 %v11094_v2 }
 0x2d4   :  { %v3052_v32 = vsel %vm3031_vm2, %v3023_v59, %v11110_v30  ;;  %v3053_v18 = vsel %vm3031_vm2, %v3024_v55, %v11111_v58 }
 0x2d5   :  { %v11119_v48 = vpop.permute.xlu1 %11118  ;;  %v2911_v56 = vsel %vm1695_vm4, %v13433_v27, %v11096_v51  ;;  %v2910_v46 = vsel %vm1695_vm4, %v13431_v52, %v11095_v63 }
 0x2d6   :  { %v11121_v44 = vunpack.i.h.bf16 %v11119_v48  ;;  %v11120_v7 = vunpack.i.l.bf16 %v11119_v48  ;;  %v11104_v8 = vpop.permute.xlu0 %11103 }
 0x2d7   :  { %v11106_v17 = vunpack.i.h.bf16 %v11104_v8  ;;  %v11105_v43 = vunpack.i.l.bf16 %v11104_v8 }
 0x2d8   :  { %v3081_v21 = vsel %vm3060_vm5, %v3052_v32, %v11120_v7  ;;  %v3082_v1 = vsel %vm3060_vm5, %v3053_v18, %v11121_v44 }
 0x2d9   :  { %v3137_v37 = vrot.slane %v3081_v21, 1  ;;  %v3193_v15 = vrot.slane %v3081_v21, 2  ;;  %v3249_v11 = vrot.slane %v3081_v21, 3  ;;  %v3333_v12 = vrot.slane %v3082_v1, 4 }
 0x2da   :  { %v3389_v6 = vrot.slane %v3082_v1, 5  ;;  %v3445_v42 = vrot.slane %v3082_v1, 6  ;;  %v3501_v29 = vrot.slane %v3082_v1, 7  ;;  %v2939_v10 = vsel %vm2916_vm7, %v2910_v46, %v11105_v43 }
 0x2db   :  { %v3558_v54 = vsel %vm3537_vm9, %v3081_v21, %v3137_v37  ;;  %v2940_v49 = vsel %vm2916_vm7, %v2911_v56, %v11106_v17 }
 0x2dc   :  { %v3587_v50 = vsel %vm3566_vm10, %v3558_v54, %v3193_v15 }
 0x2dd   :  { %v3616_v61 = vsel %vm3595_vm11, %v3587_v50, %v3249_v11  ;;  %v11129_v62 = vpop.permute.xlu1 %11128 }
 0x2de   :  { %v11114_v26 = vpop.permute.xlu0 %11113  ;;  %v13717_v60 = vpop.f32.mrb[2].mxu1  ;;  %v3645_v4 = vsel %vm3624_vm12, %v3616_v61, %v3333_v12  ;;  %v11131_v47 = vunpack.i.h.bf16 %v11129_v62  ;;  %v11130_v57 = vunpack.i.l.bf16 %v11129_v62 }
 0x2df   :  { %v3880_v23 = vpop.f32.mrb[3].mxu1  ;;  %v3674_v31 = vsel %vm3653_vm13, %v3645_v4, %v3389_v6  ;;  %v11116_v9 = vunpack.i.h.bf16 %v11114_v26  ;;  %v11115_v13 = vunpack.i.l.bf16 %v11114_v26 }
 0x2e0   :  { %v3703_v36 = vsel %vm3682_vm14, %v3674_v31, %v3445_v42  ;;  %v2102_v31 = vld [vmem:[#allocation2 + $0x2d2] sm:$0xff] }
 0x2e1   :  { %v3732_v39 = vsel %vm3711_vm15, %v3703_v36, %v3501_v29  ;;  %v2967_v14 = vsel %vm1125_vm3, %v2939_v10, %v11115_v13  ;;  %v2968_v53 = vsel %vm1125_vm3, %v2940_v49, %v11116_v9  ;;  %v3144_v17 = vrot.slane %v2102_v31, 1 }
 0x2e2   :  { %v11124_v40 = vpop.permute.xlu0 %11123  ;;  %3922 = vmatmul.mubr.f32.gmra.mrb[20].mxu1 %v3732_v39 }
 0x2e3   :  { %9453 = vmatprep.mubr.msk.f32.mxu1 %vm1695_vm4, %v13569_v20  ;;  %v11126_v45 = vunpack.i.h.bf16 %v11124_v40  ;;  %v11125_v28 = vunpack.i.l.bf16 %v11124_v40  ;;  %v3565_v62 = vsel %vm3537_vm9, %v2102_v31, %v3144_v17 }
 0x2e5   :  { %v2996_v22 = vsel %vm2973_vm8, %v2967_v14, %v11125_v28  ;;  %v2997_v20 = vsel %vm2973_vm8, %v2968_v53, %v11126_v45  ;;  %v3200_v28 = vrot.slane %v2102_v31, 2 }
 0x2e6   :  { %v3025_v2 = vsel %vm3002_vm1, %v2996_v22, %v11130_v57  ;;  %v3026_v19 = vsel %vm3002_vm1, %v2997_v20, %v11131_v47 }
 0x2e7   :  { %v3594_v47 = vsel %vm3566_vm10, %v3565_v62, %v3200_v28 }
 0x2e9   :  { %v11139_v3 = vpop.permute.xlu1 %11138 }
 0x2ea   :  { %v11134_v27 = vpop.permute.xlu0 %11133  ;;  %v11141_v41 = vunpack.i.h.bf16 %v11139_v3  ;;  %v11140_v30 = vunpack.i.l.bf16 %v11139_v3 }
 0x2eb   :  { %v11136_v52 = vunpack.i.h.bf16 %v11134_v27  ;;  %v11135_v58 = vunpack.i.l.bf16 %v11134_v27 }
 0x2ed   :  { %v3054_v48 = vsel %vm3031_vm2, %v3025_v2, %v11135_v58  ;;  %v3055_v16 = vsel %vm3031_vm2, %v3026_v19, %v11136_v52  ;;  %v11149_v8 = vpop.permute.xlu1 %11148 }
 0x2ee   :  { %v3083_v59 = vsel %vm3060_vm5, %v3054_v48, %v11140_v30  ;;  %v3084_v55 = vsel %vm3060_vm5, %v3055_v16, %v11141_v41  ;;  %v11144_v61 = vpop.permute.xlu0 %11143  ;;  %v11150_v63 = vunpack.i.l.bf16 %v11149_v8  ;;  %v11151_v9 = vunpack.i.h.bf16 %v11149_v8  ;;  %v2103_v41 = vld [vmem:[#allocation2 + $0x2da] sm:$0xff] }
 0x2ef   :  { %v3139_v44 = vrot.slane %v3083_v59, 1  ;;  %v3195_v7 = vrot.slane %v3083_v59, 2  ;;  %v3251_v32 = vrot.slane %v3083_v59, 3  ;;  %v3335_v21 = vrot.slane %v3084_v55, 4 }
 0x2f0   :  { %v3391_v37 = vrot.slane %v3084_v55, 5  ;;  %v3447_v11 = vrot.slane %v3084_v55, 6  ;;  %v3503_v50 = vrot.slane %v3084_v55, 7  ;;  %v11145_v29 = vunpack.i.l.bf16 %v11144_v61 }
 0x2f1   :  { %v3560_v18 = vsel %vm3537_vm9, %v3083_v59, %v3139_v44  ;;  %v11146_v51 = vunpack.i.h.bf16 %v11144_v61  ;;  %v3256_v30 = vrot.slane %v2102_v31, 3  ;;  %v3452_v31 = vrot.slane %v2103_v41, 6 }
 0x2f2   :  { %v3589_v1 = vsel %vm3566_vm10, %v3560_v18, %v3195_v7  ;;  %v2912_v43 = vsel %vm1695_vm4, %v13519_v34, %v11145_v29  ;;  %v3340_v7 = vrot.slane %v2103_v41, 4 }
 0x2f3   :  { %v3618_v15 = vsel %vm3595_vm11, %v3589_v1, %v3251_v32  ;;  %v2913_v13 = vsel %vm1695_vm4, %v13521_v38, %v11146_v51  ;;  %v3623_v16 = vsel %vm3595_vm11, %v3594_v47, %v3256_v30 }
 0x2f4   :  { %v3647_v54 = vsel %vm3624_vm12, %v3618_v15, %v3335_v21  ;;  %v2942_v53 = vsel %vm2916_vm7, %v2913_v13, %v11151_v9 }
 0x2f5   :  { %v3676_v12 = vsel %vm3653_vm13, %v3647_v54, %v3391_v37  ;;  %v13747_v26 = vpop.f32.mrb[4].mxu1  ;;  %v11159_v42 = vpop.permute.xlu1 %11158  ;;  %v3652_v37 = vsel %vm3624_vm12, %v3623_v16, %v3340_v7 }
 0x2f6   :  { %v3705_v6 = vsel %vm3682_vm14, %v3676_v12, %v3447_v11  ;;  %v3885_v4 = vpop.f32.mrb[5].mxu1  ;;  %v11154_v36 = vpop.permute.xlu0 %11153  ;;  %v11160_v56 = vunpack.i.l.bf16 %v11159_v42  ;;  %v11161_v14 = vunpack.i.h.bf16 %v11159_v42  ;;  %v3396_v11 = vrot.slane %v2103_v41, 5 }
 0x2f7   :  { %v3734_v23 = vsel %vm3711_vm15, %v3705_v6, %v3503_v50  ;;  %v11155_v40 = vunpack.i.l.bf16 %v11154_v36  ;;  %v11156_v45 = vunpack.i.h.bf16 %v11154_v36 }
 0x2f8   :  { %3927 = vmatmul.mubr.f32.gmra.mrb[22].mxu1 %v3734_v23  ;;  %v3681_v42 = vsel %vm3653_vm13, %v3652_v37, %v3396_v11 }
 0x2f9   :  { %9454 = vmatprep.mubr.msk.f32.mxu1 %vm1695_vm4, %v13644_v24  ;;  %v11169_v39 = vpop.permute.xlu1 %11168  ;;  %v2941_v24 = vsel %vm2916_vm7, %v2912_v43, %v11150_v63  ;;  %v2970_v20 = vsel %vm1125_vm3, %v2942_v53, %v11156_v45 }
 0x2fa   :  { %v2969_v10 = vsel %vm1125_vm3, %v2941_v24, %v11155_v40  ;;  %v11170_v49 = vunpack.i.l.bf16 %v11169_v39  ;;  %v11171_v38 = vunpack.i.h.bf16 %v11169_v39  ;;  %v2999_v19 = vsel %vm2973_vm8, %v2970_v20, %v11161_v14 }
 0x2fb   :  { %v2998_v57 = vsel %vm2973_vm8, %v2969_v10, %v11160_v56  ;;  %v3710_v40 = vsel %vm3682_vm14, %v3681_v42, %v3452_v31  ;;  %v3508_v56 = vrot.slane %v2103_v41, 7 }
 0x2fc   :  { %v3027_v52 = vsel %vm3002_vm1, %v2998_v57, %v11170_v49  ;;  %v3028_v59 = vsel %vm3002_vm1, %v2999_v19, %v11171_v38 }
 0x301   :  { %v11179_v46 = vpop.permute.xlu1 %11178 }
 0x302   :  { %v11180_v34 = vunpack.i.l.bf16 %v11179_v46  ;;  %v13760_v22 = vpop.permute.xlu0 %11163  ;;  %v11181_v3 = vunpack.i.h.bf16 %v11179_v46 }
 0x303   :  { %v11165_v12 = vunpack.i.l.bf16 %v13760_v22  ;;  %v11166_v9 = vunpack.i.h.bf16 %v13760_v22 }
 0x304   :  { %v3056_v48 = vsel %vm3031_vm2, %v3027_v52, %v11180_v34  ;;  %v3057_v55 = vsel %vm3031_vm2, %v3028_v59, %v11181_v3  ;;  %v3739_v34 = vsel %vm3711_vm15, %v3710_v40, %v3508_v56 }
 0x305   :  { %v11189_v27 = vpop.permute.xlu1 %11188  ;;  %v2914_v13 = vsel %vm1695_vm4, %v13586_v0, %v11165_v12  ;;  %v2915_v20 = vsel %vm1695_vm4, %v13588_v5, %v11166_v9  ;;  %v3961_v9 = vlaneseq }
 0x306   :  { %v11191_v58 = vunpack.i.h.bf16 %v11189_v27  ;;  %v11190_v2 = vunpack.i.l.bf16 %v11189_v27  ;;  %v11174_v21 = vpop.permute.xlu0 %11173 }
 0x307   :  { %v11175_v4 = vunpack.i.l.bf16 %v11174_v21  ;;  %v11176_v24 = vunpack.i.h.bf16 %v11174_v21 }
 0x308   :  { %v3085_v44 = vsel %vm3060_vm5, %v3056_v48, %v11190_v2  ;;  %v3086_v1 = vsel %vm3060_vm5, %v3057_v55, %v11191_v58 }
 0x309   :  { %v3141_v32 = vrot.slane %v3085_v44, 1  ;;  %v3197_v18 = vrot.slane %v3085_v44, 2  ;;  %v3253_v15 = vrot.slane %v3085_v44, 3  ;;  %v3337_v50 = vrot.slane %v3086_v1, 4 }
 0x30a   :  { %v3393_v29 = vrot.slane %v3086_v1, 5  ;;  %v3449_v63 = vrot.slane %v3086_v1, 6  ;;  %v3505_v17 = vrot.slane %v3086_v1, 7  ;;  %v2943_v46 = vsel %vm2916_vm7, %v2914_v13, %v11175_v4 }
 0x30b   :  { %v3562_v8 = vsel %vm3537_vm9, %v3085_v44, %v3141_v32  ;;  %v2944_v47 = vsel %vm2916_vm7, %v2915_v20, %v11176_v24  ;;  %v13837_v24 = vshrl.u32 %v3961_v9, 7 }
 0x30c   :  { %v3591_v54 = vsel %vm3566_vm10, %v3562_v8, %v3197_v18 }
 0x30d   :  { %v3620_v61 = vsel %vm3595_vm11, %v3591_v54, %v3253_v15  ;;  %v11199_v62 = vpop.permute.xlu1 %11198 }
 0x30e   :  { %v11184_v6 = vpop.permute.xlu0 %11183  ;;  %v13779_v23 = vpop.f32.mrb[6].mxu1  ;;  %v3649_v39 = vsel %vm3624_vm12, %v3620_v61, %v3337_v50  ;;  %v11200_v38 = vunpack.i.l.bf16 %v11199_v62  ;;  %v11201_v58 = vunpack.i.h.bf16 %v11199_v62 }
 0x30f   :  { %v11185_v36 = vunpack.i.l.bf16 %v11184_v6  ;;  %v3890_v51 = vpop.f32.mrb[7].mxu1  ;;  %v3678_v43 = vsel %vm3653_vm13, %v3649_v39, %v3393_v29  ;;  %v11186_v14 = vunpack.i.h.bf16 %v11184_v6 }
 0x310   :  { %v3707_v28 = vsel %vm3682_vm14, %v3678_v43, %v3449_v63  ;;  %v4784_v51 = vld [vmem:[%s16572_s5 + $0x188] sm:$0xff]  ;;  %v4767_v63 = vld [vmem:[%s16572_s5 + $0x100] sm:$0xff]  ;;  %v11553_v43 = vmov 1983009808  }
 0x311   :  { %v3736_v49 = vsel %vm3711_vm15, %v3707_v28, %v3505_v17  ;;  %v2971_v53 = vsel %vm1125_vm3, %v2943_v46, %v11185_v36  ;;  %v2972_v57 = vsel %vm1125_vm3, %v2944_v47, %v11186_v14  ;;  %v4783_v36 = vld [vmem:[%s16572_s5 + $0x180] sm:$0xff]  ;;  %v4768_v17 = vld [vmem:[%s16572_s5 + $0x108] sm:$0xff]  ;;  %v3959_v40 = vunpack.c.l.s4 %v11553_v43  ;;  %v4785_v14 = vld [vmem:[%s16572_s5 + $0x190] sm:$0xff] }
 0x312   :  { %v11194_v45 = vpop.permute.xlu0 %11193  ;;  %3932 = vmatmul.mubr.f32.gmra.mrb[24].mxu1 %v3736_v49  ;;  %v10329_v39 = vpack.c.bf16 %v4784_v51, %v4783_v36  ;;  %v10331_v13 = vpack.c.bf16 %v4768_v17, %v4767_v63 }
 0x313   :  { %v11195_v10 = vunpack.i.l.bf16 %v11194_v45  ;;  %v11196_v22 = vunpack.i.h.bf16 %v11194_v45  ;;  %9455 = vmatprep.mubr.msk.f32.mxu1 %vm1695_vm4, %v3739_v34  ;;  %v13833_v45 = vld [vmem:[%s16573_s4] ss:$0 sm:$0xff]  ;;  %v3960_v56 = vunpack.c.0.s8 %v3959_v40 }
 0x314   :  { %10330 = vmatprep.subr.bf16.mxu0 %v10329_v39  ;;  %v3874_v28 = vadd.f32 %v13833_v45, %v13694_v25 }
 0x315   :  { %v3000_v0 = vsel %vm2973_vm8, %v2971_v53, %v11195_v10  ;;  %v3001_v52 = vsel %vm2973_vm8, %v2972_v57, %v11196_v22  ;;  %10332 = vmatpush3.bf16.msra.mxu0 %v10331_v13  ;;  %v13840_v62 = vsub.s32 %v3960_v56, %v13837_v24  ;;  %v4786_v53 = vld [vmem:[%s16572_s5 + $0x198] sm:$0xff]  ;;  %v4769_v22 = vld [vmem:[%s16572_s5 + $0x110] sm:$0xff] }
 0x316   :  { %v3029_v41 = vsel %vm3002_vm1, %v3000_v0, %v11200_v38  ;;  %v3030_v59 = vsel %vm3002_vm1, %v3001_v52, %v11201_v58  ;;  %v3942_v46 = vmax.f32 %v3874_v28, 0.0  ;;  %v10333_v34 = vpack.c.bf16 %v4786_v53, %v4785_v14  ;;  %v4770_v0 = vld [vmem:[%s16572_s5 + $0x118] sm:$0xff] }
 0x317   :  { %v2857_v3 = vpop.permute.xlu1 %2856  ;;  %v10335_v47 = vpack.c.bf16 %v4770_v0, %v4769_v22  ;;  %vm11554_vm1 = vmmov 0  }
 0x318   :  { %v2745_v27 = vpop.permute.xlu0 %2744  ;;  %v3964_v10 = vrot.slane %v3942_v46, %v13840_v62  ;;  %v4026_v49 = vcombine.high %v3942_v46, %v3942_v46  ;;  %10334 = vmatprep.subr.bf16.mxu0 %v10333_v34 }
 0x319   :  { %v3058_v30 = vsel %vm3031_vm2, %v3029_v41, %v2745_v27  ;;  %10336 = vmatpush3.bf16.msra.mxu0 %v10335_v47  ;;  %v4787_v47 = vld [vmem:[%s16572_s5 + $0x1a0] sm:$0xff] }
 0x31a   :  { %v3087_v2 = vsel %vm3060_vm5, %v3058_v30, %v2857_v3  ;;  %v4000_v57 = vcombine.high %v3964_v10, %v3964_v10  ;;  %v4033_v3 = vrot.slane %v4026_v49, %v13840_v62  ;;  %v3988_v41 = vrot.slane %v3964_v10, 1 }
 0x31b   :  { %v3143_v19 = vrot.slane %v3087_v2, 1  ;;  %v3199_v48 = vrot.slane %v3087_v2, 2  ;;  %v2859_v16 = vpop.permute.xlu1 %2858  ;;  %v3255_v55 = vrot.slane %v3087_v2, 3 }
 0x31c   :  { %v2747_v5 = vpop.permute.xlu0 %2746  ;;  %v4014_v58 = vrot.slane %v4000_v57, 1 }
 0x31d   :  { %v3564_v44 = vsel %vm3537_vm9, %v3087_v2, %v3143_v19  ;;  %v3059_v7 = vsel %vm3031_vm2, %v3030_v59, %v2747_v5  ;;  %vm3979_vm9 = vcmask 1043459   ;;  %v4051_v2 = vrot.slane %v4033_v3, 1 }
 0x31e   :  { %v3593_v32 = vsel %vm3566_vm10, %v3564_v44, %v3199_v48  ;;  %v3088_v18 = vsel %vm3060_vm5, %v3059_v7, %v2859_v16  ;;  %vm3981_vm10 = vcmask 1045509   ;;  %v4062_v59 = vcombine.high %v4033_v3, %v4033_v3 }
 0x31f   :  { %v3339_v21 = vrot.slane %v3088_v18, 4  ;;  %v3395_v1 = vrot.slane %v3088_v18, 5  ;;  %v3622_v37 = vsel %vm3595_vm11, %v3593_v32, %v3255_v55  ;;  %v3451_v15 = vrot.slane %v3088_v18, 6 }
 0x320   :  { %v3507_v11 = vrot.slane %v3088_v18, 7  ;;  %vm3983_vm11 = vcmask 1047559   ;;  %v3879_v44 = vadd.f32 %v13833_v45, %v13717_v60  ;;  %vm6190_vm5 = vcmask 253952  }
 0x321   :  { %v3651_v8 = vsel %vm3624_vm12, %v3622_v37, %v3339_v21  ;;  %vm3986_vm12 = vcmask 254976   ;;  %6191 = vst.msk [vmem:[#allocation4 + $0x8] sm:$0x1] %vm6190_vm5, %v11544_v33  ;;  %6193 = vst.msk [vmem:[#allocation4 + $0x18] sm:$0x1] %vm6190_vm5, %v11544_v33 }
 0x322   :  { %v3680_v54 = vsel %vm3653_vm13, %v3651_v8, %v3395_v1  ;;  %vm3998_vm13 = vcmask 517376   ;;  %6195 = vst.msk [vmem:[#allocation4 + $0x28] sm:$0x1] %vm6190_vm5, %v11544_v33  ;;  %6197 = vst.msk [vmem:[#allocation4 + $0x38] sm:$0x1] %vm6190_vm5, %v11544_v33 }
 0x323   :  { %v3709_v12 = vsel %vm3682_vm14, %v3680_v54, %v3451_v15  ;;  %vm4012_vm14 = vcmask 779776   ;;  %6199 = vst.msk [vmem:[#allocation4 + $0x48] sm:$0x1] %vm6190_vm5, %v11544_v33  ;;  %6201 = vst.msk [vmem:[#allocation4 + $0x58] sm:$0x1] %vm6190_vm5, %v11544_v33 }
 0x324   :  { %v3738_v50 = vsel %vm3711_vm15, %v3709_v12, %v3507_v11  ;;  %vm4024_vm15 = vcmask 1042176   ;;  %6203 = vst.msk [vmem:[#allocation4 + $0x68] sm:$0x1] %vm6190_vm5, %v11544_v33  ;;  %6205 = vst.msk [vmem:[#allocation4 + $0x78] sm:$0x1] %vm6190_vm5, %v11544_v33 }
 0x325   :  { %3937 = vmatmul.mubr.f32.gmra.mrb[26].mxu1 %v3738_v50  ;;  %v13812_v6 = vpop.f32.mrb[8].mxu1  ;;  %6207 = vst.msk [vmem:[#allocation4 + $0x88] sm:$0x1] %vm6190_vm5, %v11544_v33  ;;  %6209 = vst.msk [vmem:[#allocation4 + $0x98] sm:$0x1] %vm6190_vm5, %v11544_v33 }
 0x326   :  { %v3895_v61 = vpop.f32.mrb[9].mxu1  ;;  %6211 = vst.msk [vmem:[#allocation4 + $0xa8] sm:$0x1] %vm6190_vm5, %v11544_v33  ;;  %6213 = vst.msk [vmem:[#allocation4 + $0xb8] sm:$0x1] %vm6190_vm5, %v11544_v33 }
 0x327   :  { %6215 = vst.msk [vmem:[#allocation4 + $0xc8] sm:$0x1] %vm6190_vm5, %v11544_v33  ;;  %6217 = vst.msk [vmem:[#allocation4 + $0xd8] sm:$0x1] %vm6190_vm5, %v11544_v33 }
 0x328   :  { %6219 = vst.msk [vmem:[#allocation4 + $0xe8] sm:$0x1] %vm6190_vm5, %v11544_v33  ;;  %6221 = vst.msk [vmem:[#allocation4 + $0xf8] sm:$0x1] %vm6190_vm5, %v11544_v33 }
 0x33e   :  { %v13814_v42 = vpop.f32.mrb[10].mxu1 }
 0x33f   :  { %v3900_v4 = vpop.f32.mrb[11].mxu1 }
 0x355   :  { %v13816_v29 = vpop.f32.mrb[12].mxu1 }
 0x356   :  { %v3905_v31 = vpop.f32.mrb[13].mxu1 }
 0x36e   :  { %v3908_v25 = vpop.f32.mrb[14].mxu1 }
 0x36f   :  { %v3909_v20 = vadd.f32 %v13833_v45, %v3908_v25  ;;  %v3910_v38 = vpop.f32.mrb[15].mxu1 }
 0x371   :  { %v3949_v27 = vmax.f32 %v3909_v20, 0.0 }
 0x373   :  { %v3971_v30 = vrot.slane %v3949_v27, %v13840_v62  ;;  %v4034_v52 = vcombine.high %v3949_v27, %v3949_v27 }
 0x375   :  { %v4041_v19 = vrot.slane %v4034_v52, %v13840_v62  ;;  %v3991_v48 = vsel %vm3977_vm6, %v3971_v30, %v3988_v41  ;;  %v4001_v16 = vcombine.high %v3971_v30, %v3971_v30  ;;  %v3976_v5 = vrot.slane %v3971_v30, 7  ;;  %v4789_v52 = vld [vmem:[%s16572_s5 + $0x1b0] sm:$0xff] }
 0x376   :  { %v3992_v7 = vsel %vm3979_vm9, %v3971_v30, %v3991_v48 }
 0x377   :  { %v3993_v55 = vsel %vm3981_vm10, %v3971_v30, %v3992_v7  ;;  %v4054_v32 = vsel %vm3977_vm6, %v4041_v19, %v4051_v2  ;;  %v4017_v18 = vsel %vm3977_vm6, %v4001_v16, %v4014_v58  ;;  %v4063_v21 = vcombine.high %v4041_v19, %v4041_v19  ;;  %v4790_v58 = vld [vmem:[%s16572_s5 + $0x1b8] sm:$0xff]  ;;  %v4751_v7 = vld [vmem:[%s16572_s5 + $0x80] sm:$0xff] }
 0x378   :  { %v3994_v1 = vsel %vm3983_vm11, %v3971_v30, %v3993_v55  ;;  %v4055_v37 = vsel %vm3979_vm9, %v4041_v19, %v4054_v32  ;;  %v4018_v15 = vsel %vm3979_vm9, %v4001_v16, %v4017_v18  ;;  %v4004_v8 = vrot.slane %v4001_v16, 7  ;;  %v4772_v30 = vld [vmem:[%s16572_s5 + $0x128] sm:$0xff] }
 0x379   :  { %3995 = vrot.lane.b32.xlu0 %v3994_v1, %s11545_s28  ;;  %v4056_v60 = vsel %vm3981_vm10, %v4041_v19, %v4055_v37  ;;  %v4019_v11 = vsel %vm3981_vm10, %v4001_v16, %v4018_v15  ;;  %v4066_v54 = vrot.slane %v4063_v21, 7  ;;  %v3978_v12 = vsel %vm3977_vm6, %v3976_v5, %v3964_v10  ;;  %v4752_v1 = vld [vmem:[%s16572_s5 + $0x88] sm:$0xff]  ;;  %v4735_v37 = vld [vmem:[%s16572_s5] sm:$0xff] }
 0x37a   :  { %v4057_v50 = vsel %vm3983_vm11, %v4041_v19, %v4056_v60  ;;  %v4020_v61 = vsel %vm3983_vm11, %v4001_v16, %v4019_v11  ;;  %v4005_v4 = vsel %vm3977_vm6, %v4004_v8, %v4000_v57  ;;  %v3980_v31 = vsel %vm3979_vm9, %v3976_v5, %v3978_v12  ;;  %v4788_v57 = vld [vmem:[%s16572_s5 + $0x1a8] sm:$0xff] }
 0x37b   :  { %4058 = vrot.lane.b32.xlu1 %v4057_v50, %s11545_s28  ;;  %v4067_v36 = vsel %vm3977_vm6, %v4066_v54, %v4062_v59  ;;  %v4006_v51 = vsel %vm3979_vm9, %v4004_v8, %v4005_v4  ;;  %v3982_v63 = vsel %vm3981_vm10, %v3976_v5, %v3980_v31  ;;  %v4044_v39 = vrot.slane %v4041_v19, 7  ;;  %v4773_v59 = vld [vmem:[%s16572_s5 + $0x130] sm:$0xff]  ;;  %v4736_v15 = vld [vmem:[%s16572_s5 + $0x8] sm:$0xff] }
 0x37c   :  { %v4068_v17 = vsel %vm3979_vm9, %v4066_v54, %v4067_v36  ;;  %v4007_v43 = vsel %vm3981_vm10, %v4004_v8, %v4006_v51  ;;  %v3984_v40 = vsel %vm3983_vm11, %v3976_v5, %v3982_v63  ;;  %v3943_v10 = vmax.f32 %v3879_v44, 0.0  ;;  %v4774_v44 = vld [vmem:[%s16572_s5 + $0x138] sm:$0xff] }
 0x37d   :  { %4021 = vrot.lane.b32.xlu0 %v4020_v61, %s11551_s24  ;;  %v4069_v9 = vsel %vm3981_vm10, %v4066_v54, %v4068_v17  ;;  %v4008_v13 = vsel %vm3983_vm11, %v4004_v8, %v4007_v43  ;;  %3987 = vst.msk [vmem:[#allocation3] sm:$0x3] %vm3986_vm12, %v3984_v40  ;;  %v4045_v28 = vsel %vm3977_vm6, %v4044_v39, %v4033_v3  ;;  %v4771_v3 = vld [vmem:[%s16572_s5 + $0x120] sm:$0xff] }
 0x37e   :  { %v4070_v56 = vsel %vm3983_vm11, %v4066_v54, %v4069_v9  ;;  %v4046_v46 = vsel %vm3979_vm9, %v4044_v39, %v4045_v28  ;;  %v4083_v53 = vrot.slane %v3943_v10, %v13840_v62  ;;  %v4135_v34 = vcombine.high %v3943_v10, %v3943_v10 }
 0x37f   :  { %4071 = vrot.lane.b32.xlu1 %v4070_v56, %s11548_s26  ;;  %v4047_v49 = vsel %vm3981_vm10, %v4044_v39, %v4046_v46  ;;  %v10337_v41 = vpack.c.bf16 %v4788_v57, %v4787_v47  ;;  %v10339_v2 = vpack.c.bf16 %v4772_v30, %v4771_v3  ;;  %v10341_v19 = vpack.c.bf16 %v4790_v58, %v4789_v52  ;;  %v4756_v30 = vld [vmem:[%s16572_s5 + $0xa8] sm:$0xff]  ;;  %v4791_v52 = vld [vmem:[%s16572_s5 + $0x1c0] sm:$0xff] }
 0x380   :  { %v4048_v14 = vsel %vm3983_vm11, %v4044_v39, %v4047_v49  ;;  %v4111_v20 = vcombine.high %v4083_v53, %v4083_v53  ;;  %v4142_v38 = vrot.slane %v4135_v34, %v13840_v62  ;;  %v4102_v48 = vrot.slane %v4083_v53, 1 }
 0x381   :  { %4009 = vrot.lane.b32.xlu0 %v4008_v13, %s11548_s26  ;;  %4050 = vst.msk [vmem:[#allocation3 + $0x2] sm:$0x3] %vm3986_vm12, %v4048_v14  ;;  %10338 = vmatprep.subr.bf16.mxu0 %v10337_v41  ;;  %v10343_v21 = vpack.c.bf16 %v4774_v44, %v4773_v59  ;;  %v3884_v12 = vadd.f32 %v13833_v45, %v13747_v26  ;;  %v4753_v14 = vld [vmem:[%s16572_s5 + $0x90] sm:$0xff]  ;;  %v4755_v41 = vld [vmem:[%s16572_s5 + $0xa0] sm:$0xff]  ;;  %v4776_v44 = vld [vmem:[%s16572_s5 + $0x148] sm:$0xff] }
 0x382   :  { %v4124_v55 = vrot.slane %v4111_v20, 1  ;;  %v4162_v32 = vrot.slane %v4142_v38, 1  ;;  %v4171_v18 = vcombine.high %v4142_v38, %v4142_v38  ;;  %10340 = vmatpush3.bf16.msra.mxu0 %v10339_v2  ;;  %v10297_v61 = vpack.c.bf16 %v4752_v1, %v4751_v7  ;;  %v4775_v59 = vld [vmem:[%s16572_s5 + $0x140] sm:$0xff]  ;;  %v4740_v1 = vld [vmem:[%s16572_s5 + $0x28] sm:$0xff] }
 0x383   :  { %10342 = vmatprep.subr.bf16.mxu0 %v10341_v19  ;;  %v10299_v4 = vpack.c.bf16 %v4736_v15, %v4735_v37  ;;  %v3944_v34 = vmax.f32 %v3884_v12, 0.0  ;;  %v10305_v15 = vpack.c.bf16 %v4756_v30, %v4755_v41  ;;  %v10347_v12 = vpack.c.bf16 %v4776_v44, %v4775_v59  ;;  %v4777_v44 = vld [vmem:[%s16572_s5 + $0x150] sm:$0xff] }
 0x384   :  { %10298 = vmatprep.subr.bf16.mxu1 %v10297_v61 }
 0x385   :  { %10300 = vmatpush3.bf16.msra.mxu1 %v10299_v4 }
 0x386   :  { %v3913_v25 = vpop.f32.mrb[16].mxu1  ;;  %10344 = vmatpush3.bf16.msra.mxu0 %v10343_v21  ;;  %v4739_v21 = vld [vmem:[%s16572_s5 + $0x20] sm:$0xff] }
 0x387   :  { %v3914_v22 = vadd.f32 %v13833_v45, %v3913_v25  ;;  %v3915_v0 = vpop.f32.mrb[17].mxu1 }
 0x389   :  { %v3950_v27 = vmax.f32 %v3914_v22, 0.0 }
 0x38b   :  { %v13918_v16 = vrot.slane %v3950_v27, %v13840_v62  ;;  %v4143_v5 = vcombine.high %v3950_v27, %v3950_v27 }
 0x38d   :  { %v4150_v8 = vrot.slane %v4143_v5, %v13840_v62  ;;  %v4093_v60 = vrot.slane %v13918_v16, 7  ;;  %v4112_v11 = vcombine.high %v13918_v16, %v13918_v16  ;;  %v4105_v54 = vsel %vm3977_vm6, %v13918_v16, %v4102_v48  ;;  %v4792_v5 = vld [vmem:[%s16572_s5 + $0x1c8] sm:$0xff] }
 0x38e   :  { %v4106_v50 = vsel %vm3979_vm9, %v13918_v16, %v4105_v54  ;;  %v10345_v54 = vpack.c.bf16 %v4792_v5, %v4791_v52 }
 0x38f   :  { %v4094_v31 = vsel %vm3977_vm6, %v4093_v60, %v4083_v53  ;;  %v4127_v36 = vsel %vm3977_vm6, %v4112_v11, %v4124_v55  ;;  %v4172_v51 = vcombine.high %v4150_v8, %v4150_v8  ;;  %v4115_v63 = vrot.slane %v4112_v11, 7  ;;  %v4754_v53 = vld [vmem:[%s16572_s5 + $0x98] sm:$0xff] }
 0x390   :  { %v4095_v39 = vsel %vm3979_vm9, %v4093_v60, %v4094_v31  ;;  %v4128_v17 = vsel %vm3979_vm9, %v4112_v11, %v4127_v36  ;;  %v4153_v43 = vrot.slane %v4150_v8, 7  ;;  %v4165_v40 = vsel %vm3977_vm6, %v4150_v8, %v4162_v32  ;;  %10346 = vmatprep.subr.bf16.mxu0 %v10345_v54  ;;  %v4741_v31 = vld [vmem:[%s16572_s5 + $0x30] sm:$0xff]  ;;  %v4742_v36 = vld [vmem:[%s16572_s5 + $0x38] sm:$0xff]  ;;  %v4748_v54 = vld [vmem:[%s16572_s5 + $0x68] sm:$0xff] }
 0x391   :  { %v4096_v26 = vsel %vm3981_vm10, %v4093_v60, %v4095_v39  ;;  %v4129_v9 = vsel %vm3981_vm10, %v4112_v11, %v4128_v17  ;;  %v4175_v13 = vrot.slane %v4172_v51, 7  ;;  %v4116_v28 = vsel %vm3977_vm6, %v4115_v63, %v4111_v20  ;;  %v4737_v20 = vld [vmem:[%s16572_s5 + $0x10] sm:$0xff]  ;;  %10348 = vmatpush3.bf16.msra.mxu0 %v10347_v12  ;;  %v4759_v39 = vld [vmem:[%s16572_s5 + $0xc0] sm:$0xff]  ;;  %v4760_v17 = vld [vmem:[%s16572_s5 + $0xc8] sm:$0xff] }
 0x392   :  { %v4097_v56 = vsel %vm3983_vm11, %v4093_v60, %v4096_v26  ;;  %v4130_v46 = vsel %vm3983_vm11, %v4112_v11, %v4129_v9  ;;  %v4117_v10 = vsel %vm3979_vm9, %v4115_v63, %v4116_v28  ;;  %v4154_v49 = vsel %vm3977_vm6, %v4153_v43, %v4142_v38  ;;  %v4738_v38 = vld [vmem:[%s16572_s5 + $0x18] sm:$0xff]  ;;  %v4744_v28 = vld [vmem:[%s16572_s5 + $0x48] sm:$0xff]  ;;  %v4795_v12 = vld [vmem:[%s16572_s5 + $0x1e0] sm:$0xff] }
 0x393   :  { %4098 = vrot.lane.b32.xlu1 %v4097_v56, %s11551_s24  ;;  %4131 = vrot.lane.b32.xlu0 %v4130_v46, %s11548_s26  ;;  %v4176_v25 = vsel %vm3977_vm6, %v4175_v13, %v4171_v18  ;;  %v4118_v22 = vsel %vm3981_vm10, %v4115_v63, %v4117_v10  ;;  %v4155_v0 = vsel %vm3979_vm9, %v4153_v43, %v4154_v49  ;;  %v4761_v46 = vld [vmem:[%s16572_s5 + $0xd0] sm:$0xff]  ;;  %v4762_v10 = vld [vmem:[%s16572_s5 + $0xd8] sm:$0xff] }
 0x394   :  { %v4177_v47 = vsel %vm3979_vm9, %v4175_v13, %v4176_v25  ;;  %v4119_v57 = vsel %vm3983_vm11, %v4115_v63, %v4118_v22  ;;  %v4156_v3 = vsel %vm3981_vm10, %v4153_v43, %v4155_v0  ;;  %v4166_v27 = vsel %vm3979_vm9, %v4150_v8, %v4165_v40  ;;  %v14059_v49 = vld [vmem:[%s16572_s5 + $0x50] sm:$0xff]  ;;  %v4746_v25 = vld [vmem:[%s16572_s5 + $0x58] sm:$0xff] }
 0x395   :  { %v4178_v58 = vsel %vm3981_vm10, %v4175_v13, %v4177_v47  ;;  %v4157_v2 = vsel %vm3983_vm11, %v4153_v43, %v4156_v3  ;;  %v4167_v19 = vsel %vm3981_vm10, %v4150_v8, %v4166_v27  ;;  %v4107_v48 = vsel %vm3981_vm10, %v13918_v16, %v4106_v50  ;;  %v4793_v22 = vld [vmem:[%s16572_s5 + $0x1d0] sm:$0xff]  ;;  %v4794_v0 = vld [vmem:[%s16572_s5 + $0x1d8] sm:$0xff] }
 0x396   :  { %v4179_v7 = vsel %vm3983_vm11, %v4175_v13, %v4178_v58  ;;  %v4168_v55 = vsel %vm3983_vm11, %v4150_v8, %v4167_v19  ;;  %v4108_v32 = vsel %vm3983_vm11, %v13918_v16, %v4107_v48  ;;  %v10301_v18 = vpack.c.bf16 %v4754_v53, %v4753_v14  ;;  %v4757_v16 = vld [vmem:[%s16572_s5 + $0xb0] sm:$0xff]  ;;  %v4758_v8 = vld [vmem:[%s16572_s5 + $0xb8] sm:$0xff]  ;;  %v4743_v13 = vld [vmem:[%s16572_s5 + $0x40] sm:$0xff] }
 0x397   :  { %4180 = vrot.lane.b32.xlu1 %v4179_v7, %s11545_s28  ;;  %4120 = vrot.lane.b32.xlu0 %v4119_v57, %s11545_s28  ;;  %4170 = vst.msk [vmem:[#allocation3 + $0x6] sm:$0x3] %vm3986_vm12, %v4168_v55  ;;  %4110 = vst.msk [vmem:[#allocation3 + $0x4] sm:$0x3] %vm3986_vm12, %v4108_v32  ;;  %v10303_v37 = vpack.c.bf16 %v4738_v38, %v4737_v20  ;;  %v4192_v60 = vrot.slane %v3944_v34, %v13840_v62  ;;  %v4778_v7 = vld [vmem:[%s16572_s5 + $0x158] sm:$0xff] }
 0x398   :  { %v4244_v11 = vcombine.high %v3944_v34, %v3944_v34  ;;  %10302 = vmatprep.subr.bf16.mxu1 %v10301_v18  ;;  %v10307_v50 = vpack.c.bf16 %v4740_v1, %v4739_v21  ;;  %v10309_v4 = vpack.c.bf16 %v4758_v8, %v4757_v16  ;;  %v10311_v9 = vpack.c.bf16 %v4742_v36, %v4741_v31  ;;  %v4763_v1 = vld [vmem:[%s16572_s5 + $0xe0] sm:$0xff] }
 0x399   :  { %10304 = vmatpush3.bf16.msra.mxu1 %v10303_v37  ;;  %v14039_v43 = vcombine.high %v4192_v60, %v4192_v60  ;;  %v10313_v56 = vpack.c.bf16 %v4760_v17, %v4759_v39  ;;  %v4211_v14 = vrot.slane %v4192_v60, 1  ;;  %v10315_v47 = vpack.c.bf16 %v4744_v28, %v4743_v13  ;;  %v4764_v37 = vld [vmem:[%s16572_s5 + $0xe8] sm:$0xff]  ;;  %v4766_v13 = vld [vmem:[%s16572_s5 + $0xf8] sm:$0xff] }
 0x39a   :  { %10306 = vmatprep.subr.bf16.mxu1 %v10305_v15  ;;  %v14042_v40 = vrot.slane %v4244_v11, %v13840_v62  ;;  %v10349_v57 = vpack.c.bf16 %v4794_v0, %v4793_v22  ;;  %v10317_v58 = vpack.c.bf16 %v4762_v10, %v4761_v46  ;;  %v4747_v15 = vld [vmem:[%s16572_s5 + $0x60] sm:$0xff]  ;;  %v10351_v17 = vpack.c.bf16 %v4778_v7, %v4777_v44 }
 0x39b   :  { %v3918_v61 = vpop.f32.mrb[18].mxu1  ;;  %4158 = vrot.lane.b32.xlu0 %v4157_v2, %s11551_s24  ;;  %v4233_v20 = vrot.slane %v14039_v43, 1  ;;  %v10319_v2 = vpack.c.bf16 %v4746_v25, %v14059_v49  ;;  %v10323_v46 = vpack.c.bf16 %v4748_v54, %v4747_v15  ;;  %v4797_v49 = vld [vmem:[%s16572_s5 + $0x1f0] sm:$0xff] }
 0x39c   :  { %v3919_v51 = vadd.f32 %v13833_v45, %v3918_v61  ;;  %v3920_v63 = vpop.f32.mrb[19].mxu1  ;;  %v4271_v38 = vrot.slane %v14042_v40, 1  ;;  %10350 = vmatprep.subr.bf16.mxu0 %v10349_v57  ;;  %v4782_v57 = vld [vmem:[%s16572_s5 + $0x178] sm:$0xff] }
 0x39d   :  { %10308 = vmatpush3.bf16.msra.mxu1 %v10307_v50  ;;  %v4796_v50 = vld [vmem:[%s16572_s5 + $0x1e8] sm:$0xff]  ;;  %10352 = vmatpush3.bf16.msra.mxu0 %v10351_v17 }
 0x39e   :  { %v3951_v26 = vmax.f32 %v3919_v51, 0.0  ;;  %10310 = vmatprep.subr.bf16.mxu1 %v10309_v4  ;;  %v4779_v51 = vld [vmem:[%s16572_s5 + $0x160] sm:$0xff]  ;;  %v4780_v63 = vld [vmem:[%s16572_s5 + $0x168] sm:$0xff]  ;;  %v10353_v10 = vpack.c.bf16 %v4796_v50, %v4795_v12 }
 0x39f   :  { %v10355_v25 = vpack.c.bf16 %v4780_v63, %v4779_v51 }
 0x3a0   :  { %v4199_v53 = vrot.slane %v3951_v26, %v13840_v62  ;;  %v4252_v34 = vcombine.high %v3951_v26, %v3951_v26  ;;  %v10321_v26 = vpack.c.bf16 %v4764_v37, %v4763_v1  ;;  %10354 = vmatprep.subr.bf16.mxu0 %v10353_v10 }
 0x3a1   :  { %10312 = vmatpush3.bf16.msra.mxu1 %v10311_v9  ;;  %v4765_v9 = vld [vmem:[%s16572_s5 + $0xf0] sm:$0xff]  ;;  %10356 = vmatpush3.bf16.msra.mxu0 %v10355_v25 }
 0x3a2   :  { %v14074_v3 = vrot.slane %v4252_v34, %v13840_v62  ;;  %v4202_v27 = vrot.slane %v4199_v53, 7  ;;  %v4223_v41 = vcombine.high %v4199_v53, %v4199_v53  ;;  %v4214_v30 = vsel %vm3977_vm6, %v4199_v53, %v4211_v14  ;;  %10314 = vmatprep.subr.bf16.mxu1 %v10313_v56  ;;  %v4798_v14 = vld [vmem:[%s16572_s5 + $0x1f8] sm:$0xff] }
 0x3a3   :  { %v4215_v52 = vsel %vm3979_vm9, %v4199_v53, %v4214_v30  ;;  %v10357_v30 = vpack.c.bf16 %v4798_v14, %v4797_v49  ;;  %v4815_v49 = vld [vmem:[%s16572_s5 + $0x280] sm:$0xff]  ;;  %v4816_v14 = vld [vmem:[%s16572_s5 + $0x288] sm:$0xff] }
 0x3a4   :  { %v4203_v19 = vsel %vm3977_vm6, %v4202_v27, %v4192_v60  ;;  %v4236_v48 = vsel %vm3977_vm6, %v4223_v41, %v4233_v20  ;;  %v4216_v5 = vsel %vm3981_vm10, %v4199_v53, %v4215_v52  ;;  %v4274_v59 = vsel %vm3977_vm6, %v14074_v3, %v4271_v38  ;;  %v4750_v38 = vld [vmem:[%s16572_s5 + $0x78] sm:$0xff] }
 0x3a5   :  { %v4204_v55 = vsel %vm3979_vm9, %v4202_v27, %v4203_v19  ;;  %v4237_v32 = vsel %vm3979_vm9, %v4223_v41, %v4236_v48  ;;  %v4217_v18 = vsel %vm3983_vm11, %v4199_v53, %v4216_v5  ;;  %v4275_v21 = vsel %vm3979_vm9, %v14074_v3, %v4274_v59  ;;  %10316 = vmatpush3.bf16.msra.mxu1 %v10315_v47  ;;  %v4781_v47 = vld [vmem:[%s16572_s5 + $0x170] sm:$0xff] }
 0x3a6   :  { %v4205_v16 = vsel %vm3981_vm10, %v4202_v27, %v4204_v55  ;;  %v4238_v8 = vsel %vm3981_vm10, %v4223_v41, %v4237_v32  ;;  %v4276_v60 = vsel %vm3981_vm10, %v14074_v3, %v4275_v21  ;;  %v4262_v11 = vrot.slane %v14074_v3, 7  ;;  %10318 = vmatprep.subr.bf16.mxu1 %v10317_v58  ;;  %10358 = vmatprep.subr.bf16.mxu0 %v10357_v30 }
 0x3a7   :  { %v4206_v61 = vsel %vm3983_vm11, %v4202_v27, %v4205_v16  ;;  %v4239_v4 = vsel %vm3983_vm11, %v4223_v41, %v4238_v8  ;;  %v4277_v31 = vsel %vm3983_vm11, %v14074_v3, %v4276_v60  ;;  %v4226_v36 = vrot.slane %v4223_v41, 7 }
 0x3a8   :  { %4207 = vrot.lane.b32.xlu1 %v4206_v61, %s11548_s26  ;;  %4240 = vrot.lane.b32.xlu0 %v4239_v4, %s11545_s28  ;;  %v4263_v39 = vsel %vm3977_vm6, %v4262_v11, %v14042_v40  ;;  %v10325_v20 = vpack.c.bf16 %v4766_v13, %v4765_v9  ;;  %v3889_v27 = vadd.f32 %v13833_v45, %v13779_v23 }
 0x3a9   :  { %v4264_v28 = vsel %vm3979_vm9, %v4262_v11, %v4263_v39  ;;  %v4227_v56 = vsel %vm3977_vm6, %v4226_v36, %v14039_v43  ;;  %10320 = vmatpush3.bf16.msra.mxu1 %v10319_v2  ;;  %v4749_v43 = vld [vmem:[%s16572_s5 + $0x70] sm:$0xff]  ;;  %v4283_v52 = vcombine.high %v14074_v3, %v14074_v3  ;;  %v10359_v2 = vpack.c.bf16 %v4782_v57, %v4781_v47  ;;  %v4847_v47 = vld [vmem:[%s16572_s5 + $0x380] sm:$0xff]  ;;  %v4848_v57 = vld [vmem:[%s16572_s5 + $0x388] sm:$0xff] }
 0x3aa   :  { %v4265_v53 = vsel %vm3981_vm10, %v4262_v11, %v4264_v28  ;;  %v4228_v34 = vsel %vm3979_vm9, %v4226_v36, %v4227_v56  ;;  %10322 = vmatprep.subr.bf16.mxu1 %v10321_v26  ;;  %v10327_v58 = vpack.c.bf16 %v4750_v38, %v4749_v43  ;;  %v4282_v19 = vcombine.high %v14042_v40, %v14042_v40 }
 0x3ab   :  { %v4266_v22 = vsel %vm3983_vm11, %v4262_v11, %v4265_v53  ;;  %v4229_v0 = vsel %vm3981_vm10, %v4226_v36, %v4228_v34  ;;  %v4286_v23 = vrot.slane %v4283_v52, 7  ;;  %v3945_v48 = vmax.f32 %v3889_v27, 0.0  ;;  %10360 = vmatpush3.bf16.msra.mxu0 %v10359_v2 }
 0x3ac   :  { %4218 = vrot.lane.b32.xlu1 %v4217_v18, %s11551_s24  ;;  %4278 = vrot.lane.b32.xlu0 %v4277_v31, %s11551_s24  ;;  %v4230_v41 = vsel %vm3983_vm11, %v4226_v36, %v4229_v0  ;;  %v3894_v31 = vadd.f32 %v13833_v45, %v13812_v6  ;;  %v10361_v52 = vpack.c.bf16 %v4816_v14, %v4815_v49 }
 0x3ad   :  { %4232 = vst.msk [vmem:[#allocation3 + $0x8] sm:$0x3] %vm3986_vm12, %v4230_v41  ;;  %10324 = vmatpush3.bf16.msra.mxu1 %v10323_v46  ;;  %v4287_v5 = vsel %vm3977_vm6, %v4286_v23, %v4282_v19  ;;  %v4353_v44 = vcombine.high %v3945_v48, %v3945_v48  ;;  %v4301_v40 = vrot.slane %v3945_v48, %v13840_v62 }
 0x3ae   :  { %10326 = vmatprep.subr.bf16.mxu1 %v10325_v20  ;;  %v4288_v59 = vsel %vm3979_vm9, %v4286_v23, %v4287_v5 }
 0x3af   :  { %v4289_v3 = vsel %vm3981_vm10, %v4286_v23, %v4288_v59  ;;  %v4360_v21 = vrot.slane %v4353_v44, %v13840_v62  ;;  %v4331_v37 = vcombine.high %v4301_v40, %v4301_v40  ;;  %v4320_v15 = vrot.slane %v4301_v40, 1 }
 0x3b0   :  { %4267 = vrot.lane.b32.xlu0 %v4266_v22, %s11548_s26  ;;  %v4290_v7 = vsel %vm3983_vm11, %v4286_v23, %v4289_v3  ;;  %v3946_v23 = vmax.f32 %v3894_v31, 0.0  ;;  %v10393_v59 = vpack.c.bf16 %v4848_v57, %v4847_v47 }
 0x3b1   :  { %10328 = vmatpush3.bf16.msra.mxu1 %v10327_v58  ;;  %4292 = vst.msk [vmem:[#allocation3 + $0xa] sm:$0x3] %vm3986_vm12, %v4290_v7  ;;  %v4380_v60 = vrot.slane %v4360_v21, 1  ;;  %v4344_v61 = vrot.slane %v4331_v37, 1  ;;  %v4391_v4 = vcombine.high %v4360_v21, %v4360_v21 }
 0x3b2   :  { %10362 = vmatprep.subr.bf16.mxu1 %v10361_v52  ;;  %10394 = vmatprep.subr.bf16.mxu0 %v10393_v59  ;;  %v4464_v7 = vcombine.high %v3946_v23, %v3946_v23 }
 0x3b5   :  { %v3923_v55 = vpop.f32.mrb[20].mxu1 }
 0x3b6   :  { %v3924_v32 = vadd.f32 %v13833_v45, %v3923_v55  ;;  %v3925_v18 = vpop.f32.mrb[21].mxu1 }
 0x3b8   :  { %v3952_v1 = vmax.f32 %v3924_v32, 0.0 }
 0x3ba   :  { %v4308_v16 = vrot.slane %v3952_v1, %v13840_v62  ;;  %v4361_v8 = vcombine.high %v3952_v1, %v3952_v1 }
 0x3bc   :  { %v4332_v11 = vcombine.high %v4308_v16, %v4308_v16  ;;  %v4368_v54 = vrot.slane %v4361_v8, %v13840_v62  ;;  %v4323_v12 = vsel %vm3977_vm6, %v4308_v16, %v4320_v15  ;;  %v4311_v50 = vrot.slane %v4308_v16, 7 }
 0x3bd   :  { %v4324_v36 = vsel %vm3979_vm9, %v4308_v16, %v4323_v12 }
 0x3be   :  { %v4325_v51 = vsel %vm3981_vm10, %v4308_v16, %v4324_v36  ;;  %v4383_v63 = vsel %vm3977_vm6, %v4368_v54, %v4380_v60  ;;  %v4312_v39 = vsel %vm3977_vm6, %v4311_v50, %v4301_v40  ;;  %v4371_v17 = vrot.slane %v4368_v54, 7 }
 0x3bf   :  { %v4326_v26 = vsel %vm3983_vm11, %v4308_v16, %v4325_v51  ;;  %v4384_v9 = vsel %vm3979_vm9, %v4368_v54, %v4383_v63  ;;  %v4313_v13 = vsel %vm3979_vm9, %v4311_v50, %v4312_v39  ;;  %v4335_v28 = vrot.slane %v4332_v11, 7 }
 0x3c0   :  { %4327 = vrot.lane.b32.xlu1 %v4326_v26, %s11548_s26  ;;  %v4385_v6 = vsel %vm3981_vm10, %v4368_v54, %v4384_v9  ;;  %v4314_v56 = vsel %vm3981_vm10, %v4311_v50, %v4313_v13  ;;  %v4372_v46 = vsel %vm3977_vm6, %v4371_v17, %v4360_v21  ;;  %v4392_v10 = vcombine.high %v4368_v54, %v4368_v54 }
 0x3c1   :  { %v4386_v53 = vsel %vm3983_vm11, %v4368_v54, %v4385_v6  ;;  %v4315_v34 = vsel %vm3983_vm11, %v4311_v50, %v4314_v56  ;;  %v4373_v25 = vsel %vm3979_vm9, %v4371_v17, %v4372_v46  ;;  %v4336_v43 = vsel %vm3977_vm6, %v4335_v28, %v4331_v37 }
 0x3c2   :  { %4387 = vrot.lane.b32.xlu0 %v4386_v53, %s11548_s26  ;;  %v4374_v22 = vsel %vm3981_vm10, %v4371_v17, %v4373_v25  ;;  %v4337_v0 = vsel %vm3979_vm9, %v4335_v28, %v4336_v43  ;;  %v4395_v20 = vrot.slane %v4392_v10, 7  ;;  %v4347_v38 = vsel %vm3977_vm6, %v4332_v11, %v4344_v61 }
 0x3c3   :  { %v4375_v27 = vsel %vm3983_vm11, %v4371_v17, %v4374_v22  ;;  %v4338_v41 = vsel %vm3981_vm10, %v4335_v28, %v4337_v0  ;;  %v4348_v30 = vsel %vm3979_vm9, %v4332_v11, %v4347_v38  ;;  %v4412_v40 = vrot.slane %v3946_v23, %v13840_v62 }
 0x3c4   :  { %4316 = vrot.lane.b32.xlu1 %v4315_v34, %s11545_s28  ;;  %v4339_v58 = vsel %vm3983_vm11, %v4335_v28, %v4338_v41  ;;  %v4396_v2 = vsel %vm3977_vm6, %v4395_v20, %v4391_v4  ;;  %v4349_v19 = vsel %vm3981_vm10, %v4332_v11, %v4348_v30  ;;  %v4471_v21 = vrot.slane %v4464_v7, %v13840_v62 }
 0x3c5   :  { %v4397_v48 = vsel %vm3979_vm9, %v4395_v20, %v4396_v2  ;;  %v4350_v5 = vsel %vm3983_vm11, %v4332_v11, %v4349_v19  ;;  %v4440_v37 = vcombine.high %v4412_v40, %v4412_v40  ;;  %v4429_v15 = vrot.slane %v4412_v40, 1 }
 0x3c6   :  { %4376 = vrot.lane.b32.xlu0 %v4375_v27, %s11545_s28  ;;  %v4398_v3 = vsel %vm3981_vm10, %v4395_v20, %v4397_v48  ;;  %4352 = vst.msk [vmem:[#allocation3 + $0xc] sm:$0x3] %vm3986_vm12, %v4350_v5  ;;  %v4489_v60 = vrot.slane %v4471_v21, 1  ;;  %v4500_v4 = vcombine.high %v4471_v21, %v4471_v21  ;;  %v3899_v30 = vadd.f32 %v13833_v45, %v13814_v42 }
 0x3c7   :  { %v4399_v44 = vsel %vm3983_vm11, %v4395_v20, %v4398_v3  ;;  %v4453_v61 = vrot.slane %v4440_v37, 1 }
 0x3c8   :  { %4340 = vrot.lane.b32.xlu1 %v4339_v58, %s11551_s24  ;;  %v3947_v19 = vmax.f32 %v3899_v30, 0.0 }
 0x3ca   :  { %4400 = vrot.lane.b32.xlu0 %v4399_v44, %s11551_s24  ;;  %v4521_v23 = vrot.slane %v3947_v19, %v13840_v62  ;;  %v4573_v48 = vcombine.high %v3947_v19, %v3947_v19 }
 0x3cb   :  { %v3928_v55 = vpop.f32.mrb[22].mxu1 }
 0x3cc   :  { %v3929_v32 = vadd.f32 %v13833_v45, %v3928_v55  ;;  %v3930_v18 = vpop.f32.mrb[23].mxu1  ;;  %v4549_v3 = vcombine.high %v4521_v23, %v4521_v23  ;;  %v4580_v44 = vrot.slane %v4573_v48, %v13840_v62  ;;  %v4540_v55 = vrot.slane %v4521_v23, 1 }
 0x3ce   :  { %v3953_v1 = vmax.f32 %v3929_v32, 0.0 }
 0x3d0   :  { %v4419_v16 = vrot.slane %v3953_v1, %v13840_v62  ;;  %v4472_v8 = vcombine.high %v3953_v1, %v3953_v1  ;;  %v4600_v1 = vrot.slane %v4580_v44, 1 }
 0x3d2   :  { %v4441_v11 = vcombine.high %v4419_v16, %v4419_v16  ;;  %v4479_v54 = vrot.slane %v4472_v8, %v13840_v62  ;;  %v4432_v12 = vsel %vm3977_vm6, %v4419_v16, %v4429_v15  ;;  %v4422_v50 = vrot.slane %v4419_v16, 7 }
 0x3d3   :  { %v4433_v31 = vsel %vm3979_vm9, %v4419_v16, %v4432_v12 }
 0x3d4   :  { %v4434_v36 = vsel %vm3981_vm10, %v4419_v16, %v4433_v31  ;;  %v4492_v51 = vsel %vm3977_vm6, %v4479_v54, %v4489_v60  ;;  %v4444_v63 = vrot.slane %v4441_v11, 7  ;;  %v4501_v39 = vcombine.high %v4479_v54, %v4479_v54 }
 0x3d5   :  { %v4435_v17 = vsel %vm3983_vm11, %v4419_v16, %v4434_v36  ;;  %v4493_v26 = vsel %vm3979_vm9, %v4479_v54, %v4492_v51  ;;  %v4456_v9 = vsel %vm3977_vm6, %v4441_v11, %v4453_v61  ;;  %v4423_v13 = vsel %vm3977_vm6, %v4422_v50, %v4412_v40 }
 0x3d6   :  { %4436 = vrot.lane.b32.xlu1 %v4435_v17, %s11545_s28  ;;  %v4494_v28 = vsel %vm3981_vm10, %v4479_v54, %v4493_v26  ;;  %v4445_v6 = vsel %vm3977_vm6, %v4444_v63, %v4440_v37  ;;  %v4504_v56 = vrot.slane %v4501_v39, 7  ;;  %v4457_v46 = vsel %vm3979_vm9, %v4441_v11, %v4456_v9 }
 0x3d7   :  { %v4495_v10 = vsel %vm3983_vm11, %v4479_v54, %v4494_v28  ;;  %v4446_v49 = vsel %vm3979_vm9, %v4444_v63, %v4445_v6  ;;  %v4458_v14 = vsel %vm3981_vm10, %v4441_v11, %v4457_v46  ;;  %v4424_v53 = vsel %vm3979_vm9, %v4422_v50, %v4423_v13 }
 0x3d8   :  { %4496 = vrot.lane.b32.xlu0 %v4495_v10, %s11545_s28  ;;  %v4447_v34 = vsel %vm3981_vm10, %v4444_v63, %v4446_v49  ;;  %v4505_v25 = vsel %vm3977_vm6, %v4504_v56, %v4500_v4  ;;  %v4459_v43 = vsel %vm3983_vm11, %v4441_v11, %v4458_v14  ;;  %v4425_v22 = vsel %vm3981_vm10, %v4422_v50, %v4424_v53 }
 0x3d9   :  { %v4448_v0 = vsel %vm3983_vm11, %v4444_v63, %v4447_v34  ;;  %v4506_v20 = vsel %vm3979_vm9, %v4504_v56, %v4505_v25  ;;  %v4426_v38 = vsel %vm3983_vm11, %v4422_v50, %v4425_v22  ;;  %v4482_v47 = vrot.slane %v4479_v54, 7 }
 0x3da   :  { %4449 = vrot.lane.b32.xlu1 %v4448_v0, %s11548_s26  ;;  %v4507_v57 = vsel %vm3981_vm10, %v4504_v56, %v4506_v20  ;;  %4428 = vst.msk [vmem:[#allocation3 + $0xe] sm:$0x3] %vm3986_vm12, %v4426_v38  ;;  %v3904_v40 = vadd.f32 %v13833_v45, %v13816_v29  ;;  %v4609_v11 = vcombine.high %v4580_v44, %v4580_v44 }
 0x3db   :  { %v4508_v27 = vsel %vm3983_vm11, %v4504_v56, %v4507_v57  ;;  %v4483_v41 = vsel %vm3977_vm6, %v4482_v47, %v4471_v21  ;;  %v4562_v21 = vrot.slane %v4549_v3, 1 }
 0x3dc   :  { %4509 = vrot.lane.b32.xlu0 %v4508_v27, %s11548_s26  ;;  %v4484_v52 = vsel %vm3979_vm9, %v4482_v47, %v4483_v41  ;;  %v3948_v54 = vmax.f32 %v3904_v40, 0.0 }
 0x3dd   :  { %v4485_v58 = vsel %vm3981_vm10, %v4482_v47, %v4484_v52 }
 0x3de   :  { %4460 = vrot.lane.b32.xlu1 %v4459_v43, %s11551_s24  ;;  %v4486_v2 = vsel %vm3983_vm11, %v4482_v47, %v4485_v58  ;;  %v4630_v38 = vrot.slane %v3948_v54, %v13840_v62  ;;  %v4682_v52 = vcombine.high %v3948_v54, %v3948_v54 }
 0x3df   :  { %4488 = vst.msk [vmem:[#allocation3 + $0x10] sm:$0x3] %vm3986_vm12, %v4486_v2 }
 0x3e5   :  { %v3933_v5 = vpop.f32.mrb[24].mxu1 }
 0x3e6   :  { %v3934_v59 = vadd.f32 %v13833_v45, %v3933_v5  ;;  %v3935_v42 = vpop.f32.mrb[25].mxu1  ;;  %v4660_v5 = vcombine.high %v4630_v38, %v4630_v38 }
 0x3e7   :  { %v4689_v42 = vrot.slane %v4682_v52, %v13840_v62 }
 0x3e8   :  { %v3954_v7 = vmax.f32 %v3934_v59, 0.0  ;;  %v4671_v40 = vrot.slane %v4660_v5, 1 }
 0x3ea   :  { %v4528_v32 = vrot.slane %v3954_v7, %v13840_v62  ;;  %v4581_v18 = vcombine.high %v3954_v7, %v3954_v7 }
 0x3eb   :  { %v3996_v37 = vpop.permute.xlu0 %3995 }
 0x3ec   :  { %v4588_v15 = vrot.slane %v4581_v18, %v13840_v62  ;;  %3999 = vst.msk [vmem:[#allocation3] sm:$0x3] %vm3998_vm13, %v3996_v37  ;;  %v4550_v16 = vcombine.high %v4528_v32, %v4528_v32  ;;  %v4531_v8 = vrot.slane %v4528_v32, 7  ;;  %v4543_v60 = vsel %vm3977_vm6, %v4528_v32, %v4540_v55 }
 0x3ed   :  { %v4059_v12 = vpop.permute.xlu1 %4058  ;;  %v4544_v29 = vsel %vm3979_vm9, %v4528_v32, %v4543_v60 }
 0x3ee   :  { %4061 = vst.msk [vmem:[#allocation3 + $0x2] sm:$0x3] %vm3998_vm13, %v4059_v12  ;;  %v4565_v50 = vsel %vm3977_vm6, %v4550_v16, %v4562_v21  ;;  %v4532_v61 = vsel %vm3977_vm6, %v4531_v8, %v4521_v23  ;;  %v4553_v4 = vrot.slane %v4550_v16, 7  ;;  %v4610_v31 = vcombine.high %v4588_v15, %v4588_v15 }
 0x3ef   :  { %v4022_v36 = vpop.permute.xlu0 %4021  ;;  %v4566_v51 = vsel %vm3979_vm9, %v4550_v16, %v4565_v50  ;;  %v4533_v63 = vsel %vm3979_vm9, %v4531_v8, %v4532_v61  ;;  %v4591_v39 = vrot.slane %v4588_v15, 7  ;;  %v4545_v17 = vsel %vm3981_vm10, %v4528_v32, %v4544_v29 }
 0x3f0   :  { %v4567_v26 = vsel %vm3981_vm10, %v4550_v16, %v4566_v51  ;;  %v4534_v9 = vsel %vm3981_vm10, %v4531_v8, %v4533_v63  ;;  %v4554_v13 = vsel %vm3977_vm6, %v4553_v4, %v4549_v3  ;;  %v4613_v28 = vrot.slane %v4610_v31, 7 }
 0x3f1   :  { %v4072_v6 = vpop.permute.xlu1 %4071  ;;  %v4568_v56 = vsel %vm3983_vm11, %v4550_v16, %v4567_v26  ;;  %v4535_v46 = vsel %vm3983_vm11, %v4531_v8, %v4534_v9  ;;  %v4555_v10 = vsel %vm3979_vm9, %v4553_v4, %v4554_v13  ;;  %v4592_v49 = vsel %vm3977_vm6, %v4591_v39, %v4580_v44 }
 0x3f2   :  { %4074 = vst.msk [vmem:[#allocation3 + $0x2] sm:$0x3] %vm4012_vm14, %v4072_v6  ;;  %4569 = vrot.lane.b32.xlu1 %v4568_v56, %s11548_s26  ;;  %4536 = vrot.lane.b32.xlu0 %v4535_v46, %s11551_s24  ;;  %v4556_v14 = vsel %vm3981_vm10, %v4553_v4, %v4555_v10  ;;  %v4614_v53 = vsel %vm3977_vm6, %v4613_v28, %v4609_v11  ;;  %v4649_v3 = vrot.slane %v4630_v38, 1  ;;  %v4709_v21 = vrot.slane %v4689_v42, 1 }
 0x3f3   :  { %v4593_v34 = vsel %vm3979_vm9, %v4591_v39, %v4592_v49  ;;  %v4010_v25 = vpop.permute.xlu0 %4009  ;;  %v4557_v43 = vsel %vm3983_vm11, %v4553_v4, %v4556_v14  ;;  %v4615_v22 = vsel %vm3979_vm9, %v4613_v28, %v4614_v53  ;;  %v4546_v20 = vsel %vm3983_vm11, %v4528_v32, %v4545_v17 }
 0x3f4   :  { %v4594_v0 = vsel %vm3981_vm10, %v4591_v39, %v4593_v34  ;;  %4013 = vst.msk [vmem:[#allocation3] sm:$0x3] %vm4012_vm14, %v4010_v25  ;;  %v4616_v47 = vsel %vm3981_vm10, %v4613_v28, %v4615_v22  ;;  %v4603_v27 = vsel %vm3977_vm6, %v4588_v15, %v4600_v1  ;;  %v4720_v1 = vcombine.high %v4689_v42, %v4689_v42 }
 0x3f5   :  { %v4595_v57 = vsel %vm3983_vm11, %v4591_v39, %v4594_v0  ;;  %4548 = vst.msk [vmem:[#allocation3 + $0x12] sm:$0x3] %vm3986_vm12, %v4546_v20  ;;  %v4617_v41 = vsel %vm3983_vm11, %v4613_v28, %v4616_v47  ;;  %v4604_v30 = vsel %vm3979_vm9, %v4588_v15, %v4603_v27 }
 0x3f6   :  { %4025 = vst.msk [vmem:[#allocation3] sm:$0x3] %vm4024_vm15, %v4022_v36  ;;  %4558 = vrot.lane.b32.xlu1 %v4557_v43, %s11545_s28  ;;  %4618 = vrot.lane.b32.xlu0 %v4617_v41, %s11545_s28  ;;  %v4605_v2 = vsel %vm3981_vm10, %v4588_v15, %v4604_v30 }
 0x3f7   :  { %v4606_v48 = vsel %vm3983_vm11, %v4588_v15, %v4605_v2  ;;  %v4800_v2 = vld [vmem:[%s16572_s5 + $0x208] sm:$0xff] }
 0x3f8   :  { %v3938_v58 = vpop.f32.mrb[26].mxu1  ;;  %4608 = vst.msk [vmem:[#allocation3 + $0x14] sm:$0x3] %vm3986_vm12, %v4606_v48  ;;  %v4817_v48 = vld [vmem:[%s16572_s5 + $0x290] sm:$0xff] }
 0x3f9   :  { %v3939_v19 = vadd.f32 %v13833_v45, %v3938_v58  ;;  %v3940_v23 = vpop.f32.mrb[27].mxu1  ;;  %v4799_v58 = vld [vmem:[%s16572_s5 + $0x200] sm:$0xff] }
 0x3fa   :  { %4596 = vrot.lane.b32.xlu1 %v4595_v57, %s11551_s24 }
 0x3fb   :  { %v3955_v59 = vmax.f32 %v3939_v19, 0.0 }
 0x3fd   :  { %v4637_v44 = vrot.slane %v3955_v59, %v13840_v62  ;;  %v4690_v7 = vcombine.high %v3955_v59, %v3955_v59  ;;  %v4831_v59 = vld [vmem:[%s16572_s5 + $0x300] sm:$0xff] }
 0x3ff   :  { %v4697_v55 = vrot.slane %v4690_v7, %v13840_v62  ;;  %v4661_v32 = vcombine.high %v4637_v44, %v4637_v44  ;;  %v4640_v45 = vrot.slane %v4637_v44, 7  ;;  %v4652_v18 = vsel %vm3977_vm6, %v4637_v44, %v4649_v3 }
 0x400   :  { %v4653_v37 = vsel %vm3979_vm9, %v4637_v44, %v4652_v18  ;;  %v10363_v7 = vpack.c.bf16 %v4800_v2, %v4799_v58  ;;  %v4802_v18 = vld [vmem:[%s16572_s5 + $0x218] sm:$0xff]  ;;  %v4839_v58 = vld [vmem:[%s16572_s5 + $0x340] sm:$0xff]  ;;  %v4840_v2 = vld [vmem:[%s16572_s5 + $0x348] sm:$0xff] }
 0x401   :  { %v4721_v15 = vcombine.high %v4697_v55, %v4697_v55  ;;  %v4674_v16 = vsel %vm3977_vm6, %v4661_v32, %v4671_v40  ;;  %v4641_v8 = vsel %vm3977_vm6, %v4640_v45, %v4630_v38  ;;  %v4700_v60 = vrot.slane %v4697_v55, 7  ;;  %v4849_v40 = vld [vmem:[%s16572_s5 + $0x390] sm:$0xff] }
 0x402   :  { %v4675_v11 = vsel %vm3979_vm9, %v4661_v32, %v4674_v16  ;;  %v4642_v54 = vsel %vm3979_vm9, %v4640_v45, %v4641_v8  ;;  %v4654_v12 = vsel %vm3981_vm10, %v4637_v44, %v4653_v37  ;;  %v4712_v29 = vsel %vm3977_vm6, %v4697_v55, %v4709_v21  ;;  %v4819_v37 = vld [vmem:[%s16572_s5 + $0x2a0] sm:$0xff]  ;;  %v4833_v8 = vld [vmem:[%s16572_s5 + $0x310] sm:$0xff] }
 0x403   :  { %v4724_v50 = vrot.slane %v4721_v15, 7  ;;  %v4676_v61 = vsel %vm3981_vm10, %v4661_v32, %v4675_v11  ;;  %v4643_v4 = vsel %vm3981_vm10, %v4640_v45, %v4642_v54  ;;  %v4701_v31 = vsel %vm3977_vm6, %v4700_v60, %v4689_v42  ;;  %v4832_v42 = vld [vmem:[%s16572_s5 + $0x308] sm:$0xff]  ;;  %v4851_v54 = vld [vmem:[%s16572_s5 + $0x3a0] sm:$0xff] }
 0x404   :  { %v4677_v36 = vsel %vm3983_vm11, %v4661_v32, %v4676_v61  ;;  %v4644_v51 = vsel %vm3983_vm11, %v4640_v45, %v4643_v4  ;;  %v4702_v63 = vsel %vm3979_vm9, %v4700_v60, %v4701_v31  ;;  %v4655_v39 = vsel %vm3983_vm11, %v4637_v44, %v4654_v12  ;;  %v4801_v45 = vld [vmem:[%s16572_s5 + $0x210] sm:$0xff]  ;;  %v4820_v15 = vld [vmem:[%s16572_s5 + $0x2a8] sm:$0xff] }
 0x405   :  { %v4725_v17 = vsel %vm3977_vm6, %v4724_v50, %v4720_v1  ;;  %4678 = vrot.lane.b32.xlu1 %v4677_v36, %s11545_s28  ;;  %4645 = vrot.lane.b32.xlu0 %v4644_v51, %s11548_s26  ;;  %v4703_v26 = vsel %vm3981_vm10, %v4700_v60, %v4702_v63  ;;  %v4713_v9 = vsel %vm3979_vm9, %v4697_v55, %v4712_v29  ;;  %v4664_v13 = vrot.slane %v4661_v32, 7  ;;  %v4099_v6 = vpop.permute.xlu1 %4098  ;;  %v4132_v56 = vpop.permute.xlu0 %4131  ;;  %v4852_v12 = vld [vmem:[%s16572_s5 + $0x3a8] sm:$0xff]  ;;  %v4821_v31 = vld [vmem:[%s16572_s5 + $0x2b0] sm:$0xff] }
 0x406   :  { %v4726_v28 = vsel %vm3979_vm9, %v4724_v50, %v4725_v17  ;;  %v4704_v46 = vsel %vm3983_vm11, %v4700_v60, %v4703_v26  ;;  %v4714_v10 = vsel %vm3981_vm10, %v4697_v55, %v4713_v9  ;;  %4101 = vst.msk [vmem:[#allocation3 + $0x2] sm:$0x3] %vm4024_vm15, %v4099_v6  ;;  %v10395_v1 = vpack.c.bf16 %v4832_v42, %v4831_v59  ;;  %v4834_v60 = vld [vmem:[%s16572_s5 + $0x318] sm:$0xff]  ;;  %v4804_v61 = vld [vmem:[%s16572_s5 + $0x228] sm:$0xff]  ;;  %v4835_v63 = vld [vmem:[%s16572_s5 + $0x320] sm:$0xff] }
 0x407   :  { %v4727_v49 = vsel %vm3981_vm10, %v4724_v50, %v4726_v28  ;;  %v4715_v14 = vsel %vm3983_vm11, %v4697_v55, %v4714_v10  ;;  %v4665_v53 = vsel %vm3977_vm6, %v4664_v13, %v4660_v5  ;;  %v4818_v5 = vld [vmem:[%s16572_s5 + $0x298] sm:$0xff]  ;;  %v10367_v11 = vpack.c.bf16 %v4802_v18, %v4801_v45  ;;  %v4853_v26 = vld [vmem:[%s16572_s5 + $0x3b0] sm:$0xff]  ;;  %v4823_v10 = vld [vmem:[%s16572_s5 + $0x2c0] sm:$0xff] }
 0x408   :  { %v4728_v34 = vsel %vm3983_vm11, %v4724_v50, %v4727_v49  ;;  %v4666_v25 = vsel %vm3979_vm9, %v4664_v13, %v4665_v53  ;;  %v4850_v55 = vld [vmem:[%s16572_s5 + $0x398] sm:$0xff]  ;;  %v10365_v32 = vpack.c.bf16 %v4818_v5, %v4817_v48  ;;  %v10369_v29 = vpack.c.bf16 %v4820_v15, %v4819_v37  ;;  %v4803_v50 = vld [vmem:[%s16572_s5 + $0x220] sm:$0xff]  ;;  %v4805_v28 = vld [vmem:[%s16572_s5 + $0x230] sm:$0xff] }
 0x409   :  { %4730 = vst.msk [vmem:[#allocation3 + $0x18] sm:$0x3] %vm3986_vm12, %v4728_v34  ;;  %4705 = vrot.lane.b32.xlu1 %v4704_v46, %s11548_s26  ;;  %4656 = vrot.lane.b32.xlu0 %v4655_v39, %s11551_s24  ;;  %v4667_v43 = vsel %vm3981_vm10, %v4664_v13, %v4666_v25  ;;  %v4181_v22 = vpop.permute.xlu1 %4180  ;;  %v4121_v0 = vpop.permute.xlu0 %4120  ;;  %v10397_v16 = vpack.c.bf16 %v4850_v55, %v4849_v40  ;;  %v4822_v36 = vld [vmem:[%s16572_s5 + $0x2b8] sm:$0xff]  ;;  %v4836_v39 = vld [vmem:[%s16572_s5 + $0x328] sm:$0xff]  ;;  %vm7402_vm6 = vcmask 516096  }
 0x40a   :  { %v4668_v20 = vsel %vm3983_vm11, %v4664_v13, %v4667_v43  ;;  %4183 = vst.msk [vmem:[#allocation3 + $0x6] sm:$0x3] %vm3998_vm13, %v4181_v22  ;;  %4123 = vst.msk [vmem:[#allocation3 + $0x4] sm:$0x3] %vm3998_vm13, %v4121_v0  ;;  %v10399_v4 = vpack.c.bf16 %v4834_v60, %v4833_v8  ;;  %v10401_v51 = vpack.c.bf16 %v4852_v12, %v4851_v54  ;;  %v4854_v9 = vld [vmem:[%s16572_s5 + $0x3b8] sm:$0xff]  ;;  %v4824_v49 = vld [vmem:[%s16572_s5 + $0x2c8] sm:$0xff] }
 0x40b   :  { %4670 = vst.msk [vmem:[#allocation3 + $0x16] sm:$0x3] %vm3986_vm12, %v4668_v20  ;;  %v10371_v17 = vpack.c.bf16 %v4804_v61, %v4803_v50  ;;  %v10373_v13 = vpack.c.bf16 %v4822_v36, %v4821_v31  ;;  %v4806_v6 = vld [vmem:[%s16572_s5 + $0x238] sm:$0xff]  ;;  %v10403_v46 = vpack.c.bf16 %v4836_v39, %v4835_v63  ;;  %v4837_v53 = vld [vmem:[%s16572_s5 + $0x330] sm:$0xff]  ;;  %v4855_v22 = vld [vmem:[%s16572_s5 + $0x3c0] sm:$0xff]  ;;  %v10377_v20 = vpack.c.bf16 %v4824_v49, %v4823_v10 }
 0x40c   :  { %4134 = vst.msk [vmem:[#allocation3 + $0x4] sm:$0x3] %vm4012_vm14, %v4132_v56  ;;  %v4838_v34 = vld [vmem:[%s16572_s5 + $0x338] sm:$0xff]  ;;  %v10375_v43 = vpack.c.bf16 %v4806_v6, %v4805_v28  ;;  %v4856_v0 = vld [vmem:[%s16572_s5 + $0x3c8] sm:$0xff]  ;;  %v4857_v48 = vld [vmem:[%s16572_s5 + $0x3d0] sm:$0xff] }
 0x40d   :  { %4716 = vrot.lane.b32.xlu1 %v4715_v14, %s11551_s24  ;;  %v4159_v38 = vpop.permute.xlu0 %4158  ;;  %v10405_v14 = vpack.c.bf16 %v4854_v9, %v4853_v26  ;;  %v4858_v5 = vld [vmem:[%s16572_s5 + $0x3d8] sm:$0xff]  ;;  %v4809_v42 = vld [vmem:[%s16572_s5 + $0x250] sm:$0xff]  ;;  %v4827_v40 = vld [vmem:[%s16572_s5 + $0x2e0] sm:$0xff]  ;;  %7417 = vst.msk [vmem:[#allocation5 + $0x78] sm:$0x1] %vm7402_vm6, %v11544_v33 }
 0x40e   :  { %4161 = vst.msk [vmem:[#allocation3 + $0x4] sm:$0x3] %vm4024_vm15, %v4159_v38  ;;  %v4807_v38 = vld [vmem:[%s16572_s5 + $0x240] sm:$0xff]  ;;  %v4828_v55 = vld [vmem:[%s16572_s5 + $0x2e8] sm:$0xff]  ;;  %v4841_v45 = vld [vmem:[%s16572_s5 + $0x350] sm:$0xff] }
 0x40f   :  { %v4842_v18 = vld [vmem:[%s16572_s5 + $0x358] sm:$0xff]  ;;  %v4859_v37 = vld [vmem:[%s16572_s5 + $0x3e0] sm:$0xff]  ;;  %v4860_v15 = vld [vmem:[%s16572_s5 + $0x3e8] sm:$0xff]  ;;  %7403 = vst.msk [vmem:[#allocation5 + $0x8] sm:$0x1] %vm7402_vm6, %v11544_v33 }
 0x410   :  { %v4811_v8 = vld [vmem:[%s16572_s5 + $0x260] sm:$0xff]  ;;  %v4812_v60 = vld [vmem:[%s16572_s5 + $0x268] sm:$0xff]  ;;  %v4829_v54 = vld [vmem:[%s16572_s5 + $0x2f0] sm:$0xff]  ;;  %7405 = vst.msk [vmem:[#allocation5 + $0x18] sm:$0x1] %vm7402_vm6, %v11544_v33 }
 0x411   :  { %v4830_v12 = vld [vmem:[%s16572_s5 + $0x2f8] sm:$0xff]  ;;  %v4843_v50 = vld [vmem:[%s16572_s5 + $0x360] sm:$0xff]  ;;  %v4844_v61 = vld [vmem:[%s16572_s5 + $0x368] sm:$0xff]  ;;  %7407 = vst.msk [vmem:[#allocation5 + $0x28] sm:$0x1] %vm7402_vm6, %v11544_v33 }
 0x412   :  { %v4861_v31 = vld [vmem:[%s16572_s5 + $0x3f0] sm:$0xff]  ;;  %v4862_v36 = vld [vmem:[%s16572_s5 + $0x3f8] sm:$0xff]  ;;  %v4879_v26 = vld [vmem:[%s16572_s5 + $0x480] sm:$0xff]  ;;  %7409 = vst.msk [vmem:[#allocation5 + $0x38] sm:$0x1] %vm7402_vm6, %v11544_v33 }
 0x413   :  { %v4813_v63 = vld [vmem:[%s16572_s5 + $0x270] sm:$0xff]  ;;  %v4814_v39 = vld [vmem:[%s16572_s5 + $0x278] sm:$0xff]  ;;  %v4880_v9 = vld [vmem:[%s16572_s5 + $0x488] sm:$0xff]  ;;  %7411 = vst.msk [vmem:[#allocation5 + $0x48] sm:$0x1] %vm7402_vm6, %v11544_v33 }
 0x414   :  { %v4845_v28 = vld [vmem:[%s16572_s5 + $0x370] sm:$0xff]  ;;  %v4846_v6 = vld [vmem:[%s16572_s5 + $0x378] sm:$0xff]  ;;  %v4912_v10 = vld [vmem:[%s16572_s5 + $0x588] sm:$0xff]  ;;  %v10425_v49 = vpack.c.bf16 %v4880_v9, %v4879_v26  ;;  %7413 = vst.msk [vmem:[#allocation5 + $0x58] sm:$0x1] %vm7402_vm6, %v11544_v33 }
 0x415   :  { %v4887_v9 = vld [vmem:[%s16572_s5 + $0x4c0] sm:$0xff]  ;;  %7415 = vst.msk [vmem:[#allocation5 + $0x68] sm:$0x1] %vm7402_vm6, %v11544_v33  ;;  %7419 = vst.msk [vmem:[#allocation5 + $0x88] sm:$0x1] %vm7402_vm6, %v11544_v33 }
 0x416   :  { %7421 = vst.msk [vmem:[#allocation5 + $0x98] sm:$0x1] %vm7402_vm6, %v11544_v33  ;;  %7423 = vst.msk [vmem:[#allocation5 + $0xa8] sm:$0x1] %vm7402_vm6, %v11544_v33 }
 0x417   :  { %7425 = vst.msk [vmem:[#allocation5 + $0xb8] sm:$0x1] %vm7402_vm6, %v11544_v33  ;;  %7427 = vst.msk [vmem:[#allocation5 + $0xc8] sm:$0x1] %vm7402_vm6, %v11544_v33 }
 0x418   :  { %7429 = vst.msk [vmem:[#allocation5 + $0xd8] sm:$0x1] %vm7402_vm6, %v11544_v33  ;;  %7431 = vst.msk [vmem:[#allocation5 + $0xe8] sm:$0x1] %vm7402_vm6, %v11544_v33 }
 0x419   :  { %7433 = vst.msk [vmem:[#allocation5 + $0xf8] sm:$0x1] %vm7402_vm6, %v11544_v33 }
 0x41a   :  { %v4208_v47 = vpop.permute.xlu1 %4207  ;;  %v4241_v57 = vpop.permute.xlu0 %4240 }
 0x41b   :  { %4210 = vst.msk [vmem:[#allocation3 + $0x6] sm:$0x3] %vm4012_vm14, %v4208_v47  ;;  %v4808_v47 = vld [vmem:[%s16572_s5 + $0x248] sm:$0xff] }
 0x41c   :  { %4243 = vst.msk [vmem:[#allocation3 + $0x8] sm:$0x3] %vm3998_vm13, %v4241_v57 }
 0x41e   :  { %v4219_v27 = vpop.permute.xlu1 %4218  ;;  %v4279_v41 = vpop.permute.xlu0 %4278 }
 0x41f   :  { %4221 = vst.msk [vmem:[#allocation3 + $0x6] sm:$0x3] %vm4024_vm15, %v4219_v27  ;;  %v10407_v27 = vpack.c.bf16 %v4838_v34, %v4837_v53 }
 0x422   :  { %v4268_v30 = vpop.permute.xlu0 %4267 }
 0x423   :  { %4270 = vst.msk [vmem:[#allocation3 + $0x8] sm:$0x3] %vm4012_vm14, %v4268_v30  ;;  %v4826_v30 = vld [vmem:[%s16572_s5 + $0x2d8] sm:$0xff] }
 0x424   :  { %4281 = vst.msk [vmem:[#allocation3 + $0x8] sm:$0x3] %vm4024_vm15, %v4279_v41  ;;  %v4825_v41 = vld [vmem:[%s16572_s5 + $0x2d0] sm:$0xff] }
 0x425   :  { %v10381_v59 = vpack.c.bf16 %v4826_v30, %v4825_v41  ;;  %v4881_v41 = vld [vmem:[%s16572_s5 + $0x490] sm:$0xff]  ;;  %v4882_v30 = vld [vmem:[%s16572_s5 + $0x498] sm:$0xff] }
 0x426   :  { %v4731_v52 = vld [vmem:[#allocation3] sm:$0xff] }
 0x427   :  { %v4949_v19 = vrot.slane %v4731_v52, %v13840_v62  ;;  %v4942_v23 = vcombine.high %v4731_v52, %v4731_v52  ;;  %v10409_v52 = vpack.c.bf16 %v4856_v0, %v4855_v22 }
 0x429   :  { %v4957_v3 = vcombine.high %v4949_v19, %v4949_v19  ;;  %v4956_v44 = vrot.slane %v4942_v23, %v13840_v62  ;;  %v10379_v23 = vpack.c.bf16 %v4808_v47, %v4807_v38  ;;  %v4863_v38 = vld [vmem:[%s16572_s5 + $0x400] sm:$0xff]  ;;  %v4864_v47 = vld [vmem:[%s16572_s5 + $0x408] sm:$0xff] }
 0x42b   :  { %5078 = vmatprep.mubr.f32.mxu1 %v4957_v3  ;;  %v4958_v21 = vcombine.high %v4956_v44, %v4956_v44  ;;  %v4810_v3 = vld [vmem:[%s16572_s5 + $0x258] sm:$0xff] }
 0x42c   :  { %5079 = vmatmul.mubr.f32.vlgmr.msra.gmra.mrb[28].mxu1 %v4949_v19 }
 0x42d   :  { %5148 = vmatprep.mubr.f32.mxu0 %v4958_v21  ;;  %10364 = vmatpush3.bf16.msra.mxu1 %v10363_v7  ;;  %v10411_v7 = vpack.c.bf16 %v4840_v2, %v4839_v58  ;;  %v4896_v58 = vld [vmem:[%s16572_s5 + $0x508] sm:$0xff] }
 0x42e   :  { %5149 = vmatmul.mubr.f32.vlgmr.msra.gmra.mrb[56].mxu0 %v4956_v44  ;;  %10366 = vmatprep.subr.bf16.mxu1 %v10365_v32  ;;  %v10413_v32 = vpack.c.bf16 %v4858_v5, %v4857_v48  ;;  %v4913_v48 = vld [vmem:[%s16572_s5 + $0x590] sm:$0xff]  ;;  %v4914_v5 = vld [vmem:[%s16572_s5 + $0x598] sm:$0xff] }
 0x42f   :  { %10396 = vmatpush3.bf16.msra.mxu0 %v10395_v1  ;;  %v10383_v1 = vpack.c.bf16 %v4810_v3, %v4809_v42  ;;  %v4865_v42 = vld [vmem:[%s16572_s5 + $0x410] sm:$0xff]  ;;  %v4866_v3 = vld [vmem:[%s16572_s5 + $0x418] sm:$0xff] }
 0x430   :  { %10398 = vmatprep.subr.bf16.mxu0 %v10397_v16  ;;  %v10385_v16 = vpack.c.bf16 %v4828_v55, %v4827_v40  ;;  %v4883_v40 = vld [vmem:[%s16572_s5 + $0x4a0] sm:$0xff]  ;;  %v4884_v55 = vld [vmem:[%s16572_s5 + $0x4a8] sm:$0xff] }
 0x431   :  { %10368 = vmatpush3.bf16.msra.mxu1 %v10367_v11  ;;  %v10415_v11 = vpack.c.bf16 %v4842_v18, %v4841_v45  ;;  %v4897_v45 = vld [vmem:[%s16572_s5 + $0x510] sm:$0xff]  ;;  %v4898_v18 = vld [vmem:[%s16572_s5 + $0x518] sm:$0xff] }
 0x432   :  { %10370 = vmatprep.subr.bf16.mxu1 %v10369_v29  ;;  %v4328_v56 = vpop.permute.xlu1 %4327  ;;  %v10417_v29 = vpack.c.bf16 %v4860_v15, %v4859_v37  ;;  %v4916_v37 = vld [vmem:[%s16572_s5 + $0x5a8] sm:$0xff]  ;;  %v10433_v15 = vpack.c.bf16 %v4884_v55, %v4883_v40 }
 0x433   :  { %10400 = vmatpush3.bf16.msra.mxu0 %v10399_v4  ;;  %v10387_v4 = vpack.c.bf16 %v4812_v60, %v4811_v8  ;;  %v4868_v8 = vld [vmem:[%s16572_s5 + $0x428] sm:$0xff]  ;;  %v10463_v60 = vpack.c.bf16 %v4898_v18, %v4897_v45 }
 0x434   :  { %10402 = vmatprep.subr.bf16.mxu0 %v10401_v51  ;;  %v4388_v25 = vpop.permute.xlu0 %4387  ;;  %v10389_v51 = vpack.c.bf16 %v4830_v12, %v4829_v54  ;;  %v4886_v54 = vld [vmem:[%s16572_s5 + $0x4b8] sm:$0xff]  ;;  %v4924_v40 = vld [vmem:[%s16572_s5 + $0x5e8] sm:$0xff] }
 0x435   :  { %10372 = vmatpush3.bf16.msra.mxu1 %v10371_v17  ;;  %v10419_v17 = vpack.c.bf16 %v4844_v61, %v4843_v50  ;;  %v4900_v50 = vld [vmem:[%s16572_s5 + $0x528] sm:$0xff] }
 0x436   :  { %10374 = vmatprep.subr.bf16.mxu1 %v10373_v13  ;;  %v4317_v57 = vpop.permute.xlu1 %4316  ;;  %v10421_v13 = vpack.c.bf16 %v4862_v36, %v4861_v31  ;;  %v4918_v31 = vld [vmem:[%s16572_s5 + $0x5b8] sm:$0xff]  ;;  %v4876_v45 = vld [vmem:[%s16572_s5 + $0x468] sm:$0xff] }
 0x437   :  { %10404 = vmatpush3.bf16.msra.mxu0 %v10403_v46  ;;  %4319 = vst.msk [vmem:[#allocation3 + $0xa] sm:$0x3] %vm3998_vm13, %v4317_v57  ;;  %v4911_v46 = vld [vmem:[%s16572_s5 + $0x580] sm:$0xff] }
 0x438   :  { %10406 = vmatprep.subr.bf16.mxu0 %v10405_v14  ;;  %4330 = vst.msk [vmem:[#allocation3 + $0xa] sm:$0x3] %vm4012_vm14, %v4328_v56  ;;  %v4377_v19 = vpop.permute.xlu0 %4376  ;;  %v10391_v56 = vpack.c.bf16 %v4814_v39, %v4813_v63  ;;  %v10423_v14 = vpack.c.bf16 %v4846_v6, %v4845_v28  ;;  %v10457_v53 = vpack.c.bf16 %v4912_v10, %v4911_v46  ;;  %v4870_v63 = vld [vmem:[%s16572_s5 + $0x438] sm:$0xff]  ;;  %v4901_v6 = vld [vmem:[%s16572_s5 + $0x530] sm:$0xff]  ;;  %v4919_v10 = vld [vmem:[%s16572_s5 + $0x5c0] sm:$0xff] }
 0x439   :  { %10376 = vmatpush3.bf16.msra.mxu1 %v10375_v43  ;;  %4379 = vst.msk [vmem:[#allocation3 + $0xc] sm:$0x3] %vm3998_vm13, %v4377_v19 }
 0x43a   :  { %10378 = vmatprep.subr.bf16.mxu1 %v10377_v20  ;;  %4390 = vst.msk [vmem:[#allocation3 + $0xc] sm:$0x3] %vm4012_vm14, %v4388_v25  ;;  %v4341_v44 = vpop.permute.xlu1 %4340 }
 0x43b   :  { %10408 = vmatpush3.bf16.msra.mxu0 %v10407_v27  ;;  %4343 = vst.msk [vmem:[#allocation3 + $0xa] sm:$0x3] %vm4024_vm15, %v4341_v44 }
 0x43c   :  { %10410 = vmatprep.subr.bf16.mxu0 %v10409_v52  ;;  %v4401_v21 = vpop.permute.xlu0 %4400  ;;  %v4895_v52 = vld [vmem:[%s16572_s5 + $0x500] sm:$0xff] }
 0x43d   :  { %10380 = vmatpush3.bf16.msra.mxu1 %v10379_v23  ;;  %4403 = vst.msk [vmem:[#allocation3 + $0xc] sm:$0x3] %vm4024_vm15, %v4401_v21  ;;  %v10427_v23 = vpack.c.bf16 %v4864_v47, %v4863_v38  ;;  %v10431_v21 = vpack.c.bf16 %v4866_v3, %v4865_v42  ;;  %v4903_v47 = vld [vmem:[%s16572_s5 + $0x540] sm:$0xff]  ;;  %v4905_v42 = vld [vmem:[%s16572_s5 + $0x550] sm:$0xff]  ;;  %v4906_v3 = vld [vmem:[%s16572_s5 + $0x558] sm:$0xff] }
 0x43e   :  { %10382 = vmatprep.subr.bf16.mxu1 %v10381_v59  ;;  %v10429_v59 = vpack.c.bf16 %v4882_v30, %v4881_v41  ;;  %v4921_v41 = vld [vmem:[%s16572_s5 + $0x5d0] sm:$0xff]  ;;  %v4922_v30 = vld [vmem:[%s16572_s5 + $0x5d8] sm:$0xff]  ;;  %v10479_v18 = vpack.c.bf16 %v4906_v3, %v4905_v42 }
 0x43f   :  { %10412 = vmatpush3.bf16.msra.mxu0 %v10411_v7  ;;  %v10459_v7 = vpack.c.bf16 %v4896_v58, %v4895_v52  ;;  %v4873_v58 = vld [vmem:[%s16572_s5 + $0x450] sm:$0xff] }
 0x440   :  { %10414 = vmatprep.subr.bf16.mxu0 %v10413_v32  ;;  %v10461_v32 = vpack.c.bf16 %v4914_v5, %v4913_v48  ;;  %v4891_v48 = vld [vmem:[%s16572_s5 + $0x4e0] sm:$0xff]  ;;  %v4892_v5 = vld [vmem:[%s16572_s5 + $0x4e8] sm:$0xff]  ;;  %v5530_v3 = vld [vmem:[%s16574_s7 + $0xd0] sm:$0xff] }
 0x441   :  { %10384 = vmatpush3.bf16.msra.mxu1 %v10383_v1  ;;  %v4915_v1 = vld [vmem:[%s16572_s5 + $0x5a0] sm:$0xff]  ;;  %v10449_v55 = vpack.c.bf16 %v4892_v5, %v4891_v48  ;;  %v5535_v48 = vld [vmem:[%s16574_s7 + $0xf8] sm:$0xff] }
 0x442   :  { %10386 = vmatprep.subr.bf16.mxu1 %v10385_v16  ;;  %v4867_v16 = vld [vmem:[%s16572_s5 + $0x420] sm:$0xff]  ;;  %v10465_v12 = vpack.c.bf16 %v4916_v37, %v4915_v1  ;;  %v4894_v1 = vld [vmem:[%s16572_s5 + $0x4f8] sm:$0xff] }
 0x443   :  { %10416 = vmatpush3.bf16.msra.mxu0 %v10415_v11  ;;  %v4885_v11 = vld [vmem:[%s16572_s5 + $0x4b0] sm:$0xff]  ;;  %v10435_v61 = vpack.c.bf16 %v4868_v8, %v4867_v16  ;;  %v4908_v16 = vld [vmem:[%s16572_s5 + $0x568] sm:$0xff]  ;;  %v5548_v5 = vld [vmem:[%s16574_s7 + $0x160] sm:$0xff] }
 0x444   :  { %10418 = vmatprep.subr.bf16.mxu0 %v10417_v29  ;;  %v4899_v29 = vld [vmem:[%s16572_s5 + $0x520] sm:$0xff]  ;;  %v10437_v36 = vpack.c.bf16 %v4886_v54, %v4885_v11  ;;  %v4926_v11 = vld [vmem:[%s16572_s5 + $0x5f8] sm:$0xff]  ;;  %v10531_v42 = vpack.c.bf16 %v5548_v5, %v5535_v48 }
 0x445   :  { %10388 = vmatpush3.bf16.msra.mxu1 %v10387_v4  ;;  %v4917_v4 = vld [vmem:[%s16572_s5 + $0x5b0] sm:$0xff]  ;;  %v10467_v26 = vpack.c.bf16 %v4900_v50, %v4899_v29  ;;  %v4878_v29 = vld [vmem:[%s16572_s5 + $0x478] sm:$0xff] }
 0x446   :  { %10390 = vmatprep.subr.bf16.mxu1 %v10389_v51  ;;  %v4869_v51 = vld [vmem:[%s16572_s5 + $0x430] sm:$0xff]  ;;  %v10469_v28 = vpack.c.bf16 %v4918_v31, %v4917_v4 }
 0x447   :  { %10420 = vmatpush3.bf16.msra.mxu0 %v10419_v17  ;;  %v10439_v46 = vpack.c.bf16 %v4870_v63, %v4869_v51  ;;  %v4910_v51 = vld [vmem:[%s16572_s5 + $0x578] sm:$0xff] }
 0x448   :  { %10422 = vmatprep.subr.bf16.mxu0 %v10421_v13  ;;  %v4437_v34 = vpop.permute.xlu1 %4436  ;;  %v4888_v13 = vld [vmem:[%s16572_s5 + $0x4c8] sm:$0xff] }
 0x449   :  { %10392 = vmatpush3.bf16.msra.mxu1 %v10391_v56  ;;  %4439 = vst.msk [vmem:[#allocation3 + $0xe] sm:$0x3] %vm3998_vm13, %v4437_v34  ;;  %v4902_v56 = vld [vmem:[%s16572_s5 + $0x538] sm:$0xff]  ;;  %v4872_v34 = vld [vmem:[%s16572_s5 + $0x448] sm:$0xff] }
 0x44a   :  { %10426 = vmatprep.subr.bf16.mxu1 %v10425_v49  ;;  %v4497_v25 = vpop.permute.xlu0 %4496  ;;  %v4920_v49 = vld [vmem:[%s16572_s5 + $0x5c8] sm:$0xff] }
 0x44b   :  { %10424 = vmatpush3.bf16.msra.mxu0 %v10423_v14  ;;  %4499 = vst.msk [vmem:[#allocation3 + $0x10] sm:$0x3] %vm3998_vm13, %v4497_v25  ;;  %v10441_v14 = vpack.c.bf16 %v4888_v13, %v4887_v9  ;;  %v10473_v38 = vpack.c.bf16 %v4920_v49, %v4919_v10 }
 0x44c   :  { %10458 = vmatprep.subr.bf16.mxu0 %v10457_v53  ;;  %v4450_v43 = vpop.permute.xlu1 %4449  ;;  %v4871_v53 = vld [vmem:[%s16572_s5 + $0x440] sm:$0xff] }
 0x44d   :  { %4452 = vst.msk [vmem:[#allocation3 + $0xe] sm:$0x3] %vm4012_vm14, %v4450_v43 }
 0x44e   :  { %v4510_v22 = vpop.permute.xlu0 %4509 }
 0x44f   :  { %4512 = vst.msk [vmem:[#allocation3 + $0x10] sm:$0x3] %vm4012_vm14, %v4510_v22  ;;  %v10471_v22 = vpack.c.bf16 %v4902_v56, %v4901_v6  ;;  %v4928_v6 = vld [vmem:[%s16572_s5 + $0x608] sm:$0xff] }
 0x450   :  { %v4461_v0 = vpop.permute.xlu1 %4460 }
 0x451   :  { %4463 = vst.msk [vmem:[#allocation3 + $0xe] sm:$0x3] %vm4024_vm15, %v4461_v0  ;;  %v4889_v0 = vld [vmem:[%s16572_s5 + $0x4d0] sm:$0xff] }
 0x458   :  { %v4732_v20 = vld [vmem:[#allocation3 + $0x8] sm:$0xff] }
 0x459   :  { %v4966_v57 = vrot.slane %v4732_v20, %v13840_v62  ;;  %v4959_v27 = vcombine.high %v4732_v20, %v4732_v20  ;;  %v4890_v20 = vld [vmem:[%s16572_s5 + $0x4d8] sm:$0xff] }
 0x45a   :  { %v10445_v52 = vpack.c.bf16 %v4890_v20, %v4889_v0  ;;  %v5518_v0 = vld [vmem:[%s16574_s7 + $0x70] sm:$0xff]  ;;  %v5509_v20 = vld [vmem:[%s16574_s7 + $0x28] sm:$0xff] }
 0x45b   :  { %v4974_v2 = vcombine.high %v4966_v57, %v4966_v57  ;;  %v4973_v19 = vrot.slane %v4959_v27, %v13840_v62  ;;  %v10443_v27 = vpack.c.bf16 %v4872_v34, %v4871_v53  ;;  %v4929_v53 = vld [vmem:[%s16572_s5 + $0x610] sm:$0xff]  ;;  %v4930_v34 = vld [vmem:[%s16572_s5 + $0x618] sm:$0xff] }
 0x45d   :  { %5218 = vmatprep.mubr.f32.mxu1 %v4974_v2  ;;  %v4975_v44 = vcombine.high %v4973_v19, %v4973_v19  ;;  %v4874_v2 = vld [vmem:[%s16572_s5 + $0x458] sm:$0xff] }
 0x45e   :  { %5219 = vmatmul.mubr.f32.vlgmr.msra.gmra.mrb[30].mxu1 %v4966_v57  ;;  %v4904_v57 = vld [vmem:[%s16572_s5 + $0x548] sm:$0xff] }
 0x45f   :  { %5288 = vmatprep.mubr.f32.mxu0 %v4975_v44  ;;  %10428 = vmatpush3.bf16.msra.mxu1 %v10427_v23  ;;  %v10475_v23 = vpack.c.bf16 %v4904_v57, %v4903_v47  ;;  %v10447_v44 = vpack.c.bf16 %v4874_v2, %v4873_v58  ;;  %v5522_v47 = vld [vmem:[%s16574_s7 + $0x90] sm:$0xff]  ;;  %v5504_v57 = vld [vmem:[%s16574_s7] sm:$0xff]  ;;  %v5521_v58 = vld [vmem:[%s16574_s7 + $0x88] sm:$0xff] }
 0x460   :  { %5289 = vmatmul.mubr.f32.vlgmr.msra.gmra.mrb[58].mxu0 %v4973_v19  ;;  %10430 = vmatprep.subr.bf16.mxu1 %v10429_v59  ;;  %v10477_v59 = vpack.c.bf16 %v4922_v30, %v4921_v41  ;;  %v10527_v41 = vpack.c.bf16 %v5522_v47, %v5509_v20  ;;  %v5531_v2 = vld [vmem:[%s16574_s7 + $0xd8] sm:$0xff] }
 0x461   :  { %10460 = vmatpush3.bf16.msra.mxu0 %v10459_v7  ;;  %v4923_v7 = vld [vmem:[%s16572_s5 + $0x5e0] sm:$0xff] }
 0x462   :  { %10462 = vmatprep.subr.bf16.mxu0 %v10461_v32  ;;  %v4875_v32 = vld [vmem:[%s16572_s5 + $0x460] sm:$0xff]  ;;  %v10481_v37 = vpack.c.bf16 %v4924_v40, %v4923_v7  ;;  %v5534_v7 = vld [vmem:[%s16574_s7 + $0xf0] sm:$0xff] }
 0x463   :  { %10432 = vmatpush3.bf16.msra.mxu1 %v10431_v21  ;;  %v4893_v21 = vld [vmem:[%s16572_s5 + $0x4f0] sm:$0xff]  ;;  %v10451_v8 = vpack.c.bf16 %v4876_v45, %v4875_v32  ;;  %v5557_v45 = vld [vmem:[%s16574_s7 + $0x1a8] sm:$0xff] }
 0x464   :  { %10434 = vmatprep.subr.bf16.mxu1 %v10433_v15  ;;  %v4570_v39 = vpop.permute.xlu1 %4569  ;;  %v4537_v17 = vpop.permute.xlu0 %4536  ;;  %v4907_v15 = vld [vmem:[%s16572_s5 + $0x560] sm:$0xff]  ;;  %v10453_v54 = vpack.c.bf16 %v4894_v1, %v4893_v21  ;;  %v5561_v21 = vld [vmem:[%s16574_s7 + $0x1c8] sm:$0xff] }
 0x465   :  { %10464 = vmatpush3.bf16.msra.mxu0 %v10463_v60  ;;  %4539 = vst.msk [vmem:[#allocation3 + $0x10] sm:$0x3] %vm4024_vm15, %v4537_v17  ;;  %v4925_v60 = vld [vmem:[%s16572_s5 + $0x5f0] sm:$0xff]  ;;  %v10483_v50 = vpack.c.bf16 %v4908_v16, %v4907_v15  ;;  %v5556_v15 = vld [vmem:[%s16574_s7 + $0x1a0] sm:$0xff]  ;;  %v5569_v16 = vld [vmem:[%s16574_s7 + $0x208] sm:$0xff] }
 0x466   :  { %10466 = vmatprep.subr.bf16.mxu0 %v10465_v12  ;;  %v4877_v12 = vld [vmem:[%s16572_s5 + $0x470] sm:$0xff]  ;;  %v10485_v31 = vpack.c.bf16 %v4926_v11, %v4925_v60  ;;  %v10505_v60 = vpack.c.bf16 %v5569_v16, %v5556_v15  ;;  %v5560_v11 = vld [vmem:[%s16574_s7 + $0x1c0] sm:$0xff]  ;;  %v5545_v16 = vld [vmem:[%s16574_s7 + $0x148] sm:$0xff] }
 0x467   :  { %10436 = vmatpush3.bf16.msra.mxu1 %v10435_v61  ;;  %v10455_v63 = vpack.c.bf16 %v4878_v29, %v4877_v12  ;;  %v5583_v12 = vld [vmem:[%s16574_s7 + $0x278] sm:$0xff]  ;;  %v5532_v15 = vld [vmem:[%s16574_s7 + $0xe0] sm:$0xff] }
 0x468   :  { %10438 = vmatprep.subr.bf16.mxu1 %v10437_v36  ;;  %v4559_v25 = vpop.permute.xlu1 %4558  ;;  %v4619_v43 = vpop.permute.xlu0 %4618  ;;  %v4909_v36 = vld [vmem:[%s16572_s5 + $0x570] sm:$0xff] }
 0x469   :  { %10468 = vmatpush3.bf16.msra.mxu0 %v10467_v26  ;;  %4561 = vst.msk [vmem:[#allocation3 + $0x12] sm:$0x3] %vm3998_vm13, %v4559_v25  ;;  %4621 = vst.msk [vmem:[#allocation3 + $0x14] sm:$0x3] %vm3998_vm13, %v4619_v43  ;;  %v10493_v43 = vpack.c.bf16 %v4930_v34, %v4929_v53 }
 0x46a   :  { %10470 = vmatprep.subr.bf16.mxu0 %v10469_v28  ;;  %4572 = vst.msk [vmem:[#allocation3 + $0x12] sm:$0x3] %vm4012_vm14, %v4570_v39  ;;  %v10487_v39 = vpack.c.bf16 %v4910_v51, %v4909_v36  ;;  %v4927_v28 = vld [vmem:[%s16572_s5 + $0x600] sm:$0xff]  ;;  %v5582_v51 = vld [vmem:[%s16574_s7 + $0x270] sm:$0xff] }
 0x46b   :  { %10440 = vmatpush3.bf16.msra.mxu1 %v10439_v46  ;;  %v10490_v49 = vpack.c.bf16 %v4928_v6, %v4927_v28 }
 0x46c   :  { %10442 = vmatprep.subr.bf16.mxu1 %v10441_v14  ;;  %v4597_v19 = vpop.permute.xlu1 %4596 }
 0x46d   :  { %10472 = vmatpush3.bf16.msra.mxu0 %v10471_v22  ;;  %4599 = vst.msk [vmem:[#allocation3 + $0x12] sm:$0x3] %vm4024_vm15, %v4597_v19  ;;  %v5505_v22 = vld [vmem:[%s16574_s7 + $0x8] sm:$0xff] }
 0x46e   :  { %10474 = vmatprep.subr.bf16.mxu0 %v10473_v38  ;;  %v10495_v38 = vpack.c.bf16 %v5518_v0, %v5505_v22 }
 0x46f   :  { %10444 = vmatpush3.bf16.msra.mxu1 %v10443_v27  ;;  %v5517_v27 = vld [vmem:[%s16574_s7 + $0x68] sm:$0xff] }
 0x470   :  { %10446 = vmatprep.subr.bf16.mxu1 %v10445_v52  ;;  %v10497_v30 = vpack.c.bf16 %v5517_v27, %v5504_v57  ;;  %v5508_v52 = vld [vmem:[%s16574_s7 + $0x20] sm:$0xff] }
 0x471   :  { %10476 = vmatpush3.bf16.msra.mxu0 %v10475_v23  ;;  %v10529_v19 = vpack.c.bf16 %v5521_v58, %v5508_v52  ;;  %v5544_v23 = vld [vmem:[%s16574_s7 + $0x140] sm:$0xff] }
 0x472   :  { %10478 = vmatprep.subr.bf16.mxu0 %v10477_v59  ;;  %v10499_v59 = vpack.c.bf16 %v5544_v23, %v5531_v2 }
 0x473   :  { %10448 = vmatpush3.bf16.msra.mxu1 %v10447_v44  ;;  %v5543_v44 = vld [vmem:[%s16574_s7 + $0x138] sm:$0xff] }
 0x474   :  { %10450 = vmatprep.subr.bf16.mxu1 %v10449_v55  ;;  %v10501_v40 = vpack.c.bf16 %v5543_v44, %v5530_v3  ;;  %v5547_v55 = vld [vmem:[%s16574_s7 + $0x158] sm:$0xff]  ;;  %v5512_v44 = vld [vmem:[%s16574_s7 + $0x40] sm:$0xff] }
 0x475   :  { %10480 = vmatpush3.bf16.msra.mxu0 %v10479_v18  ;;  %v10533_v32 = vpack.c.bf16 %v5547_v55, %v5534_v7  ;;  %v5570_v18 = vld [vmem:[%s16574_s7 + $0x210] sm:$0xff]  ;;  %v5519_v3 = vld [vmem:[%s16574_s7 + $0x78] sm:$0xff]  ;;  %v5525_v7 = vld [vmem:[%s16574_s7 + $0xa8] sm:$0xff] }
 0x476   :  { %10482 = vmatprep.subr.bf16.mxu0 %v10481_v37  ;;  %v10503_v1 = vpack.c.bf16 %v5570_v18, %v5557_v45  ;;  %v5574_v37 = vld [vmem:[%s16574_s7 + $0x230] sm:$0xff]  ;;  %v5539_v45 = vld [vmem:[%s16574_s7 + $0x118] sm:$0xff]  ;;  %v5552_v18 = vld [vmem:[%s16574_s7 + $0x180] sm:$0xff] }
 0x477   :  { %v4679_v61 = vpop.permute.xlu1 %4678  ;;  %v4646_v4 = vpop.permute.xlu0 %4645  ;;  %10452 = vmatpush3.bf16.msra.mxu1 %v10451_v8  ;;  %v10535_v8 = vpack.c.bf16 %v5574_v37, %v5561_v21  ;;  %v10561_v37 = vpack.c.bf16 %v5525_v7, %v5512_v44  ;;  %v5576_v44 = vld [vmem:[%s16574_s7 + $0x240] sm:$0xff] }
 0x478   :  { %4681 = vst.msk [vmem:[#allocation3 + $0x16] sm:$0x3] %vm3998_vm13, %v4679_v61  ;;  %10454 = vmatprep.subr.bf16.mxu1 %v10453_v54  ;;  %v5573_v54 = vld [vmem:[%s16574_s7 + $0x228] sm:$0xff]  ;;  %v5587_v61 = vld [vmem:[%s16574_s7 + $0x298] sm:$0xff] }
 0x479   :  { %4648 = vst.msk [vmem:[#allocation3 + $0x14] sm:$0x3] %vm4012_vm14, %v4646_v4  ;;  %10484 = vmatpush3.bf16.msra.mxu0 %v10483_v50  ;;  %v10537_v29 = vpack.c.bf16 %v5573_v54, %v5560_v11  ;;  %v5596_v50 = vld [vmem:[%s16574_s7 + $0x2e0] sm:$0xff]  ;;  %v10563_v54 = vpack.c.bf16 %v5552_v18, %v5539_v45  ;;  %v5575_v45 = vld [vmem:[%s16574_s7 + $0x238] sm:$0xff] }
 0x47a   :  { %10486 = vmatprep.subr.bf16.mxu0 %v10485_v31  ;;  %v5600_v4 = vld [vmem:[%s16574_s7 + $0x300] sm:$0xff]  ;;  %v10507_v31 = vpack.c.bf16 %v5596_v50, %v5583_v12  ;;  %v5538_v12 = vld [vmem:[%s16574_s7 + $0x110] sm:$0xff]  ;;  %v5559_v50 = vld [vmem:[%s16574_s7 + $0x1b8] sm:$0xff] }
 0x47b   :  { %v4706_v17 = vpop.permute.xlu1 %4705  ;;  %v4657_v26 = vpop.permute.xlu0 %4656  ;;  %10456 = vmatpush3.bf16.msra.mxu1 %v10455_v63  ;;  %v10539_v36 = vpack.c.bf16 %v5600_v4, %v5587_v61  ;;  %v5595_v63 = vld [vmem:[%s16574_s7 + $0x2d8] sm:$0xff]  ;;  %v5572_v61 = vld [vmem:[%s16574_s7 + $0x220] sm:$0xff]  ;;  %v5565_v4 = vld [vmem:[%s16574_s7 + $0x1e8] sm:$0xff] }
 0x47c   :  { %4708 = vst.msk [vmem:[#allocation3 + $0x16] sm:$0x3] %vm4012_vm14, %v4706_v17  ;;  %10489 = vmatprep.subr.bf16.mxu1 %v11547_v35  ;;  %v10509_v17 = vpack.c.bf16 %v5595_v63, %v5582_v51  ;;  %v5558_v63 = vld [vmem:[%s16574_s7 + $0x1b0] sm:$0xff]  ;;  %v5568_v18 = vld [vmem:[%s16574_s7 + $0x200] sm:$0xff] }
 0x47d   :  { %4659 = vst.msk [vmem:[#allocation3 + $0x14] sm:$0x3] %vm4024_vm15, %v4657_v26  ;;  %10488 = vmatpush3.bf16.msra.mxu0 %v10487_v39  ;;  %v5586_v39 = vld [vmem:[%s16574_s7 + $0x290] sm:$0xff]  ;;  %v5599_v26 = vld [vmem:[%s16574_s7 + $0x2f8] sm:$0xff] }
 0x47e   :  { %10528 = vmatprep.subr.bf16.mxu0 %v10527_v41  ;;  %v10541_v28 = vpack.c.bf16 %v5599_v26, %v5586_v39  ;;  %v5571_v39 = vld [vmem:[%s16574_s7 + $0x218] sm:$0xff] }
 0x47f   :  { %v4717_v9 = vpop.permute.xlu1 %4716 }
 0x480   :  { %4719 = vst.msk [vmem:[#allocation3 + $0x16] sm:$0x3] %vm4024_vm15, %v4717_v9  ;;  %v5507_v9 = vld [vmem:[%s16574_s7 + $0x18] sm:$0xff] }
 0x487   :  { %v4733_v13 = vld [vmem:[#allocation3 + $0x10] sm:$0xff] }
 0x488   :  { %v4983_v56 = vrot.slane %v4733_v13, %v13840_v62  ;;  %v4976_v46 = vcombine.high %v4733_v13, %v4733_v13  ;;  %v5520_v13 = vld [vmem:[%s16574_s7 + $0x80] sm:$0xff] }
 0x489   :  { %v10511_v6 = vpack.c.bf16 %v5520_v13, %v5507_v9  ;;  %v5564_v9 = vld [vmem:[%s16574_s7 + $0x1e0] sm:$0xff]  ;;  %v5577_v13 = vld [vmem:[%s16574_s7 + $0x248] sm:$0xff] }
 0x48a   :  { %v4991_v10 = vcombine.high %v4983_v56, %v4983_v56  ;;  %v4990_v14 = vrot.slane %v4976_v46, %v13840_v62  ;;  %v9457_v62 = vld.sshfl [vmem:[#allocation3 + $0x18] sm:$0x3 pattern:$0x76325410]  ;;  %v5526_v46 = vld [vmem:[%s16574_s7 + $0xb0] sm:$0xff] }
 0x48c   :  { %5358 = vmatprep.mubr.f32.mxu1 %v4991_v10  ;;  %v4992_v25 = vcombine.high %v4990_v14, %v4990_v14 }
 0x48d   :  { %5359 = vmatmul.mubr.f32.vlgmr.msra.gmra.mrb[32].mxu1 %v4983_v56  ;;  %v5513_v56 = vld [vmem:[%s16574_s7 + $0x48] sm:$0xff] }
 0x48e   :  { %10491 = vmatpush3.bf16.msra.mxu1 %v10490_v49  ;;  %5428 = vmatprep.mubr.f32.mxu0 %v4992_v25  ;;  %v10559_v10 = vpack.c.bf16 %v5526_v46, %v5513_v56  ;;  %v5591_v56 = vld [vmem:[%s16574_s7 + $0x2b8] sm:$0xff]  ;;  %v5604_v46 = vld [vmem:[%s16574_s7 + $0x320] sm:$0xff] }
 0x48f   :  { %5429 = vmatmul.mubr.f32.vlgmr.msra.gmra.mrb[60].mxu0 %v4990_v14  ;;  %10492 = vmatprep.subr.bf16.mxu1 %v11547_v35  ;;  %v9456_v14 = vld [vmem:[%s16575_s6] ss:$0 sm:$0xff] }
 0x490   :  { %10035 = vmatprep.mubr.msk.f32.mxu1 %vm11554_vm1, %v11544_v33  ;;  %5886 = vmatprep.mubr.f32.mxu0 %v11544_v33 }
 0x491   :  { %10530 = vmatpush1.bf16.msra.mxu0 %v10529_v19 }
 0x492   :  { %10494 = vmatpush3.bf16.msra.mxu1 %v10493_v43  ;;  %10532 = vmatprep.subr.bf16.mxu0 %v10531_v42  ;;  %v5506_v42 = vld [vmem:[%s16574_s7 + $0x10] sm:$0xff] }
 0x493   :  { %10496 = vmatprep.subr.bf16.mxu1 %v10495_v38 }
 0x495   :  { %10036 = vmatmul.mubr.msk.f32.vlgmr.msra.gmra.mrb[34].mxu1 %vm2916_vm7, %v9457_v62  ;;  %10534 = vmatpush1.bf16.msra.mxu0 %v10533_v32  ;;  %v5546_v32 = vld [vmem:[%s16574_s7 + $0x150] sm:$0xff] }
 0x496   :  { %5744 = vmatprep.mubr.f32.mxu1 %v11544_v33  ;;  %10498 = vmatpush1.bf16.msra.mxu1 %v10497_v30 }
 0x497   :  { %10500 = vmatprep.subr.bf16.mxu1 %v10499_v59  ;;  %10536 = vmatprep.subr.bf16.mxu0 %v10535_v8 }
 0x499   :  { %10538 = vmatpush1.bf16.msra.mxu0 %v10537_v29  ;;  %v5551_v29 = vld [vmem:[%s16574_s7 + $0x178] sm:$0xff] }
 0x49a   :  { %10502 = vmatpush1.bf16.msra.mxu1 %v10501_v40  ;;  %10540 = vmatprep.subr.bf16.mxu0 %v10539_v36  ;;  %v5533_v40 = vld [vmem:[%s16574_s7 + $0xe8] sm:$0xff]  ;;  %v10517_v36 = vpack.c.bf16 %v5545_v16, %v5532_v15  ;;  %v10565_v51 = vpack.c.bf16 %v5551_v29, %v5538_v12  ;;  %v5594_v12 = vld [vmem:[%s16574_s7 + $0x2d0] sm:$0xff]  ;;  %v5607_v29 = vld [vmem:[%s16574_s7 + $0x338] sm:$0xff] }
 0x49b   :  { %10504 = vmatprep.subr.bf16.mxu1 %v10503_v1  ;;  %v10513_v1 = vpack.c.bf16 %v5519_v3, %v5506_v42  ;;  %v10515_v11 = vpack.c.bf16 %v5546_v32, %v5533_v40  ;;  %v5555_v42 = vld [vmem:[%s16574_s7 + $0x198] sm:$0xff] }
 0x49c   :  { %v5563_v3 = vld [vmem:[%s16574_s7 + $0x1d8] sm:$0xff] }
 0x49d   :  { %10542 = vmatpush1.bf16.msra.mxu0 %v10541_v28  ;;  %v5585_v28 = vld [vmem:[%s16574_s7 + $0x288] sm:$0xff]  ;;  %v10551_v32 = vpack.c.bf16 %v5576_v44, %v5563_v3 }
 0x49e   :  { %10506 = vmatpush1.bf16.msra.mxu1 %v10505_v60  ;;  %10560 = vmatprep.subr.bf16.mxu0 %v10559_v10  ;;  %v10521_v10 = vpack.c.bf16 %v5571_v39, %v5558_v63  ;;  %v5527_v63 = vld [vmem:[%s16574_s7 + $0xb8] sm:$0xff]  ;;  %v5541_v39 = vld [vmem:[%s16574_s7 + $0x128] sm:$0xff] }
 0x49f   :  { %10508 = vmatprep.subr.bf16.mxu1 %v10507_v31  ;;  %v5578_v31 = vld [vmem:[%s16574_s7 + $0x250] sm:$0xff] }
 0x4a0   :  { %v10567_v26 = vpack.c.bf16 %v5578_v31, %v5565_v4  ;;  %v10601_v31 = vpack.c.bf16 %v5607_v29, %v5594_v12 }
 0x4a2   :  { %10510 = vmatpush1.bf16.msra.mxu1 %v10509_v17  ;;  %v10519_v17 = vpack.c.bf16 %v5572_v61, %v5559_v50  ;;  %v5515_v50 = vld [vmem:[%s16574_s7 + $0x58] sm:$0xff]  ;;  %v5528_v61 = vld [vmem:[%s16574_s7 + $0xc0] sm:$0xff] }
 0x4a3   :  { %10512 = vmatprep.subr.bf16.mxu1 %v10511_v6  ;;  %v5598_v6 = vld [vmem:[%s16574_s7 + $0x2f0] sm:$0xff] }
 0x4ff   :  { %v9621_v49 = vpop.f32.mrb[28].mxu1 }
 0x500   :  { %v9622_v53 = vpop.f32.mrb[29].mxu1 }
 0x501   :  { %v9623_v34 = vadd.f32 %v9622_v53, %v9621_v49  ;;  %v9656_v25 = vpop.f32.mrb[56].mxu0  ;;  %v10569_v49 = vpack.c.bf16 %v5577_v13, %v5564_v9  ;;  %v10523_v53 = vpack.c.bf16 %v5598_v6, %v5585_v28  ;;  %v5540_v9 = vld [vmem:[%s16574_s7 + $0x120] sm:$0xff]  ;;  %v5553_v13 = vld [vmem:[%s16574_s7 + $0x188] sm:$0xff]  ;;  %v5567_v28 = vld [vmem:[%s16574_s7 + $0x1f8] sm:$0xff] }
 0x502   :  { %v9657_v43 = vpop.f32.mrb[57].mxu0  ;;  %v5580_v6 = vld [vmem:[%s16574_s7 + $0x260] sm:$0xff] }
 0x503   :  { %v5081_v62 = vadd.f32 %v9623_v34, %v9456_v14  ;;  %v9658_v22 = vadd.f32 %v9657_v43, %v9656_v25  ;;  %v5584_v14 = vld [vmem:[%s16574_s7 + $0x280] sm:$0xff]  ;;  %v10571_v34 = vpack.c.bf16 %v5604_v46, %v5591_v56  ;;  %v5597_v25 = vld [vmem:[%s16574_s7 + $0x2e8] sm:$0xff]  ;;  %v5590_v43 = vld [vmem:[%s16574_s7 + $0x2b0] sm:$0xff]  ;;  %v10581_v56 = vpack.c.bf16 %v5553_v13, %v5540_v9 }
 0x504   :  { %v10583_v46 = vpack.c.bf16 %v5580_v6, %v5567_v28 }
 0x505   :  { %v5151_v0 = vadd.f32 %v9658_v22, %v5081_v62  ;;  %v5603_v62 = vld [vmem:[%s16574_s7 + $0x318] sm:$0xff] }
 0x506   :  { %v5511_v22 = vld [vmem:[%s16574_s7 + $0x38] sm:$0xff] }
 0x531   :  { %v9691_v20 = vpop.f32.mrb[30].mxu1 }
 0x532   :  { %v9692_v38 = vpop.f32.mrb[31].mxu1 }
 0x533   :  { %v9693_v47 = vadd.f32 %v9692_v38, %v9691_v20  ;;  %v9726_v57 = vpop.f32.mrb[58].mxu0  ;;  %v10525_v20 = vpack.c.bf16 %v5597_v25, %v5584_v14  ;;  %v10573_v38 = vpack.c.bf16 %v5603_v62, %v5590_v43  ;;  %v5593_v14 = vld [vmem:[%s16574_s7 + $0x2c8] sm:$0xff]  ;;  %v5592_v43 = vld [vmem:[%s16574_s7 + $0x2c0] sm:$0xff] }
 0x534   :  { %v9727_v27 = vpop.f32.mrb[59].mxu0  ;;  %v5605_v62 = vld [vmem:[%s16574_s7 + $0x328] sm:$0xff] }
 0x535   :  { %v5221_v41 = vadd.f32 %v9693_v47, %v5151_v0  ;;  %v9728_v30 = vadd.f32 %v9727_v27, %v9726_v57  ;;  %v5524_v0 = vld [vmem:[%s16574_s7 + $0xa0] sm:$0xff]  ;;  %v5510_v47 = vld [vmem:[%s16574_s7 + $0x30] sm:$0xff]  ;;  %v5523_v27 = vld [vmem:[%s16574_s7 + $0x98] sm:$0xff] }
 0x536   :  { %v10543_v57 = vpack.c.bf16 %v5524_v0, %v5511_v22  ;;  %v10589_v22 = vpack.c.bf16 %v5605_v62, %v5592_v43 }
 0x537   :  { %v5291_v52 = vadd.f32 %v9728_v30, %v5221_v41  ;;  %v5516_v41 = vld [vmem:[%s16574_s7 + $0x60] sm:$0xff]  ;;  %v5529_v30 = vld [vmem:[%s16574_s7 + $0xc8] sm:$0xff] }
 0x560   :  { %v9761_v58 = vpop.f32.mrb[32].mxu1 }
 0x561   :  { %v9762_v2 = vpop.f32.mrb[33].mxu1 }
 0x562   :  { %v9763_v19 = vadd.f32 %v9762_v2, %v9761_v58  ;;  %v9796_v23 = vpop.f32.mrb[60].mxu0  ;;  %v5550_v58 = vld [vmem:[%s16574_s7 + $0x170] sm:$0xff]  ;;  %v10545_v2 = vpack.c.bf16 %v5523_v27, %v5510_v47  ;;  %v15170_v47 = vld [vmem:[%s16576_s8] sm:$0xff]  ;;  %v5634_v27 = vsub.s32 5, %v13837_v24 }
 0x563   :  { %v9797_v48 = vpop.f32.mrb[61].mxu0 }
 0x564   :  { %v5361_v5 = vadd.f32 %v9763_v19, %v5291_v52  ;;  %v9798_v59 = vadd.f32 %v9797_v48, %v9796_v23  ;;  %v5537_v52 = vld [vmem:[%s16574_s7 + $0x108] sm:$0xff]  ;;  %v10592_v19 = vpack.c.bf16 %v5529_v30, %v5516_v41  ;;  %v5536_v23 = vld [vmem:[%s16574_s7 + $0x100] sm:$0xff] }
 0x565   :  { %v10547_v48 = vpack.c.bf16 %v5550_v58, %v5537_v52 }
 0x566   :  { %v5431_v55 = vadd.f32 %v9798_v59, %v5361_v5  ;;  %v5549_v5 = vld [vmem:[%s16574_s7 + $0x168] sm:$0xff]  ;;  %v5542_v59 = vld [vmem:[%s16574_s7 + $0x130] sm:$0xff] }
 0x567   :  { %v10549_v7 = vpack.c.bf16 %v5549_v5, %v5536_v23  ;;  %v10595_v40 = vpack.c.bf16 %v5555_v42, %v5542_v59 }
 0x568   :  { %v5500_v21 = vpop.f32.mrb[34].mxu1 }
 0x569   :  { %v14931_v8 = vadd.f32 %v5500_v21, %v5431_v55  ;;  %v10037_v60 = vpop.f32.mrb[35].mxu1  ;;  %v5562_v55 = vld [vmem:[%s16574_s7 + $0x1d0] sm:$0xff]  ;;  %v5581_v21 = vld [vmem:[%s16574_s7 + $0x268] sm:$0xff] }
 0x56a   :  { %v10553_v15 = vpack.c.bf16 %v5575_v45, %v5562_v55  ;;  %v10598_v16 = vpack.c.bf16 %v5581_v21, %v5568_v18  ;;  %v5588_v60 = vld [vmem:[%s16574_s7 + $0x2a0] sm:$0xff] }
 0x56b   :  { %9459 = vmatmul.mubr.msk.f32.vlgmr.msra.gmra.mrb[36].mxu1 %vm2973_vm8, %v14931_v8  ;;  %9461 = vmatmul.mubr.msk.f32.vlgmr.msra.gmra.mrb[62].mxu0 %vm2973_vm8, %v14931_v8 }
 0x56c   :  { %10514 = vmatpush1.bf16.msra.mxu1 %v10513_v1  ;;  %10562 = vmatpush1.bf16.msra.mxu0 %v10561_v37  ;;  %v5589_v1 = vld [vmem:[%s16574_s7 + $0x2a8] sm:$0xff]  ;;  %v5602_v37 = vld [vmem:[%s16574_s7 + $0x310] sm:$0xff] }
 0x56d   :  { %10516 = vmatprep.subr.bf16.mxu1 %v10515_v11  ;;  %10564 = vmatprep.subr.bf16.mxu0 %v10563_v54  ;;  %v10555_v11 = vpack.c.bf16 %v5602_v37, %v5589_v1  ;;  %v5601_v54 = vld [vmem:[%s16574_s7 + $0x308] sm:$0xff] }
 0x56e   :  { %5815 = vmatprep.mubr.f32.mxu1 %v11544_v33  ;;  %6028 = vmatprep.mubr.f32.mxu0 %v11544_v33  ;;  %v10557_v4 = vpack.c.bf16 %v5601_v54, %v5588_v60 }
 0x570   :  { %10518 = vmatpush1.bf16.msra.mxu1 %v10517_v36  ;;  %10566 = vmatpush1.bf16.msra.mxu0 %v10565_v51  ;;  %v10575_v36 = vpack.c.bf16 %v5528_v61, %v5515_v50  ;;  %v5514_v51 = vld [vmem:[%s16574_s7 + $0x50] sm:$0xff] }
 0x571   :  { %10520 = vmatprep.subr.bf16.mxu1 %v10519_v17  ;;  %10568 = vmatprep.subr.bf16.mxu0 %v10567_v26  ;;  %v5554_v17 = vld [vmem:[%s16574_s7 + $0x190] sm:$0xff] }
 0x572   :  { %v10579_v26 = vpack.c.bf16 %v5554_v17, %v5541_v39  ;;  %v15213_v39 = vld [vmem:[%s16576_s8 + $0x8] sm:$0x1f]  ;;  %v5626_v17 = vsub.s32 3, %v13837_v24 }
 0x574   :  { %10522 = vmatpush1.bf16.msra.mxu1 %v10521_v10  ;;  %10570 = vmatpush1.bf16.msra.mxu0 %v10569_v49  ;;  %v5566_v10 = vld [vmem:[%s16574_s7 + $0x1f0] sm:$0xff]  ;;  %v5579_v49 = vld [vmem:[%s16574_s7 + $0x258] sm:$0xff]  ;;  %v5627_v13 = vrot.slane %v15170_v47, %v5626_v17 }
 0x575   :  { %10524 = vmatprep.subr.bf16.mxu1 %v10523_v53  ;;  %10572 = vmatprep.subr.bf16.mxu0 %v10571_v34  ;;  %v5606_v53 = vld [vmem:[%s16574_s7 + $0x330] sm:$0xff]  ;;  %v10585_v34 = vpack.c.bf16 %v5579_v49, %v5566_v10 }
 0x576   :  { %v10587_v25 = vpack.c.bf16 %v5606_v53, %v5593_v14 }
 0x578   :  { %10526 = vmatpush1.bf16.msra.mxu1 %v10525_v20  ;;  %10574 = vmatpush1.bf16.msra.mxu0 %v10573_v38  ;;  %v15164_v20 = vsub.s32 0, %v13837_v24  ;;  %v5630_v38 = vsub.s32 4, %v13837_v24 }
 0x579   :  { %10544 = vmatprep.subr.bf16.mxu1 %v10543_v57  ;;  %10591 = vmatprep.subr.bf16.mxu0 %v11547_v35  ;;  %v5618_v57 = vsub.s32 1, %v13837_v24 }
 0x57a   :  { %v5615_v30 = vrot.slane %v15170_v47, %v15164_v20  ;;  %v5631_v52 = vrot.slane %v15170_v47, %v5630_v38  ;;  %v5647_v9 = vrot.slane %v15213_v39, %v15164_v20 }
 0x57b   :  { %9460 = vmatmul.mubr.msk.f32.vlgmr.msra.gmra.mrb[38].mxu1 %vm2973_vm8, %v14931_v8  ;;  %9463 = vmatmul.mubr.msk.f32.vlgmr.msra.gmra.mrb[64].mxu0 %vm2973_vm8, %v14931_v8  ;;  %v5619_v58 = vrot.slane %v15170_v47, %v5618_v57  ;;  %v5651_v28 = vrot.slane %v15213_v39, %v5618_v57 }
 0x57c   :  { %10546 = vmatpush1.bf16.msra.mxu1 %v10545_v2  ;;  %10593 = vmatpush3.bf16.msra.mxu0 %v10592_v19  ;;  %v5635_v2 = vrot.slane %v15170_v47, %v5634_v27 }
 0x57d   :  { %10548 = vmatprep.subr.bf16.mxu1 %v10547_v48  ;;  %10594 = vmatprep.subr.bf16.mxu0 %v11547_v35 }
 0x57e   :  { %5957 = vmatprep.mubr.f32.mxu1 %v11544_v33  ;;  %10054 = vmatprep.mubr.msk.f32.mxu0 %vm11554_vm1, %v11544_v33 }
 0x580   :  { %10550 = vmatpush1.bf16.msra.mxu1 %v10549_v7  ;;  %10596 = vmatpush3.bf16.msra.mxu0 %v10595_v40 }
 0x581   :  { %10552 = vmatprep.subr.bf16.mxu1 %v10551_v32  ;;  %10597 = vmatprep.subr.bf16.mxu0 %v11547_v35 }
 0x584   :  { %10554 = vmatpush1.bf16.msra.mxu1 %v10553_v15  ;;  %10599 = vmatpush3.bf16.msra.mxu0 %v10598_v16 }
 0x585   :  { %10556 = vmatprep.subr.bf16.mxu1 %v10555_v11  ;;  %10600 = vmatprep.subr.bf16.mxu0 %v11547_v35  ;;  %v10577_v35 = vpack.c.bf16 %v5527_v63, %v5514_v51 }
 0x588   :  { %10558 = vmatpush1.bf16.msra.mxu1 %v10557_v4  ;;  %10602 = vmatpush3.bf16.msra.mxu0 %v10601_v31 }
 0x589   :  { %10576 = vmatprep.subr.bf16.mxu1 %v10575_v36  ;;  %v5622_v36 = vsub.s32 2, %v13837_v24 }
 0x58b   :  { %9462 = vmatmul.mubr.msk.f32.vlgmr.msra.gmra.mrb[40].mxu1 %vm2973_vm8, %v14931_v8  ;;  %10055 = vmatmul.mubr.msk.f32.vlgmr.msra.gmra.mrb[66].mxu0 %vm2973_vm8, %v14931_v8 }
 0x58c   :  { %10578 = vmatpush1.bf16.msra.mxu1 %v10577_v35  ;;  %6099 = vmatprep.mubr.f32.mxu1 %v11544_v33  ;;  %v8718_v33 = vld [vmem:[#allocation5 + $0x71] sm:$0xff] }
 0x58d   :  { %10580 = vmatprep.subr.bf16.mxu1 %v10579_v26  ;;  %v5623_v26 = vrot.slane %v15170_v47, %v5622_v36 }
 0x590   :  { %10582 = vmatpush1.bf16.msra.mxu1 %v10581_v56 }
 0x591   :  { %10584 = vmatprep.subr.bf16.mxu1 %v10583_v46 }
 0x594   :  { %10586 = vmatpush1.bf16.msra.mxu1 %v10585_v34 }
 0x595   :  { %10588 = vmatprep.subr.bf16.mxu1 %v10587_v25 }
 0x598   :  { %10590 = vmatpush1.bf16.msra.mxu1 %v10589_v22 }
 0x59b   :  { %9464 = vmatmul.mubr.msk.f32.vlgmr.msra.gmra.mrb[42].mxu1 %vm2973_vm8, %v14931_v8  ;;  %v11555_v8 = vmov 1966171168  }
 0x59c   :  { %v6224_v0 = vunpack.c.l.s4 %v11555_v8 }
 0x59e   :  { %v6225_v41 = vunpack.c.0.s8 %v6224_v0 }
 0x5a0   :  { %v15182_v48 = vsub.s32 %v6225_v41, %v13837_v24 }
 0x63e   :  { %v5746_v19 = vpop.f32.mrb[36].mxu1  ;;  %v5888_v23 = vpop.f32.mrb[62].mxu0 }
 0x63f   :  { %v5747_v5 = vadd.f32 %v5746_v19, %v5615_v30  ;;  %v5889_v59 = vadd.f32 %v5888_v23, %v5631_v52  ;;  %v5748_v42 = vpop.f32.mrb[37].mxu1  ;;  %v5890_v3 = vpop.f32.mrb[63].mxu0 }
 0x640   :  { %v5749_v44 = vadd.f32 %v5748_v42, %v5619_v58  ;;  %v5891_v7 = vadd.f32 %v5890_v3, %v5635_v2 }
 0x641   :  { %v6176_v40 = vmax.f32 %v5747_v5, 0.0  ;;  %v6180_v55 = vmax.f32 %v5889_v59, 0.0 }
 0x642   :  { %v6177_v32 = vmax.f32 %v5749_v44, 0.0  ;;  %v6181_v45 = vmax.f32 %v5891_v7, 0.0  ;;  %v5638_v7 = vsub.s32 6, %v13837_v24 }
 0x643   :  { %v6229_v18 = vrot.slane %v6176_v40, %v15182_v48  ;;  %v6467_v21 = vrot.slane %v6180_v55, %v15182_v48 }
 0x644   :  { %v6288_v1 = vrot.slane %v6177_v32, %v15182_v48  ;;  %v6526_v37 = vrot.slane %v6181_v45, %v15182_v48  ;;  %v5642_v32 = vsub.s32 7, %v13837_v24  ;;  %v5639_v45 = vrot.slane %v15170_v47, %v5638_v7 }
 0x645   :  { %v6230_v15 = vcombine.high %v6229_v18, %v6229_v18  ;;  %v6237_v16 = vrot.slane %v6229_v18, %v15182_v48  ;;  %v6468_v60 = vcombine.high %v6467_v21, %v6467_v21  ;;  %v6475_v11 = vrot.slane %v6467_v21, %v15182_v48 }
 0x646   :  { %v6289_v54 = vcombine.high %v6288_v1, %v6288_v1  ;;  %v6296_v12 = vrot.slane %v6288_v1, %v15182_v48  ;;  %v6527_v29 = vcombine.high %v6526_v37, %v6526_v37  ;;  %v6534_v50 = vrot.slane %v6526_v37, %v15182_v48 }
 0x647   :  { %v15193_v61 = vrot.slane %v6230_v15, %v15182_v48  ;;  %6247 = vst.msk [vmem:[#allocation4] sm:$0x1] %vm6190_vm5, %v6237_v16  ;;  %v6252_v4 = vrot.slane %v6237_v16, %v15164_v20  ;;  %v15198_v31 = vrot.slane %v6468_v60, %v15182_v48  ;;  %6485 = vst.msk [vmem:[#allocation4 + $0x22] sm:$0x1] %vm6190_vm5, %v6475_v11 }
 0x648   :  { %v15203_v51 = vrot.slane %v6289_v54, %v15182_v48  ;;  %6306 = vst.msk [vmem:[#allocation4 + $0x4] sm:$0x1] %vm6190_vm5, %v6296_v12  ;;  %v15207_v63 = vrot.slane %v6527_v29, %v15182_v48  ;;  %6544 = vst.msk [vmem:[#allocation4 + $0x26] sm:$0x1] %vm6190_vm5, %v6534_v50  ;;  %v6490_v35 = vrot.slane %v6475_v11, %v15164_v20 }
 0x649   :  { %6248 = vst.msk [vmem:[#allocation4 + $0x80] sm:$0x1] %vm6190_vm5, %v15193_v61  ;;  %6486 = vst.msk [vmem:[#allocation4 + $0xa2] sm:$0x1] %vm6190_vm5, %v15198_v31  ;;  %6265 = vrot.lane.b32.xlu1 %v6252_v4, %s11548_s26  ;;  %6257 = vrot.lane.b32.xlu0 %v6252_v4, %s11551_s24  ;;  %v6311_v46 = vrot.slane %v6296_v12, %v15164_v20  ;;  %v6549_v42 = vrot.slane %v6534_v50, %v15164_v20 }
 0x64a   :  { %6307 = vst.msk [vmem:[#allocation4 + $0x84] sm:$0x1] %vm6190_vm5, %v15203_v51  ;;  %6545 = vst.msk [vmem:[#allocation4 + $0xa6] sm:$0x1] %vm6190_vm5, %v15207_v63  ;;  %v5663_v18 = vrot.slane %v15213_v39, %v5630_v38  ;;  %v5643_v21 = vrot.slane %v15170_v47, %v5642_v32  ;;  %v6256_v54 = vrot.slane %v15193_v61, %v15164_v20 }
 0x64d   :  { %6503 = vrot.lane.b32.xlu1 %v6490_v35, %s11548_s26  ;;  %6273 = vrot.lane.b32.xlu0 %v6252_v4, %s11545_s28 }
 0x64e   :  { %v5817_v6 = vpop.f32.mrb[38].mxu1  ;;  %v6030_v56 = vpop.f32.mrb[64].mxu0 }
 0x64f   :  { %v5818_v10 = vadd.f32 %v5817_v6, %v5623_v26  ;;  %v6031_v49 = vadd.f32 %v6030_v56, %v5647_v9  ;;  %v5819_v14 = vpop.f32.mrb[39].mxu1  ;;  %v6032_v53 = vpop.f32.mrb[65].mxu0 }
 0x650   :  { %v5820_v34 = vadd.f32 %v5819_v14, %v5627_v13  ;;  %v6033_v25 = vadd.f32 %v6032_v53, %v5651_v28  ;;  %v5659_v14 = vrot.slane %v15213_v39, %v5626_v17 }
 0x651   :  { %v6178_v43 = vmax.f32 %v5818_v10, 0.0  ;;  %v6184_v62 = vmax.f32 %v6031_v49, 0.0  ;;  %6316 = vrot.lane.b32.xlu1 %v6311_v46, %s11551_s24  ;;  %6495 = vrot.lane.b32.xlu0 %v6490_v35, %s11551_s24  ;;  %v6315_v10 = vrot.slane %v15203_v51, %v15164_v20  ;;  %v5655_v51 = vrot.slane %v15213_v39, %v5622_v36 }
 0x652   :  { %v6179_v22 = vmax.f32 %v5820_v34, 0.0  ;;  %v6185_v8 = vmax.f32 %v6033_v25, 0.0 }
 0x653   :  { %v6348_v0 = vrot.slane %v6178_v43, %v15182_v48  ;;  %v6705_v57 = vrot.slane %v6184_v62, %v15182_v48  ;;  %v6553_v43 = vrot.slane %v15207_v63, %v15164_v20 }
 0x654   :  { %v6407_v27 = vrot.slane %v6179_v22, %v15182_v48  ;;  %v6765_v41 = vrot.slane %v6185_v8, %v15182_v48 }
 0x655   :  { %v6349_v30 = vcombine.high %v6348_v0, %v6348_v0  ;;  %v15246_v52 = vrot.slane %v6348_v0, %v15182_v48  ;;  %v6706_v58 = vcombine.high %v6705_v57, %v6705_v57  ;;  %v15249_v2 = vrot.slane %v6705_v57, %v15182_v48  ;;  %6332 = vrot.lane.b32.xlu1 %v6311_v46, %s11545_s28 }
 0x656   :  { %v6408_v19 = vcombine.high %v6407_v27, %v6407_v27  ;;  %v15253_v23 = vrot.slane %v6407_v27, %v15182_v48  ;;  %v6766_v5 = vcombine.high %v6765_v41, %v6765_v41  ;;  %v15256_v59 = vrot.slane %v6765_v41, %v15182_v48  ;;  %6511 = vrot.lane.b32.xlu0 %v6490_v35, %s11545_s28 }
 0x657   :  { %v15261_v3 = vrot.slane %v6349_v30, %v15182_v48  ;;  %6366 = vst.msk [vmem:[#allocation4 + $0x11] sm:$0x1] %vm6190_vm5, %v15246_v52  ;;  %v15266_v44 = vrot.slane %v6706_v58, %v15182_v48  ;;  %6723 = vst.msk [vmem:[#allocation4 + $0x44] sm:$0x1] %vm6190_vm5, %v15249_v2  ;;  %v6494_v35 = vrot.slane %v15198_v31, %v15164_v20 }
 0x658   :  { %v15272_v40 = vrot.slane %v6408_v19, %v15182_v48  ;;  %6425 = vst.msk [vmem:[#allocation4 + $0x15] sm:$0x1] %vm6190_vm5, %v15253_v23  ;;  %v15277_v55 = vrot.slane %v6766_v5, %v15182_v48  ;;  %6783 = vst.msk [vmem:[#allocation4 + $0x51] sm:$0x1] %vm6190_vm5, %v15256_v59  ;;  %v6371_v63 = vrot.slane %v15246_v52, %v15164_v20 }
 0x659   :  { %6367 = vst.msk [vmem:[#allocation4 + $0x91] sm:$0x1] %vm6190_vm5, %v15261_v3  ;;  %6724 = vst.msk [vmem:[#allocation4 + $0xc4] sm:$0x1] %vm6190_vm5, %v15266_v44  ;;  %6554 = vrot.lane.b32.xlu1 %v6549_v42, %s11551_s24  ;;  %v6728_v30 = vrot.slane %v15249_v2, %v15164_v20  ;;  %v6788_v52 = vrot.slane %v15256_v59, %v15164_v20  ;;  %v6375_v58 = vrot.slane %v15261_v3, %v15164_v20 }
 0x65a   :  { %6426 = vst.msk [vmem:[#allocation4 + $0x95] sm:$0x1] %vm6190_vm5, %v15272_v40  ;;  %6784 = vst.msk [vmem:[#allocation4 + $0xd1] sm:$0x1] %vm6190_vm5, %v15277_v55  ;;  %6324 = vrot.lane.b32.xlu0 %v6311_v46, %s11548_s26  ;;  %v6732_v2 = vrot.slane %v15266_v44, %v15164_v20  ;;  %v6434_v19 = vrot.slane %v15272_v40, %v15164_v20 }
 0x65d   :  { %6571 = vrot.lane.b32.xlu1 %v6549_v42, %s11545_s28 }
 0x65e   :  { %v5959_v1 = vpop.f32.mrb[40].mxu1  ;;  %v6172_v37 = vpop.f32.mrb[66].mxu0  ;;  %6563 = vrot.lane.b32.xlu0 %v6549_v42, %s11548_s26 }
 0x65f   :  { %v5960_v15 = vadd.f32 %v5959_v1, %v5639_v45  ;;  %v6173_v16 = vadd.f32 %v6172_v37, %v5663_v18  ;;  %v5961_v60 = vpop.f32.mrb[41].mxu1  ;;  %v10056_v11 = vpop.f32.mrb[67].mxu0 }
 0x660   :  { %v5962_v12 = vadd.f32 %v5961_v60, %v5643_v21 }
 0x661   :  { %v6182_v29 = vmax.f32 %v5960_v15, 0.0  ;;  %v6188_v50 = vmax.f32 %v6173_v16, 0.0  ;;  %6267 = vrot.lane.b32.xlu1 %v6256_v54, %s11548_s26 }
 0x662   :  { %v6183_v38 = vmax.f32 %v5962_v12, 0.0  ;;  %6259 = vrot.lane.b32.xlu0 %v6256_v54, %s11551_s24 }
 0x663   :  { %v6586_v47 = vrot.slane %v6182_v29, %v15182_v48  ;;  %v6943_v4 = vrot.slane %v6188_v50, %v15182_v48 }
 0x664   :  { %v6645_v26 = vrot.slane %v6183_v38, %v15182_v48 }
 0x665   :  { %v6587_v9 = vcombine.high %v6586_v47, %v6586_v47  ;;  %v15309_v61 = vrot.slane %v6586_v47, %v15182_v48  ;;  %v6944_v13 = vcombine.high %v6943_v4, %v6943_v4  ;;  %v6951_v28 = vrot.slane %v6943_v4, %v15182_v48  ;;  %6505 = vrot.lane.b32.xlu1 %v6494_v35, %s11548_s26  ;;  %v7229_v47 = vld [vmem:[%s16577_s9] sm:$0xff]  ;;  %v7230_v4 = vld [vmem:[%s16577_s9 + $0x8] sm:$0xff] }
 0x666   :  { %v6646_v6 = vcombine.high %v6645_v26, %v6645_v26  ;;  %v15314_v56 = vrot.slane %v6645_v26, %v15182_v48  ;;  %6275 = vrot.lane.b32.xlu0 %v6256_v54, %s11545_s28  ;;  %v10603_v26 = vpack.c.bf16 %v7230_v4, %v7229_v47 }
 0x667   :  { %v15318_v46 = vrot.slane %v6587_v9, %v15182_v48  ;;  %6604 = vst.msk [vmem:[#allocation4 + $0x33] sm:$0x1] %vm6190_vm5, %v15309_v61  ;;  %v6958_v31 = vrot.slane %v6944_v13, %v15182_v48  ;;  %6961 = vst.msk [vmem:[#allocation4 + $0x66] sm:$0x1] %vm6190_vm5, %v6951_v28  ;;  %v6609_v5 = vrot.slane %v15309_v61, %v15164_v20  ;;  %v7232_v9 = vld [vmem:[%s16577_s9 + $0x18] sm:$0xff]  ;;  %v7233_v13 = vld [vmem:[%s16577_s9 + $0x20] sm:$0xff] }
 0x668   :  { %v15327_v49 = vrot.slane %v6646_v6, %v15182_v48  ;;  %6664 = vst.msk [vmem:[#allocation4 + $0x40] sm:$0x1] %vm6190_vm5, %v15314_v56  ;;  %v6669_v59 = vrot.slane %v15314_v56, %v15164_v20  ;;  %v7234_v28 = vld [vmem:[%s16577_s9 + $0x28] sm:$0xff]  ;;  %10604 = vmatprep.subr.bf16.mxu1 %v10603_v26 }
 0x669   :  { %6605 = vst.msk [vmem:[#allocation4 + $0xb3] sm:$0x1] %vm6190_vm5, %v15318_v46  ;;  %6962 = vst.msk [vmem:[#allocation4 + $0xe6] sm:$0x1] %vm6190_vm5, %v6958_v31  ;;  %6318 = vrot.lane.b32.xlu1 %v6315_v10, %s11551_s24  ;;  %v6613_v42 = vrot.slane %v15318_v46, %v15164_v20  ;;  %10606 = vmatpush3.bf16.msra.mxu1 %v10603_v26  ;;  %v10611_v46 = vpack.c.bf16 %v7234_v28, %v7233_v13  ;;  %v7235_v31 = vld [vmem:[%s16577_s9 + $0x30] sm:$0xff] }
 0x66a   :  { %6665 = vst.msk [vmem:[#allocation4 + $0xc0] sm:$0x1] %vm6190_vm5, %v15327_v49  ;;  %6497 = vrot.lane.b32.xlu0 %v6494_v35, %s11551_s24  ;;  %v6673_v3 = vrot.slane %v15327_v49, %v15164_v20 }
 0x66d   :  { %6334 = vrot.lane.b32.xlu1 %v6315_v10, %s11545_s28 }
 0x66e   :  { %v6101_v53 = vpop.f32.mrb[42].mxu1  ;;  %6513 = vrot.lane.b32.xlu0 %v6494_v35, %s11545_s28  ;;  %v7231_v35 = vld [vmem:[%s16577_s9 + $0x10] sm:$0xff] }
 0x66f   :  { %v6102_v34 = vadd.f32 %v6101_v53, %v5655_v51  ;;  %v6103_v25 = vpop.f32.mrb[43].mxu1  ;;  %v10607_v61 = vpack.c.bf16 %v7232_v9, %v7231_v35  ;;  %v7237_v53 = vld [vmem:[%s16577_s9 + $0x40] sm:$0xff] }
 0x670   :  { %v6104_v62 = vadd.f32 %v6103_v25, %v5659_v14 }
 0x671   :  { %v6186_v22 = vmax.f32 %v6102_v34, 0.0  ;;  %6556 = vrot.lane.b32.xlu1 %v6553_v43, %s11551_s24  ;;  %10608 = vmatprep.subr.bf16.mxu1 %v10607_v61  ;;  %v7238_v34 = vld [vmem:[%s16577_s9 + $0x48] sm:$0xff] }
 0x672   :  { %v6187_v8 = vmax.f32 %v6104_v62, 0.0  ;;  %6326 = vrot.lane.b32.xlu0 %v6315_v10, %s11548_s26  ;;  %v7236_v10 = vld [vmem:[%s16577_s9 + $0x38] sm:$0xff]  ;;  %10610 = vmatpush3.bf16.msra.mxu1 %v10607_v61  ;;  %v10619_v62 = vpack.c.bf16 %v7238_v34, %v7237_v53 }
 0x673   :  { %v6824_v24 = vrot.slane %v6186_v22, %v15182_v48  ;;  %10612 = vmatprep.subr.bf16.mxu1 %v10611_v46  ;;  %v10615_v14 = vpack.c.bf16 %v7236_v10, %v7235_v31 }
 0x674   :  { %v6884_v36 = vrot.slane %v6187_v8, %v15182_v48 }
 0x675   :  { %v6825_v39 = vcombine.high %v6824_v24, %v6824_v24  ;;  %v6832_v17 = vrot.slane %v6824_v24, %v15182_v48  ;;  %6573 = vrot.lane.b32.xlu1 %v6553_v43, %s11545_s28 }
 0x676   :  { %v6885_v0 = vcombine.high %v6884_v36, %v6884_v36  ;;  %v6892_v57 = vrot.slane %v6884_v36, %v15182_v48  ;;  %6565 = vrot.lane.b32.xlu0 %v6553_v43, %s11548_s26  ;;  %10614 = vmatpush3.bf16.msra.mxu1 %v10611_v46 }
 0x677   :  { %v15359_v27 = vrot.slane %v6825_v39, %v15182_v48  ;;  %6842 = vst.msk [vmem:[#allocation4 + $0x55] sm:$0x1] %vm6190_vm5, %v6832_v17  ;;  %v6847_v44 = vrot.slane %v6832_v17, %v15164_v20  ;;  %10616 = vmatprep.subr.bf16.mxu1 %v10615_v14 }
 0x678   :  { %v15363_v41 = vrot.slane %v6885_v0, %v15182_v48  ;;  %6902 = vst.msk [vmem:[#allocation4 + $0x62] sm:$0x1] %vm6190_vm5, %v6892_v57  ;;  %v6430_v48 = vrot.slane %v15253_v23, %v15164_v20  ;;  %v6792_v23 = vrot.slane %v15277_v55, %v15164_v20  ;;  %v6907_v55 = vrot.slane %v6892_v57, %v15164_v20  ;;  %v7239_v0 = vld [vmem:[%s16577_s9 + $0x50] sm:$0xff]  ;;  %v7240_v57 = vld [vmem:[%s16577_s9 + $0x58] sm:$0xff] }
 0x679   :  { %6843 = vst.msk [vmem:[#allocation4 + $0xd5] sm:$0x1] %vm6190_vm5, %v15359_v27  ;;  %6384 = vrot.lane.b32.xlu1 %v6371_v63, %s11548_s26  ;;  %v6851_v16 = vrot.slane %v15359_v27, %v15164_v20 }
 0x67a   :  { %6903 = vst.msk [vmem:[#allocation4 + $0xe2] sm:$0x1] %vm6190_vm5, %v15363_v41  ;;  %6376 = vrot.lane.b32.xlu0 %v6371_v63, %s11551_s24  ;;  %v6911_v54 = vrot.slane %v15363_v41, %v15164_v20  ;;  %10618 = vmatpush3.bf16.msra.mxu1 %v10615_v14 }
 0x67b   :  { %10620 = vmatprep.subr.bf16.mxu1 %v10619_v62 }
 0x67d   :  { %6741 = vrot.lane.b32.xlu1 %v6728_v30, %s11548_s26 }
 0x67e   :  { %6392 = vrot.lane.b32.xlu0 %v6371_v63, %s11545_s28  ;;  %10622 = vmatpush3.bf16.msra.mxu1 %v10619_v62  ;;  %v10623_v63 = vpack.c.bf16 %v7240_v57, %v7239_v0 }
 0x680   :  { %10624 = vmatprep.subr.bf16.mxu1 %v10623_v63 }
 0x681   :  { %6435 = vrot.lane.b32.xlu1 %v6430_v48, %s11551_s24 }
 0x682   :  { %6733 = vrot.lane.b32.xlu0 %v6728_v30, %s11551_s24  ;;  %10626 = vmatpush3.bf16.msra.mxu1 %v10623_v63 }
 0x685   :  { %6452 = vrot.lane.b32.xlu1 %v6430_v48, %s11545_s28 }
 0x686   :  { %6749 = vrot.lane.b32.xlu0 %v6728_v30, %s11545_s28  ;;  %v7241_v30 = vld [vmem:[%s16577_s9 + $0x60] sm:$0xff] }
 0x689   :  { %6793 = vrot.lane.b32.xlu1 %v6788_v52, %s11551_s24 }
 0x68a   :  { %6443 = vrot.lane.b32.xlu0 %v6430_v48, %s11548_s26  ;;  %v7242_v48 = vld [vmem:[%s16577_s9 + $0x68] sm:$0xff] }
 0x68d   :  { %6809 = vrot.lane.b32.xlu1 %v6788_v52, %s11545_s28 }
 0x68e   :  { %6801 = vrot.lane.b32.xlu0 %v6788_v52, %s11548_s26  ;;  %v10627_v52 = vpack.c.bf16 %v7242_v48, %v7241_v30 }
 0x690   :  { %10628 = vmatprep.subr.bf16.mxu1 %v10627_v52 }
 0x691   :  { %6386 = vrot.lane.b32.xlu1 %v6375_v58, %s11548_s26  ;;  %10630 = vmatpush3.bf16.msra.mxu1 %v10627_v52 }
 0x692   :  { %6378 = vrot.lane.b32.xlu0 %v6375_v58, %s11551_s24 }
 0x695   :  { %6743 = vrot.lane.b32.xlu1 %v6732_v2, %s11548_s26 }
 0x696   :  { %6394 = vrot.lane.b32.xlu0 %v6375_v58, %s11545_s28 }
 0x699   :  { %6437 = vrot.lane.b32.xlu1 %v6434_v19, %s11551_s24 }
 0x69a   :  { %6735 = vrot.lane.b32.xlu0 %v6732_v2, %s11551_s24 }
 0x69d   :  { %6454 = vrot.lane.b32.xlu1 %v6434_v19, %s11545_s28 }
 0x69e   :  { %6751 = vrot.lane.b32.xlu0 %v6732_v2, %s11545_s28 }
 0x6a1   :  { %6795 = vrot.lane.b32.xlu1 %v6792_v23, %s11551_s24 }
 0x6a2   :  { %6445 = vrot.lane.b32.xlu0 %v6434_v19, %s11548_s26  ;;  %v7243_v19 = vld [vmem:[%s16577_s9 + $0x70] sm:$0xff] }
 0x6a5   :  { %6622 = vrot.lane.b32.xlu1 %v6609_v5, %s11548_s26 }
 0x6a6   :  { %6614 = vrot.lane.b32.xlu0 %v6609_v5, %s11551_s24 }
 0x6a9   :  { %6674 = vrot.lane.b32.xlu1 %v6669_v59, %s11551_s24 }
 0x6aa   :  { %6630 = vrot.lane.b32.xlu0 %v6609_v5, %s11545_s28 }
 0x6ad   :  { %6690 = vrot.lane.b32.xlu1 %v6669_v59, %s11545_s28 }
 0x6ae   :  { %6682 = vrot.lane.b32.xlu0 %v6669_v59, %s11548_s26 }
 0x6b1   :  { %6624 = vrot.lane.b32.xlu1 %v6613_v42, %s11548_s26 }
 0x6b2   :  { %6616 = vrot.lane.b32.xlu0 %v6613_v42, %s11551_s24 }
 0x6b5   :  { %6676 = vrot.lane.b32.xlu1 %v6673_v3, %s11551_s24 }
 0x6b6   :  { %6632 = vrot.lane.b32.xlu0 %v6613_v42, %s11545_s28 }
 0x6b9   :  { %6692 = vrot.lane.b32.xlu1 %v6673_v3, %s11545_s28 }
 0x6ba   :  { %6684 = vrot.lane.b32.xlu0 %v6673_v3, %s11548_s26 }
 0x6bb   :  { %v6266_v7 = vpop.permute.xlu1 %6265  ;;  %v6258_v40 = vpop.permute.xlu0 %6257 }
 0x6bc   :  { %6271 = vst.msk [vmem:[#allocation4 + $0x2] sm:$0x1] %vm6190_vm5, %v6266_v7  ;;  %6263 = vst.msk [vmem:[#allocation4 + $0x1] sm:$0x1] %vm6190_vm5, %v6258_v40 }
 0x6bd   :  { %6860 = vrot.lane.b32.xlu1 %v6847_v44, %s11548_s26 }
 0x6be   :  { %6852 = vrot.lane.b32.xlu0 %v6847_v44, %s11551_s24 }
 0x6bf   :  { %v6504_v32 = vpop.permute.xlu1 %6503  ;;  %v6274_v45 = vpop.permute.xlu0 %6273 }
 0x6c0   :  { %6509 = vst.msk [vmem:[#allocation4 + $0x24] sm:$0x1] %vm6190_vm5, %v6504_v32  ;;  %6279 = vst.msk [vmem:[#allocation4 + $0x3] sm:$0x1] %vm6190_vm5, %v6274_v45 }
 0x6c1   :  { %6912 = vrot.lane.b32.xlu1 %v6907_v55, %s11551_s24 }
 0x6c2   :  { %6869 = vrot.lane.b32.xlu0 %v6847_v44, %s11545_s28 }
 0x6c3   :  { %v6317_v18 = vpop.permute.xlu1 %6316  ;;  %v6496_v21 = vpop.permute.xlu0 %6495 }
 0x6c4   :  { %6322 = vst.msk [vmem:[#allocation4 + $0x5] sm:$0x1] %vm6190_vm5, %v6317_v18  ;;  %6501 = vst.msk [vmem:[#allocation4 + $0x23] sm:$0x1] %vm6190_vm5, %v6496_v21 }
 0x6c5   :  { %6928 = vrot.lane.b32.xlu1 %v6907_v55, %s11545_s28 }
 0x6c6   :  { %6920 = vrot.lane.b32.xlu0 %v6907_v55, %s11548_s26 }
 0x6c7   :  { %v6333_v1 = vpop.permute.xlu1 %6332 }
 0x6c8   :  { %6339 = vst.msk [vmem:[#allocation4 + $0x10] sm:$0x1] %vm6190_vm5, %v6333_v1  ;;  %v6512_v37 = vpop.permute.xlu0 %6511 }
 0x6c9   :  { %6517 = vst.msk [vmem:[#allocation4 + $0x25] sm:$0x1] %vm6190_vm5, %v6512_v37  ;;  %6811 = vrot.lane.b32.xlu1 %v6792_v23, %s11545_s28 }
 0x6ca   :  { %6803 = vrot.lane.b32.xlu0 %v6792_v23, %s11548_s26  ;;  %v7244_v23 = vld [vmem:[%s16577_s9 + $0x78] sm:$0xff] }
 0x6cb   :  { %v6555_v15 = vpop.permute.xlu1 %6554  ;;  %v10631_v3 = vpack.c.bf16 %v7244_v23, %v7243_v19 }
 0x6cc   :  { %6561 = vst.msk [vmem:[#allocation4 + $0x30] sm:$0x1] %vm6190_vm5, %v6555_v15  ;;  %v6325_v60 = vpop.permute.xlu0 %6324 }
 0x6cd   :  { %6330 = vst.msk [vmem:[#allocation4 + $0x6] sm:$0x1] %vm6190_vm5, %v6325_v60  ;;  %6862 = vrot.lane.b32.xlu1 %v6851_v16, %s11548_s26  ;;  %10632 = vmatprep.subr.bf16.mxu1 %v10631_v3 }
 0x6ce   :  { %6854 = vrot.lane.b32.xlu0 %v6851_v16, %s11551_s24  ;;  %10634 = vmatpush3.bf16.msra.mxu1 %v10631_v3 }
 0x6cf   :  { %v6572_v11 = vpop.permute.xlu1 %6571 }
 0x6d0   :  { %6577 = vst.msk [vmem:[#allocation4 + $0x32] sm:$0x1] %vm6190_vm5, %v6572_v11  ;;  %v6564_v12 = vpop.permute.xlu0 %6563 }
 0x6d1   :  { %6569 = vst.msk [vmem:[#allocation4 + $0x31] sm:$0x1] %vm6190_vm5, %v6564_v12  ;;  %6914 = vrot.lane.b32.xlu1 %v6911_v54, %s11551_s24 }
 0x6d2   :  { %6871 = vrot.lane.b32.xlu0 %v6851_v16, %s11545_s28 }
 0x6d3   :  { %v6268_v29 = vpop.permute.xlu1 %6267 }
 0x6d4   :  { %6272 = vst.msk [vmem:[#allocation4 + $0x82] sm:$0x1] %vm6190_vm5, %v6268_v29  ;;  %v6260_v50 = vpop.permute.xlu0 %6259  ;;  %v6977_v59 = vld [vmem:[#allocation4 + $0x1] sm:$0xff] }
 0x6d5   :  { %6264 = vst.msk [vmem:[#allocation4 + $0x81] sm:$0x1] %vm6190_vm5, %v6260_v50  ;;  %6930 = vrot.lane.b32.xlu1 %v6911_v54, %s11545_s28  ;;  %v7011_v50 = vld [vmem:[#allocation4 + $0x71] sm:$0xff] }
 0x6d6   :  { %6922 = vrot.lane.b32.xlu0 %v6911_v54, %s11548_s26 }
 0x6d7   :  { %v6506_v20 = vpop.permute.xlu1 %6505 }
 0x6d8   :  { %6510 = vst.msk [vmem:[#allocation4 + $0xa4] sm:$0x1] %vm6190_vm5, %v6506_v20  ;;  %v6276_v38 = vpop.permute.xlu0 %6275  ;;  %v6997_v20 = vld [vmem:[#allocation4 + $0x70] sm:$0xff] }
 0x6d9   :  { %6280 = vst.msk [vmem:[#allocation4 + $0x83] sm:$0x1] %vm6190_vm5, %v6276_v38 }
 0x6db   :  { %v6319_v6 = vpop.permute.xlu1 %6318 }
 0x6dc   :  { %6323 = vst.msk [vmem:[#allocation4 + $0x85] sm:$0x1] %vm6190_vm5, %v6319_v6  ;;  %v6498_v56 = vpop.permute.xlu0 %6497 }
 0x6dd   :  { %6502 = vst.msk [vmem:[#allocation4 + $0xa3] sm:$0x1] %vm6190_vm5, %v6498_v56 }
 0x6df   :  { %v6335_v49 = vpop.permute.xlu1 %6334 }
 0x6e0   :  { %6340 = vst.msk [vmem:[#allocation4 + $0x90] sm:$0x1] %vm6190_vm5, %v6335_v49  ;;  %v6514_v51 = vpop.permute.xlu0 %6513 }
 0x6e1   :  { %6518 = vst.msk [vmem:[#allocation4 + $0xa5] sm:$0x1] %vm6190_vm5, %v6514_v51 }
 0x6e3   :  { %v6557_v25 = vpop.permute.xlu1 %6556 }
 0x6e4   :  { %6562 = vst.msk [vmem:[#allocation4 + $0xb0] sm:$0x1] %vm6190_vm5, %v6557_v25  ;;  %v6327_v43 = vpop.permute.xlu0 %6326 }
 0x6e5   :  { %6331 = vst.msk [vmem:[#allocation4 + $0x86] sm:$0x1] %vm6190_vm5, %v6327_v43 }
 0x6e7   :  { %v6574_v22 = vpop.permute.xlu1 %6573 }
 0x6e8   :  { %6578 = vst.msk [vmem:[#allocation4 + $0xb2] sm:$0x1] %vm6190_vm5, %v6574_v22  ;;  %v6566_v8 = vpop.permute.xlu0 %6565 }
 0x6e9   :  { %6570 = vst.msk [vmem:[#allocation4 + $0xb1] sm:$0x1] %vm6190_vm5, %v6566_v8 }
 0x6eb   :  { %v6385_v24 = vpop.permute.xlu1 %6384 }
 0x6ec   :  { %6390 = vst.msk [vmem:[#allocation4 + $0x13] sm:$0x1] %vm6190_vm5, %v6385_v24  ;;  %v6377_v36 = vpop.permute.xlu0 %6376 }
 0x6ed   :  { %6382 = vst.msk [vmem:[#allocation4 + $0x12] sm:$0x1] %vm6190_vm5, %v6377_v36 }
 0x6ef   :  { %v6742_v39 = vpop.permute.xlu1 %6741 }
 0x6f0   :  { %6747 = vst.msk [vmem:[#allocation4 + $0x46] sm:$0x1] %vm6190_vm5, %v6742_v39  ;;  %v6393_v17 = vpop.permute.xlu0 %6392 }
 0x6f1   :  { %6398 = vst.msk [vmem:[#allocation4 + $0x14] sm:$0x1] %vm6190_vm5, %v6393_v17 }
 0x6f3   :  { %v6436_v27 = vpop.permute.xlu1 %6435 }
 0x6f4   :  { %6441 = vst.msk [vmem:[#allocation4 + $0x16] sm:$0x1] %vm6190_vm5, %v6436_v27  ;;  %v6734_v41 = vpop.permute.xlu0 %6733 }
 0x6f5   :  { %6739 = vst.msk [vmem:[#allocation4 + $0x45] sm:$0x1] %vm6190_vm5, %v6734_v41 }
 0x6f7   :  { %v6453_v58 = vpop.permute.xlu1 %6452 }
 0x6f8   :  { %6458 = vst.msk [vmem:[#allocation4 + $0x21] sm:$0x1] %vm6190_vm5, %v6453_v58  ;;  %v6750_v2 = vpop.permute.xlu0 %6749 }
 0x6f9   :  { %6756 = vst.msk [vmem:[#allocation4 + $0x50] sm:$0x1] %vm6190_vm5, %v6750_v2 }
 0x6fb   :  { %v6794_v5 = vpop.permute.xlu1 %6793  ;;  %v6978_v42 = vld [vmem:[#allocation4 + $0x11] sm:$0xff] }
 0x6fc   :  { %6799 = vst.msk [vmem:[#allocation4 + $0x52] sm:$0x1] %vm6190_vm5, %v6794_v5  ;;  %v6444_v44 = vpop.permute.xlu0 %6443  ;;  %v11202_v7 = vpack.i.bf16 %v6978_v42, %v6977_v59  ;;  %v15533_v1 = vld [vmem:[#allocation4 + $0x10] sm:$0xff] }
 0x6fd   :  { %6450 = vst.msk [vmem:[#allocation4 + $0x20] sm:$0x1] %vm6190_vm5, %v6444_v44 }
 0x6fe   :  { %11203 = vrot.lane.b32.xlu0 %v11202_v7, %s11545_s28 }
 0x6ff   :  { %v6810_v40 = vpop.permute.xlu1 %6809  ;;  %v7006_v55 = vld [vmem:[#allocation4 + $0x21] sm:$0xff] }
 0x700   :  { %6815 = vst.msk [vmem:[#allocation4 + $0x54] sm:$0x1] %vm6190_vm5, %v6810_v40  ;;  %v6802_v32 = vpop.permute.xlu0 %6801  ;;  %v11212_v45 = vpack.i.bf16 %v7006_v55, %v6978_v42 }
 0x701   :  { %6807 = vst.msk [vmem:[#allocation4 + $0x53] sm:$0x1] %vm6190_vm5, %v6802_v32 }
 0x702   :  { %11213 = vrot.lane.b32.xlu0 %v11212_v45, %s11551_s24 }
 0x703   :  { %v6387_v18 = vpop.permute.xlu1 %6386 }
 0x704   :  { %6391 = vst.msk [vmem:[#allocation4 + $0x93] sm:$0x1] %vm6190_vm5, %v6387_v18  ;;  %v6379_v21 = vpop.permute.xlu0 %6378  ;;  %v15535_v37 = vld [vmem:[#allocation4 + $0x20] sm:$0xff] }
 0x705   :  { %6383 = vst.msk [vmem:[#allocation4 + $0x92] sm:$0x1] %vm6190_vm5, %v6379_v21  ;;  %v11207_v15 = vpack.i.bf16 %v15535_v37, %v15533_v1 }
 0x707   :  { %11208 = vrot.lane.b32.xlu1 %v11207_v15, %s11548_s26  ;;  %v6744_v16 = vpop.permute.xlu1 %6743 }
 0x708   :  { %6748 = vst.msk [vmem:[#allocation4 + $0xc6] sm:$0x1] %vm6190_vm5, %v6744_v16  ;;  %v6395_v60 = vpop.permute.xlu0 %6394 }
 0x709   :  { %6399 = vst.msk [vmem:[#allocation4 + $0x94] sm:$0x1] %vm6190_vm5, %v6395_v60 }
 0x70b   :  { %v6438_v11 = vpop.permute.xlu1 %6437 }
 0x70c   :  { %6442 = vst.msk [vmem:[#allocation4 + $0x96] sm:$0x1] %vm6190_vm5, %v6438_v11  ;;  %v6736_v54 = vpop.permute.xlu0 %6735 }
 0x70d   :  { %6740 = vst.msk [vmem:[#allocation4 + $0xc5] sm:$0x1] %vm6190_vm5, %v6736_v54 }
 0x70f   :  { %v6455_v12 = vpop.permute.xlu1 %6454 }
 0x710   :  { %6459 = vst.msk [vmem:[#allocation4 + $0xa1] sm:$0x1] %vm6190_vm5, %v6455_v12  ;;  %v6752_v29 = vpop.permute.xlu0 %6751 }
 0x711   :  { %6757 = vst.msk [vmem:[#allocation4 + $0xd0] sm:$0x1] %vm6190_vm5, %v6752_v29 }
 0x713   :  { %v6796_v38 = vpop.permute.xlu1 %6795  ;;  %v7012_v47 = vld [vmem:[#allocation4 + $0x91] sm:$0xff] }
 0x714   :  { %v15547_v4 = vld [vmem:[#allocation4 + $0x90] sm:$0xff]  ;;  %6800 = vst.msk [vmem:[#allocation4 + $0xd2] sm:$0x1] %vm6190_vm5, %v6796_v38  ;;  %v6446_v35 = vpop.permute.xlu0 %6445  ;;  %v11222_v26 = vpack.i.bf16 %v7012_v47, %v7011_v50 }
 0x715   :  { %v11217_v9 = vpack.i.bf16 %v15547_v4, %v6997_v20  ;;  %6451 = vst.msk [vmem:[#allocation4 + $0xa0] sm:$0x1] %vm6190_vm5, %v6446_v35 }
 0x716   :  { %11223 = vrot.lane.b32.xlu1 %v11222_v26, %s11551_s24 }
 0x717   :  { %11218 = vrot.lane.b32.xlu0 %v11217_v9, %s11548_s26  ;;  %v6623_v61 = vpop.permute.xlu1 %6622  ;;  %v15554_v13 = vld [vmem:[#allocation4 + $0xa1] sm:$0xff]  ;;  %v7492_v9 = vld [vmem:[%s16578_s11 + $0x8] sm:$0xff] }
 0x718   :  { %6628 = vst.msk [vmem:[#allocation4 + $0x35] sm:$0x1] %vm6190_vm5, %v6623_v61  ;;  %v6615_v28 = vpop.permute.xlu0 %6614  ;;  %v11227_v6 = vpack.i.bf16 %v15554_v13, %v7012_v47  ;;  %v7491_v47 = vld [vmem:[%s16578_s11] sm:$0xff] }
 0x719   :  { %6620 = vst.msk [vmem:[#allocation4 + $0x34] sm:$0x1] %vm6190_vm5, %v6615_v28  ;;  %v7018_v28 = vld [vmem:[#allocation4 + $0xf1] sm:$0xff] }
 0x71b   :  { %11228 = vrot.lane.b32.xlu0 %v11227_v6, %s11545_s28  ;;  %v6675_v56 = vpop.permute.xlu1 %6674  ;;  %v15628_v6 = vpack.c.bf16 %v7492_v9, %v7491_v47 }
 0x71c   :  { %6680 = vst.msk [vmem:[#allocation4 + $0x41] sm:$0x1] %vm6190_vm5, %v6675_v56  ;;  %v6631_v46 = vpop.permute.xlu0 %6630  ;;  %v15606_v16 = vld [vmem:[#allocation4 + $0xa0] sm:$0xff] }
 0x71d   :  { %6636 = vst.msk [vmem:[#allocation4 + $0x36] sm:$0x1] %vm6190_vm5, %v6631_v46  ;;  %10636 = vmatprep.subr.bf16.mxu0 %v15628_v6  ;;  %10668 = vmatprep.subr.bf16.mxu1 %v15628_v6 }
 0x71e   :  { %10638 = vmatpush3.bf16.msra.mxu0 %v15628_v6 }
 0x71f   :  { %v6691_v31 = vpop.permute.xlu1 %6690 }
 0x720   :  { %6696 = vst.msk [vmem:[#allocation4 + $0x43] sm:$0x1] %vm6190_vm5, %v6691_v31  ;;  %v6683_v10 = vpop.permute.xlu0 %6682 }
 0x721   :  { %6688 = vst.msk [vmem:[#allocation4 + $0x42] sm:$0x1] %vm6190_vm5, %v6683_v10 }
 0x723   :  { %v6625_v49 = vpop.permute.xlu1 %6624 }
 0x724   :  { %6629 = vst.msk [vmem:[#allocation4 + $0xb5] sm:$0x1] %vm6190_vm5, %v6625_v49  ;;  %v6617_v51 = vpop.permute.xlu0 %6616  ;;  %v6980_v14 = vld [vmem:[#allocation4 + $0x31] sm:$0xff] }
 0x725   :  { %6621 = vst.msk [vmem:[#allocation4 + $0xb4] sm:$0x1] %vm6190_vm5, %v6617_v51  ;;  %v11232_v53 = vpack.i.bf16 %v6980_v14, %v7006_v55  ;;  %v15568_v62 = vld [vmem:[#allocation4 + $0x30] sm:$0xff]  ;;  %v6984_v55 = vld [vmem:[#allocation4 + $0x81] sm:$0xff] }
 0x727   :  { %11233 = vrot.lane.b32.xlu1 %v11232_v53, %s11545_s28  ;;  %v6677_v34 = vpop.permute.xlu1 %6676 }
 0x728   :  { %6681 = vst.msk [vmem:[#allocation4 + $0xc1] sm:$0x1] %vm6190_vm5, %v6677_v34  ;;  %v6633_v25 = vpop.permute.xlu0 %6632  ;;  %v7008_v43 = vld [vmem:[#allocation4 + $0x41] sm:$0xff] }
 0x729   :  { %v15570_v22 = vld [vmem:[#allocation4 + $0x40] sm:$0xff]  ;;  %6637 = vst.msk [vmem:[#allocation4 + $0xb6] sm:$0x1] %vm6190_vm5, %v6633_v25  ;;  %v11242_v8 = vpack.i.bf16 %v7008_v43, %v6980_v14 }
 0x72a   :  { %v11237_v24 = vpack.i.bf16 %v15570_v22, %v15568_v62  ;;  %v6963_v25 = vld [vmem:[#allocation4] sm:$0xff] }
 0x72b   :  { %11243 = vrot.lane.b32.xlu1 %v11242_v8, %s11551_s24  ;;  %v6693_v36 = vpop.permute.xlu1 %6692 }
 0x72c   :  { %11238 = vrot.lane.b32.xlu0 %v11237_v24, %s11548_s26  ;;  %6697 = vst.msk [vmem:[#allocation4 + $0xc3] sm:$0x1] %vm6190_vm5, %v6693_v36  ;;  %v6685_v39 = vpop.permute.xlu0 %6684 }
 0x72d   :  { %6689 = vst.msk [vmem:[#allocation4 + $0xc2] sm:$0x1] %vm6190_vm5, %v6685_v39 }
 0x72f   :  { %v6861_v17 = vpop.permute.xlu1 %6860 }
 0x730   :  { %6867 = vst.msk [vmem:[#allocation4 + $0x60] sm:$0x1] %vm6190_vm5, %v6861_v17  ;;  %v6853_v0 = vpop.permute.xlu0 %6852  ;;  %v7014_v44 = vld [vmem:[#allocation4 + $0xb1] sm:$0xff] }
 0x731   :  { %6858 = vst.msk [vmem:[#allocation4 + $0x56] sm:$0x1] %vm6190_vm5, %v6853_v0  ;;  %v11272_v32 = vpack.i.bf16 %v7014_v44, %v15554_v13  ;;  %v15601_v18 = vld [vmem:[#allocation4 + $0xb0] sm:$0xff] }
 0x732   :  { %v11267_v54 = vpack.i.bf16 %v15601_v18, %v15606_v16  ;;  %v7004_v13 = vld [vmem:[#allocation4 + $0xf0] sm:$0xff] }
 0x733   :  { %v6913_v57 = vpop.permute.xlu1 %6912 }
 0x734   :  { %6918 = vst.msk [vmem:[#allocation4 + $0x63] sm:$0x1] %vm6190_vm5, %v6913_v57  ;;  %v6870_v63 = vpop.permute.xlu0 %6869  ;;  %v15608_v60 = vld [vmem:[#allocation4 + $0xc0] sm:$0xff] }
 0x735   :  { %6875 = vst.msk [vmem:[#allocation4 + $0x61] sm:$0x1] %vm6190_vm5, %v6870_v63  ;;  %v6988_v29 = vld [vmem:[#allocation4 + $0xc1] sm:$0xff] }
 0x736   :  { %v11277_v50 = vpack.i.bf16 %v6988_v29, %v7014_v44 }
 0x737   :  { %v6929_v27 = vpop.permute.xlu1 %6928 }
 0x738   :  { %6934 = vst.msk [vmem:[#allocation4 + $0x65] sm:$0x1] %vm6190_vm5, %v6929_v27  ;;  %v6921_v41 = vpop.permute.xlu0 %6920  ;;  %v6982_v30 = vld [vmem:[#allocation4 + $0x51] sm:$0xff] }
 0x739   :  { %6926 = vst.msk [vmem:[#allocation4 + $0x64] sm:$0x1] %vm6190_vm5, %v6921_v41  ;;  %v11247_v48 = vpack.i.bf16 %v6982_v30, %v7008_v43  ;;  %v15589_v5 = vld [vmem:[#allocation4 + $0x50] sm:$0xff] }
 0x73b   :  { %11248 = vrot.lane.b32.xlu0 %v11247_v48, %s11545_s28  ;;  %v6812_v52 = vpop.permute.xlu1 %6811 }
 0x73c   :  { %6816 = vst.msk [vmem:[#allocation4 + $0xd4] sm:$0x1] %vm6190_vm5, %v6812_v52  ;;  %v6804_v58 = vpop.permute.xlu0 %6803 }
 0x73d   :  { %6808 = vst.msk [vmem:[#allocation4 + $0xd3] sm:$0x1] %vm6190_vm5, %v6804_v58 }
 0x73f   :  { %v6863_v2 = vpop.permute.xlu1 %6862 }
 0x740   :  { %6868 = vst.msk [vmem:[#allocation4 + $0xe0] sm:$0x1] %vm6190_vm5, %v6863_v2  ;;  %v6855_v19 = vpop.permute.xlu0 %6854  ;;  %v7010_v23 = vld [vmem:[#allocation4 + $0x61] sm:$0xff] }
 0x741   :  { %v15591_v59 = vld [vmem:[#allocation4 + $0x60] sm:$0xff]  ;;  %6859 = vst.msk [vmem:[#allocation4 + $0xd6] sm:$0x1] %vm6190_vm5, %v6855_v19  ;;  %v11257_v42 = vpack.i.bf16 %v7010_v23, %v6982_v30  ;;  %v11262_v45 = vpack.i.bf16 %v6984_v55, %v7010_v23 }
 0x742   :  { %v11252_v3 = vpack.i.bf16 %v15591_v59, %v15589_v5 }
 0x743   :  { %11258 = vrot.lane.b32.xlu0 %v11257_v42, %s11551_s24  ;;  %v6915_v7 = vpop.permute.xlu1 %6914 }
 0x744   :  { %11253 = vrot.lane.b32.xlu1 %v11252_v3, %s11548_s26  ;;  %6919 = vst.msk [vmem:[#allocation4 + $0xe3] sm:$0x1] %vm6190_vm5, %v6915_v7  ;;  %v6872_v40 = vpop.permute.xlu0 %6871 }
 0x745   :  { %6876 = vst.msk [vmem:[#allocation4 + $0xe1] sm:$0x1] %vm6190_vm5, %v6872_v40 }
 0x747   :  { %11273 = vrot.lane.b32.xlu0 %v11272_v32, %s11551_s24  ;;  %v6931_v21 = vpop.permute.xlu1 %6930 }
 0x748   :  { %11263 = vrot.lane.b32.xlu1 %v11262_v45, %s11545_s28  ;;  %6935 = vst.msk [vmem:[#allocation4 + $0xe5] sm:$0x1] %vm6190_vm5, %v6931_v21  ;;  %v6923_v15 = vpop.permute.xlu0 %6922  ;;  %v15610_v11 = vld [vmem:[#allocation4 + $0xd0] sm:$0xff] }
 0x749   :  { %6927 = vst.msk [vmem:[#allocation4 + $0xe4] sm:$0x1] %vm6190_vm5, %v6923_v15  ;;  %v11282_v12 = vpack.i.bf16 %v15610_v11, %v15608_v60  ;;  %v7016_v20 = vld [vmem:[#allocation4 + $0xd1] sm:$0xff] }
 0x74a   :  { %v11287_v35 = vpack.i.bf16 %v7016_v20, %v6988_v29 }
 0x74b   :  { %11283 = vrot.lane.b32.xlu0 %v11282_v12, %s11548_s26 }
 0x74c   :  { %11268 = vrot.lane.b32.xlu1 %v11267_v54, %s11548_s26 }
 0x750   :  { %11278 = vrot.lane.b32.xlu1 %v11277_v50, %s11545_s28  ;;  %v6990_v38 = vld [vmem:[#allocation4 + $0xe1] sm:$0xff] }
 0x751   :  { %v11292_v26 = vpack.i.bf16 %v6990_v38, %v7016_v20  ;;  %v15626_v61 = vld [vmem:[#allocation4 + $0xe0] sm:$0xff]  ;;  %v11302_v46 = vpack.i.bf16 %v7018_v28, %v6990_v38 }
 0x752   :  { %v11297_v56 = vpack.i.bf16 %v7004_v13, %v15626_v61 }
 0x753   :  { %11293 = vrot.lane.b32.xlu0 %v11292_v26, %s11545_s28 }
 0x754   :  { %11288 = vrot.lane.b32.xlu1 %v11287_v35, %s11551_s24 }
 0x757   :  { %11303 = vrot.lane.b32.xlu0 %v11302_v46, %s11551_s24 }
 0x758   :  { %11298 = vrot.lane.b32.xlu1 %v11297_v56, %s11548_s26 }
 0x770   :  { %v11204_v31 = vpop.permute.xlu0 %11203 }
 0x771   :  { %v11206_v10 = vunpack.i.h.bf16 %v11204_v31  ;;  %v11205_v49 = vunpack.i.l.bf16 %v11204_v31 }
 0x773   :  { %v7187_v24 = vsel %vm2916_vm7, %v6963_v25, %v11205_v49  ;;  %v7188_v36 = vsel %vm2916_vm7, %v15533_v1, %v11206_v10 }
 0x774   :  { %v11214_v51 = vpop.permute.xlu0 %11213 }
 0x775   :  { %v11216_v43 = vunpack.i.h.bf16 %v11214_v51  ;;  %v11215_v8 = vunpack.i.l.bf16 %v11214_v51 }
 0x779   :  { %v11209_v14 = vpop.permute.xlu1 %11208 }
 0x77a   :  { %v11211_v53 = vunpack.i.h.bf16 %v11209_v14  ;;  %v11210_v34 = vunpack.i.l.bf16 %v11209_v14 }
 0x77c   :  { %v7201_v39 = vsel %vm2973_vm8, %v7187_v24, %v11210_v34  ;;  %v7202_v17 = vsel %vm2973_vm8, %v7188_v36, %v11211_v53 }
 0x77d   :  { %v7215_v0 = vsel %vm3031_vm2, %v7201_v39, %v11215_v8  ;;  %v7216_v57 = vsel %vm3031_vm2, %v7202_v17, %v11216_v43 }
 0x77e   :  { %10089 = vmatprep.mubr.f32.mxu1 %v7215_v0 }
 0x77f   :  { %10090 = vmatmul.mubr.f32.vlgmr.msra.gmra.mrb[44].mxu1 %v7216_v57 }
 0x780   :  { %10670 = vmatpush3.bf16.msra.mxu1 %v15628_v6 }
 0x788   :  { %v11224_v27 = vpop.permute.xlu1 %11223 }
 0x789   :  { %v11219_v63 = vpop.permute.xlu0 %11218  ;;  %v11226_v53 = vunpack.i.h.bf16 %v11224_v27  ;;  %v11225_v34 = vunpack.i.l.bf16 %v11224_v27 }
 0x78a   :  { %v11221_v46 = vunpack.i.h.bf16 %v11219_v63  ;;  %v11220_v31 = vunpack.i.l.bf16 %v11219_v63 }
 0x78d   :  { %v11229_v41 = vpop.permute.xlu0 %11228 }
 0x78e   :  { %v11230_v10 = vunpack.i.l.bf16 %v11229_v41  ;;  %v11231_v51 = vunpack.i.h.bf16 %v11229_v41 }
 0x790   :  { %v7195_v57 = vsel %vm2916_vm7, %v15547_v4, %v11230_v10  ;;  %v7196_v63 = vsel %vm2916_vm7, %v15606_v16, %v11231_v51  ;;  %v7498_v10 = vld [vmem:[%s16578_s11 + $0x38] sm:$0xff] }
 0x799   :  { %v11234_v30 = vpop.permute.xlu1 %11233 }
 0x79a   :  { %v11236_v48 = vunpack.i.h.bf16 %v11234_v30  ;;  %v11235_v52 = vunpack.i.l.bf16 %v11234_v30 }
 0x79c   :  { %v7189_v3 = vsel %vm2916_vm7, %v15535_v37, %v11235_v52  ;;  %v7190_v44 = vsel %vm2916_vm7, %v15568_v62, %v11236_v48 }
 0x79d   :  { %v11244_v58 = vpop.permute.xlu1 %11243 }
 0x79e   :  { %v11239_v1 = vpop.permute.xlu0 %11238  ;;  %v11246_v2 = vunpack.i.h.bf16 %v11244_v58  ;;  %v11245_v19 = vunpack.i.l.bf16 %v11244_v58 }
 0x79f   :  { %v11241_v23 = vunpack.i.h.bf16 %v11239_v1  ;;  %v11240_v42 = vunpack.i.l.bf16 %v11239_v1 }
 0x7a1   :  { %v7203_v7 = vsel %vm2973_vm8, %v7189_v3, %v11240_v42  ;;  %v7204_v40 = vsel %vm2973_vm8, %v7190_v44, %v11241_v23 }
 0x7a2   :  { %v7217_v55 = vsel %vm3031_vm2, %v7203_v7, %v11245_v19  ;;  %v7218_v32 = vsel %vm3031_vm2, %v7204_v40, %v11246_v2 }
 0x7a3   :  { %10092 = vmatprep.mubr.f32.mxu1 %v7217_v55 }
 0x7a4   :  { %10093 = vmatmul.mubr.f32.gmra.mrb[46].mxu1 %v7218_v32 }
 0x7ad   :  { %v11249_v45 = vpop.permute.xlu0 %11248 }
 0x7ae   :  { %v11251_v21 = vunpack.i.h.bf16 %v11249_v45  ;;  %v11250_v15 = vunpack.i.l.bf16 %v11249_v45 }
 0x7b0   :  { %v7191_v62 = vsel %vm2916_vm7, %v15570_v22, %v11250_v15  ;;  %v7192_v38 = vsel %vm2916_vm7, %v15589_v5, %v11251_v21  ;;  %v6970_v22 = vld [vmem:[#allocation4 + $0x80] sm:$0xff] }
 0x7b5   :  { %v11259_v12 = vpop.permute.xlu0 %11258 }
 0x7b6   :  { %v11254_v54 = vpop.permute.xlu1 %11253  ;;  %v11261_v50 = vunpack.i.h.bf16 %v11259_v12  ;;  %v11260_v20 = vunpack.i.l.bf16 %v11259_v12 }
 0x7b7   :  { %v11256_v29 = vunpack.i.h.bf16 %v11254_v54  ;;  %v11255_v37 = vunpack.i.l.bf16 %v11254_v54 }
 0x7b9   :  { %v7205_v47 = vsel %vm2973_vm8, %v7191_v62, %v11255_v37  ;;  %v7206_v35 = vsel %vm2973_vm8, %v7192_v38, %v11256_v29  ;;  %v11274_v49 = vpop.permute.xlu0 %11273 }
 0x7ba   :  { %v11264_v26 = vpop.permute.xlu1 %11263  ;;  %v7219_v9 = vsel %vm3031_vm2, %v7205_v47, %v11260_v20  ;;  %v7220_v13 = vsel %vm3031_vm2, %v7206_v35, %v11261_v50  ;;  %v11275_v39 = vunpack.i.l.bf16 %v11274_v49  ;;  %v11276_v52 = vunpack.i.h.bf16 %v11274_v49 }
 0x7bb   :  { %v11266_v28 = vunpack.i.h.bf16 %v11264_v26  ;;  %v11265_v56 = vunpack.i.l.bf16 %v11264_v26  ;;  %10095 = vmatprep.mubr.f32.mxu1 %v7219_v9  ;;  %v15693_v26 = vld [vmem:[#allocation5 + $0xf0] sm:$0xff] }
 0x7bc   :  { %10096 = vmatmul.mubr.f32.gmra.mrb[48].mxu1 %v7220_v13  ;;  %8350 = vrot.lane.b32.xlu1 %v15693_v26, %s11545_s28  ;;  %v8704_v9 = vld [vmem:[#allocation5 + $0x70] sm:$0xff] }
 0x7bd   :  { %v7193_v5 = vsel %vm2916_vm7, %v15591_v59, %v11265_v56  ;;  %v7194_v14 = vsel %vm2916_vm7, %v6970_v22, %v11266_v28  ;;  %v11284_v27 = vpop.permute.xlu0 %11283  ;;  %v7495_v28 = vld [vmem:[%s16578_s11 + $0x20] sm:$0xff]  ;;  %v7496_v56 = vld [vmem:[%s16578_s11 + $0x28] sm:$0xff]  ;;  %8336 = vrot.lane.b32.xlu0 %v8704_v9, %s11545_s28 }
 0x7be   :  { %v11269_v25 = vpop.permute.xlu1 %11268  ;;  %v7207_v43 = vsel %vm2973_vm8, %v7193_v5, %v11220_v31  ;;  %v7208_v8 = vsel %vm2973_vm8, %v7194_v14, %v11221_v46  ;;  %v11286_v16 = vunpack.i.h.bf16 %v11284_v27  ;;  %v11285_v23 = vunpack.i.l.bf16 %v11284_v27  ;;  %v7497_v31 = vld [vmem:[%s16578_s11 + $0x30] sm:$0xff]  ;;  %v15754_v22 = vld [vmem:[%s16579_s10] ss:$0 sm:$0xff] }
 0x7bf   :  { %v11271_v24 = vunpack.i.h.bf16 %v11269_v25  ;;  %v11270_v36 = vunpack.i.l.bf16 %v11269_v25  ;;  %v7221_v17 = vsel %vm3031_vm2, %v7207_v43, %v11225_v34  ;;  %v7222_v0 = vsel %vm3031_vm2, %v7208_v8, %v11226_v53 }
 0x7c0   :  { %10098 = vmatprep.mubr.f32.mxu1 %v7221_v17  ;;  %v10643_v46 = vpack.c.bf16 %v7496_v56, %v7495_v28  ;;  %8864 = vrot.lane.b32.xlu1 %v8704_v9, %s11546_s14  ;;  %v10647_v49 = vpack.c.bf16 %v7498_v10, %v7497_v31 }
 0x7c1   :  { %v7209_v59 = vsel %vm2973_vm8, %v7195_v57, %v11270_v36  ;;  %10099 = vmatmul.mubr.f32.gmra.mrb[50].mxu1 %v7222_v0  ;;  %v7210_v48 = vsel %vm2973_vm8, %v7196_v63, %v11271_v24 }
 0x7c2   :  { %v11279_v41 = vpop.permute.xlu1 %11278  ;;  %v7223_v30 = vsel %vm3031_vm2, %v7209_v59, %v11275_v39  ;;  %v7224_v2 = vsel %vm3031_vm2, %v7210_v48, %v11276_v52 }
 0x7c3   :  { %v11281_v58 = vunpack.i.h.bf16 %v11279_v41  ;;  %v11280_v1 = vunpack.i.l.bf16 %v11279_v41  ;;  %10101 = vmatprep.mubr.f32.mxu1 %v7223_v30 }
 0x7c4   :  { %8920 = vrot.lane.b32.xlu1 %v8718_v33, %s11549_s27 }
 0x7c5   :  { %v7197_v4 = vsel %vm2916_vm7, %v15601_v18, %v11280_v1  ;;  %v7198_v19 = vsel %vm2916_vm7, %v15608_v60, %v11281_v58  ;;  %10102 = vmatmul.mubr.f32.gmra.mrb[52].mxu1 %v7224_v2  ;;  %v11294_v3 = vpop.permute.xlu0 %11293 }
 0x7c6   :  { %v11289_v42 = vpop.permute.xlu1 %11288  ;;  %v11296_v40 = vunpack.i.h.bf16 %v11294_v3  ;;  %v11295_v55 = vunpack.i.l.bf16 %v11294_v3  ;;  %v7211_v32 = vsel %vm2973_vm8, %v7197_v4, %v11285_v23  ;;  %v7212_v45 = vsel %vm2973_vm8, %v7198_v19, %v11286_v16 }
 0x7c7   :  { %v11291_v44 = vunpack.i.h.bf16 %v11289_v42  ;;  %v11290_v7 = vunpack.i.l.bf16 %v11289_v42 }
 0x7c8   :  { %v7199_v50 = vsel %vm2916_vm7, %v15610_v11, %v11295_v55  ;;  %v7200_v20 = vsel %vm2916_vm7, %v15626_v61, %v11296_v40  ;;  %v7493_v11 = vld [vmem:[%s16578_s11 + $0x10] sm:$0xff]  ;;  %v7494_v61 = vld [vmem:[%s16578_s11 + $0x18] sm:$0xff] }
 0x7c9   :  { %v7225_v21 = vsel %vm3031_vm2, %v7211_v32, %v11290_v7  ;;  %v7226_v18 = vsel %vm3031_vm2, %v7212_v45, %v11291_v44  ;;  %v11304_v54 = vpop.permute.xlu0 %11303  ;;  %v10639_v13 = vpack.c.bf16 %v7494_v61, %v7493_v11 }
 0x7ca   :  { %v11299_v15 = vpop.permute.xlu1 %11298  ;;  %10104 = vmatprep.mubr.f32.mxu1 %v7225_v21  ;;  %v11306_v29 = vunpack.i.h.bf16 %v11304_v54  ;;  %v11305_v37 = vunpack.i.l.bf16 %v11304_v54 }
 0x7cb   :  { %v11301_v60 = vunpack.i.h.bf16 %v11299_v15  ;;  %v11300_v12 = vunpack.i.l.bf16 %v11299_v15  ;;  %10105 = vmatmul.mubr.f32.gmra.mrb[54].mxu1 %v7226_v18  ;;  %10640 = vmatprep.subr.bf16.mxu0 %v10639_v13 }
 0x7cc   :  { %10672 = vmatprep.subr.bf16.mxu1 %v10639_v13  ;;  %10642 = vmatpush3.bf16.msra.mxu0 %v10639_v13 }
 0x7cd   :  { %v7213_v62 = vsel %vm2973_vm8, %v7199_v50, %v11300_v12  ;;  %v7214_v38 = vsel %vm2973_vm8, %v7200_v20, %v11301_v60  ;;  %10644 = vmatprep.subr.bf16.mxu0 %v10643_v46  ;;  %10674 = vmatpush3.bf16.msra.mxu1 %v10639_v13 }
 0x7ce   :  { %v7227_v47 = vsel %vm3031_vm2, %v7213_v62, %v11305_v37  ;;  %v7228_v35 = vsel %vm3031_vm2, %v7214_v38, %v11306_v29  ;;  %10676 = vmatprep.subr.bf16.mxu1 %v10643_v46  ;;  %vm7434_vm2 = vcmask 522240  }
 0x7cf   :  { %10107 = vmatprep.mubr.f32.mxu1 %v7227_v47 }
 0x7d0   :  { %10108 = vmatmul.mubr.f32.gmra.mrb[56].mxu1 %v7228_v35  ;;  %10646 = vmatpush3.bf16.msra.mxu0 %v10643_v46 }
 0x7d1   :  { %10648 = vmatprep.subr.bf16.mxu0 %v10647_v49  ;;  %10678 = vmatpush3.bf16.msra.mxu1 %v10643_v46 }
 0x7d2   :  { %10680 = vmatprep.subr.bf16.mxu1 %v10647_v49 }
 0x7d4   :  { %10650 = vmatpush3.bf16.msra.mxu0 %v10647_v49 }
 0x7d5   :  { %10652 = vmatprep.subr.bf16.mxu0 %v15628_v6  ;;  %10682 = vmatpush3.bf16.msra.mxu1 %v10647_v49 }
 0x852   :  { %v10091_v51 = vpop.f32.mrb[44].mxu1 }
 0x853   :  { %v7324_v5 = vadd.f32 %v10091_v51, %v15754_v22  ;;  %v7318_v14 = vpop.f32.mrb[45].mxu1 }
 0x854   :  { %v7319_v53 = vadd.f32 %v15754_v22, %v7318_v14 }
 0x855   :  { %v7388_v34 = vmax.f32 %v7324_v5, 0.0 }
 0x856   :  { %v7387_v25 = vmax.f32 %v7319_v53, 0.0 }
 0x857   :  { %7436 = vst.msk [vmem:[#allocation5 + $0x10] sm:$0x7f] %vm7434_vm2, %v7388_v34  ;;  %v15878_v34 = vpop.permute.xlu0 %8336 }
 0x858   :  { %7435 = vst.msk [vmem:[#allocation5] sm:$0x7f] %vm7434_vm2, %v7387_v25 }
 0x85e   :  { %v7782_v43 = vld [vmem:[#allocation5 + $0x11] sm:$0xff] }
 0x85f   :  { %v7768_v8 = vld [vmem:[#allocation5 + $0x10] sm:$0xff]  ;;  %7867 = vrot.lane.b32.xlu0 %v7782_v43, %s11546_s14  ;;  %v7449_v24 = vld [vmem:[#allocation5] sm:$0xff] }
 0x860   :  { %7811 = vrot.lane.b32.xlu1 %v7768_v8, %s11552_s1  ;;  %10126 = vmatprep.mubr.msk.f32.mxu0 %vm2973_vm8, %v7449_v24  ;;  %v7781_v36 = vld [vmem:[#allocation5 + $0x1] sm:$0xff] }
 0x861   :  { %10127 = vmatmul.mubr.msk.f32.vlgmr.msra.gmra.mrb[68].mxu0 %vm2973_vm8, %v7768_v8 }
 0x862   :  { %10654 = vmatpush3.bf16.msra.mxu0 %v15628_v6 }
 0x863   :  { %8324 = vrot.lane.b32.xlu0 %v7768_v8, %s11545_s28  ;;  %10656 = vmatprep.subr.bf16.mxu0 %v10639_v13 }
 0x864   :  { %8270 = vrot.lane.b32.xlu1 %v7768_v8, %s11551_s24 }
 0x866   :  { %10658 = vmatpush3.bf16.msra.mxu0 %v10639_v13 }
 0x867   :  { %8798 = vrot.lane.b32.xlu0 %v7782_v43, %s11552_s1  ;;  %10660 = vmatprep.subr.bf16.mxu0 %v10643_v46 }
 0x868   :  { %8742 = vrot.lane.b32.xlu1 %v7768_v8, %s11550_s17 }
 0x86a   :  { %10662 = vmatpush3.bf16.msra.mxu0 %v10643_v46 }
 0x86b   :  { %7865 = vrot.lane.b32.xlu0 %v7781_v36, %s11546_s14  ;;  %10664 = vmatprep.subr.bf16.mxu0 %v10647_v49 }
 0x86c   :  { %8852 = vrot.lane.b32.xlu1 %v7768_v8, %s11546_s14 }
 0x86e   :  { %10666 = vmatpush3.bf16.msra.mxu0 %v10647_v49 }
 0x86f   :  { %8796 = vrot.lane.b32.xlu0 %v7781_v36, %s11552_s1 }
 0x870   :  { %8908 = vrot.lane.b32.xlu1 %v7782_v43, %s11549_s27 }
 0x874   :  { %7809 = vrot.lane.b32.xlu1 %v7449_v24, %s11552_s1 }
 0x877   :  { %v10094_v6 = vpop.f32.mrb[46].mxu1 }
 0x878   :  { %v7334_v39 = vadd.f32 %v10094_v6, %v15754_v22  ;;  %v7328_v17 = vpop.f32.mrb[47].mxu1  ;;  %8268 = vrot.lane.b32.xlu1 %v7449_v24, %s11551_s24 }
 0x879   :  { %v7329_v0 = vadd.f32 %v15754_v22, %v7328_v17 }
 0x87a   :  { %v7390_v57 = vmax.f32 %v7334_v39, 0.0 }
 0x87b   :  { %v7389_v59 = vmax.f32 %v7329_v0, 0.0 }
 0x87c   :  { %7438 = vst.msk [vmem:[#allocation5 + $0x30] sm:$0x7f] %vm7434_vm2, %v7390_v57  ;;  %8740 = vrot.lane.b32.xlu1 %v7449_v24, %s11550_s17 }
 0x87d   :  { %7437 = vst.msk [vmem:[#allocation5 + $0x20] sm:$0x7f] %vm7434_vm2, %v7389_v59 }
 0x883   :  { %v7784_v63 = vld [vmem:[#allocation5 + $0x31] sm:$0xff] }
 0x884   :  { %v7770_v27 = vld [vmem:[#allocation5 + $0x30] sm:$0xff]  ;;  %7871 = vrot.lane.b32.xlu0 %v7784_v63, %s11546_s14  ;;  %v7451_v41 = vld [vmem:[#allocation5 + $0x20] sm:$0xff] }
 0x885   :  { %7815 = vrot.lane.b32.xlu1 %v7770_v27, %s11552_s1  ;;  %10129 = vmatprep.mubr.msk.f32.mxu0 %vm2973_vm8, %v7451_v41  ;;  %v7783_v48 = vld [vmem:[#allocation5 + $0x21] sm:$0xff] }
 0x886   :  { %10130 = vmatmul.mubr.msk.f32.gmra.mrb[70].mxu0 %vm2973_vm8, %v7770_v27 }
 0x888   :  { %8328 = vrot.lane.b32.xlu0 %v7770_v27, %s11545_s28 }
 0x889   :  { %8274 = vrot.lane.b32.xlu1 %v7770_v27, %s11551_s24 }
 0x88c   :  { %8802 = vrot.lane.b32.xlu0 %v7784_v63, %s11552_s1 }
 0x88d   :  { %8746 = vrot.lane.b32.xlu1 %v7770_v27, %s11550_s17 }
 0x88f   :  { %v10097_v30 = vpop.f32.mrb[48].mxu1 }
 0x890   :  { %v7344_v52 = vadd.f32 %v10097_v30, %v15754_v22  ;;  %v7338_v58 = vpop.f32.mrb[49].mxu1  ;;  %7869 = vrot.lane.b32.xlu0 %v7783_v48, %s11546_s14 }
 0x891   :  { %8856 = vrot.lane.b32.xlu1 %v7770_v27, %s11546_s14  ;;  %v7339_v1 = vadd.f32 %v15754_v22, %v7338_v58 }
 0x892   :  { %v7392_v2 = vmax.f32 %v7344_v52, 0.0 }
 0x893   :  { %v7391_v4 = vmax.f32 %v7339_v1, 0.0 }
 0x894   :  { %7440 = vst.msk [vmem:[#allocation5 + $0x50] sm:$0x7f] %vm7434_vm2, %v7392_v2  ;;  %8326 = vrot.lane.b32.xlu0 %v7451_v41, %s11545_s28  ;;  %v10100_v19 = vpop.f32.mrb[50].mxu1 }
 0x895   :  { %8912 = vrot.lane.b32.xlu1 %v7784_v63, %s11549_s27  ;;  %7439 = vst.msk [vmem:[#allocation5 + $0x40] sm:$0x7f] %vm7434_vm2, %v7391_v4  ;;  %v7354_v16 = vadd.f32 %v10100_v19, %v15754_v22  ;;  %v7348_v23 = vpop.f32.mrb[51].mxu1 }
 0x896   :  { %v7349_v42 = vadd.f32 %v15754_v22, %v7348_v23 }
 0x897   :  { %v7394_v3 = vmax.f32 %v7354_v16, 0.0 }
 0x898   :  { %8854 = vrot.lane.b32.xlu0 %v7451_v41, %s11546_s14  ;;  %v7393_v44 = vmax.f32 %v7349_v42, 0.0  ;;  %v10103_v7 = vpop.f32.mrb[52].mxu1 }
 0x899   :  { %7813 = vrot.lane.b32.xlu1 %v7451_v41, %s11552_s1  ;;  %7442 = vst.msk [vmem:[#allocation5 + $0x80] sm:$0x7f] %vm7434_vm2, %v7394_v3  ;;  %v7364_v40 = vadd.f32 %v10103_v7, %v15754_v22  ;;  %v7358_v55 = vpop.f32.mrb[53].mxu1 }
 0x89a   :  { %7441 = vst.msk [vmem:[#allocation5 + $0x60] sm:$0x7f] %vm7434_vm2, %v7393_v44  ;;  %v7359_v32 = vadd.f32 %v15754_v22, %v7358_v55 }
 0x89b   :  { %v7396_v45 = vmax.f32 %v7364_v40, 0.0  ;;  %v7454_v15 = vld [vmem:[#allocation5 + $0x50] sm:$0xff] }
 0x89c   :  { %8910 = vrot.lane.b32.xlu0 %v7783_v48, %s11549_s27  ;;  %v7453_v21 = vld [vmem:[#allocation5 + $0x40] sm:$0xff]  ;;  %v7395_v18 = vmax.f32 %v7359_v32, 0.0  ;;  %v7786_v47 = vld [vmem:[#allocation5 + $0x51] sm:$0xff] }
 0x89d   :  { %8272 = vrot.lane.b32.xlu1 %v7451_v41, %s11551_s24  ;;  %10132 = vmatprep.mubr.msk.f32.mxu0 %vm2973_vm8, %v7453_v21  ;;  %7444 = vst.msk [vmem:[#allocation5 + $0xa0] sm:$0x7f] %vm7434_vm2, %v7396_v45  ;;  %v7785_v10 = vld [vmem:[#allocation5 + $0x41] sm:$0xff] }
 0x89e   :  { %v10106_v54 = vpop.f32.mrb[54].mxu1  ;;  %10133 = vmatmul.mubr.msk.f32.gmra.mrb[72].mxu0 %vm2973_vm8, %v7454_v15  ;;  %7443 = vst.msk [vmem:[#allocation5 + $0x90] sm:$0x7f] %vm7434_vm2, %v7395_v18 }
 0x89f   :  { %v7374_v60 = vadd.f32 %v10106_v54, %v15754_v22  ;;  %v7368_v12 = vpop.f32.mrb[55].mxu1 }
 0x8a0   :  { %v7369_v29 = vadd.f32 %v15754_v22, %v7368_v12  ;;  %8800 = vrot.lane.b32.xlu0 %v7783_v48, %s11552_s1  ;;  %v7456_v38 = vld [vmem:[#allocation5 + $0x80] sm:$0xff] }
 0x8a1   :  { %8744 = vrot.lane.b32.xlu1 %v7451_v41, %s11550_s17  ;;  %v7398_v37 = vmax.f32 %v7374_v60, 0.0  ;;  %v15814_v20 = vld [vmem:[#allocation5 + $0x60] sm:$0xff] }
 0x8a2   :  { %v7397_v50 = vmax.f32 %v7369_v29, 0.0  ;;  %10135 = vmatprep.mubr.msk.f32.mxu0 %vm2973_vm8, %v15814_v20  ;;  %v7788_v51 = vld [vmem:[#allocation5 + $0x81] sm:$0xff] }
 0x8a3   :  { %7446 = vst.msk [vmem:[#allocation5 + $0xc0] sm:$0x7f] %vm7434_vm2, %v7398_v37  ;;  %v10109_v62 = vpop.f32.mrb[56].mxu1  ;;  %10136 = vmatmul.mubr.msk.f32.gmra.mrb[74].mxu0 %vm2973_vm8, %v7456_v38  ;;  %v7787_v14 = vld [vmem:[#allocation5 + $0x61] sm:$0xff] }
 0x8a4   :  { %7445 = vst.msk [vmem:[#allocation5 + $0xb0] sm:$0x7f] %vm7434_vm2, %v7397_v50  ;;  %v7384_v35 = vadd.f32 %v10109_v62, %v15754_v22  ;;  %7875 = vrot.lane.b32.xlu0 %v7786_v47, %s11546_s14  ;;  %v7378_v11 = vpop.f32.mrb[57].mxu1  ;;  %v15829_v56 = vld [vmem:[#allocation5 + $0xa0] sm:$0xff] }
 0x8a5   :  { %7819 = vrot.lane.b32.xlu1 %v7454_v15, %s11552_s1  ;;  %v7379_v61 = vadd.f32 %v15754_v22, %v7378_v11  ;;  %v15825_v13 = vld [vmem:[#allocation5 + $0x90] sm:$0xff]  ;;  %v15864_v22 = vpop.permute.xlu1 %8350  ;;  %v15888_v24 = vld [vmem:[#allocation5 + $0xa1] sm:$0xff] }
 0x8a6   :  { %v7400_v9 = vmax.f32 %v7384_v35, 0.0  ;;  %10138 = vmatprep.mubr.msk.f32.mxu0 %vm2973_vm8, %v15825_v13  ;;  %v7789_v57 = vld [vmem:[#allocation5 + $0x91] sm:$0xff] }
 0x8a7   :  { %v7399_v28 = vmax.f32 %v7379_v61, 0.0  ;;  %10139 = vmatmul.mubr.msk.f32.gmra.mrb[76].mxu0 %vm2973_vm8, %v15829_v56 }
 0x8a8   :  { %7448 = vst.msk [vmem:[#allocation5 + $0xe0] sm:$0x7f] %vm7434_vm2, %v7400_v9  ;;  %8332 = vrot.lane.b32.xlu0 %v7454_v15, %s11545_s28 }
 0x8a9   :  { %7447 = vst.msk [vmem:[#allocation5 + $0xd0] sm:$0x7f] %vm7434_vm2, %v7399_v28  ;;  %8278 = vrot.lane.b32.xlu1 %v7454_v15, %s11551_s24  ;;  %v15869_v5 = vpop.permute.xlu1 %8864 }
 0x8aa   :  { %v15842_v31 = vld [vmem:[#allocation5 + $0xc0] sm:$0xff] }
 0x8ab   :  { %v15837_v46 = vld [vmem:[#allocation5 + $0xb0] sm:$0xff]  ;;  %v7792_v4 = vld [vmem:[#allocation5 + $0xc1] sm:$0xff] }
 0x8ac   :  { %8806 = vrot.lane.b32.xlu0 %v7786_v47, %s11552_s1  ;;  %10141 = vmatprep.mubr.msk.f32.mxu0 %vm2973_vm8, %v15837_v46  ;;  %v15958_v37 = vld [vmem:[#allocation5 + $0xb1] sm:$0xff] }
 0x8ad   :  { %8750 = vrot.lane.b32.xlu1 %v7454_v15, %s11550_s17  ;;  %10142 = vmatmul.mubr.msk.f32.gmra.mrb[78].mxu0 %vm2973_vm8, %v15842_v31  ;;  %v15875_v53 = vpop.permute.xlu1 %8920 }
 0x8af   :  { %v15853_v33 = vld [vmem:[#allocation5 + $0xe0] sm:$0xff] }
 0x8b0   :  { %7873 = vrot.lane.b32.xlu0 %v7785_v10, %s11546_s14  ;;  %v15848_v49 = vld [vmem:[#allocation5 + $0xd0] sm:$0xff] }
 0x8b1   :  { %8860 = vrot.lane.b32.xlu1 %v7454_v15, %s11546_s14  ;;  %10144 = vmatprep.mubr.msk.f32.mxu0 %vm2973_vm8, %v15848_v49 }
 0x8b2   :  { %10145 = vmatmul.mubr.msk.f32.gmra.mrb[80].mxu0 %vm2973_vm8, %v15853_v33 }
 0x8b4   :  { %8330 = vrot.lane.b32.xlu0 %v7453_v21, %s11545_s28 }
 0x8b5   :  { %8916 = vrot.lane.b32.xlu1 %v7786_v47, %s11549_s27 }
 0x8b8   :  { %8858 = vrot.lane.b32.xlu0 %v7453_v21, %s11546_s14 }
 0x8b9   :  { %7817 = vrot.lane.b32.xlu1 %v7453_v21, %s11552_s1 }
 0x8bc   :  { %8914 = vrot.lane.b32.xlu0 %v7785_v10, %s11549_s27 }
 0x8bd   :  { %8276 = vrot.lane.b32.xlu1 %v7453_v21, %s11551_s24 }
 0x8c0   :  { %8804 = vrot.lane.b32.xlu0 %v7785_v10, %s11552_s1 }
 0x8c1   :  { %8748 = vrot.lane.b32.xlu1 %v7453_v21, %s11550_s17 }
 0x8c4   :  { %7879 = vrot.lane.b32.xlu0 %v7788_v51, %s11546_s14 }
 0x8c5   :  { %7823 = vrot.lane.b32.xlu1 %v7456_v38, %s11552_s1 }
 0x8c8   :  { %7877 = vrot.lane.b32.xlu0 %v7787_v14, %s11546_s14 }
 0x8c9   :  { %8282 = vrot.lane.b32.xlu1 %v7456_v38, %s11551_s24 }
 0x8cc   :  { %8334 = vrot.lane.b32.xlu0 %v15814_v20, %s11545_s28 }
 0x8cd   :  { %8754 = vrot.lane.b32.xlu1 %v7456_v38, %s11550_s17 }
 0x8d0   :  { %8862 = vrot.lane.b32.xlu0 %v15814_v20, %s11546_s14 }
 0x8d1   :  { %8810 = vrot.lane.b32.xlu1 %v7788_v51, %s11552_s1  ;;  %v7868_v43 = vpop.permute.xlu0 %7867 }
 0x8d2   :  { %v7812_v25 = vpop.permute.xlu1 %7811 }
 0x8d3   :  { %v7908_v59 = vsel %vm1695_vm4, %v7812_v25, %v7868_v43 }
 0x8d4   :  { %8918 = vrot.lane.b32.xlu0 %v7787_v14, %s11549_s27  ;;  %v7922_v41 = vsel %vm2916_vm7, %v7908_v59, %v7812_v25 }
 0x8d5   :  { %7821 = vrot.lane.b32.xlu1 %v15814_v20, %s11552_s1  ;;  %v8325_v36 = vpop.permute.xlu0 %8324  ;;  %v7936_v58 = vsel %vm1125_vm3, %v7922_v41, %v7868_v43  ;;  %v8993_v41 = vld [vmem:[%s16578_s11 + $0x8] sm:$0xff] }
 0x8d6   :  { %v15886_v8 = vpop.permute.xlu1 %8270 }
 0x8d8   :  { %7883 = vrot.lane.b32.xlu0 %v15888_v24, %s11546_s14 }
 0x8d9   :  { %8280 = vrot.lane.b32.xlu1 %v15814_v20, %s11551_s24  ;;  %v15900_v17 = vpop.permute.xlu0 %8798 }
 0x8da   :  { %v15894_v6 = vpop.permute.xlu1 %8742 }
 0x8db   :  { %v8951_v61 = vsel %vm1695_vm4, %v15894_v6, %v15900_v17  ;;  %v15993_v6 = vld [vmem:[#allocation5 + $0xe1] sm:$0xff] }
 0x8dc   :  { %8340 = vrot.lane.b32.xlu0 %v15829_v56, %s11545_s28 }
 0x8dd   :  { %8752 = vrot.lane.b32.xlu1 %v15814_v20, %s11550_s17  ;;  %v7866_v63 = vpop.permute.xlu0 %7865 }
 0x8de   :  { %v8853_v39 = vpop.permute.xlu1 %8852 }
 0x8e0   :  { %8286 = vrot.lane.b32.xlu0 %v15829_v56, %s11551_s24 }
 0x8e1   :  { %8808 = vrot.lane.b32.xlu1 %v7787_v14, %s11552_s1  ;;  %v8797_v16 = vpop.permute.xlu0 %8796 }
 0x8e2   :  { %v8909_v0 = vpop.permute.xlu1 %8908 }
 0x8e4   :  { %7881 = vrot.lane.b32.xlu0 %v7789_v57, %s11546_s14 }
 0x8e5   :  { %7827 = vrot.lane.b32.xlu1 %v15829_v56, %s11552_s1 }
 0x8e6   :  { %v7810_v27 = vpop.permute.xlu1 %7809 }
 0x8e7   :  { %v7907_v30 = vsel %vm1695_vm4, %v7810_v27, %v7866_v63 }
 0x8e8   :  { %v7921_v48 = vsel %vm2916_vm7, %v7907_v30, %v7810_v27  ;;  %8338 = vrot.lane.b32.xlu0 %v15825_v13, %s11545_s28  ;;  %v8992_v27 = vld [vmem:[%s16578_s11] sm:$0xff] }
 0x8e9   :  { %8758 = vrot.lane.b32.xlu1 %v15829_v56, %s11550_s17  ;;  %v7935_v52 = vsel %vm1125_vm3, %v7921_v48, %v7866_v63  ;;  %v10683_v48 = vpack.c.bf16 %v8993_v41, %v8992_v27 }
 0x8ea   :  { %v8269_v1 = vpop.permute.xlu1 %8268  ;;  %10163 = vmatprep.mubr.msk.f32.mxu0 %vm2973_vm8, %v7935_v52 }
 0x8eb   :  { %v8366_v2 = vsel %vm2916_vm7, %v8269_v1, %v8325_v36  ;;  %10164 = vmatmul.mubr.msk.f32.vlgmr.msra.gmra.mrb[82].mxu0 %vm2973_vm8, %v7936_v58  ;;  %10684 = vmatprep.subr.bf16.mxu0 %v10683_v48  ;;  %v8994_v1 = vld [vmem:[%s16578_s11 + $0x10] sm:$0xff] }
 0x8ec   :  { %7887 = vrot.lane.b32.xlu0 %v7792_v4, %s11546_s14  ;;  %v8380_v19 = vsel %vm1125_vm3, %v8366_v2, %v8325_v36  ;;  %10686 = vmatpush3.bf16.msra.mxu0 %v10683_v48  ;;  %v8995_v2 = vld [vmem:[%s16578_s11 + $0x18] sm:$0xff] }
 0x8ed   :  { %8814 = vrot.lane.b32.xlu1 %v15888_v24, %s11552_s1  ;;  %10200 = vmatprep.mubr.msk.f32.mxu1 %vm2973_vm8, %v8380_v19  ;;  %v10687_v19 = vpack.c.bf16 %v8995_v2, %v8994_v1 }
 0x8ee   :  { %v8741_v23 = vpop.permute.xlu1 %8740  ;;  %10699 = vmatprep.subr.bf16.mxu1 %v10683_v48 }
 0x8ef   :  { %v8950_v42 = vsel %vm1695_vm4, %v8741_v23, %v8797_v16  ;;  %10688 = vmatprep.subr.bf16.mxu0 %v10687_v19  ;;  %v8997_v23 = vld [vmem:[%s16578_s11 + $0x28] sm:$0xff] }
 0x8f0   :  { %v8964_v3 = vsel %vm2916_vm7, %v8950_v42, %v8853_v39  ;;  %8344 = vrot.lane.b32.xlu0 %v15842_v31, %s11545_s28  ;;  %10690 = vmatpush3.bf16.msra.mxu0 %v10687_v19 }
 0x8f1   :  { %7825 = vrot.lane.b32.xlu1 %v15825_v13, %s11552_s1  ;;  %v15933_v44 = vsel %vm1125_vm3, %v8964_v3, %v8909_v0 }
 0x8f4   :  { %8290 = vrot.lane.b32.xlu0 %v15842_v31, %s11551_s24 }
 0x8f5   :  { %8284 = vrot.lane.b32.xlu1 %v15825_v13, %s11551_s24 }
 0x8f6   :  { %v7872_v7 = vpop.permute.xlu0 %7871 }
 0x8f7   :  { %v7816_v40 = vpop.permute.xlu1 %7815 }
 0x8f8   :  { %8762 = vrot.lane.b32.xlu0 %v15842_v31, %s11550_s17  ;;  %v7910_v50 = vsel %vm1695_vm4, %v7816_v40, %v7872_v7 }
 0x8f9   :  { %8866 = vrot.lane.b32.xlu1 %v15825_v13, %s11546_s14  ;;  %v7924_v47 = vsel %vm2916_vm7, %v7910_v50, %v7816_v40  ;;  %v8999_v40 = vld [vmem:[%s16578_s11 + $0x38] sm:$0xff] }
 0x8fa   :  { %v8329_v55 = vpop.permute.xlu0 %8328  ;;  %v7938_v10 = vsel %vm1125_vm3, %v7924_v47, %v7872_v7  ;;  %v8998_v7 = vld [vmem:[%s16578_s11 + $0x30] sm:$0xff] }
 0x8fb   :  { %v15943_v32 = vpop.permute.xlu1 %8274 }
 0x8fc   :  { %8818 = vrot.lane.b32.xlu0 %v7792_v4, %s11552_s1 }
 0x8fd   :  { %8922 = vrot.lane.b32.xlu1 %v7789_v57, %s11549_s27 }
 0x8fe   :  { %v8803_v45 = vpop.permute.xlu0 %8802 }
 0x8ff   :  { %v8747_v21 = vpop.permute.xlu1 %8746 }
 0x900   :  { %v15948_v18 = vsel %vm1695_vm4, %v8747_v21, %v8803_v45  ;;  %8872 = vrot.lane.b32.xlu0 %v15842_v31, %s11546_s14  ;;  %v10695_v21 = vpack.c.bf16 %v8999_v40, %v8998_v7 }
 0x901   :  { %8756 = vrot.lane.b32.xlu1 %v15825_v13, %s11550_s17 }
 0x902   :  { %v7870_v15 = vpop.permute.xlu0 %7869 }
 0x903   :  { %v8857_v54 = vpop.permute.xlu1 %8856 }
 0x904   :  { %8928 = vrot.lane.b32.xlu0 %v7792_v4, %s11549_s27 }
 0x905   :  { %8812 = vrot.lane.b32.xlu1 %v7789_v57, %s11552_s1 }
 0x906   :  { %v8327_v60 = vpop.permute.xlu0 %8326 }
 0x907   :  { %v8913_v12 = vpop.permute.xlu1 %8912  ;;  %v8367_v29 = vsel %vm2916_vm7, %v15886_v8, %v8327_v60 }
 0x908   :  { %v8381_v20 = vsel %vm1125_vm3, %v8367_v29, %v8327_v60  ;;  %7885 = vrot.lane.b32.xlu0 %v15958_v37, %s11546_s14  ;;  %v7793_v29 = vld [vmem:[#allocation5 + $0xd1] sm:$0xff] }
 0x909   :  { %7831 = vrot.lane.b32.xlu1 %v15842_v31, %s11552_s1  ;;  %10201 = vmatmul.mubr.msk.f32.vlgmr.msra.gmra.mrb[58].mxu1 %vm2973_vm8, %v8381_v20 }
 0x90a   :  { %v8855_v62 = vpop.permute.xlu0 %8854  ;;  %10703 = vmatpush3.bf16.msra.mxu1 %v10683_v48 }
 0x90b   :  { %v7814_v38 = vpop.permute.xlu1 %7813  ;;  %v8965_v13 = vsel %vm2916_vm7, %v8951_v61, %v8855_v62  ;;  %10700 = vmatprep.subr.bf16.mxu1 %v10687_v19 }
 0x90c   :  { %v7909_v35 = vsel %vm1695_vm4, %v7814_v38, %v7870_v15  ;;  %8760 = vrot.lane.b32.xlu0 %v15837_v46, %s11550_s17 }
 0x90d   :  { %v7923_v11 = vsel %vm2916_vm7, %v7909_v35, %v7814_v38  ;;  %7829 = vrot.lane.b32.xlu1 %v15837_v46, %s11552_s1 }
 0x90e   :  { %v7937_v9 = vsel %vm1125_vm3, %v7923_v11, %v7870_v15  ;;  %v8911_v28 = vpop.permute.xlu0 %8910  ;;  %10704 = vmatpush3.bf16.msra.mxu1 %v10687_v19 }
 0x90f   :  { %v8273_v31 = vpop.permute.xlu1 %8272  ;;  %10166 = vmatprep.mubr.msk.f32.mxu0 %vm2973_vm8, %v7937_v9  ;;  %v15982_v51 = vsel %vm1125_vm3, %v8965_v13, %v8911_v28  ;;  %v16090_v13 = vld [vmem:[%s16580_s12] ss:$0 sm:$0xff] }
 0x910   :  { %v8368_v14 = vsel %vm2916_vm7, %v8273_v31, %v8329_v55  ;;  %10167 = vmatmul.mubr.msk.f32.gmra.mrb[84].mxu0 %vm2973_vm8, %v7938_v10  ;;  %8816 = vrot.lane.b32.xlu0 %v15958_v37, %s11552_s1 }
 0x911   :  { %v8382_v25 = vsel %vm1125_vm3, %v8368_v14, %v8329_v55  ;;  %8342 = vrot.lane.b32.xlu1 %v15837_v46, %s11545_s28 }
 0x912   :  { %10203 = vmatprep.mubr.msk.f32.mxu1 %vm2973_vm8, %v8382_v25  ;;  %v8801_v43 = vpop.permute.xlu0 %8800 }
 0x913   :  { %v8745_v8 = vpop.permute.xlu1 %8744 }
 0x914   :  { %v8952_v36 = vsel %vm1695_vm4, %v8745_v8, %v8801_v43  ;;  %7891 = vrot.lane.b32.xlu0 %v15993_v6, %s11546_s14 }
 0x915   :  { %v8966_v39 = vsel %vm2916_vm7, %v8952_v36, %v8857_v54  ;;  %8288 = vrot.lane.b32.xlu1 %v15837_v46, %s11551_s24 }
 0x916   :  { %v16001_v17 = vsel %vm1125_vm3, %v8966_v39, %v8913_v12  ;;  %v16003_v0 = vpop.permute.xlu0 %7875 }
 0x917   :  { %v7820_v57 = vpop.permute.xlu1 %7819 }
 0x918   :  { %8348 = vrot.lane.b32.xlu0 %v15853_v33, %s11545_s28  ;;  %v7912_v54 = vsel %vm1695_vm4, %v7820_v57, %v16003_v0 }
 0x919   :  { %7835 = vrot.lane.b32.xlu1 %v15853_v33, %s11552_s1 }
 0x91a   :  { %v16009_v59 = vpop.permute.xlu0 %8332 }
 0x91b   :  { %v16011_v63 = vpop.permute.xlu1 %8278 }
 0x91c   :  { %8294 = vrot.lane.b32.xlu0 %v15853_v33, %s11551_s24 }
 0x91d   :  { %7833 = vrot.lane.b32.xlu1 %v15848_v49, %s11552_s1 }
 0x91e   :  { %v8807_v30 = vpop.permute.xlu0 %8806 }
 0x91f   :  { %v8751_v52 = vpop.permute.xlu1 %8750 }
 0x920   :  { %v16024_v58 = vsel %vm1695_vm4, %v8751_v52, %v8807_v30  ;;  %8766 = vrot.lane.b32.xlu0 %v15853_v33, %s11550_s17 }
 0x921   :  { %8868 = vrot.lane.b32.xlu1 %v15829_v56, %s11546_s14  ;;  %v8996_v56 = vld [vmem:[%s16578_s11 + $0x20] sm:$0xff] }
 0x922   :  { %v7874_v4 = vpop.permute.xlu0 %7873  ;;  %v10691_v3 = vpack.c.bf16 %v8997_v23, %v8996_v56 }
 0x923   :  { %v8861_v16 = vpop.permute.xlu1 %8860 }
 0x924   :  { %8822 = vrot.lane.b32.xlu0 %v15993_v6, %s11552_s1  ;;  %10692 = vmatprep.subr.bf16.mxu0 %v10691_v3 }
 0x925   :  { %8346 = vrot.lane.b32.xlu1 %v15848_v49, %s11545_s28  ;;  %10694 = vmatpush3.bf16.msra.mxu0 %v10691_v3 }
 0x926   :  { %v8331_v42 = vpop.permute.xlu0 %8330  ;;  %10701 = vmatprep.subr.bf16.mxu1 %v10691_v3  ;;  %10696 = vmatprep.subr.bf16.mxu0 %v10695_v21 }
 0x927   :  { %v8369_v55 = vsel %vm2916_vm7, %v15943_v32, %v8331_v42  ;;  %v8917_v45 = vpop.permute.xlu1 %8916  ;;  %10705 = vmatpush3.bf16.msra.mxu1 %v10691_v3 }
 0x928   :  { %v8383_v15 = vsel %vm1125_vm3, %v8369_v55, %v8331_v42  ;;  %8876 = vrot.lane.b32.xlu0 %v15853_v33, %s11546_s14  ;;  %v7926_v33 = vsel %vm2916_vm7, %v7912_v54, %v7820_v57  ;;  %10702 = vmatprep.subr.bf16.mxu1 %v10695_v21 }
 0x929   :  { %8292 = vrot.lane.b32.xlu1 %v15848_v49, %s11551_s24  ;;  %10204 = vmatmul.mubr.msk.f32.gmra.mrb[60].mxu1 %vm2973_vm8, %v8383_v15  ;;  %v7940_v35 = vsel %vm1125_vm3, %v7926_v33, %v16003_v0 }
 0x92a   :  { %v8859_v60 = vpop.permute.xlu0 %8858  ;;  %10698 = vmatpush3.bf16.msra.mxu0 %v10695_v21 }
 0x92b   :  { %v8967_v32 = vsel %vm2916_vm7, %v15948_v18, %v8859_v60  ;;  %v7818_v12 = vpop.permute.xlu1 %7817  ;;  %10706 = vmatpush3.bf16.msra.mxu1 %v10695_v21 }
 0x92c   :  { %v7911_v50 = vsel %vm1695_vm4, %v7818_v12, %v7874_v4  ;;  %7889 = vrot.lane.b32.xlu0 %v7793_v29, %s11546_s14 }
 0x92d   :  { %v7925_v20 = vsel %vm2916_vm7, %v7911_v50, %v7818_v12  ;;  %8870 = vrot.lane.b32.xlu1 %v15837_v46, %s11546_s14 }
 0x92e   :  { %v8915_v62 = vpop.permute.xlu0 %8914  ;;  %v7939_v38 = vsel %vm1125_vm3, %v7925_v20, %v7874_v4 }
 0x92f   :  { %v16072_v18 = vsel %vm1125_vm3, %v8967_v32, %v8915_v62  ;;  %v8277_v47 = vpop.permute.xlu1 %8276  ;;  %10169 = vmatprep.mubr.msk.f32.mxu0 %vm2973_vm8, %v7939_v38 }
 0x930   :  { %v8370_v11 = vsel %vm2916_vm7, %v8277_v47, %v16009_v59  ;;  %10170 = vmatmul.mubr.msk.f32.gmra.mrb[86].mxu0 %vm2973_vm8, %v7940_v35  ;;  %8878 = vrot.lane.b32.xlu0 %v15693_v26, %s11546_s14 }
 0x931   :  { %8924 = vrot.lane.b32.xlu1 %v15888_v24, %s11549_s27  ;;  %v8384_v46 = vsel %vm1125_vm3, %v8370_v11, %v16009_v59 }
 0x932   :  { %10206 = vmatprep.mubr.msk.f32.mxu1 %vm2973_vm8, %v8384_v46  ;;  %v8805_v61 = vpop.permute.xlu0 %8804 }
 0x933   :  { %v8749_v9 = vpop.permute.xlu1 %8748 }
 0x934   :  { %v8954_v28 = vsel %vm1695_vm4, %v8749_v9, %v8805_v61  ;;  %8932 = vrot.lane.b32.xlu0 %v15993_v6, %s11549_s27  ;;  %v10128_v24 = vpop.f32.mrb[68].mxu0 }
 0x935   :  { %v8968_v26 = vsel %vm2916_vm7, %v8954_v28, %v8861_v16  ;;  %8926 = vrot.lane.b32.xlu1 %v15958_v37, %s11549_s27  ;;  %v7620_v31 = vadd.f32 %v10128_v24, %v16090_v13  ;;  %v7614_v10 = vpop.f32.mrb[69].mxu0 }
 0x936   :  { %v7880_v14 = vpop.permute.xlu0 %7879  ;;  %v16100_v25 = vsel %vm1125_vm3, %v8968_v26, %v8917_v45  ;;  %v7615_v43 = vadd.f32 %v16090_v13, %v7614_v10 }
 0x937   :  { %v7824_v8 = vpop.permute.xlu1 %7823  ;;  %v7684_v36 = vsub.f32 0.0, %v7620_v31 }
 0x938   :  { %8874 = vrot.lane.b32.xlu0 %v15848_v49, %s11546_s14  ;;  %v7683_v6 = vsub.f32 0.0, %v7615_v43  ;;  %v7914_v4 = vsel %vm1695_vm4, %v7824_v8, %v7880_v14 }
 0x939   :  { %v7699_v39 = vmul.f32 1.442695, %v7684_v36  ;;  %v7928_v7 = vsel %vm2916_vm7, %v7914_v4, %v7824_v8 }
 0x93a   :  { %v7878_v0 = vpop.permute.xlu0 %7877  ;;  %v7697_v57 = vmul.f32 1.442695, %v7683_v6  ;;  %v7942_v15 = vsel %vm1125_vm3, %v7928_v7, %v7880_v14 }
 0x93b   :  { %v8283_v37 = vpop.permute.xlu1 %8282  ;;  %11310 = vpow2.f32 %v7699_v39 }
 0x93c   :  { %8930 = vrot.lane.b32.xlu0 %v7793_v29, %s11549_s27  ;;  %11312 = vpow2.f32 %v7697_v57 }
 0x93e   :  { %v8335_v59 = vpop.permute.xlu0 %8334 }
 0x93f   :  { %v8755_v27 = vpop.permute.xlu1 %8754  ;;  %v8371_v41 = vsel %vm2916_vm7, %v16011_v63, %v8335_v59  ;;  %v8725_v63 = vld [vmem:[#allocation5 + $0xf1] sm:$0xff] }
 0x940   :  { %v8385_v30 = vsel %vm1125_vm3, %v8371_v41, %v8335_v59  ;;  %8764 = vrot.lane.b32.xlu0 %v15848_v49, %s11550_s17 }
 0x941   :  { %10207 = vmatmul.mubr.msk.f32.gmra.mrb[62].mxu1 %vm2973_vm8, %v8385_v30 }
 0x942   :  { %v8863_v48 = vpop.permute.xlu0 %8862 }
 0x943   :  { %v8811_v52 = vpop.permute.xlu1 %8810  ;;  %v8969_v1 = vsel %vm2916_vm7, %v16024_v58, %v8863_v48 }
 0x944   :  { %v16115_v2 = vsel %vm1695_vm4, %v8755_v27, %v8811_v52  ;;  %8820 = vrot.lane.b32.xlu0 %v7793_v29, %s11552_s1 }
 0x945   :  { %v11311_v19 = vpop.eup %11310 }
 0x946   :  { %v8919_v16 = vpop.permute.xlu0 %8918  ;;  %v11313_v56 = vpop.eup %11312  ;;  %v7726_v23 = vadd.f32 1.0, %v11311_v19 }
 0x947   :  { %v16120_v49 = vsel %vm1125_vm3, %v8969_v1, %v8919_v16  ;;  %v7822_v42 = vpop.permute.xlu1 %7821  ;;  %v7725_v3 = vadd.f32 1.0, %v11313_v56 }
 0x948   :  { %v7913_v58 = vsel %vm1695_vm4, %v7822_v42, %v7878_v0  ;;  %8934 = vrot.lane.b32.xlu0 %v8725_v63, %s11549_s27  ;;  %11314 = vrcp.f32 %v7726_v23 }
 0x949   :  { %v7927_v40 = vsel %vm2916_vm7, %v7913_v58, %v7822_v42  ;;  %11316 = vrcp.f32 %v7725_v3 }
 0x94a   :  { %v7884_v55 = vpop.permute.xlu0 %7883  ;;  %v7941_v45 = vsel %vm1125_vm3, %v7927_v40, %v7878_v0 }
 0x94b   :  { %v8281_v21 = vpop.permute.xlu1 %8280  ;;  %10172 = vmatprep.mubr.msk.f32.mxu0 %vm2973_vm8, %v7941_v45 }
 0x94c   :  { %v8372_v54 = vsel %vm2916_vm7, %v8281_v21, %v15878_v34  ;;  %10173 = vmatmul.mubr.msk.f32.gmra.mrb[88].mxu0 %vm2973_vm8, %v7942_v15 }
 0x94d   :  { %v8386_v60 = vsel %vm1125_vm3, %v8372_v54, %v15878_v34 }
 0x94e   :  { %10209 = vmatprep.mubr.msk.f32.mxu1 %vm2973_vm8, %v8386_v60  ;;  %v8341_v32 = vpop.permute.xlu0 %8340 }
 0x94f   :  { %v8753_v12 = vpop.permute.xlu1 %8752 }
 0x952   :  { %v16135_v29 = vpop.permute.xlu0 %8286  ;;  %v11315_v33 = vpop.eup %11314 }
 0x953   :  { %v8809_v50 = vpop.permute.xlu1 %8808  ;;  %v11317_v20 = vpop.eup %11316  ;;  %7754 = vst.msk [vmem:[%s16581_s13 + $0x8] sm:$0xff] %vm941_vm0, %v11315_v33 }
 0x954   :  { %v16142_v62 = vsel %vm1695_vm4, %v8753_v12, %v8809_v50  ;;  %7753 = vst.msk [vmem:[%s16581_s13] sm:$0xff] %vm941_vm0, %v11317_v20 }
 0x956   :  { %v7882_v34 = vpop.permute.xlu0 %7881 }
 0x957   :  { %v7828_v38 = vpop.permute.xlu1 %7827 }
 0x958   :  { %v7916_v6 = vsel %vm1695_vm4, %v7828_v38, %v7884_v55 }
 0x959   :  { %v10131_v47 = vpop.f32.mrb[70].mxu0  ;;  %v7930_v57 = vsel %vm2916_vm7, %v7916_v6, %v7828_v38 }
 0x95a   :  { %v7630_v35 = vadd.f32 %v10131_v47, %v16090_v13  ;;  %v7624_v11 = vpop.f32.mrb[71].mxu0  ;;  %v8339_v46 = vpop.permute.xlu0 %8338  ;;  %v7944_v48 = vsel %vm1125_vm3, %v7930_v57, %v7884_v55 }
 0x95b   :  { %v7625_v61 = vadd.f32 %v16090_v13, %v7624_v11  ;;  %v8373_v9 = vsel %vm2916_vm7, %v8283_v37, %v8339_v46  ;;  %v8759_v28 = vpop.permute.xlu1 %8758 }
 0x95c   :  { %v7686_v26 = vsub.f32 0.0, %v7630_v35  ;;  %v8387_v24 = vsel %vm1125_vm3, %v8373_v9, %v8339_v46 }
 0x95d   :  { %v7685_v31 = vsub.f32 0.0, %v7625_v61  ;;  %10210 = vmatmul.mubr.msk.f32.gmra.mrb[64].mxu1 %vm2973_vm8, %v8387_v24 }
 0x95e   :  { %v7703_v10 = vmul.f32 1.442695, %v7686_v26  ;;  %v16153_v14 = vpop.permute.xlu0 %7887 }
 0x95f   :  { %v7701_v43 = vmul.f32 1.442695, %v7685_v31  ;;  %v8815_v8 = vpop.permute.xlu1 %8814 }
 0x960   :  { %11318 = vpow2.f32 %v7703_v10  ;;  %v16156_v36 = vsel %vm1695_vm4, %v8759_v28, %v8815_v8 }
 0x961   :  { %11320 = vpow2.f32 %v7701_v43 }
 0x962   :  { %v16159_v39 = vpop.permute.xlu0 %8344 }
 0x963   :  { %v7826_v0 = vpop.permute.xlu1 %7825 }
 0x964   :  { %v7915_v37 = vsel %vm1695_vm4, %v7826_v0, %v7882_v34 }
 0x965   :  { %v7929_v59 = vsel %vm2916_vm7, %v7915_v37, %v7826_v0 }
 0x966   :  { %v16164_v27 = vpop.permute.xlu0 %8290  ;;  %v7943_v41 = vsel %vm1125_vm3, %v7929_v59, %v7882_v34 }
 0x967   :  { %v8285_v30 = vpop.permute.xlu1 %8284  ;;  %10175 = vmatprep.mubr.msk.f32.mxu0 %vm2973_vm8, %v7943_v41 }
 0x968   :  { %v8374_v52 = vsel %vm2916_vm7, %v8285_v30, %v8341_v32  ;;  %10176 = vmatmul.mubr.msk.f32.gmra.mrb[90].mxu0 %vm2973_vm8, %v7944_v48 }
 0x969   :  { %v8388_v1 = vsel %vm1125_vm3, %v8374_v52, %v8341_v32 }
 0x96a   :  { %v11319_v4 = vpop.eup %11318  ;;  %10212 = vmatprep.mubr.msk.f32.mxu1 %vm2973_vm8, %v8388_v1  ;;  %v16173_v63 = vpop.permute.xlu0 %8762 }
 0x96b   :  { %v11321_v19 = vpop.eup %11320  ;;  %v7728_v16 = vadd.f32 1.0, %v11319_v4  ;;  %v8867_v56 = vpop.permute.xlu1 %8866 }
 0x96c   :  { %v7727_v23 = vadd.f32 1.0, %v11321_v19  ;;  %v8971_v42 = vsel %vm2916_vm7, %v16115_v2, %v8867_v56 }
 0x96d   :  { %11322 = vrcp.f32 %v7728_v16 }
 0x96e   :  { %11324 = vrcp.f32 %v7727_v23  ;;  %v16177_v3 = vpop.permute.xlu0 %8818 }
 0x96f   :  { %v8923_v7 = vpop.permute.xlu1 %8922 }
 0x970   :  { %v16180_v58 = vsel %vm1125_vm3, %v8971_v42, %v8923_v7 }
 0x971   :  { %v10134_v40 = vpop.f32.mrb[72].mxu0 }
 0x972   :  { %v7640_v55 = vadd.f32 %v10134_v40, %v16090_v13  ;;  %v7634_v45 = vpop.f32.mrb[73].mxu0  ;;  %v16183_v21 = vpop.permute.xlu0 %8872 }
 0x973   :  { %v7635_v15 = vadd.f32 %v16090_v13, %v7634_v45  ;;  %v16186_v54 = vpop.permute.xlu1 %8756 }
 0x974   :  { %v7688_v60 = vsub.f32 0.0, %v7640_v55 }
 0x975   :  { %v7687_v2 = vsub.f32 0.0, %v7635_v15 }
 0x976   :  { %v7707_v32 = vmul.f32 1.442695, %v7688_v60  ;;  %v16188_v12 = vpop.permute.xlu0 %8928  ;;  %v10137_v34 = vpop.f32.mrb[74].mxu0 }
 0x977   :  { %v11323_v33 = vpop.eup %11322  ;;  %v7705_v50 = vmul.f32 1.442695, %v7687_v2  ;;  %v16190_v20 = vpop.permute.xlu1 %8812  ;;  %v7650_v47 = vadd.f32 %v10137_v34, %v16090_v13 }
 0x978   :  { %v11325_v38 = vpop.eup %11324  ;;  %7756 = vst.msk [vmem:[%s16581_s13 + $0x18] sm:$0xff] %vm941_vm0, %v11323_v33  ;;  %11326 = vpow2.f32 %v7707_v32  ;;  %v7644_v35 = vpop.f32.mrb[75].mxu0 }
 0x979   :  { %7755 = vst.msk [vmem:[%s16581_s13 + $0x10] sm:$0xff] %vm941_vm0, %v11325_v38  ;;  %11328 = vpow2.f32 %v7705_v50  ;;  %v7645_v11 = vadd.f32 %v16090_v13, %v7644_v35  ;;  %v7690_v46 = vsub.f32 0.0, %v7650_v47 }
 0x97a   :  { %v7886_v61 = vpop.permute.xlu0 %7885  ;;  %v10140_v26 = vpop.f32.mrb[76].mxu0 }
 0x97b   :  { %v7689_v9 = vsub.f32 0.0, %v7645_v11  ;;  %v7832_v28 = vpop.permute.xlu1 %7831  ;;  %v7711_v24 = vmul.f32 1.442695, %v7690_v46  ;;  %v7660_v31 = vadd.f32 %v10140_v26, %v16090_v13  ;;  %v7654_v10 = vpop.f32.mrb[77].mxu0 }
 0x97c   :  { %v7918_v8 = vsel %vm1695_vm4, %v7832_v28, %v16153_v14  ;;  %v7655_v6 = vadd.f32 %v16090_v13, %v7654_v10 }
 0x97d   :  { %v7709_v43 = vmul.f32 1.442695, %v7689_v9  ;;  %11330 = vpow2.f32 %v7711_v24  ;;  %v7692_v0 = vsub.f32 0.0, %v7660_v31  ;;  %v7932_v41 = vsel %vm2916_vm7, %v7918_v8, %v7832_v28 }
 0x97e   :  { %v16206_v57 = vpop.permute.xlu0 %8760  ;;  %v7691_v37 = vsub.f32 0.0, %v7655_v6  ;;  %v7946_v60 = vsel %vm1125_vm3, %v7932_v41, %v16153_v14 }
 0x97f   :  { %11332 = vpow2.f32 %v7709_v43  ;;  %v7830_v59 = vpop.permute.xlu1 %7829  ;;  %v7715_v30 = vmul.f32 1.442695, %v7692_v0 }
 0x980   :  { %v7917_v48 = vsel %vm1695_vm4, %v7830_v59, %v7886_v61  ;;  %v10143_v52 = vpop.f32.mrb[78].mxu0  ;;  %v7713_v1 = vmul.f32 1.442695, %v7691_v37 }
 0x981   :  { %v7931_v4 = vsel %vm2916_vm7, %v7917_v48, %v7830_v59  ;;  %v7670_v19 = vadd.f32 %v10143_v52, %v16090_v13  ;;  %v7664_v16 = vpop.f32.mrb[79].mxu0  ;;  %11334 = vpow2.f32 %v7715_v30 }
 0x982   :  { %v11327_v56 = vpop.eup %11326  ;;  %v7665_v23 = vadd.f32 %v16090_v13, %v7664_v16  ;;  %v16213_v42 = vpop.permute.xlu0 %8816  ;;  %v7945_v7 = vsel %vm1125_vm3, %v7931_v4, %v7886_v61  ;;  %11336 = vpow2.f32 %v7713_v1 }
 0x983   :  { %v11329_v40 = vpop.eup %11328  ;;  %v7730_v55 = vadd.f32 1.0, %v11327_v56  ;;  %v7694_v45 = vsub.f32 0.0, %v7670_v19  ;;  %v8343_v15 = vpop.permute.xlu1 %8342  ;;  %10178 = vmatprep.mubr.msk.f32.mxu0 %vm2973_vm8, %v7945_v7 }
 0x984   :  { %v7729_v2 = vadd.f32 1.0, %v11329_v40  ;;  %v7693_v32 = vsub.f32 0.0, %v7665_v23  ;;  %v8375_v33 = vsel %vm2916_vm7, %v16135_v29, %v8343_v15  ;;  %10179 = vmatmul.mubr.msk.f32.gmra.mrb[92].mxu0 %vm2973_vm8, %v7946_v60 }
 0x985   :  { %11338 = vrcp.f32 %v7730_v55  ;;  %v7719_v50 = vmul.f32 1.442695, %v7694_v45  ;;  %v8389_v34 = vsel %vm1125_vm3, %v8375_v33, %v8343_v15  ;;  %v10146_v38 = vpop.f32.mrb[80].mxu0 }
 0x986   :  { %11340 = vrcp.f32 %v7729_v2  ;;  %v7717_v47 = vmul.f32 1.442695, %v7693_v32  ;;  %v7680_v35 = vadd.f32 %v10146_v38, %v16090_v13  ;;  %10213 = vmatmul.mubr.msk.f32.gmra.mrb[66].mxu1 %vm2973_vm8, %v8389_v34  ;;  %v16225_v11 = vpop.permute.xlu0 %7891  ;;  %v7674_v14 = vpop.f32.mrb[81].mxu0  ;;  %v8960_v38 = vsel %vm1695_vm4, %v16206_v57, %v16213_v42 }
 0x987   :  { %11342 = vpow2.f32 %v7719_v50  ;;  %v8289_v46 = vpop.permute.xlu1 %8288  ;;  %v7675_v29 = vadd.f32 %v16090_v13, %v7674_v14  ;;  %v11331_v61 = vpop.eup %11330  ;;  %v8974_v42 = vsel %vm2916_vm7, %v8960_v38, %v16183_v21 }
 0x988   :  { %11344 = vpow2.f32 %v7717_v47  ;;  %v7696_v9 = vsub.f32 0.0, %v7680_v35  ;;  %v8376_v28 = vsel %vm2916_vm7, %v8289_v46, %v16159_v39  ;;  %v7732_v24 = vadd.f32 1.0, %v11331_v61 }
 0x989   :  { %v11333_v26 = vpop.eup %11332  ;;  %v7695_v31 = vsub.f32 0.0, %v7675_v29  ;;  %v8390_v10 = vsel %vm1125_vm3, %v8376_v28, %v16159_v39 }
 0x98a   :  { %v7731_v43 = vadd.f32 1.0, %v11333_v26  ;;  %v7723_v8 = vmul.f32 1.442695, %v7696_v9  ;;  %10215 = vmatprep.mubr.msk.f32.mxu1 %vm2973_vm8, %v8390_v10  ;;  %v8349_v6 = vpop.permute.xlu0 %8348  ;;  %11346 = vrcp.f32 %v7732_v24 }
 0x98b   :  { %v7721_v0 = vmul.f32 1.442695, %v7695_v31  ;;  %v7836_v37 = vpop.permute.xlu1 %7835  ;;  %v11335_v59 = vpop.eup %11334 }
 0x98c   :  { %11348 = vrcp.f32 %v7731_v43  ;;  %v11337_v41 = vpop.eup %11336  ;;  %v7734_v30 = vadd.f32 1.0, %v11335_v59  ;;  %v7920_v29 = vsel %vm1695_vm4, %v7836_v37, %v16225_v11  ;;  %v8988_v43 = vsel %vm1125_vm3, %v8974_v42, %v16188_v12 }
 0x98d   :  { %11350 = vpow2.f32 %v7723_v8  ;;  %v7733_v48 = vadd.f32 1.0, %v11337_v41  ;;  %v7934_v21 = vsel %vm2916_vm7, %v7920_v29, %v7836_v37 }
 0x98e   :  { %11352 = vpow2.f32 %v7721_v0  ;;  %v8295_v52 = vpop.permute.xlu0 %8294  ;;  %v7948_v0 = vsel %vm1125_vm3, %v7934_v21, %v16225_v11  ;;  %v8970_v11 = vsel %vm2916_vm7, %v16142_v62, %v15869_v5  ;;  %v8958_v5 = vsel %vm1695_vm4, %v16186_v54, %v16190_v20 }
 0x98f   :  { %v11339_v1 = vpop.eup %11338  ;;  %11354 = vrcp.f32 %v7734_v30  ;;  %v7834_v4 = vpop.permute.xlu1 %7833  ;;  %v8961_v30 = vsel %vm1695_vm4, %v16173_v63, %v16177_v3 }
 0x990   :  { %v11341_v39 = vpop.eup %11340  ;;  %7758 = vst.msk [vmem:[%s16581_s13 + $0x28] sm:$0xff] %vm941_vm0, %v11339_v1  ;;  %11356 = vrcp.f32 %v7733_v48 }
 0x991   :  { %v11343_v19 = vpop.eup %11342  ;;  %7757 = vst.msk [vmem:[%s16581_s13 + $0x20] sm:$0xff] %vm941_vm0, %v11341_v39 }
 0x992   :  { %v11345_v16 = vpop.eup %11344  ;;  %v7736_v56 = vadd.f32 1.0, %v11343_v19  ;;  %v16241_v23 = vpop.permute.xlu0 %8766 }
 0x993   :  { %v7735_v7 = vadd.f32 1.0, %v11345_v16  ;;  %v16243_v40 = vpop.permute.xlu1 %8868 }
 0x994   :  { %11358 = vrcp.f32 %v7736_v56  ;;  %v11347_v55 = vpop.eup %11346 }
 0x995   :  { %11360 = vrcp.f32 %v7735_v7  ;;  %7760 = vst.msk [vmem:[%s16581_s13 + $0x38] sm:$0xff] %vm941_vm0, %v11347_v55 }
 0x996   :  { %v11349_v45 = vpop.eup %11348  ;;  %v16249_v15 = vpop.permute.xlu0 %8822 }
 0x997   :  { %v11351_v60 = vpop.eup %11350  ;;  %7759 = vst.msk [vmem:[%s16581_s13 + $0x30] sm:$0xff] %vm941_vm0, %v11349_v45  ;;  %v8347_v2 = vpop.permute.xlu1 %8346 }
 0x998   :  { %v11353_v32 = vpop.eup %11352  ;;  %v7738_v33 = vadd.f32 1.0, %v11351_v60  ;;  %v8377_v50 = vsel %vm2916_vm7, %v16164_v27, %v8347_v2  ;;  %v8379_v27 = vsel %vm2916_vm7, %v8295_v52, %v15864_v22 }
 0x999   :  { %v11355_v34 = vpop.eup %11354  ;;  %v7737_v47 = vadd.f32 1.0, %v11353_v32  ;;  %v8391_v35 = vsel %vm1125_vm3, %v8377_v50, %v8347_v2  ;;  %v8393_v24 = vsel %vm1125_vm3, %v8379_v27, %v15864_v22 }
 0x99a   :  { %v11357_v14 = vpop.eup %11356  ;;  %7762 = vst.msk [vmem:[%s16581_s13 + $0x48] sm:$0xff] %vm941_vm0, %v11355_v34  ;;  %11362 = vrcp.f32 %v7738_v33  ;;  %10216 = vmatmul.mubr.msk.f32.gmra.mrb[68].mxu1 %vm2973_vm8, %v8391_v35  ;;  %v8877_v46 = vpop.permute.xlu0 %8876 }
 0x99b   :  { %7761 = vst.msk [vmem:[%s16581_s13 + $0x40] sm:$0xff] %vm941_vm0, %v11357_v14  ;;  %11364 = vrcp.f32 %v7737_v47  ;;  %v8293_v57 = vpop.permute.xlu1 %8292 }
 0x99c   :  { %v8378_v61 = vsel %vm2916_vm7, %v8293_v57, %v8349_v6 }
 0x99d   :  { %v8392_v9 = vsel %vm1125_vm3, %v8378_v61, %v8349_v6 }
 0x99e   :  { %v11359_v28 = vpop.eup %11358  ;;  %10218 = vmatprep.mubr.msk.f32.mxu1 %vm2973_vm8, %v8392_v9  ;;  %v7890_v26 = vpop.permute.xlu0 %7889 }
 0x99f   :  { %v11361_v31 = vpop.eup %11360  ;;  %7764 = vst.msk [vmem:[%s16581_s13 + $0x58] sm:$0xff] %vm941_vm0, %v11359_v28  ;;  %v7919_v10 = vsel %vm1695_vm4, %v7834_v4, %v7890_v26  ;;  %10219 = vmatmul.mubr.msk.f32.gmra.mrb[70].mxu1 %vm2973_vm8, %v8393_v24  ;;  %v8871_v41 = vpop.permute.xlu1 %8870 }
 0x9a0   :  { %7763 = vst.msk [vmem:[%s16581_s13 + $0x50] sm:$0xff] %vm941_vm0, %v11361_v31  ;;  %v7933_v22 = vsel %vm2916_vm7, %v7919_v10, %v7834_v4  ;;  %10252 = vmatprep.mubr.msk.f32.mxu1 %vm2973_vm8, %v8988_v43  ;;  %v8963_v4 = vsel %vm1695_vm4, %v16241_v23, %v16249_v15 }
 0x9a1   :  { %v7947_v8 = vsel %vm1125_vm3, %v7933_v22, %v7890_v26 }
 0x9a2   :  { %v8879_v6 = vpop.permute.xlu0 %8878  ;;  %10181 = vmatprep.mubr.msk.f32.mxu0 %vm2973_vm8, %v7947_v8 }
 0x9a3   :  { %10182 = vmatmul.mubr.msk.f32.gmra.mrb[94].mxu0 %vm2973_vm8, %v7948_v0  ;;  %v8925_v48 = vpop.permute.xlu1 %8924  ;;  %v8977_v39 = vsel %vm2916_vm7, %v8963_v4, %v8879_v6 }
 0x9a4   :  { %v11363_v12 = vpop.eup %11362  ;;  %10237 = vmatprep.mubr.msk.f32.mxu0 %vm2973_vm8, %v15933_v44 }
 0x9a5   :  { %v11365_v37 = vpop.eup %11364  ;;  %7766 = vst.msk [vmem:[%s16581_s13 + $0x68] sm:$0xff] %vm941_vm0, %v11363_v12 }
 0x9a6   :  { %7765 = vst.msk [vmem:[%s16581_s13 + $0x60] sm:$0xff] %vm941_vm0, %v11365_v37  ;;  %v8933_v59 = vpop.permute.xlu0 %8932 }
 0x9a7   :  { %10238 = vmatmul.mubr.msk.f32.vlgmr.msra.gmra.mrb[96].mxu0 %vm2973_vm8, %v15982_v51  ;;  %v8927_v3 = vpop.permute.xlu1 %8926 }
 0x9a8   :  { %10240 = vmatprep.mubr.msk.f32.mxu0 %vm2973_vm8, %v16001_v17 }
 0x9aa   :  { %v8875_v44 = vpop.permute.xlu0 %8874 }
 0x9ab   :  { %10241 = vmatmul.mubr.msk.f32.gmra.mrb[98].mxu0 %vm2973_vm8, %v16072_v18  ;;  %v8975_v51 = vsel %vm2916_vm7, %v8961_v30, %v8875_v44  ;;  %v8984_v18 = vsel %vm1125_vm3, %v8970_v11, %v15875_v53  ;;  %v8973_v53 = vsel %vm2916_vm7, %v16156_v36, %v8871_v41 }
 0x9ac   :  { %10243 = vmatprep.mubr.msk.f32.mxu0 %vm2973_vm8, %v16100_v25  ;;  %v8972_v25 = vsel %vm2916_vm7, %v8958_v5, %v16243_v40 }
 0x9ad   :  { %v8986_v63 = vsel %vm1125_vm3, %v8972_v25, %v8925_v48 }
 0x9ae   :  { %v8931_v52 = vpop.permute.xlu0 %8930 }
 0x9af   :  { %v8989_v17 = vsel %vm1125_vm3, %v8975_v51, %v8931_v52  ;;  %10244 = vmatmul.mubr.msk.f32.gmra.mrb[100].mxu0 %vm2973_vm8, %v16120_v49  ;;  %v8987_v49 = vsel %vm1125_vm3, %v8973_v53, %v8927_v3 }
 0x9b0   :  { %10246 = vmatprep.mubr.msk.f32.mxu0 %vm2973_vm8, %v8984_v18  ;;  %10253 = vmatmul.mubr.msk.f32.vlgmr.msra.gmra.mrb[72].mxu1 %vm2973_vm8, %v8989_v17 }
 0x9b2   :  { %v8765_v62 = vpop.permute.xlu0 %8764 }
 0x9b3   :  { %10247 = vmatmul.mubr.msk.f32.gmra.mrb[102].mxu0 %vm2973_vm8, %v16180_v58 }
 0x9b4   :  { %10249 = vmatprep.mubr.msk.f32.mxu0 %vm2973_vm8, %v8986_v63 }
 0x9b6   :  { %v8821_v1 = vpop.permute.xlu0 %8820 }
 0x9b7   :  { %v8962_v54 = vsel %vm1695_vm4, %v8765_v62, %v8821_v1  ;;  %10250 = vmatmul.mubr.msk.f32.gmra.mrb[104].mxu0 %vm2973_vm8, %v8987_v49 }
 0x9b8   :  { %v8976_v20 = vsel %vm2916_vm7, %v8962_v54, %v8877_v46 }
 0x9b9   :  { %v8990_v58 = vsel %vm1125_vm3, %v8976_v20, %v8933_v59 }
 0x9ba   :  { %v8935_v19 = vpop.permute.xlu0 %8934  ;;  %10255 = vmatprep.mubr.msk.f32.mxu1 %vm2973_vm8, %v8990_v58 }
 0x9bb   :  { %v8991_v36 = vsel %vm1125_vm3, %v8977_v39, %v8935_v19 }
 0x9bc   :  { %10256 = vmatmul.mubr.msk.f32.gmra.mrb[74].mxu1 %vm2973_vm8, %v8991_v36 }
 0x9be   :  { %v10165_v16 = vpop.f32.mrb[82].mxu0 }
 0x9bf   :  { %v8078_v56 = vadd.f32 %v10165_v16, %v16090_v13  ;;  %v8072_v7 = vpop.f32.mrb[83].mxu0 }
 0x9c0   :  { %v8073_v40 = vadd.f32 %v16090_v13, %v8072_v7 }
 0x9c1   :  { %v8142_v55 = vsub.f32 0.0, %v8078_v56 }
 0x9c2   :  { %v8141_v45 = vsub.f32 0.0, %v8073_v40 }
 0x9c3   :  { %v8157_v23 = vmul.f32 1.442695, %v8142_v55 }
 0x9c4   :  { %v8155_v15 = vmul.f32 1.442695, %v8141_v45 }
 0x9c5   :  { %11366 = vpow2.f32 %v8157_v23 }
 0x9c6   :  { %11368 = vpow2.f32 %v8155_v15 }
 0x9cf   :  { %v11367_v60 = vpop.eup %11366 }
 0x9d0   :  { %v11369_v2 = vpop.eup %11368  ;;  %v8184_v32 = vadd.f32 1.0, %v11367_v60 }
 0x9d1   :  { %v8183_v33 = vadd.f32 1.0, %v11369_v2 }
 0x9d2   :  { %11370 = vrcp.f32 %v8184_v32 }
 0x9d3   :  { %11372 = vrcp.f32 %v8183_v33 }
 0x9dc   :  { %v11371_v50 = vpop.eup %11370  ;;  %v10202_v34 = vpop.f32.mrb[58].mxu1 }
 0x9dd   :  { %v11373_v38 = vpop.eup %11372  ;;  %8212 = vst.msk [vmem:[%s16581_s13 + $0x78] sm:$0xff] %vm941_vm0, %v11371_v50  ;;  %v8523_v47 = vadd.f32 %v10202_v34, %v16090_v13  ;;  %v8517_v35 = vpop.f32.mrb[59].mxu1 }
 0x9de   :  { %8211 = vst.msk [vmem:[%s16581_s13 + $0x70] sm:$0xff] %vm941_vm0, %v11373_v38  ;;  %v8518_v14 = vadd.f32 %v16090_v13, %v8517_v35 }
 0x9df   :  { %v8587_v46 = vsub.f32 0.0, %v8523_v47 }
 0x9e0   :  { %v8586_v27 = vsub.f32 0.0, %v8518_v14 }
 0x9e1   :  { %v8602_v57 = vmul.f32 1.442695, %v8587_v46 }
 0x9e2   :  { %v8600_v42 = vmul.f32 1.442695, %v8586_v27 }
 0x9e3   :  { %v10168_v29 = vpop.f32.mrb[84].mxu0  ;;  %11374 = vpow2.f32 %v8602_v57 }
 0x9e4   :  { %v8088_v61 = vadd.f32 %v10168_v29, %v16090_v13  ;;  %v8082_v9 = vpop.f32.mrb[85].mxu0  ;;  %11376 = vpow2.f32 %v8600_v42 }
 0x9e5   :  { %v8083_v28 = vadd.f32 %v16090_v13, %v8082_v9 }
 0x9e6   :  { %v8144_v26 = vsub.f32 0.0, %v8088_v61 }
 0x9e7   :  { %v8143_v24 = vsub.f32 0.0, %v8083_v28 }
 0x9e8   :  { %v8161_v31 = vmul.f32 1.442695, %v8144_v26 }
 0x9e9   :  { %v8159_v21 = vmul.f32 1.442695, %v8143_v24 }
 0x9ea   :  { %11378 = vpow2.f32 %v8161_v31 }
 0x9eb   :  { %11380 = vpow2.f32 %v8159_v21 }
 0x9ed   :  { %v11375_v10 = vpop.eup %11374 }
 0x9ee   :  { %v11377_v43 = vpop.eup %11376  ;;  %v8629_v22 = vadd.f32 1.0, %v11375_v10 }
 0x9ef   :  { %v8628_v8 = vadd.f32 1.0, %v11377_v43 }
 0x9f0   :  { %11382 = vrcp.f32 %v8629_v22 }
 0x9f1   :  { %11384 = vrcp.f32 %v8628_v8 }
 0x9f4   :  { %v11379_v6 = vpop.eup %11378 }
 0x9f5   :  { %v11381_v0 = vpop.eup %11380  ;;  %v8186_v12 = vadd.f32 1.0, %v11379_v6 }
 0x9f6   :  { %v8185_v37 = vadd.f32 1.0, %v11381_v0 }
 0x9f7   :  { %11386 = vrcp.f32 %v8186_v12 }
 0x9f8   :  { %11388 = vrcp.f32 %v8185_v37 }
 0x9fa   :  { %v11383_v59 = vpop.eup %11382 }
 0x9fb   :  { %v11385_v41 = vpop.eup %11384  ;;  %8657 = vst.msk [vmem:[%s16581_s13 + $0xe8] sm:$0xff] %vm941_vm0, %v11383_v59 }
 0x9fc   :  { %8656 = vst.msk [vmem:[%s16581_s13 + $0xe0] sm:$0xff] %vm941_vm0, %v11385_v41  ;;  %v10205_v44 = vpop.f32.mrb[60].mxu1 }
 0x9fd   :  { %v8533_v11 = vadd.f32 %v10205_v44, %v16090_v13  ;;  %v8527_v30 = vpop.f32.mrb[61].mxu1 }
 0x9fe   :  { %v8528_v48 = vadd.f32 %v16090_v13, %v8527_v30 }
 0x9ff   :  { %v8589_v51 = vsub.f32 0.0, %v8533_v11 }
 0xa00   :  { %v8588_v17 = vsub.f32 0.0, %v8528_v48 }
 0xa01   :  { %v11387_v52 = vpop.eup %11386  ;;  %v8606_v5 = vmul.f32 1.442695, %v8589_v51 }
 0xa02   :  { %v11389_v18 = vpop.eup %11388  ;;  %8214 = vst.msk [vmem:[%s16581_s13 + $0x88] sm:$0xff] %vm941_vm0, %v11387_v52  ;;  %v8604_v25 = vmul.f32 1.442695, %v8588_v17 }
 0xa03   :  { %8213 = vst.msk [vmem:[%s16581_s13 + $0x80] sm:$0xff] %vm941_vm0, %v11389_v18  ;;  %11390 = vpow2.f32 %v8606_v5  ;;  %v10171_v62 = vpop.f32.mrb[86].mxu0 }
 0xa04   :  { %11392 = vpow2.f32 %v8604_v25  ;;  %v8098_v63 = vadd.f32 %v10171_v62, %v16090_v13  ;;  %v8092_v3 = vpop.f32.mrb[87].mxu0 }
 0xa05   :  { %v8093_v53 = vadd.f32 %v16090_v13, %v8092_v3 }
 0xa06   :  { %v8146_v49 = vsub.f32 0.0, %v8098_v63 }
 0xa07   :  { %v8145_v1 = vsub.f32 0.0, %v8093_v53 }
 0xa08   :  { %v8165_v54 = vmul.f32 1.442695, %v8146_v49 }
 0xa09   :  { %v8163_v20 = vmul.f32 1.442695, %v8145_v1 }
 0xa0a   :  { %11394 = vpow2.f32 %v8165_v54 }
 0xa0b   :  { %11396 = vpow2.f32 %v8163_v20 }
 0xa0d   :  { %v11391_v4 = vpop.eup %11390 }
 0xa0e   :  { %v11393_v58 = vpop.eup %11392  ;;  %v8631_v39 = vadd.f32 1.0, %v11391_v4 }
 0xa0f   :  { %v8630_v19 = vadd.f32 1.0, %v11393_v58 }
 0xa10   :  { %11398 = vrcp.f32 %v8631_v39 }
 0xa11   :  { %11400 = vrcp.f32 %v8630_v19 }
 0xa14   :  { %v11395_v36 = vpop.eup %11394  ;;  %v10208_v16 = vpop.f32.mrb[62].mxu1 }
 0xa15   :  { %v11397_v56 = vpop.eup %11396  ;;  %v8188_v7 = vadd.f32 1.0, %v11395_v36  ;;  %v8543_v40 = vadd.f32 %v10208_v16, %v16090_v13  ;;  %v8537_v55 = vpop.f32.mrb[63].mxu1 }
 0xa16   :  { %v8187_v45 = vadd.f32 1.0, %v11397_v56  ;;  %v8538_v23 = vadd.f32 %v16090_v13, %v8537_v55 }
 0xa17   :  { %11402 = vrcp.f32 %v8188_v7  ;;  %v8591_v15 = vsub.f32 0.0, %v8543_v40 }
 0xa18   :  { %11404 = vrcp.f32 %v8187_v45  ;;  %v8590_v60 = vsub.f32 0.0, %v8538_v23 }
 0xa19   :  { %v8610_v2 = vmul.f32 1.442695, %v8591_v15 }
 0xa1a   :  { %v11399_v32 = vpop.eup %11398  ;;  %v8608_v33 = vmul.f32 1.442695, %v8590_v60 }
 0xa1b   :  { %v11401_v50 = vpop.eup %11400  ;;  %8659 = vst.msk [vmem:[%s16581_s13 + $0xf8] sm:$0xff] %vm941_vm0, %v11399_v32  ;;  %11406 = vpow2.f32 %v8610_v2 }
 0xa1c   :  { %8658 = vst.msk [vmem:[%s16581_s13 + $0xf0] sm:$0xff] %vm941_vm0, %v11401_v50  ;;  %11408 = vpow2.f32 %v8608_v33 }
 0xa1f   :  { %v10174_v34 = vpop.f32.mrb[88].mxu0 }
 0xa20   :  { %v8108_v38 = vadd.f32 %v10174_v34, %v16090_v13  ;;  %v8102_v47 = vpop.f32.mrb[89].mxu0 }
 0xa21   :  { %v11403_v35 = vpop.eup %11402  ;;  %v8103_v14 = vadd.f32 %v16090_v13, %v8102_v47 }
 0xa22   :  { %v11405_v46 = vpop.eup %11404  ;;  %8216 = vst.msk [vmem:[%s16581_s13 + $0x98] sm:$0xff] %vm941_vm0, %v11403_v35  ;;  %v8148_v27 = vsub.f32 0.0, %v8108_v38 }
 0xa23   :  { %8215 = vst.msk [vmem:[%s16581_s13 + $0x90] sm:$0xff] %vm941_vm0, %v11405_v46  ;;  %v8147_v57 = vsub.f32 0.0, %v8103_v14 }
 0xa24   :  { %v8169_v42 = vmul.f32 1.442695, %v8148_v27 }
 0xa25   :  { %v11407_v29 = vpop.eup %11406  ;;  %v8167_v61 = vmul.f32 1.442695, %v8147_v57 }
 0xa26   :  { %v11409_v9 = vpop.eup %11408  ;;  %v8633_v28 = vadd.f32 1.0, %v11407_v29  ;;  %11410 = vpow2.f32 %v8169_v42 }
 0xa27   :  { %v8632_v26 = vadd.f32 1.0, %v11409_v9  ;;  %11412 = vpow2.f32 %v8167_v61  ;;  %v11540_v9 = vld [vmem:[%s16580_s12] ss:$0 sm:$0xff] }
 0xa28   :  { %11414 = vrcp.f32 %v8633_v28 }
 0xa29   :  { %11416 = vrcp.f32 %v8632_v26 }
 0xa30   :  { %v11411_v24 = vpop.eup %11410  ;;  %v10211_v31 = vpop.f32.mrb[64].mxu1 }
 0xa31   :  { %v11413_v21 = vpop.eup %11412  ;;  %v8190_v10 = vadd.f32 1.0, %v11411_v24  ;;  %v8553_v43 = vadd.f32 %v10211_v31, %v16090_v13  ;;  %v8547_v22 = vpop.f32.mrb[65].mxu1 }
 0xa32   :  { %v11415_v8 = vpop.eup %11414  ;;  %v8189_v6 = vadd.f32 1.0, %v11413_v21  ;;  %v8548_v0 = vadd.f32 %v16090_v13, %v8547_v22 }
 0xa33   :  { %v11417_v12 = vpop.eup %11416  ;;  %8661 = vst.msk [vmem:[%s16581_s13 + $0x108] sm:$0xff] %vm941_vm0, %v11415_v8  ;;  %11418 = vrcp.f32 %v8190_v10  ;;  %v8593_v37 = vsub.f32 0.0, %v8553_v43 }
 0xa34   :  { %8660 = vst.msk [vmem:[%s16581_s13 + $0x100] sm:$0xff] %vm941_vm0, %v11417_v12  ;;  %11420 = vrcp.f32 %v8189_v6  ;;  %v8592_v59 = vsub.f32 0.0, %v8548_v0 }
 0xa35   :  { %v8614_v41 = vmul.f32 1.442695, %v8593_v37 }
 0xa36   :  { %v8612_v44 = vmul.f32 1.442695, %v8592_v59 }
 0xa37   :  { %11422 = vpow2.f32 %v8614_v41 }
 0xa38   :  { %11424 = vpow2.f32 %v8612_v44 }
 0xa3b   :  { %v10177_v11 = vpop.f32.mrb[90].mxu0 }
 0xa3c   :  { %v8118_v30 = vadd.f32 %v10177_v11, %v16090_v13  ;;  %v8112_v48 = vpop.f32.mrb[91].mxu0 }
 0xa3d   :  { %v11419_v51 = vpop.eup %11418  ;;  %v8113_v52 = vadd.f32 %v16090_v13, %v8112_v48 }
 0xa3e   :  { %v11421_v17 = vpop.eup %11420  ;;  %8218 = vst.msk [vmem:[%s16581_s13 + $0xa8] sm:$0xff] %vm941_vm0, %v11419_v51  ;;  %v8150_v18 = vsub.f32 0.0, %v8118_v30 }
 0xa3f   :  { %8217 = vst.msk [vmem:[%s16581_s13 + $0xa0] sm:$0xff] %vm941_vm0, %v11421_v17  ;;  %v8149_v5 = vsub.f32 0.0, %v8113_v52 }
 0xa40   :  { %v8173_v25 = vmul.f32 1.442695, %v8150_v18 }
 0xa41   :  { %v11423_v62 = vpop.eup %11422  ;;  %v8171_v63 = vmul.f32 1.442695, %v8149_v5  ;;  %v16468_v5 = vld [vmem:[%s16580_s12] ss:$0 sm:$0xff] }
 0xa42   :  { %v11425_v3 = vpop.eup %11424  ;;  %v8635_v53 = vadd.f32 1.0, %v11423_v62  ;;  %11426 = vpow2.f32 %v8173_v25 }
 0xa43   :  { %v8634_v49 = vadd.f32 1.0, %v11425_v3  ;;  %11428 = vpow2.f32 %v8171_v63 }
 0xa44   :  { %11430 = vrcp.f32 %v8635_v53 }
 0xa45   :  { %11432 = vrcp.f32 %v8634_v49 }
 0xa4c   :  { %v11427_v1 = vpop.eup %11426 }
 0xa4d   :  { %v11429_v54 = vpop.eup %11428  ;;  %v8192_v20 = vadd.f32 1.0, %v11427_v1 }
 0xa4e   :  { %v11431_v4 = vpop.eup %11430  ;;  %v8191_v58 = vadd.f32 1.0, %v11429_v54 }
 0xa4f   :  { %v11433_v39 = vpop.eup %11432  ;;  %8663 = vst.msk [vmem:[%s16581_s13 + $0x118] sm:$0xff] %vm941_vm0, %v11431_v4  ;;  %11434 = vrcp.f32 %v8192_v20 }
 0xa50   :  { %8662 = vst.msk [vmem:[%s16581_s13 + $0x110] sm:$0xff] %vm941_vm0, %v11433_v39  ;;  %11436 = vrcp.f32 %v8191_v58 }
 0xa57   :  { %v10180_v19 = vpop.f32.mrb[92].mxu0 }
 0xa58   :  { %v8128_v36 = vadd.f32 %v10180_v19, %v16090_v13  ;;  %v8122_v16 = vpop.f32.mrb[93].mxu0 }
 0xa59   :  { %v11435_v56 = vpop.eup %11434  ;;  %v8123_v7 = vadd.f32 %v16090_v13, %v8122_v16  ;;  %v10214_v40 = vpop.f32.mrb[66].mxu1 }
 0xa5a   :  { %v11437_v55 = vpop.eup %11436  ;;  %8220 = vst.msk [vmem:[%s16581_s13 + $0xb8] sm:$0xff] %vm941_vm0, %v11435_v56  ;;  %v8152_v45 = vsub.f32 0.0, %v8128_v36  ;;  %v8563_v23 = vadd.f32 %v10214_v40, %v16090_v13  ;;  %v8557_v15 = vpop.f32.mrb[67].mxu1 }
 0xa5b   :  { %8219 = vst.msk [vmem:[%s16581_s13 + $0xb0] sm:$0xff] %vm941_vm0, %v11437_v55  ;;  %v8151_v60 = vsub.f32 0.0, %v8123_v7  ;;  %v8558_v2 = vadd.f32 %v16090_v13, %v8557_v15 }
 0xa5c   :  { %v8177_v32 = vmul.f32 1.442695, %v8152_v45  ;;  %v8595_v33 = vsub.f32 0.0, %v8563_v23 }
 0xa5d   :  { %v8175_v50 = vmul.f32 1.442695, %v8151_v60  ;;  %v8594_v34 = vsub.f32 0.0, %v8558_v2 }
 0xa5e   :  { %11438 = vpow2.f32 %v8177_v32  ;;  %v8618_v38 = vmul.f32 1.442695, %v8595_v33 }
 0xa5f   :  { %11440 = vpow2.f32 %v8175_v50  ;;  %v8616_v47 = vmul.f32 1.442695, %v8594_v34 }
 0xa60   :  { %11442 = vpow2.f32 %v8618_v38 }
 0xa61   :  { %11444 = vpow2.f32 %v8616_v47 }
 0xa68   :  { %v11439_v35 = vpop.eup %11438 }
 0xa69   :  { %v11441_v14 = vpop.eup %11440  ;;  %v8194_v46 = vadd.f32 1.0, %v11439_v35 }
 0xa6a   :  { %v11443_v27 = vpop.eup %11442  ;;  %v8193_v57 = vadd.f32 1.0, %v11441_v14 }
 0xa6b   :  { %v11445_v42 = vpop.eup %11444  ;;  %11446 = vrcp.f32 %v8194_v46  ;;  %v8637_v29 = vadd.f32 1.0, %v11443_v27 }
 0xa6c   :  { %11448 = vrcp.f32 %v8193_v57  ;;  %v8636_v13 = vadd.f32 1.0, %v11445_v42 }
 0xa6d   :  { %11450 = vrcp.f32 %v8637_v29  ;;  %v10217_v61 = vpop.f32.mrb[68].mxu1 }
 0xa6e   :  { %11452 = vrcp.f32 %v8636_v13  ;;  %v8573_v28 = vadd.f32 %v11540_v9, %v10217_v61  ;;  %v8567_v26 = vpop.f32.mrb[69].mxu1 }
 0xa6f   :  { %v8568_v24 = vadd.f32 %v11540_v9, %v8567_v26 }
 0xa70   :  { %v8597_v31 = vsub.f32 0.0, %v8573_v28 }
 0xa71   :  { %v8596_v21 = vsub.f32 0.0, %v8568_v24 }
 0xa72   :  { %v8622_v10 = vmul.f32 1.442695, %v8597_v31  ;;  %v10220_v43 = vpop.f32.mrb[70].mxu1 }
 0xa73   :  { %v8620_v22 = vmul.f32 1.442695, %v8596_v21  ;;  %v8583_v8 = vadd.f32 %v11540_v9, %v10220_v43  ;;  %v8577_v6 = vpop.f32.mrb[71].mxu1 }
 0xa74   :  { %11454 = vpow2.f32 %v8622_v10  ;;  %v8578_v0 = vadd.f32 %v11540_v9, %v8577_v6 }
 0xa75   :  { %v11447_v12 = vpop.eup %11446  ;;  %11456 = vpow2.f32 %v8620_v22  ;;  %v8599_v37 = vsub.f32 0.0, %v8583_v8 }
 0xa76   :  { %v11449_v59 = vpop.eup %11448  ;;  %8222 = vst.msk [vmem:[%s16581_s13 + $0xc8] sm:$0xff] %vm941_vm0, %v11447_v12  ;;  %v8598_v41 = vsub.f32 0.0, %v8578_v0  ;;  %v10183_v44 = vpop.f32.mrb[94].mxu0 }
 0xa77   :  { %v11451_v11 = vpop.eup %11450  ;;  %8221 = vst.msk [vmem:[%s16581_s13 + $0xc0] sm:$0xff] %vm941_vm0, %v11449_v59  ;;  %v8626_v30 = vmul.f32 1.442695, %v8599_v37  ;;  %v8138_v48 = vadd.f32 %v11540_v9, %v10183_v44  ;;  %v8132_v51 = vpop.f32.mrb[95].mxu0 }
 0xa78   :  { %v11453_v52 = vpop.eup %11452  ;;  %8665 = vst.msk [vmem:[%s16581_s13 + $0x128] sm:$0xff] %vm941_vm0, %v11451_v11  ;;  %v8624_v17 = vmul.f32 1.442695, %v8598_v41  ;;  %v8133_v18 = vadd.f32 %v11540_v9, %v8132_v51 }
 0xa79   :  { %8664 = vst.msk [vmem:[%s16581_s13 + $0x120] sm:$0xff] %vm941_vm0, %v11453_v52  ;;  %11458 = vpow2.f32 %v8626_v30  ;;  %v8154_v25 = vsub.f32 0.0, %v8138_v48 }
 0xa7a   :  { %11460 = vpow2.f32 %v8624_v17  ;;  %v8153_v62 = vsub.f32 0.0, %v8133_v18  ;;  %v10239_v63 = vpop.f32.mrb[96].mxu0 }
 0xa7b   :  { %v8181_v3 = vmul.f32 1.442695, %v8154_v25  ;;  %v9121_v53 = vadd.f32 %v10239_v63, %v16468_v5  ;;  %v9115_v49 = vpop.f32.mrb[97].mxu0 }
 0xa7c   :  { %v8179_v1 = vmul.f32 1.442695, %v8153_v62  ;;  %v9116_v54 = vadd.f32 %v16468_v5, %v9115_v49 }
 0xa7d   :  { %11462 = vpow2.f32 %v8181_v3  ;;  %v9185_v20 = vsub.f32 0.0, %v9121_v53 }
 0xa7e   :  { %v11455_v4 = vpop.eup %11454  ;;  %11464 = vpow2.f32 %v8179_v1  ;;  %v9184_v58 = vsub.f32 0.0, %v9116_v54  ;;  %v10242_v39 = vpop.f32.mrb[98].mxu0 }
 0xa7f   :  { %v11457_v19 = vpop.eup %11456  ;;  %v8639_v36 = vadd.f32 1.0, %v11455_v4  ;;  %v9200_v16 = vmul.f32 1.442695, %v9185_v20  ;;  %v9131_v56 = vadd.f32 %v10242_v39, %v16468_v5  ;;  %v9125_v7 = vpop.f32.mrb[99].mxu0 }
 0xa80   :  { %v8638_v40 = vadd.f32 1.0, %v11457_v19  ;;  %v9198_v55 = vmul.f32 1.442695, %v9184_v58  ;;  %v9126_v45 = vadd.f32 %v16468_v5, %v9125_v7 }
 0xa81   :  { %11466 = vrcp.f32 %v8639_v36  ;;  %v9187_v23 = vsub.f32 0.0, %v9131_v56 }
 0xa82   :  { %11468 = vrcp.f32 %v8638_v40  ;;  %v9186_v15 = vsub.f32 0.0, %v9126_v45  ;;  %v10245_v60 = vpop.f32.mrb[100].mxu0 }
 0xa83   :  { %v11459_v2 = vpop.eup %11458  ;;  %11470 = vpow2.f32 %v9200_v16  ;;  %v9204_v32 = vmul.f32 1.442695, %v9187_v23  ;;  %v9141_v33 = vadd.f32 %v10245_v60, %v16468_v5  ;;  %v9135_v50 = vpop.f32.mrb[101].mxu0 }
 0xa84   :  { %v10254_v34 = vpop.f32.mrb[72].mxu1  ;;  %v11461_v38 = vpop.eup %11460  ;;  %v8641_v47 = vadd.f32 1.0, %v11459_v2  ;;  %11472 = vpow2.f32 %v9198_v55  ;;  %v9202_v35 = vmul.f32 1.442695, %v9186_v15  ;;  %v9136_v14 = vadd.f32 %v16468_v5, %v9135_v50 }
 0xa85   :  { %v9165_v46 = vpop.f32.mrb[73].mxu1  ;;  %v8640_v27 = vadd.f32 1.0, %v11461_v38  ;;  %11474 = vpow2.f32 %v9204_v32  ;;  %v9189_v57 = vsub.f32 0.0, %v9141_v33  ;;  %v9171_v42 = vadd.f32 %v10254_v34, %v16468_v5 }
 0xa86   :  { %11476 = vrcp.f32 %v8641_v47  ;;  %v9188_v29 = vsub.f32 0.0, %v9136_v14  ;;  %v9166_v13 = vadd.f32 %v16468_v5, %v9165_v46  ;;  %v10248_v61 = vpop.f32.mrb[102].mxu0 }
 0xa87   :  { %v11463_v9 = vpop.eup %11462  ;;  %11478 = vrcp.f32 %v8640_v27  ;;  %v9208_v28 = vmul.f32 1.442695, %v9189_v57  ;;  %v9195_v26 = vsub.f32 0.0, %v9171_v42  ;;  %v9151_v24 = vadd.f32 %v10248_v61, %v16468_v5  ;;  %v9145_v31 = vpop.f32.mrb[103].mxu0 }
 0xa88   :  { %v11465_v21 = vpop.eup %11464  ;;  %v8196_v10 = vadd.f32 1.0, %v11463_v9  ;;  %11480 = vpow2.f32 %v9202_v35  ;;  %v9206_v43 = vmul.f32 1.442695, %v9188_v29  ;;  %v9194_v22 = vsub.f32 0.0, %v9166_v13 }
 0xa89   :  { %v8195_v8 = vadd.f32 1.0, %v11465_v21  ;;  %11482 = vpow2.f32 %v9208_v28  ;;  %v9220_v6 = vmul.f32 1.442695, %v9195_v26  ;;  %v9191_v0 = vsub.f32 0.0, %v9151_v24 }
 0xa8a   :  { %11484 = vrcp.f32 %v8196_v10  ;;  %v9218_v12 = vmul.f32 1.442695, %v9194_v22  ;;  %v9146_v37 = vadd.f32 %v16468_v5, %v9145_v31  ;;  %v10251_v59 = vpop.f32.mrb[104].mxu0 }
 0xa8b   :  { %v11467_v41 = vpop.eup %11466  ;;  %11486 = vrcp.f32 %v8195_v8  ;;  %v9212_v44 = vmul.f32 1.442695, %v9191_v0  ;;  %v9161_v11 = vadd.f32 %v10251_v59, %v16468_v5  ;;  %v9155_v30 = vpop.f32.mrb[105].mxu0 }
 0xa8c   :  { %v11469_v48 = vpop.eup %11468  ;;  %8667 = vst.msk [vmem:[%s16581_s13 + $0x138] sm:$0xff] %vm941_vm0, %v11467_v41  ;;  %11488 = vpow2.f32 %v9206_v43  ;;  %v9190_v51 = vsub.f32 0.0, %v9146_v37  ;;  %v9156_v52 = vadd.f32 %v16468_v5, %v9155_v30 }
 0xa8d   :  { %v11471_v17 = vpop.eup %11470  ;;  %8666 = vst.msk [vmem:[%s16581_s13 + $0x130] sm:$0xff] %vm941_vm0, %v11469_v48  ;;  %11490 = vpow2.f32 %v9220_v6  ;;  %v9193_v18 = vsub.f32 0.0, %v9161_v11 }
 0xa8e   :  { %v11473_v25 = vpop.eup %11472  ;;  %v9227_v62 = vadd.f32 1.0, %v11471_v17  ;;  %11492 = vpow2.f32 %v9218_v12  ;;  %v9210_v53 = vmul.f32 1.442695, %v9190_v51  ;;  %v9192_v49 = vsub.f32 0.0, %v9156_v52 }
 0xa8f   :  { %v11475_v63 = vpop.eup %11474  ;;  %v9226_v3 = vadd.f32 1.0, %v11473_v25  ;;  %11494 = vpow2.f32 %v9212_v44  ;;  %v10257_v1 = vpop.f32.mrb[74].mxu1  ;;  %v9216_v4 = vmul.f32 1.442695, %v9193_v18 }
 0xa90   :  { %v11477_v54 = vpop.eup %11476  ;;  %11496 = vrcp.f32 %v9227_v62  ;;  %v9229_v20 = vadd.f32 1.0, %v11475_v63  ;;  %v9181_v58 = vadd.f32 %v10257_v1, %v16468_v5  ;;  %v9175_v39 = vpop.f32.mrb[75].mxu1  ;;  %v9214_v55 = vmul.f32 1.442695, %v9192_v49 }
 0xa91   :  { %v11479_v19 = vpop.eup %11478  ;;  %8669 = vst.msk [vmem:[%s16581_s13 + $0x148] sm:$0xff] %vm941_vm0, %v11477_v54  ;;  %11498 = vrcp.f32 %v9226_v3  ;;  %v9176_v36 = vadd.f32 %v16468_v5, %v9175_v39 }
 0xa92   :  { %v11481_v16 = vpop.eup %11480  ;;  %8668 = vst.msk [vmem:[%s16581_s13 + $0x140] sm:$0xff] %vm941_vm0, %v11479_v19  ;;  %11500 = vrcp.f32 %v9229_v20  ;;  %v9197_v56 = vsub.f32 0.0, %v9181_v58 }
 0xa93   :  { %v11483_v7 = vpop.eup %11482  ;;  %v9228_v40 = vadd.f32 1.0, %v11481_v16  ;;  %11502 = vpow2.f32 %v9210_v53  ;;  %v9196_v5 = vsub.f32 0.0, %v9176_v36 }
 0xa94   :  { %v11485_v45 = vpop.eup %11484  ;;  %v9231_v23 = vadd.f32 1.0, %v11483_v7  ;;  %11504 = vpow2.f32 %v9216_v4  ;;  %v9224_v15 = vmul.f32 1.442695, %v9197_v56 }
 0xa95   :  { %v11487_v60 = vpop.eup %11486  ;;  %8224 = vst.msk [vmem:[%s16581_s13 + $0xd8] sm:$0xff] %vm941_vm0, %v11485_v45  ;;  %11506 = vrcp.f32 %v9228_v40  ;;  %v9222_v35 = vmul.f32 1.442695, %v9196_v5 }
 0xa96   :  { %v11489_v2 = vpop.eup %11488  ;;  %8223 = vst.msk [vmem:[%s16581_s13 + $0xd0] sm:$0xff] %vm941_vm0, %v11487_v60  ;;  %11508 = vrcp.f32 %v9231_v23 }
 0xa97   :  { %v11491_v32 = vpop.eup %11490  ;;  %v9230_v33 = vadd.f32 1.0, %v11489_v2  ;;  %11510 = vpow2.f32 %v9214_v55 }
 0xa98   :  { %v11493_v50 = vpop.eup %11492  ;;  %v9237_v34 = vadd.f32 1.0, %v11491_v32  ;;  %11512 = vpow2.f32 %v9224_v15 }
 0xa99   :  { %v11495_v38 = vpop.eup %11494  ;;  %11514 = vrcp.f32 %v9230_v33  ;;  %v9236_v47 = vadd.f32 1.0, %v11493_v50 }
 0xa9a   :  { %v11497_v14 = vpop.eup %11496  ;;  %11516 = vrcp.f32 %v9237_v34  ;;  %v9233_v46 = vadd.f32 1.0, %v11495_v38 }
 0xa9b   :  { %v11499_v27 = vpop.eup %11498  ;;  %9255 = vst.msk [vmem:[%s16581_s13 + $0x158] sm:$0xff] %vm941_vm0, %v11497_v14  ;;  %11518 = vrcp.f32 %v9236_v47 }
 0xa9c   :  { %v11501_v57 = vpop.eup %11500  ;;  %9254 = vst.msk [vmem:[%s16581_s13 + $0x150] sm:$0xff] %vm941_vm0, %v11499_v27  ;;  %11520 = vrcp.f32 %v9233_v46 }
 0xa9d   :  { %v11503_v42 = vpop.eup %11502  ;;  %9257 = vst.msk [vmem:[%s16581_s13 + $0x168] sm:$0xff] %vm941_vm0, %v11501_v57  ;;  %11522 = vpow2.f32 %v9222_v35 }
 0xa9e   :  { %v11505_v29 = vpop.eup %11504  ;;  %v9232_v13 = vadd.f32 1.0, %v11503_v42 }
 0xa9f   :  { %v11507_v61 = vpop.eup %11506  ;;  %v9235_v9 = vadd.f32 1.0, %v11505_v29 }
 0xaa0   :  { %v11509_v28 = vpop.eup %11508  ;;  %9256 = vst.msk [vmem:[%s16581_s13 + $0x160] sm:$0xff] %vm941_vm0, %v11507_v61  ;;  %11524 = vrcp.f32 %v9232_v13 }
 0xaa1   :  { %v11511_v26 = vpop.eup %11510  ;;  %9259 = vst.msk [vmem:[%s16581_s13 + $0x178] sm:$0xff] %vm941_vm0, %v11509_v28  ;;  %11526 = vrcp.f32 %v9235_v9 }
 0xaa2   :  { %v11513_v24 = vpop.eup %11512  ;;  %v9234_v31 = vadd.f32 1.0, %v11511_v26 }
 0xaa3   :  { %v11515_v21 = vpop.eup %11514  ;;  %v9239_v10 = vadd.f32 1.0, %v11513_v24 }
 0xaa4   :  { %v11517_v43 = vpop.eup %11516  ;;  %9258 = vst.msk [vmem:[%s16581_s13 + $0x170] sm:$0xff] %vm941_vm0, %v11515_v21  ;;  %11528 = vrcp.f32 %v9234_v31 }
 0xaa5   :  { %v11519_v22 = vpop.eup %11518  ;;  %9265 = vst.msk [vmem:[%s16581_s13 + $0x1a8] sm:$0xff] %vm941_vm0, %v11517_v43  ;;  %11530 = vrcp.f32 %v9239_v10 }
 0xaa6   :  { %v11521_v8 = vpop.eup %11520  ;;  %9264 = vst.msk [vmem:[%s16581_s13 + $0x1a0] sm:$0xff] %vm941_vm0, %v11519_v22 }
 0xaa7   :  { %v11523_v6 = vpop.eup %11522  ;;  %9261 = vst.msk [vmem:[%s16581_s13 + $0x188] sm:$0xff] %vm941_vm0, %v11521_v8 }
 0xaa8   :  { %v9238_v0 = vadd.f32 1.0, %v11523_v6 }
 0xaaa   :  { %v11525_v12 = vpop.eup %11524  ;;  %11532 = vrcp.f32 %v9238_v0 }
 0xaab   :  { %v11527_v37 = vpop.eup %11526  ;;  %9260 = vst.msk [vmem:[%s16581_s13 + $0x180] sm:$0xff] %vm941_vm0, %v11525_v12 }
 0xaac   :  { %9263 = vst.msk [vmem:[%s16581_s13 + $0x198] sm:$0xff] %vm941_vm0, %v11527_v37 }
 0xaae   :  { %v11529_v59 = vpop.eup %11528 }
 0xaaf   :  { %v11531_v41 = vpop.eup %11530  ;;  %9262 = vst.msk [vmem:[%s16581_s13 + $0x190] sm:$0xff] %vm941_vm0, %v11529_v59 }
 0xab0   :  { %9267 = vst.msk [vmem:[%s16581_s13 + $0x1b8] sm:$0xff] %vm941_vm0, %v11531_v41 }
 0xab4   :  { %v11533_v44 = vpop.eup %11532 }
 0xab5   :  { %9266 = vst.msk [vmem:[%s16581_s13 + $0x1b0] sm:$0xff] %vm941_vm0, %v11533_v44 }

</bundles_post_ra>
